<compile_context>
chip_gen: v5e
topology: v5e:2x2
jax: 0.10.0
libtpu: 0.0.40
codegen_flags: <defaults>
</compile_context>

<pallas_src>
from functools import partial

import jax
import jax.numpy as jnp
from jax.experimental import pallas as pl
from jax.experimental.pallas import tpu as pltpu


def _round_up(x, m):
    return ((x + m - 1) // m) * m


_VMEM = pl.BlockSpec(memory_space=pltpu.MemorySpace.VMEM)
_SMEM = pl.BlockSpec(memory_space=pltpu.MemorySpace.SMEM)


# ----------------------------------------------------------------------------
# Encoder: the full LSTM recurrence in one kernel invocation (no grid).
# The per-timestep input projection (X @ W_ih + b) is hoisted by the wrapper.
# ----------------------------------------------------------------------------
def _encoder_kernel(xproj_ref, w_hh_ref, enc_out_ref, h_out_ref, c_out_ref,
                    *, hp):
    S, Bp, _ = xproj_ref.shape
    w_hh = w_hh_ref[...]                                          # (Hp, 4Hp)
    h = jnp.zeros((Bp, hp), jnp.float32)
    c = jnp.zeros((Bp, hp), jnp.float32)
    for s in range(S):                     # static unroll (short, known S)
        gates = xproj_ref[s] + jnp.dot(h, w_hh,
                                       preferred_element_type=jnp.float32)
        i = jax.nn.sigmoid(gates[:, 0 * hp:1 * hp])   # lane-aligned free views
        f = jax.nn.sigmoid(gates[:, 1 * hp:2 * hp])
        g = jnp.tanh(gates[:, 2 * hp:3 * hp])
        o = jax.nn.sigmoid(gates[:, 3 * hp:4 * hp])
        c = f * c + i * g
        h = o * jnp.tanh(c)
        enc_out_ref[s] = h                 # (Bp, Hp) store, layout-matched
    h_out_ref[...] = h                     # final state written once
    c_out_ref[...] = c


def encoder_forward(x_proj, w_hh_p):
    S, Bp, G = x_proj.shape
    Hp = G // 4
    return pl.pallas_call(
        partial(_encoder_kernel, hp=Hp),
        out_shape=(jax.ShapeDtypeStruct((S, Bp, Hp), jnp.float32),
                   jax.ShapeDtypeStruct((Bp, Hp), jnp.float32),
                   jax.ShapeDtypeStruct((Bp, Hp), jnp.float32)),
        in_specs=[_VMEM, _VMEM],
        out_specs=(_VMEM, _VMEM, _VMEM),
    )(x_proj, w_hh_p)


# ----------------------------------------------------------------------------
# Decoder: attention + LSTM cell + output projection + greedy argmax +
# teacher-forcing select, all T-1 steps inside one kernel invocation.
# ----------------------------------------------------------------------------
def _decoder_kernel(flags_ref, tch_ref, enc_ref, mask_ref, emb_ref,
                    w_gates_ref, b_ref, fc_w_ref, fc_b_ref, h0_ref, c0_ref,
                    logits_ref, cat_sc, *, vocab_size):
    Tm1, Bp, Ep = tch_ref.shape
    Hp = h0_ref.shape[1]
    Vp = fc_b_ref.shape[1]

    enc = enc_ref[...]                                   # (S, Bp, Hp) resident
    src_valid = mask_ref[...] > 0.5                      # (S, Bp)

    # hoisted argmax helpers (loop-invariant)
    lane = jax.lax.broadcasted_iota(jnp.int32, (Bp, Vp), 1)
    lane_f = lane.astype(jnp.float32)
    vocab_valid = lane < vocab_size

    h = h0_ref[...]
    c = c0_ref[...]
    prev_emb = jnp.zeros((Bp, Ep), jnp.float32)

    for t in range(Tm1):                                 # static unroll
        # teacher forcing: forced token embedding or previous greedy argmax
        emb_in = jnp.where(flags_ref[t] > 0, tch_ref[t], prev_emb)

        # ---- dot-product attention over encoder outputs --------------------
        scores = jnp.sum(enc * h[None, :, :], axis=-1)   # (S, Bp), lane-reduce
        scores = jnp.where(src_valid, scores, jnp.float32(-1e9))
        scores = scores - jnp.max(scores, axis=0, keepdims=True)
        e = jnp.exp(scores)
        attn = e / jnp.sum(e, axis=0, keepdims=True)     # softmax over S
        ctx = jnp.sum(attn[:, :, None] * enc, axis=0)    # (Bp, Hp)

        # ---- fused LSTM gates: ONE [emb|ctx|h] @ W_gates matmul -------------
        cat_sc[:, 0:Ep] = emb_in
        cat_sc[:, Ep:Ep + Hp] = ctx
        cat_sc[:, Ep + Hp:Ep + 2 * Hp] = h
        gates = (jnp.dot(cat_sc[...], w_gates_ref[...],
                         preferred_element_type=jnp.float32) + b_ref[...])
        i = jax.nn.sigmoid(gates[:, 0 * Hp:1 * Hp])
        f = jax.nn.sigmoid(gates[:, 1 * Hp:2 * Hp])
        g = jnp.tanh(gates[:, 2 * Hp:3 * Hp])
        o = jax.nn.sigmoid(gates[:, 3 * Hp:4 * Hp])
        c = f * c + i * g
        h = o * jnp.tanh(c)

        # ---- fused output projection: ONE [emb|ctx|h_new] @ fc_w matmul -----
        cat_sc[:, Ep + Hp:Ep + 2 * Hp] = h               # swap in new hidden
        logits = (jnp.dot(cat_sc[...], fc_w_ref[...],
                          preferred_element_type=jnp.float32) + fc_b_ref[...])
        logits_ref[t] = logits                           # (Bp, Vp) lane-dense

        # ---- greedy argmax -> embedding of best guess for the next step -----
        masked = jnp.where(vocab_valid, logits, jnp.float32(-1e30))
        mx = jnp.max(masked, axis=-1, keepdims=True)
        cand = jnp.where(masked == mx, lane_f, jnp.float32(1e9))
        best = jnp.min(cand, axis=-1, keepdims=True)     # first argmax index
        onehot = (lane_f == best).astype(jnp.float32)
        prev_emb = jnp.dot(onehot, emb_ref[...],
                           preferred_element_type=jnp.float32)


def decoder_forward(tf_flags, teacher_emb, enc_out, mask_sb, emb_pad,
                    w_gates, b_gates, fc_w, fc_b, h0, c0, vocab_size):
    Tm1, Bp, Ep = teacher_emb.shape
    Hp = h0.shape[1]
    Vp = fc_b.shape[1]
    return pl.pallas_call(
        partial(_decoder_kernel, vocab_size=vocab_size),
        out_shape=jax.ShapeDtypeStruct((Tm1, Bp, Vp), jnp.float32),
        in_specs=[_SMEM] + [_VMEM] * 10,
        out_specs=_VMEM,
        scratch_shapes=[pltpu.VMEM((Bp, Ep + 2 * Hp), jnp.float32)],
    )(tf_flags, teacher_emb, enc_out, mask_sb, emb_pad,
      w_gates, b_gates, fc_w, fc_b, h0, c0)


# ----------------------------------------------------------------------------
# Parameter containers; padded / fused weights are built ONCE at init.
# ----------------------------------------------------------------------------
def _init(key, shape, scale=0.1):
    return scale * jax.random.normal(key, shape, dtype=jnp.float32)


def _pad2(x, rows, cols):
    return jnp.pad(x, ((0, rows - x.shape[0]), (0, cols - x.shape[1])))


def _pad_gate_cols(w, h, hp):
    # (R, 4h) -> (R, 4hp): each gate's h columns land at a 128-aligned offset.
    return jnp.concatenate(
        [jnp.pad(w[:, k * h:(k + 1) * h], ((0, 0), (0, hp - h)))
         for k in range(4)], axis=1)


class Encoder:
    def __init__(self, key, vocab_size, emb_size, hidden_size):
        k = jax.random.split(key, 4)
        self.hidden_size = hidden_size
        self.params = dict(
            embedding=_init(k[0], (vocab_size, emb_size)),
            w_ih=_init(k[1], (emb_size, 4 * hidden_size)),
            w_hh=_init(k[2], (hidden_size, 4 * hidden_size)),
            b=_init(k[3], (1, 4 * hidden_size)),
        )


class Decoder:
    def __init__(self, key, vocab_size, emb_size, hidden_size):
        k = jax.random.split(key, 6)
        self.input_size = vocab_size          # matches PyTorch decoder.input_size
        self.hidden_size = hidden_size
        self.params = dict(
            embedding=_init(k[0], (vocab_size, emb_size)),
            w_ih=_init(k[1], (emb_size + hidden_size, 4 * hidden_size)),
            w_hh=_init(k[2], (hidden_size, 4 * hidden_size)),
            b=_init(k[3], (1, 4 * hidden_size)),
            fc_w=_init(k[4], (2 * hidden_size + emb_size, vocab_size)),
            fc_b=_init(k[5], (1, vocab_size)),
        )


@partial(jax.jit, static_argnums=(13,))
def _seq2seq_forward(enc_emb, enc_w_ih_p, enc_b_p, enc_w_hh_p,
                     dec_emb_p, dec_w_gates, dec_b_p, dec_fc_w, dec_fc_b,
                     source_sequence, source_mask, target_sequence, tf_flags,
                     vocab_size):
    S, B = source_sequence.shape
    T = target_sequence.shape[0]
    Hp4 = enc_w_hh_p.shape[1]
    Bp = _round_up(B, 8)

    # pad batch dim; padded mask columns stay valid (sliced off at the end)
    src_p = jnp.pad(source_sequence, ((0, 0), (0, Bp - B)))
    tgt_p = jnp.pad(target_sequence, ((0, 0), (0, Bp - B)))
    mask_p = jnp.pad(source_mask, ((0, 0), (0, Bp - B)), constant_values=1.0)

    # hoisted encoder input projection for all timesteps (plain XLA matmul)
    E_enc = enc_emb.shape[1]
    emb_src = jnp.take(enc_emb, src_p, axis=0)                      # (S,Bp,E)
    x_proj = (emb_src.reshape(S * Bp, E_enc) @ enc_w_ih_p
              + enc_b_p).reshape(S, Bp, Hp4)

    enc_out, h0, c0 = encoder_forward(x_proj, enc_w_hh_p)           # (S,Bp,Hp)

    # teacher-forced input embeddings for steps 1..T-1 (token target[t-1])
    teacher_emb = jnp.take(dec_emb_p, tgt_p[:T - 1], axis=0)        # (T-1,Bp,Ep)

    logits_pad = decoder_forward(tf_flags, teacher_emb, enc_out, mask_p,
                                 dec_emb_p, dec_w_gates, dec_b_p,
                                 dec_fc_w, dec_fc_b, h0, c0, vocab_size)

    logits = logits_pad[:, :B, :vocab_size]
    return jnp.concatenate(
        [jnp.zeros((1, B, vocab_size), jnp.float32), logits], axis=0)


class Seq2Seq:
    def __init__(self, encoder, decoder):
        self.encoder = encoder
        self.decoder = decoder
        enc_p, dec_p = encoder.params, decoder.params
        H = encoder.hidden_size
        E_dec = dec_p["embedding"].shape[1]
        V = decoder.input_size
        Hp = _round_up(H, 128)
        Ep = _round_up(E_dec, 128)
        Vp = _round_up(V, 128)
        self.V = V

        # --- encoder weights: per-gate lane-aligned padding (done once) ------
        self.enc_embedding = enc_p["embedding"]
        self.enc_w_ih_p = _pad_gate_cols(enc_p["w_ih"], H, Hp)        # (E,4Hp)
        self.enc_b_p = _pad_gate_cols(enc_p["b"], H, Hp)              # (1,4Hp)
        self.enc_w_hh_p = _pad2(_pad_gate_cols(enc_p["w_hh"], H, Hp),
                                Hp, 4 * Hp)                           # (Hp,4Hp)

        # --- decoder weights: fused [emb|ctx|h] gate matmul + fused FC -------
        w_ih = dec_p["w_ih"]
        w_emb = _pad2(_pad_gate_cols(w_ih[:E_dec], H, Hp), Ep, 4 * Hp)
        w_ctx = _pad2(_pad_gate_cols(w_ih[E_dec:], H, Hp), Hp, 4 * Hp)
        w_hh = _pad2(_pad_gate_cols(dec_p["w_hh"], H, Hp), Hp, 4 * Hp)
        self.dec_w_gates = jnp.concatenate([w_emb, w_ctx, w_hh], axis=0)
        self.dec_b_p = _pad_gate_cols(dec_p["b"], H, Hp)              # (1,4Hp)

        fc_w = dec_p["fc_w"]                   # logical rows: [h | ctx | emb]
        fc_h = _pad2(fc_w[:H], Hp, Vp)
        fc_c = _pad2(fc_w[H:2 * H], Hp, Vp)
        fc_e = _pad2(fc_w[2 * H:], Ep, Vp)
        # reorder rows to match the in-kernel [emb | ctx | h] concat layout
        self.dec_fc_w = jnp.concatenate([fc_e, fc_c, fc_h], axis=0)   # (Ep+2Hp,Vp)
        self.dec_fc_b = _pad2(dec_p["fc_b"], 1, Vp)
        self.dec_emb_p = _pad2(dec_p["embedding"], Vp, Ep)            # (Vp,Ep)

    def forward(self, source_sequence, source_mask, target_sequence,
                tf_key=jax.random.PRNGKey(42)):
        T = target_sequence.shape[0]
        B = source_sequence.shape[1]
        if T <= 1:
            return jnp.zeros((T, B, self.V), jnp.float32)
        # deterministic, host-sync-free replacement for `random.random() < 0.5`
        draws = jax.random.uniform(tf_key, (T,))
        tf_flags = (draws < 0.5).astype(jnp.int32).at[0].set(1)[:T - 1]
        return _seq2seq_forward(
            self.enc_embedding, self.enc_w_ih_p, self.enc_b_p, self.enc_w_hh_p,
            self.dec_emb_p, self.dec_w_gates, self.dec_b_p,
            self.dec_fc_w, self.dec_fc_b,
            source_sequence, source_mask, target_sequence, tf_flags, self.V)

    # TODO(synk): predict() detokenization (vocab dict lookups / ' '.join) is
    # host-side string processing with no Pallas equivalent; not implemented.


# ----------------------------------------------------------------------------
# main
# ----------------------------------------------------------------------------
if __name__ == "__main__":
    key = jax.random.PRNGKey(0)
    k_enc, k_dec, k_src, k_tgt = jax.random.split(key, 4)

    SRC_LEN, TGT_LEN, BATCH = 8, 6, 2
    EMB, HIDDEN = 16, 32
    SRC_VOCAB, TGT_VOCAB = 20, 24

    encoder = Encoder(k_enc, SRC_VOCAB, EMB, HIDDEN)
    decoder = Decoder(k_dec, TGT_VOCAB, EMB, HIDDEN)
    model = Seq2Seq(encoder, decoder)

    source_sequence = jax.random.randint(
        k_src, (SRC_LEN, BATCH), 0, SRC_VOCAB, dtype=jnp.int32)
    target_sequence = jax.random.randint(
        k_tgt, (TGT_LEN, BATCH), 0, TGT_VOCAB, dtype=jnp.int32)
    # mask: first sequence full length, second padded after position 5
    source_mask = jnp.ones((SRC_LEN, BATCH), jnp.float32)
    source_mask = source_mask.at[5:, 1].set(0.0)

    outputs = model.forward(source_sequence, source_mask, target_sequence)
    outputs = jax.block_until_ready(outputs)

    assert outputs.shape == (TGT_LEN, BATCH, TGT_VOCAB)
    assert bool(jnp.all(outputs[0] == 0.0))            # outputs[0] stays zero
    assert bool(jnp.all(jnp.isfinite(outputs)))
    print("KERNEL_OK")
</pallas_src>

<mosaic_0001>
module attributes {stable_mosaic.version = 11 : i64} {
  func.func @_encoder_kernel(%arg0: memref<8x8x512xf32, #tpu.memory_space<vmem>>, %arg1: memref<128x512xf32, #tpu.memory_space<vmem>>, %arg2: memref<8x8x128xf32, #tpu.memory_space<vmem>>, %arg3: memref<8x128xf32, #tpu.memory_space<vmem>>, %arg4: memref<8x128xf32, #tpu.memory_space<vmem>>) attributes {dimension_semantics = [], scalar_prefetch = 0 : i64, scratch_operands = 0 : i64, tpu.core_type = #tpu.core_type<tc>} {
    %c0 = arith.constant 0 : index
    %c0_0 = arith.constant 0 : index
    %0 = vector.load %arg1[%c0, %c0_0] : memref<128x512xf32, #tpu.memory_space<vmem>>, vector<128x512xf32>
    %cst = arith.constant 0.000000e+00 : f32
    %1 = vector.broadcast %cst : f32 to vector<8x128xf32>
    %cst_1 = arith.constant 0.000000e+00 : f32
    %2 = vector.broadcast %cst_1 : f32 to vector<8x128xf32>
    %c0_2 = arith.constant 0 : index
    %c0_3 = arith.constant 0 : index
    %c0_4 = arith.constant 0 : index
    %3 = vector.load %arg0[%c0_2, %c0_3, %c0_4] : memref<8x8x512xf32, #tpu.memory_space<vmem>>, vector<1x8x512xf32>
    %4 = vector.shape_cast %3 : vector<1x8x512xf32> to vector<8x512xf32>
    %cst_5 = arith.constant dense<0.000000e+00> : vector<8x512xf32>
    %5 = tpu.matmul %1, %0, %cst_5 {dimension_numbers = #tpu.dot_dimension_numbers<[1], [0], [0], [1], [0, 0, 1, 1], [], []>} : vector<8x128xf32>, vector<128x512xf32>, vector<8x512xf32> -> vector<8x512xf32>
    %6 = arith.addf %4, %5 : vector<8x512xf32>
    %7 = vector.extract_strided_slice %6 {offsets = [0, 0], sizes = [8, 128], strides = [1, 1]} : vector<8x512xf32> to vector<8x128xf32>
    %8 = arith.negf %7 : vector<8x128xf32>
    %9 = math.exp %8 : vector<8x128xf32>
    %cst_6 = arith.constant 1.000000e+00 : f32
    %10 = vector.broadcast %cst_6 : f32 to vector<8x128xf32>
    %11 = arith.addf %10, %9 : vector<8x128xf32>
    %12 = arith.divf %10, %11 : vector<8x128xf32>
    %13 = vector.extract_strided_slice %6 {offsets = [0, 128], sizes = [8, 128], strides = [1, 1]} : vector<8x512xf32> to vector<8x128xf32>
    %14 = arith.negf %13 : vector<8x128xf32>
    %15 = math.exp %14 : vector<8x128xf32>
    %cst_7 = arith.constant 1.000000e+00 : f32
    %16 = vector.broadcast %cst_7 : f32 to vector<8x128xf32>
    %17 = arith.addf %16, %15 : vector<8x128xf32>
    %18 = arith.divf %16, %17 : vector<8x128xf32>
    %19 = vector.extract_strided_slice %6 {offsets = [0, 256], sizes = [8, 128], strides = [1, 1]} : vector<8x512xf32> to vector<8x128xf32>
    %20 = math.tanh %19 : vector<8x128xf32>
    %21 = vector.extract_strided_slice %6 {offsets = [0, 384], sizes = [8, 128], strides = [1, 1]} : vector<8x512xf32> to vector<8x128xf32>
    %22 = arith.negf %21 : vector<8x128xf32>
    %23 = math.exp %22 : vector<8x128xf32>
    %cst_8 = arith.constant 1.000000e+00 : f32
    %24 = vector.broadcast %cst_8 : f32 to vector<8x128xf32>
    %25 = arith.addf %24, %23 : vector<8x128xf32>
    %26 = arith.divf %24, %25 : vector<8x128xf32>
    %27 = arith.mulf %18, %2 : vector<8x128xf32>
    %28 = arith.mulf %12, %20 : vector<8x128xf32>
    %29 = arith.addf %27, %28 : vector<8x128xf32>
    %30 = math.tanh %29 : vector<8x128xf32>
    %31 = arith.mulf %26, %30 : vector<8x128xf32>
    %c0_9 = arith.constant 0 : index
    %c0_10 = arith.constant 0 : index
    %c0_11 = arith.constant 0 : index
    %32 = vector.load %arg2[%c0_9, %c0_10, %c0_11] : memref<8x8x128xf32, #tpu.memory_space<vmem>>, vector<1x8x128xf32>
    %33 = vector.shape_cast %32 : vector<1x8x128xf32> to vector<8x128xf32>
    %34 = vector.shape_cast %31 : vector<8x128xf32> to vector<1x8x128xf32>
    tpu.vector_store %arg2[%c0_9, %c0_10, %c0_11], %34 {strides = array<i32>} : memref<8x8x128xf32, #tpu.memory_space<vmem>>, vector<1x8x128xf32>,
    %c1 = arith.constant 1 : index
    %c0_12 = arith.constant 0 : index
    %c0_13 = arith.constant 0 : index
    %35 = vector.load %arg0[%c1, %c0_12, %c0_13] : memref<8x8x512xf32, #tpu.memory_space<vmem>>, vector<1x8x512xf32>
    %36 = vector.shape_cast %35 : vector<1x8x512xf32> to vector<8x512xf32>
    %cst_14 = arith.constant dense<0.000000e+00> : vector<8x512xf32>
    %37 = tpu.matmul %31, %0, %cst_14 {dimension_numbers = #tpu.dot_dimension_numbers<[1], [0], [0], [1], [0, 0, 1, 1], [], []>} : vector<8x128xf32>, vector<128x512xf32>, vector<8x512xf32> -> vector<8x512xf32>
    %38 = arith.addf %36, %37 : vector<8x512xf32>
    %39 = vector.extract_strided_slice %38 {offsets = [0, 0], sizes = [8, 128], strides = [1, 1]} : vector<8x512xf32> to vector<8x128xf32>
    %40 = arith.negf %39 : vector<8x128xf32>
    %41 = math.exp %40 : vector<8x128xf32>
    %cst_15 = arith.constant 1.000000e+00 : f32
    %42 = vector.broadcast %cst_15 : f32 to vector<8x128xf32>
    %43 = arith.addf %42, %41 : vector<8x128xf32>
    %44 = arith.divf %42, %43 : vector<8x128xf32>
    %45 = vector.extract_strided_slice %38 {offsets = [0, 128], sizes = [8, 128], strides = [1, 1]} : vector<8x512xf32> to vector<8x128xf32>
    %46 = arith.negf %45 : vector<8x128xf32>
    %47 = math.exp %46 : vector<8x128xf32>
    %cst_16 = arith.constant 1.000000e+00 : f32
    %48 = vector.broadcast %cst_16 : f32 to vector<8x128xf32>
    %49 = arith.addf %48, %47 : vector<8x128xf32>
    %50 = arith.divf %48, %49 : vector<8x128xf32>
    %51 = vector.extract_strided_slice %38 {offsets = [0, 256], sizes = [8, 128], strides = [1, 1]} : vector<8x512xf32> to vector<8x128xf32>
    %52 = math.tanh %51 : vector<8x128xf32>
    %53 = vector.extract_strided_slice %38 {offsets = [0, 384], sizes = [8, 128], strides = [1, 1]} : vector<8x512xf32> to vector<8x128xf32>
    %54 = arith.negf %53 : vector<8x128xf32>
    %55 = math.exp %54 : vector<8x128xf32>
    %cst_17 = arith.constant 1.000000e+00 : f32
    %56 = vector.broadcast %cst_17 : f32 to vector<8x128xf32>
    %57 = arith.addf %56, %55 : vector<8x128xf32>
    %58 = arith.divf %56, %57 : vector<8x128xf32>
    %59 = arith.mulf %50, %29 : vector<8x128xf32>
    %60 = arith.mulf %44, %52 : vector<8x128xf32>
    %61 = arith.addf %59, %60 : vector<8x128xf32>
    %62 = math.tanh %61 : vector<8x128xf32>
    %63 = arith.mulf %58, %62 : vector<8x128xf32>
    %c1_18 = arith.constant 1 : index
    %c0_19 = arith.constant 0 : index
    %c0_20 = arith.constant 0 : index
    %64 = vector.load %arg2[%c1_18, %c0_19, %c0_20] : memref<8x8x128xf32, #tpu.memory_space<vmem>>, vector<1x8x128xf32>
    %65 = vector.shape_cast %64 : vector<1x8x128xf32> to vector<8x128xf32>
    %66 = vector.shape_cast %63 : vector<8x128xf32> to vector<1x8x128xf32>
    tpu.vector_store %arg2[%c1_18, %c0_19, %c0_20], %66 {strides = array<i32>} : memref<8x8x128xf32, #tpu.memory_space<vmem>>, vector<1x8x128xf32>,
    %c2 = arith.constant 2 : index
    %c0_21 = arith.constant 0 : index
    %c0_22 = arith.constant 0 : index
    %67 = vector.load %arg0[%c2, %c0_21, %c0_22] : memref<8x8x512xf32, #tpu.memory_space<vmem>>, vector<1x8x512xf32>
    %68 = vector.shape_cast %67 : vector<1x8x512xf32> to vector<8x512xf32>
    %cst_23 = arith.constant dense<0.000000e+00> : vector<8x512xf32>
    %69 = tpu.matmul %63, %0, %cst_23 {dimension_numbers = #tpu.dot_dimension_numbers<[1], [0], [0], [1], [0, 0, 1, 1], [], []>} : vector<8x128xf32>, vector<128x512xf32>, vector<8x512xf32> -> vector<8x512xf32>
    %70 = arith.addf %68, %69 : vector<8x512xf32>
    %71 = vector.extract_strided_slice %70 {offsets = [0, 0], sizes = [8, 128], strides = [1, 1]} : vector<8x512xf32> to vector<8x128xf32>
    %72 = arith.negf %71 : vector<8x128xf32>
    %73 = math.exp %72 : vector<8x128xf32>
    %cst_24 = arith.constant 1.000000e+00 : f32
    %74 = vector.broadcast %cst_24 : f32 to vector<8x128xf32>
    %75 = arith.addf %74, %73 : vector<8x128xf32>
    %76 = arith.divf %74, %75 : vector<8x128xf32>
    %77 = vector.extract_strided_slice %70 {offsets = [0, 128], sizes = [8, 128], strides = [1, 1]} : vector<8x512xf32> to vector<8x128xf32>
    %78 = arith.negf %77 : vector<8x128xf32>
    %79 = math.exp %78 : vector<8x128xf32>
    %cst_25 = arith.constant 1.000000e+00 : f32
    %80 = vector.broadcast %cst_25 : f32 to vector<8x128xf32>
    %81 = arith.addf %80, %79 : vector<8x128xf32>
    %82 = arith.divf %80, %81 : vector<8x128xf32>
    %83 = vector.extract_strided_slice %70 {offsets = [0, 256], sizes = [8, 128], strides = [1, 1]} : vector<8x512xf32> to vector<8x128xf32>
    %84 = math.tanh %83 : vector<8x128xf32>
    %85 = vector.extract_strided_slice %70 {offsets = [0, 384], sizes = [8, 128], strides = [1, 1]} : vector<8x512xf32> to vector<8x128xf32>
    %86 = arith.negf %85 : vector<8x128xf32>
    %87 = math.exp %86 : vector<8x128xf32>
    %cst_26 = arith.constant 1.000000e+00 : f32
    %88 = vector.broadcast %cst_26 : f32 to vector<8x128xf32>
    %89 = arith.addf %88, %87 : vector<8x128xf32>
    %90 = arith.divf %88, %89 : vector<8x128xf32>
    %91 = arith.mulf %82, %61 : vector<8x128xf32>
    %92 = arith.mulf %76, %84 : vector<8x128xf32>
    %93 = arith.addf %91, %92 : vector<8x128xf32>
    %94 = math.tanh %93 : vector<8x128xf32>
    %95 = arith.mulf %90, %94 : vector<8x128xf32>
    %c2_27 = arith.constant 2 : index
    %c0_28 = arith.constant 0 : index
    %c0_29 = arith.constant 0 : index
    %96 = vector.load %arg2[%c2_27, %c0_28, %c0_29] : memref<8x8x128xf32, #tpu.memory_space<vmem>>, vector<1x8x128xf32>
    %97 = vector.shape_cast %96 : vector<1x8x128xf32> to vector<8x128xf32>
    %98 = vector.shape_cast %95 : vector<8x128xf32> to vector<1x8x128xf32>
    tpu.vector_store %arg2[%c2_27, %c0_28, %c0_29], %98 {strides = array<i32>} : memref<8x8x128xf32, #tpu.memory_space<vmem>>, vector<1x8x128xf32>,
    %c3 = arith.constant 3 : index
    %c0_30 = arith.constant 0 : index
    %c0_31 = arith.constant 0 : index
    %99 = vector.load %arg0[%c3, %c0_30, %c0_31] : memref<8x8x512xf32, #tpu.memory_space<vmem>>, vector<1x8x512xf32>
    %100 = vector.shape_cast %99 : vector<1x8x512xf32> to vector<8x512xf32>
    %cst_32 = arith.constant dense<0.000000e+00> : vector<8x512xf32>
    %101 = tpu.matmul %95, %0, %cst_32 {dimension_numbers = #tpu.dot_dimension_numbers<[1], [0], [0], [1], [0, 0, 1, 1], [], []>} : vector<8x128xf32>, vector<128x512xf32>, vector<8x512xf32> -> vector<8x512xf32>
    %102 = arith.addf %100, %101 : vector<8x512xf32>
    %103 = vector.extract_strided_slice %102 {offsets = [0, 0], sizes = [8, 128], strides = [1, 1]} : vector<8x512xf32> to vector<8x128xf32>
    %104 = arith.negf %103 : vector<8x128xf32>
    %105 = math.exp %104 : vector<8x128xf32>
    %cst_33 = arith.constant 1.000000e+00 : f32
    %106 = vector.broadcast %cst_33 : f32 to vector<8x128xf32>
    %107 = arith.addf %106, %105 : vector<8x128xf32>
    %108 = arith.divf %106, %107 : vector<8x128xf32>
    %109 = vector.extract_strided_slice %102 {offsets = [0, 128], sizes = [8, 128], strides = [1, 1]} : vector<8x512xf32> to vector<8x128xf32>
    %110 = arith.negf %109 : vector<8x128xf32>
    %111 = math.exp %110 : vector<8x128xf32>
    %cst_34 = arith.constant 1.000000e+00 : f32
    %112 = vector.broadcast %cst_34 : f32 to vector<8x128xf32>
    %113 = arith.addf %112, %111 : vector<8x128xf32>
    %114 = arith.divf %112, %113 : vector<8x128xf32>
    %115 = vector.extract_strided_slice %102 {offsets = [0, 256], sizes = [8, 128], strides = [1, 1]} : vector<8x512xf32> to vector<8x128xf32>
    %116 = math.tanh %115 : vector<8x128xf32>
    %117 = vector.extract_strided_slice %102 {offsets = [0, 384], sizes = [8, 128], strides = [1, 1]} : vector<8x512xf32> to vector<8x128xf32>
    %118 = arith.negf %117 : vector<8x128xf32>
    %119 = math.exp %118 : vector<8x128xf32>
    %cst_35 = arith.constant 1.000000e+00 : f32
    %120 = vector.broadcast %cst_35 : f32 to vector<8x128xf32>
    %121 = arith.addf %120, %119 : vector<8x128xf32>
    %122 = arith.divf %120, %121 : vector<8x128xf32>
    %123 = arith.mulf %114, %93 : vector<8x128xf32>
    %124 = arith.mulf %108, %116 : vector<8x128xf32>
    %125 = arith.addf %123, %124 : vector<8x128xf32>
    %126 = math.tanh %125 : vector<8x128xf32>
    %127 = arith.mulf %122, %126 : vector<8x128xf32>
    %c3_36 = arith.constant 3 : index
    %c0_37 = arith.constant 0 : index
    %c0_38 = arith.constant 0 : index
    %128 = vector.load %arg2[%c3_36, %c0_37, %c0_38] : memref<8x8x128xf32, #tpu.memory_space<vmem>>, vector<1x8x128xf32>
    %129 = vector.shape_cast %128 : vector<1x8x128xf32> to vector<8x128xf32>
    %130 = vector.shape_cast %127 : vector<8x128xf32> to vector<1x8x128xf32>
    tpu.vector_store %arg2[%c3_36, %c0_37, %c0_38], %130 {strides = array<i32>} : memref<8x8x128xf32, #tpu.memory_space<vmem>>, vector<1x8x128xf32>,
    %c4 = arith.constant 4 : index
    %c0_39 = arith.constant 0 : index
    %c0_40 = arith.constant 0 : index
    %131 = vector.load %arg0[%c4, %c0_39, %c0_40] : memref<8x8x512xf32, #tpu.memory_space<vmem>>, vector<1x8x512xf32>
    %132 = vector.shape_cast %131 : vector<1x8x512xf32> to vector<8x512xf32>
    %cst_41 = arith.constant dense<0.000000e+00> : vector<8x512xf32>
    %133 = tpu.matmul %127, %0, %cst_41 {dimension_numbers = #tpu.dot_dimension_numbers<[1], [0], [0], [1], [0, 0, 1, 1], [], []>} : vector<8x128xf32>, vector<128x512xf32>, vector<8x512xf32> -> vector<8x512xf32>
    %134 = arith.addf %132, %133 : vector<8x512xf32>
    %135 = vector.extract_strided_slice %134 {offsets = [0, 0], sizes = [8, 128], strides = [1, 1]} : vector<8x512xf32> to vector<8x128xf32>
    %136 = arith.negf %135 : vector<8x128xf32>
    %137 = math.exp %136 : vector<8x128xf32>
    %cst_42 = arith.constant 1.000000e+00 : f32
    %138 = vector.broadcast %cst_42 : f32 to vector<8x128xf32>
    %139 = arith.addf %138, %137 : vector<8x128xf32>
    %140 = arith.divf %138, %139 : vector<8x128xf32>
    %141 = vector.extract_strided_slice %134 {offsets = [0, 128], sizes = [8, 128], strides = [1, 1]} : vector<8x512xf32> to vector<8x128xf32>
    %142 = arith.negf %141 : vector<8x128xf32>
    %143 = math.exp %142 : vector<8x128xf32>
    %cst_43 = arith.constant 1.000000e+00 : f32
    %144 = vector.broadcast %cst_43 : f32 to vector<8x128xf32>
    %145 = arith.addf %144, %143 : vector<8x128xf32>
    %146 = arith.divf %144, %145 : vector<8x128xf32>
    %147 = vector.extract_strided_slice %134 {offsets = [0, 256], sizes = [8, 128], strides = [1, 1]} : vector<8x512xf32> to vector<8x128xf32>
    %148 = math.tanh %147 : vector<8x128xf32>
    %149 = vector.extract_strided_slice %134 {offsets = [0, 384], sizes = [8, 128], strides = [1, 1]} : vector<8x512xf32> to vector<8x128xf32>
    %150 = arith.negf %149 : vector<8x128xf32>
    %151 = math.exp %150 : vector<8x128xf32>
    %cst_44 = arith.constant 1.000000e+00 : f32
    %152 = vector.broadcast %cst_44 : f32 to vector<8x128xf32>
    %153 = arith.addf %152, %151 : vector<8x128xf32>
    %154 = arith.divf %152, %153 : vector<8x128xf32>
    %155 = arith.mulf %146, %125 : vector<8x128xf32>
    %156 = arith.mulf %140, %148 : vector<8x128xf32>
    %157 = arith.addf %155, %156 : vector<8x128xf32>
    %158 = math.tanh %157 : vector<8x128xf32>
    %159 = arith.mulf %154, %158 : vector<8x128xf32>
    %c4_45 = arith.constant 4 : index
    %c0_46 = arith.constant 0 : index
    %c0_47 = arith.constant 0 : index
    %160 = vector.load %arg2[%c4_45, %c0_46, %c0_47] : memref<8x8x128xf32, #tpu.memory_space<vmem>>, vector<1x8x128xf32>
    %161 = vector.shape_cast %160 : vector<1x8x128xf32> to vector<8x128xf32>
    %162 = vector.shape_cast %159 : vector<8x128xf32> to vector<1x8x128xf32>
    tpu.vector_store %arg2[%c4_45, %c0_46, %c0_47], %162 {strides = array<i32>} : memref<8x8x128xf32, #tpu.memory_space<vmem>>, vector<1x8x128xf32>,
    %c5 = arith.constant 5 : index
    %c0_48 = arith.constant 0 : index
    %c0_49 = arith.constant 0 : index
    %163 = vector.load %arg0[%c5, %c0_48, %c0_49] : memref<8x8x512xf32, #tpu.memory_space<vmem>>, vector<1x8x512xf32>
    %164 = vector.shape_cast %163 : vector<1x8x512xf32> to vector<8x512xf32>
    %cst_50 = arith.constant dense<0.000000e+00> : vector<8x512xf32>
    %165 = tpu.matmul %159, %0, %cst_50 {dimension_numbers = #tpu.dot_dimension_numbers<[1], [0], [0], [1], [0, 0, 1, 1], [], []>} : vector<8x128xf32>, vector<128x512xf32>, vector<8x512xf32> -> vector<8x512xf32>
    %166 = arith.addf %164, %165 : vector<8x512xf32>
    %167 = vector.extract_strided_slice %166 {offsets = [0, 0], sizes = [8, 128], strides = [1, 1]} : vector<8x512xf32> to vector<8x128xf32>
    %168 = arith.negf %167 : vector<8x128xf32>
    %169 = math.exp %168 : vector<8x128xf32>
    %cst_51 = arith.constant 1.000000e+00 : f32
    %170 = vector.broadcast %cst_51 : f32 to vector<8x128xf32>
    %171 = arith.addf %170, %169 : vector<8x128xf32>
    %172 = arith.divf %170, %171 : vector<8x128xf32>
    %173 = vector.extract_strided_slice %166 {offsets = [0, 128], sizes = [8, 128], strides = [1, 1]} : vector<8x512xf32> to vector<8x128xf32>
    %174 = arith.negf %173 : vector<8x128xf32>
    %175 = math.exp %174 : vector<8x128xf32>
    %cst_52 = arith.constant 1.000000e+00 : f32
    %176 = vector.broadcast %cst_52 : f32 to vector<8x128xf32>
    %177 = arith.addf %176, %175 : vector<8x128xf32>
    %178 = arith.divf %176, %177 : vector<8x128xf32>
    %179 = vector.extract_strided_slice %166 {offsets = [0, 256], sizes = [8, 128], strides = [1, 1]} : vector<8x512xf32> to vector<8x128xf32>
    %180 = math.tanh %179 : vector<8x128xf32>
    %181 = vector.extract_strided_slice %166 {offsets = [0, 384], sizes = [8, 128], strides = [1, 1]} : vector<8x512xf32> to vector<8x128xf32>
    %182 = arith.negf %181 : vector<8x128xf32>
    %183 = math.exp %182 : vector<8x128xf32>
    %cst_53 = arith.constant 1.000000e+00 : f32
    %184 = vector.broadcast %cst_53 : f32 to vector<8x128xf32>
    %185 = arith.addf %184, %183 : vector<8x128xf32>
    %186 = arith.divf %184, %185 : vector<8x128xf32>
    %187 = arith.mulf %178, %157 : vector<8x128xf32>
    %188 = arith.mulf %172, %180 : vector<8x128xf32>
    %189 = arith.addf %187, %188 : vector<8x128xf32>
    %190 = math.tanh %189 : vector<8x128xf32>
    %191 = arith.mulf %186, %190 : vector<8x128xf32>
    %c5_54 = arith.constant 5 : index
    %c0_55 = arith.constant 0 : index
    %c0_56 = arith.constant 0 : index
    %192 = vector.load %arg2[%c5_54, %c0_55, %c0_56] : memref<8x8x128xf32, #tpu.memory_space<vmem>>, vector<1x8x128xf32>
    %193 = vector.shape_cast %192 : vector<1x8x128xf32> to vector<8x128xf32>
    %194 = vector.shape_cast %191 : vector<8x128xf32> to vector<1x8x128xf32>
    tpu.vector_store %arg2[%c5_54, %c0_55, %c0_56], %194 {strides = array<i32>} : memref<8x8x128xf32, #tpu.memory_space<vmem>>, vector<1x8x128xf32>,
    %c6 = arith.constant 6 : index
    %c0_57 = arith.constant 0 : index
    %c0_58 = arith.constant 0 : index
    %195 = vector.load %arg0[%c6, %c0_57, %c0_58] : memref<8x8x512xf32, #tpu.memory_space<vmem>>, vector<1x8x512xf32>
    %196 = vector.shape_cast %195 : vector<1x8x512xf32> to vector<8x512xf32>
    %cst_59 = arith.constant dense<0.000000e+00> : vector<8x512xf32>
    %197 = tpu.matmul %191, %0, %cst_59 {dimension_numbers = #tpu.dot_dimension_numbers<[1], [0], [0], [1], [0, 0, 1, 1], [], []>} : vector<8x128xf32>, vector<128x512xf32>, vector<8x512xf32> -> vector<8x512xf32>
    %198 = arith.addf %196, %197 : vector<8x512xf32>
    %199 = vector.extract_strided_slice %198 {offsets = [0, 0], sizes = [8, 128], strides = [1, 1]} : vector<8x512xf32> to vector<8x128xf32>
    %200 = arith.negf %199 : vector<8x128xf32>
    %201 = math.exp %200 : vector<8x128xf32>
    %cst_60 = arith.constant 1.000000e+00 : f32
    %202 = vector.broadcast %cst_60 : f32 to vector<8x128xf32>
    %203 = arith.addf %202, %201 : vector<8x128xf32>
    %204 = arith.divf %202, %203 : vector<8x128xf32>
    %205 = vector.extract_strided_slice %198 {offsets = [0, 128], sizes = [8, 128], strides = [1, 1]} : vector<8x512xf32> to vector<8x128xf32>
    %206 = arith.negf %205 : vector<8x128xf32>
    %207 = math.exp %206 : vector<8x128xf32>
    %cst_61 = arith.constant 1.000000e+00 : f32
    %208 = vector.broadcast %cst_61 : f32 to vector<8x128xf32>
    %209 = arith.addf %208, %207 : vector<8x128xf32>
    %210 = arith.divf %208, %209 : vector<8x128xf32>
    %211 = vector.extract_strided_slice %198 {offsets = [0, 256], sizes = [8, 128], strides = [1, 1]} : vector<8x512xf32> to vector<8x128xf32>
    %212 = math.tanh %211 : vector<8x128xf32>
    %213 = vector.extract_strided_slice %198 {offsets = [0, 384], sizes = [8, 128], strides = [1, 1]} : vector<8x512xf32> to vector<8x128xf32>
    %214 = arith.negf %213 : vector<8x128xf32>
    %215 = math.exp %214 : vector<8x128xf32>
    %cst_62 = arith.constant 1.000000e+00 : f32
    %216 = vector.broadcast %cst_62 : f32 to vector<8x128xf32>
    %217 = arith.addf %216, %215 : vector<8x128xf32>
    %218 = arith.divf %216, %217 : vector<8x128xf32>
    %219 = arith.mulf %210, %189 : vector<8x128xf32>
    %220 = arith.mulf %204, %212 : vector<8x128xf32>
    %221 = arith.addf %219, %220 : vector<8x128xf32>
    %222 = math.tanh %221 : vector<8x128xf32>
    %223 = arith.mulf %218, %222 : vector<8x128xf32>
    %c6_63 = arith.constant 6 : index
    %c0_64 = arith.constant 0 : index
    %c0_65 = arith.constant 0 : index
    %224 = vector.load %arg2[%c6_63, %c0_64, %c0_65] : memref<8x8x128xf32, #tpu.memory_space<vmem>>, vector<1x8x128xf32>
    %225 = vector.shape_cast %224 : vector<1x8x128xf32> to vector<8x128xf32>
    %226 = vector.shape_cast %223 : vector<8x128xf32> to vector<1x8x128xf32>
    tpu.vector_store %arg2[%c6_63, %c0_64, %c0_65], %226 {strides = array<i32>} : memref<8x8x128xf32, #tpu.memory_space<vmem>>, vector<1x8x128xf32>,
    %c7 = arith.constant 7 : index
    %c0_66 = arith.constant 0 : index
    %c0_67 = arith.constant 0 : index
    %227 = vector.load %arg0[%c7, %c0_66, %c0_67] : memref<8x8x512xf32, #tpu.memory_space<vmem>>, vector<1x8x512xf32>
    %228 = vector.shape_cast %227 : vector<1x8x512xf32> to vector<8x512xf32>
    %cst_68 = arith.constant dense<0.000000e+00> : vector<8x512xf32>
    %229 = tpu.matmul %223, %0, %cst_68 {dimension_numbers = #tpu.dot_dimension_numbers<[1], [0], [0], [1], [0, 0, 1, 1], [], []>} : vector<8x128xf32>, vector<128x512xf32>, vector<8x512xf32> -> vector<8x512xf32>
    %230 = arith.addf %228, %229 : vector<8x512xf32>
    %231 = vector.extract_strided_slice %230 {offsets = [0, 0], sizes = [8, 128], strides = [1, 1]} : vector<8x512xf32> to vector<8x128xf32>
    %232 = arith.negf %231 : vector<8x128xf32>
    %233 = math.exp %232 : vector<8x128xf32>
    %cst_69 = arith.constant 1.000000e+00 : f32
    %234 = vector.broadcast %cst_69 : f32 to vector<8x128xf32>
    %235 = arith.addf %234, %233 : vector<8x128xf32>
    %236 = arith.divf %234, %235 : vector<8x128xf32>
    %237 = vector.extract_strided_slice %230 {offsets = [0, 128], sizes = [8, 128], strides = [1, 1]} : vector<8x512xf32> to vector<8x128xf32>
    %238 = arith.negf %237 : vector<8x128xf32>
    %239 = math.exp %238 : vector<8x128xf32>
    %cst_70 = arith.constant 1.000000e+00 : f32
    %240 = vector.broadcast %cst_70 : f32 to vector<8x128xf32>
    %241 = arith.addf %240, %239 : vector<8x128xf32>
    %242 = arith.divf %240, %241 : vector<8x128xf32>
    %243 = vector.extract_strided_slice %230 {offsets = [0, 256], sizes = [8, 128], strides = [1, 1]} : vector<8x512xf32> to vector<8x128xf32>
    %244 = math.tanh %243 : vector<8x128xf32>
    %245 = vector.extract_strided_slice %230 {offsets = [0, 384], sizes = [8, 128], strides = [1, 1]} : vector<8x512xf32> to vector<8x128xf32>
    %246 = arith.negf %245 : vector<8x128xf32>
    %247 = math.exp %246 : vector<8x128xf32>
    %cst_71 = arith.constant 1.000000e+00 : f32
    %248 = vector.broadcast %cst_71 : f32 to vector<8x128xf32>
    %249 = arith.addf %248, %247 : vector<8x128xf32>
    %250 = arith.divf %248, %249 : vector<8x128xf32>
    %251 = arith.mulf %242, %221 : vector<8x128xf32>
    %252 = arith.mulf %236, %244 : vector<8x128xf32>
    %253 = arith.addf %251, %252 : vector<8x128xf32>
    %254 = math.tanh %253 : vector<8x128xf32>
    %255 = arith.mulf %250, %254 : vector<8x128xf32>
    %c7_72 = arith.constant 7 : index
    %c0_73 = arith.constant 0 : index
    %c0_74 = arith.constant 0 : index
    %256 = vector.load %arg2[%c7_72, %c0_73, %c0_74] : memref<8x8x128xf32, #tpu.memory_space<vmem>>, vector<1x8x128xf32>
    %257 = vector.shape_cast %256 : vector<1x8x128xf32> to vector<8x128xf32>
    %258 = vector.shape_cast %255 : vector<8x128xf32> to vector<1x8x128xf32>
    tpu.vector_store %arg2[%c7_72, %c0_73, %c0_74], %258 {strides = array<i32>} : memref<8x8x128xf32, #tpu.memory_space<vmem>>, vector<1x8x128xf32>,
    %c0_75 = arith.constant 0 : index
    %c0_76 = arith.constant 0 : index
    %259 = vector.load %arg3[%c0_75, %c0_76] : memref<8x128xf32, #tpu.memory_space<vmem>>, vector<8x128xf32>
    tpu.vector_store %arg3[%c0_75, %c0_76], %255 {strides = array<i32>} : memref<8x128xf32, #tpu.memory_space<vmem>>, vector<8x128xf32>,
    %c0_77 = arith.constant 0 : index
    %c0_78 = arith.constant 0 : index
    %260 = vector.load %arg4[%c0_77, %c0_78] : memref<8x128xf32, #tpu.memory_space<vmem>>, vector<8x128xf32>
    tpu.vector_store %arg4[%c0_77, %c0_78], %253 {strides = array<i32>} : memref<8x128xf32, #tpu.memory_space<vmem>>, vector<8x128xf32>,
    return
  }
}

module attributes {stable_mosaic.version = 11 : i64} {
  func.func @_decoder_kernel(%arg0: memref<5xi32, #tpu.memory_space<smem>>, %arg1: memref<5x8x128xf32, #tpu.memory_space<vmem>>, %arg2: memref<8x8x128xf32, #tpu.memory_space<vmem>>, %arg3: memref<8x8xf32, #tpu.memory_space<vmem>>, %arg4: memref<128x128xf32, #tpu.memory_space<vmem>>, %arg5: memref<384x512xf32, #tpu.memory_space<vmem>>, %arg6: memref<1x512xf32, #tpu.memory_space<vmem>>, %arg7: memref<384x128xf32, #tpu.memory_space<vmem>>, %arg8: memref<1x128xf32, #tpu.memory_space<vmem>>, %arg9: memref<8x128xf32, #tpu.memory_space<vmem>>, %arg10: memref<8x128xf32, #tpu.memory_space<vmem>>, %arg11: memref<5x8x128xf32, #tpu.memory_space<vmem>>, %arg12: memref<8x384xf32, #tpu.memory_space<vmem>>) attributes {dimension_semantics = [], scalar_prefetch = 0 : i64, scratch_operands = 1 : i64, tpu.core_type = #tpu.core_type<tc>} {
    %c0 = arith.constant 0 : index
    %c0_0 = arith.constant 0 : index
    %c0_1 = arith.constant 0 : index
    %0 = vector.load %arg2[%c0, %c0_0, %c0_1] : memref<8x8x128xf32, #tpu.memory_space<vmem>>, vector<8x8x128xf32>
    %c0_2 = arith.constant 0 : index
    %c0_3 = arith.constant 0 : index
    %1 = vector.load %arg3[%c0_2, %c0_3] : memref<8x8xf32, #tpu.memory_space<vmem>>, vector<8x8xf32>
    %cst = arith.constant 5.000000e-01 : f32
    %2 = vector.broadcast %cst : f32 to vector<8x8xf32>
    %3 = arith.cmpf ogt, %1, %2 : vector<8x8xf32>
    %4 = tpu.iota {dimensions = array<i32: 1>} : vector<8x128xi32>
    %5 = arith.sitofp %4 : vector<8x128xi32> to vector<8x128xf32>
    %c24_i32 = arith.constant 24 : i32
    %6 = vector.broadcast %c24_i32 : i32 to vector<8x128xi32>
    %7 = arith.cmpi slt, %4, %6 : vector<8x128xi32>
    %c0_4 = arith.constant 0 : index
    %c0_5 = arith.constant 0 : index
    %8 = vector.load %arg9[%c0_4, %c0_5] : memref<8x128xf32, #tpu.memory_space<vmem>>, vector<8x128xf32>
    %c0_6 = arith.constant 0 : index
    %c0_7 = arith.constant 0 : index
    %9 = vector.load %arg10[%c0_6, %c0_7] : memref<8x128xf32, #tpu.memory_space<vmem>>, vector<8x128xf32>
    %cst_8 = arith.constant 0.000000e+00 : f32
    %10 = vector.broadcast %cst_8 : f32 to vector<8x128xf32>
    %c0_9 = arith.constant 0 : index
    %11 = memref.load %arg0[%c0_9] : memref<5xi32, #tpu.memory_space<smem>>
    %c0_i32 = arith.constant 0 : i32
    %12 = arith.cmpi sgt, %11, %c0_i32 : i32
    %c0_10 = arith.constant 0 : index
    %c0_11 = arith.constant 0 : index
    %c0_12 = arith.constant 0 : index
    %13 = vector.load %arg1[%c0_10, %c0_11, %c0_12] : memref<5x8x128xf32, #tpu.memory_space<vmem>>, vector<1x8x128xf32>
    %14 = vector.shape_cast %13 : vector<1x8x128xf32> to vector<8x128xf32>
    %15 = arith.select %12, %14, %10 : vector<8x128xf32>
    %16 = vector.shape_cast %8 : vector<8x128xf32> to vector<1x8x128xf32>
    %17 = vector.broadcast %16 : vector<1x8x128xf32> to vector<8x8x128xf32>
    %18 = arith.mulf %0, %17 : vector<8x8x128xf32>
    %cst_13 = arith.constant dense<0.000000e+00> : vector<8x8xf32>
    %19 = vector.multi_reduction <add>, %18, %cst_13 [2] : vector<8x8x128xf32> to vector<8x8xf32>
    %cst_14 = arith.constant -1.000000e+09 : f32
    %20 = vector.broadcast %cst_14 : f32 to vector<8x8xf32>
    %21 = arith.select %3, %19, %20 : vector<8x8xi1>, vector<8x8xf32>
    %cst_15 = arith.constant dense<0xFF800000> : vector<8xf32>
    %22 = vector.multi_reduction <maximumf>, %21, %cst_15 [0] : vector<8x8xf32> to vector<8xf32>
    %23 = vector.shape_cast %22 : vector<8xf32> to vector<1x8xf32>
    %24 = vector.broadcast %23 : vector<1x8xf32> to vector<8x8xf32>
    %25 = arith.subf %21, %24 : vector<8x8xf32>
    %26 = math.exp %25 : vector<8x8xf32>
    %cst_16 = arith.constant dense<0.000000e+00> : vector<8xf32>
    %27 = vector.multi_reduction <add>, %26, %cst_16 [0] : vector<8x8xf32> to vector<8xf32>
    %28 = vector.shape_cast %27 : vector<8xf32> to vector<1x8xf32>
    %29 = vector.broadcast %28 : vector<1x8xf32> to vector<8x8xf32>
    %30 = arith.divf %26, %29 : vector<8x8xf32>
    %31 = vector.shape_cast %30 : vector<8x8xf32> to vector<8x8x1xf32>
    %32 = vector.broadcast %31 : vector<8x8x1xf32> to vector<8x8x128xf32>
    %33 = arith.mulf %32, %0 : vector<8x8x128xf32>
    %cst_17 = arith.constant dense<0.000000e+00> : vector<8x128xf32>
    %34 = vector.multi_reduction <add>, %33, %cst_17 [0] : vector<8x8x128xf32> to vector<8x128xf32>
    %c0_18 = arith.constant 0 : index
    %c0_19 = arith.constant 0 : index
    %35 = vector.load %arg12[%c0_18, %c0_19] : memref<8x384xf32, #tpu.memory_space<vmem>>, vector<8x128xf32>
    tpu.vector_store %arg12[%c0_18, %c0_19], %15 {strides = array<i32>} : memref<8x384xf32, #tpu.memory_space<vmem>>, vector<8x128xf32>,
    %c0_20 = arith.constant 0 : index
    %c128 = arith.constant 128 : index
    %36 = vector.load %arg12[%c0_20, %c128] : memref<8x384xf32, #tpu.memory_space<vmem>>, vector<8x128xf32>
    tpu.vector_store %arg12[%c0_20, %c128], %34 {strides = array<i32>} : memref<8x384xf32, #tpu.memory_space<vmem>>, vector<8x128xf32>,
    %c0_21 = arith.constant 0 : index
    %c256 = arith.constant 256 : index
    %37 = vector.load %arg12[%c0_21, %c256] : memref<8x384xf32, #tpu.memory_space<vmem>>, vector<8x128xf32>
    tpu.vector_store %arg12[%c0_21, %c256], %8 {strides = array<i32>} : memref<8x384xf32, #tpu.memory_space<vmem>>, vector<8x128xf32>,
    %c0_22 = arith.constant 0 : index
    %c0_23 = arith.constant 0 : index
    %38 = vector.load %arg12[%c0_22, %c0_23] : memref<8x384xf32, #tpu.memory_space<vmem>>, vector<8x384xf32>
    %c0_24 = arith.constant 0 : index
    %c0_25 = arith.constant 0 : index
    %39 = vector.load %arg5[%c0_24, %c0_25] : memref<384x512xf32, #tpu.memory_space<vmem>>, vector<384x512xf32>
    %cst_26 = arith.constant dense<0.000000e+00> : vector<8x512xf32>
    %40 = tpu.matmul %38, %39, %cst_26 {dimension_numbers = #tpu.dot_dimension_numbers<[1], [0], [0], [1], [0, 0, 1, 1], [], []>} : vector<8x384xf32>, vector<384x512xf32>, vector<8x512xf32> -> vector<8x512xf32>
    %c0_27 = arith.constant 0 : index
    %c0_28 = arith.constant 0 : index
    %41 = vector.load %arg6[%c0_27, %c0_28] : memref<1x512xf32, #tpu.memory_space<vmem>>, vector<1x512xf32>
    %42 = vector.broadcast %41 : vector<1x512xf32> to vector<8x512xf32>
    %43 = arith.addf %40, %42 : vector<8x512xf32>
    %44 = vector.extract_strided_slice %43 {offsets = [0, 0], sizes = [8, 128], strides = [1, 1]} : vector<8x512xf32> to vector<8x128xf32>
    %45 = arith.negf %44 : vector<8x128xf32>
    %46 = math.exp %45 : vector<8x128xf32>
    %cst_29 = arith.constant 1.000000e+00 : f32
    %47 = vector.broadcast %cst_29 : f32 to vector<8x128xf32>
    %48 = arith.addf %47, %46 : vector<8x128xf32>
    %49 = arith.divf %47, %48 : vector<8x128xf32>
    %50 = vector.extract_strided_slice %43 {offsets = [0, 128], sizes = [8, 128], strides = [1, 1]} : vector<8x512xf32> to vector<8x128xf32>
    %51 = arith.negf %50 : vector<8x128xf32>
    %52 = math.exp %51 : vector<8x128xf32>
    %cst_30 = arith.constant 1.000000e+00 : f32
    %53 = vector.broadcast %cst_30 : f32 to vector<8x128xf32>
    %54 = arith.addf %53, %52 : vector<8x128xf32>
    %55 = arith.divf %53, %54 : vector<8x128xf32>
    %56 = vector.extract_strided_slice %43 {offsets = [0, 256], sizes = [8, 128], strides = [1, 1]} : vector<8x512xf32> to vector<8x128xf32>
    %57 = math.tanh %56 : vector<8x128xf32>
    %58 = vector.extract_strided_slice %43 {offsets = [0, 384], sizes = [8, 128], strides = [1, 1]} : vector<8x512xf32> to vector<8x128xf32>
    %59 = arith.negf %58 : vector<8x128xf32>
    %60 = math.exp %59 : vector<8x128xf32>
    %cst_31 = arith.constant 1.000000e+00 : f32
    %61 = vector.broadcast %cst_31 : f32 to vector<8x128xf32>
    %62 = arith.addf %61, %60 : vector<8x128xf32>
    %63 = arith.divf %61, %62 : vector<8x128xf32>
    %64 = arith.mulf %55, %9 : vector<8x128xf32>
    %65 = arith.mulf %49, %57 : vector<8x128xf32>
    %66 = arith.addf %64, %65 : vector<8x128xf32>
    %67 = math.tanh %66 : vector<8x128xf32>
    %68 = arith.mulf %63, %67 : vector<8x128xf32>
    %c0_32 = arith.constant 0 : index
    %c256_33 = arith.constant 256 : index
    %69 = vector.load %arg12[%c0_32, %c256_33] : memref<8x384xf32, #tpu.memory_space<vmem>>, vector<8x128xf32>
    tpu.vector_store %arg12[%c0_32, %c256_33], %68 {strides = array<i32>} : memref<8x384xf32, #tpu.memory_space<vmem>>, vector<8x128xf32>,
    %c0_34 = arith.constant 0 : index
    %c0_35 = arith.constant 0 : index
    %70 = vector.load %arg12[%c0_34, %c0_35] : memref<8x384xf32, #tpu.memory_space<vmem>>, vector<8x384xf32>
    %c0_36 = arith.constant 0 : index
    %c0_37 = arith.constant 0 : index
    %71 = vector.load %arg7[%c0_36, %c0_37] : memref<384x128xf32, #tpu.memory_space<vmem>>, vector<384x128xf32>
    %cst_38 = arith.constant dense<0.000000e+00> : vector<8x128xf32>
    %72 = tpu.matmul %70, %71, %cst_38 {dimension_numbers = #tpu.dot_dimension_numbers<[1], [0], [0], [1], [0, 0, 1, 1], [], []>} : vector<8x384xf32>, vector<384x128xf32>, vector<8x128xf32> -> vector<8x128xf32>
    %c0_39 = arith.constant 0 : index
    %c0_40 = arith.constant 0 : index
    %73 = vector.load %arg8[%c0_39, %c0_40] : memref<1x128xf32, #tpu.memory_space<vmem>>, vector<1x128xf32>
    %74 = vector.broadcast %73 : vector<1x128xf32> to vector<8x128xf32>
    %75 = arith.addf %72, %74 : vector<8x128xf32>
    %c0_41 = arith.constant 0 : index
    %c0_42 = arith.constant 0 : index
    %c0_43 = arith.constant 0 : index
    %76 = vector.load %arg11[%c0_41, %c0_42, %c0_43] : memref<5x8x128xf32, #tpu.memory_space<vmem>>, vector<1x8x128xf32>
    %77 = vector.shape_cast %76 : vector<1x8x128xf32> to vector<8x128xf32>
    %78 = vector.shape_cast %75 : vector<8x128xf32> to vector<1x8x128xf32>
    tpu.vector_store %arg11[%c0_41, %c0_42, %c0_43], %78 {strides = array<i32>} : memref<5x8x128xf32, #tpu.memory_space<vmem>>, vector<1x8x128xf32>,
    %cst_44 = arith.constant -1.000000e+30 : f32
    %79 = vector.broadcast %cst_44 : f32 to vector<8x128xf32>
    %80 = arith.select %7, %75, %79 : vector<8x128xi1>, vector<8x128xf32>
    %cst_45 = arith.constant dense<0xFF800000> : vector<8xf32>
    %81 = vector.multi_reduction <maximumf>, %80, %cst_45 [1] : vector<8x128xf32> to vector<8xf32>
    %82 = vector.shape_cast %81 : vector<8xf32> to vector<8x1xf32>
    %83 = vector.broadcast %82 : vector<8x1xf32> to vector<8x128xf32>
    %84 = arith.cmpf oeq, %80, %83 : vector<8x128xf32>
    %cst_46 = arith.constant 1.000000e+09 : f32
    %85 = vector.broadcast %cst_46 : f32 to vector<8x128xf32>
    %86 = arith.select %84, %5, %85 : vector<8x128xi1>, vector<8x128xf32>
    %cst_47 = arith.constant dense<0x7F800000> : vector<8xf32>
    %87 = vector.multi_reduction <minimumf>, %86, %cst_47 [1] : vector<8x128xf32> to vector<8xf32>
    %88 = vector.shape_cast %87 : vector<8xf32> to vector<8x1xf32>
    %89 = vector.broadcast %88 : vector<8x1xf32> to vector<8x128xf32>
    %90 = arith.cmpf oeq, %5, %89 : vector<8x128xf32>
    %91 = arith.extui %90 : vector<8x128xi1> to vector<8x128xi32>
    %92 = arith.sitofp %91 : vector<8x128xi32> to vector<8x128xf32>
    %c0_48 = arith.constant 0 : index
    %c0_49 = arith.constant 0 : index
    %93 = vector.load %arg4[%c0_48, %c0_49] : memref<128x128xf32, #tpu.memory_space<vmem>>, vector<128x128xf32>
    %cst_50 = arith.constant dense<0.000000e+00> : vector<8x128xf32>
    %94 = tpu.matmul %92, %93, %cst_50 {dimension_numbers = #tpu.dot_dimension_numbers<[1], [0], [0], [1], [0, 0, 1, 1], [], []>} : vector<8x128xf32>, vector<128x128xf32>, vector<8x128xf32> -> vector<8x128xf32>
    %c1 = arith.constant 1 : index
    %95 = memref.load %arg0[%c1] : memref<5xi32, #tpu.memory_space<smem>>
    %c0_i32_51 = arith.constant 0 : i32
    %96 = arith.cmpi sgt, %95, %c0_i32_51 : i32
    %c1_52 = arith.constant 1 : index
    %c0_53 = arith.constant 0 : index
    %c0_54 = arith.constant 0 : index
    %97 = vector.load %arg1[%c1_52, %c0_53, %c0_54] : memref<5x8x128xf32, #tpu.memory_space<vmem>>, vector<1x8x128xf32>
    %98 = vector.shape_cast %97 : vector<1x8x128xf32> to vector<8x128xf32>
    %99 = arith.select %96, %98, %94 : vector<8x128xf32>
    %100 = vector.shape_cast %68 : vector<8x128xf32> to vector<1x8x128xf32>
    %101 = vector.broadcast %100 : vector<1x8x128xf32> to vector<8x8x128xf32>
    %102 = arith.mulf %0, %101 : vector<8x8x128xf32>
    %cst_55 = arith.constant dense<0.000000e+00> : vector<8x8xf32>
    %103 = vector.multi_reduction <add>, %102, %cst_55 [2] : vector<8x8x128xf32> to vector<8x8xf32>
    %cst_56 = arith.constant -1.000000e+09 : f32
    %104 = vector.broadcast %cst_56 : f32 to vector<8x8xf32>
    %105 = arith.select %3, %103, %104 : vector<8x8xi1>, vector<8x8xf32>
    %cst_57 = arith.constant dense<0xFF800000> : vector<8xf32>
    %106 = vector.multi_reduction <maximumf>, %105, %cst_57 [0] : vector<8x8xf32> to vector<8xf32>
    %107 = vector.shape_cast %106 : vector<8xf32> to vector<1x8xf32>
    %108 = vector.broadcast %107 : vector<1x8xf32> to vector<8x8xf32>
    %109 = arith.subf %105, %108 : vector<8x8xf32>
    %110 = math.exp %109 : vector<8x8xf32>
    %cst_58 = arith.constant dense<0.000000e+00> : vector<8xf32>
    %111 = vector.multi_reduction <add>, %110, %cst_58 [0] : vector<8x8xf32> to vector<8xf32>
    %112 = vector.shape_cast %111 : vector<8xf32> to vector<1x8xf32>
    %113 = vector.broadcast %112 : vector<1x8xf32> to vector<8x8xf32>
    %114 = arith.divf %110, %113 : vector<8x8xf32>
    %115 = vector.shape_cast %114 : vector<8x8xf32> to vector<8x8x1xf32>
    %116 = vector.broadcast %115 : vector<8x8x1xf32> to vector<8x8x128xf32>
    %117 = arith.mulf %116, %0 : vector<8x8x128xf32>
    %cst_59 = arith.constant dense<0.000000e+00> : vector<8x128xf32>
    %118 = vector.multi_reduction <add>, %117, %cst_59 [0] : vector<8x8x128xf32> to vector<8x128xf32>
    %c0_60 = arith.constant 0 : index
    %c0_61 = arith.constant 0 : index
    %119 = vector.load %arg12[%c0_60, %c0_61] : memref<8x384xf32, #tpu.memory_space<vmem>>, vector<8x128xf32>
    tpu.vector_store %arg12[%c0_60, %c0_61], %99 {strides = array<i32>} : memref<8x384xf32, #tpu.memory_space<vmem>>, vector<8x128xf32>,
    %c0_62 = arith.constant 0 : index
    %c128_63 = arith.constant 128 : index
    %120 = vector.load %arg12[%c0_62, %c128_63] : memref<8x384xf32, #tpu.memory_space<vmem>>, vector<8x128xf32>
    tpu.vector_store %arg12[%c0_62, %c128_63], %118 {strides = array<i32>} : memref<8x384xf32, #tpu.memory_space<vmem>>, vector<8x128xf32>,
    %c0_64 = arith.constant 0 : index
    %c256_65 = arith.constant 256 : index
    %121 = vector.load %arg12[%c0_64, %c256_65] : memref<8x384xf32, #tpu.memory_space<vmem>>, vector<8x128xf32>
    tpu.vector_store %arg12[%c0_64, %c256_65], %68 {strides = array<i32>} : memref<8x384xf32, #tpu.memory_space<vmem>>, vector<8x128xf32>,
    %c0_66 = arith.constant 0 : index
    %c0_67 = arith.constant 0 : index
    %122 = vector.load %arg12[%c0_66, %c0_67] : memref<8x384xf32, #tpu.memory_space<vmem>>, vector<8x384xf32>
    %c0_68 = arith.constant 0 : index
    %c0_69 = arith.constant 0 : index
    %123 = vector.load %arg5[%c0_68, %c0_69] : memref<384x512xf32, #tpu.memory_space<vmem>>, vector<384x512xf32>
    %cst_70 = arith.constant dense<0.000000e+00> : vector<8x512xf32>
    %124 = tpu.matmul %122, %123, %cst_70 {dimension_numbers = #tpu.dot_dimension_numbers<[1], [0], [0], [1], [0, 0, 1, 1], [], []>} : vector<8x384xf32>, vector<384x512xf32>, vector<8x512xf32> -> vector<8x512xf32>
    %c0_71 = arith.constant 0 : index
    %c0_72 = arith.constant 0 : index
    %125 = vector.load %arg6[%c0_71, %c0_72] : memref<1x512xf32, #tpu.memory_space<vmem>>, vector<1x512xf32>
    %126 = vector.broadcast %125 : vector<1x512xf32> to vector<8x512xf32>
    %127 = arith.addf %124, %126 : vector<8x512xf32>
    %128 = vector.extract_strided_slice %127 {offsets = [0, 0], sizes = [8, 128], strides = [1, 1]} : vector<8x512xf32> to vector<8x128xf32>
    %129 = arith.negf %128 : vector<8x128xf32>
    %130 = math.exp %129 : vector<8x128xf32>
    %cst_73 = arith.constant 1.000000e+00 : f32
    %131 = vector.broadcast %cst_73 : f32 to vector<8x128xf32>
    %132 = arith.addf %131, %130 : vector<8x128xf32>
    %133 = arith.divf %131, %132 : vector<8x128xf32>
    %134 = vector.extract_strided_slice %127 {offsets = [0, 128], sizes = [8, 128], strides = [1, 1]} : vector<8x512xf32> to vector<8x128xf32>
    %135 = arith.negf %134 : vector<8x128xf32>
    %136 = math.exp %135 : vector<8x128xf32>
    %cst_74 = arith.constant 1.000000e+00 : f32
    %137 = vector.broadcast %cst_74 : f32 to vector<8x128xf32>
    %138 = arith.addf %137, %136 : vector<8x128xf32>
    %139 = arith.divf %137, %138 : vector<8x128xf32>
    %140 = vector.extract_strided_slice %127 {offsets = [0, 256], sizes = [8, 128], strides = [1, 1]} : vector<8x512xf32> to vector<8x128xf32>
    %141 = math.tanh %140 : vector<8x128xf32>
    %142 = vector.extract_strided_slice %127 {offsets = [0, 384], sizes = [8, 128], strides = [1, 1]} : vector<8x512xf32> to vector<8x128xf32>
    %143 = arith.negf %142 : vector<8x128xf32>
    %144 = math.exp %143 : vector<8x128xf32>
    %cst_75 = arith.constant 1.000000e+00 : f32
    %145 = vector.broadcast %cst_75 : f32 to vector<8x128xf32>
    %146 = arith.addf %145, %144 : vector<8x128xf32>
    %147 = arith.divf %145, %146 : vector<8x128xf32>
    %148 = arith.mulf %139, %66 : vector<8x128xf32>
    %149 = arith.mulf %133, %141 : vector<8x128xf32>
    %150 = arith.addf %148, %149 : vector<8x128xf32>
    %151 = math.tanh %150 : vector<8x128xf32>
    %152 = arith.mulf %147, %151 : vector<8x128xf32>
    %c0_76 = arith.constant 0 : index
    %c256_77 = arith.constant 256 : index
    %153 = vector.load %arg12[%c0_76, %c256_77] : memref<8x384xf32, #tpu.memory_space<vmem>>, vector<8x128xf32>
    tpu.vector_store %arg12[%c0_76, %c256_77], %152 {strides = array<i32>} : memref<8x384xf32, #tpu.memory_space<vmem>>, vector<8x128xf32>,
    %c0_78 = arith.constant 0 : index
    %c0_79 = arith.constant 0 : index
    %154 = vector.load %arg12[%c0_78, %c0_79] : memref<8x384xf32, #tpu.memory_space<vmem>>, vector<8x384xf32>
    %c0_80 = arith.constant 0 : index
    %c0_81 = arith.constant 0 : index
    %155 = vector.load %arg7[%c0_80, %c0_81] : memref<384x128xf32, #tpu.memory_space<vmem>>, vector<384x128xf32>
    %cst_82 = arith.constant dense<0.000000e+00> : vector<8x128xf32>
    %156 = tpu.matmul %154, %155, %cst_82 {dimension_numbers = #tpu.dot_dimension_numbers<[1], [0], [0], [1], [0, 0, 1, 1], [], []>} : vector<8x384xf32>, vector<384x128xf32>, vector<8x128xf32> -> vector<8x128xf32>
    %c0_83 = arith.constant 0 : index
    %c0_84 = arith.constant 0 : index
    %157 = vector.load %arg8[%c0_83, %c0_84] : memref<1x128xf32, #tpu.memory_space<vmem>>, vector<1x128xf32>
    %158 = vector.broadcast %157 : vector<1x128xf32> to vector<8x128xf32>
    %159 = arith.addf %156, %158 : vector<8x128xf32>
    %c1_85 = arith.constant 1 : index
    %c0_86 = arith.constant 0 : index
    %c0_87 = arith.constant 0 : index
    %160 = vector.load %arg11[%c1_85, %c0_86, %c0_87] : memref<5x8x128xf32, #tpu.memory_space<vmem>>, vector<1x8x128xf32>
    %161 = vector.shape_cast %160 : vector<1x8x128xf32> to vector<8x128xf32>
    %162 = vector.shape_cast %159 : vector<8x128xf32> to vector<1x8x128xf32>
    tpu.vector_store %arg11[%c1_85, %c0_86, %c0_87], %162 {strides = array<i32>} : memref<5x8x128xf32, #tpu.memory_space<vmem>>, vector<1x8x128xf32>,
    %cst_88 = arith.constant -1.000000e+30 : f32
    %163 = vector.broadcast %cst_88 : f32 to vector<8x128xf32>
    %164 = arith.select %7, %159, %163 : vector<8x128xi1>, vector<8x128xf32>
    %cst_89 = arith.constant dense<0xFF800000> : vector<8xf32>
    %165 = vector.multi_reduction <maximumf>, %164, %cst_89 [1] : vector<8x128xf32> to vector<8xf32>
    %166 = vector.shape_cast %165 : vector<8xf32> to vector<8x1xf32>
    %167 = vector.broadcast %166 : vector<8x1xf32> to vector<8x128xf32>
    %168 = arith.cmpf oeq, %164, %167 : vector<8x128xf32>
    %cst_90 = arith.constant 1.000000e+09 : f32
    %169 = vector.broadcast %cst_90 : f32 to vector<8x128xf32>
    %170 = arith.select %168, %5, %169 : vector<8x128xi1>, vector<8x128xf32>
    %cst_91 = arith.constant dense<0x7F800000> : vector<8xf32>
    %171 = vector.multi_reduction <minimumf>, %170, %cst_91 [1] : vector<8x128xf32> to vector<8xf32>
    %172 = vector.shape_cast %171 : vector<8xf32> to vector<8x1xf32>
    %173 = vector.broadcast %172 : vector<8x1xf32> to vector<8x128xf32>
    %174 = arith.cmpf oeq, %5, %173 : vector<8x128xf32>
    %175 = arith.extui %174 : vector<8x128xi1> to vector<8x128xi32>
    %176 = arith.sitofp %175 : vector<8x128xi32> to vector<8x128xf32>
    %c0_92 = arith.constant 0 : index
    %c0_93 = arith.constant 0 : index
    %177 = vector.load %arg4[%c0_92, %c0_93] : memref<128x128xf32, #tpu.memory_space<vmem>>, vector<128x128xf32>
    %cst_94 = arith.constant dense<0.000000e+00> : vector<8x128xf32>
    %178 = tpu.matmul %176, %177, %cst_94 {dimension_numbers = #tpu.dot_dimension_numbers<[1], [0], [0], [1], [0, 0, 1, 1], [], []>} : vector<8x128xf32>, vector<128x128xf32>, vector<8x128xf32> -> vector<8x128xf32>
    %c2 = arith.constant 2 : index
    %179 = memref.load %arg0[%c2] : memref<5xi32, #tpu.memory_space<smem>>
    %c0_i32_95 = arith.constant 0 : i32
    %180 = arith.cmpi sgt, %179, %c0_i32_95 : i32
    %c2_96 = arith.constant 2 : index
    %c0_97 = arith.constant 0 : index
    %c0_98 = arith.constant 0 : index
    %181 = vector.load %arg1[%c2_96, %c0_97, %c0_98] : memref<5x8x128xf32, #tpu.memory_space<vmem>>, vector<1x8x128xf32>
    %182 = vector.shape_cast %181 : vector<1x8x128xf32> to vector<8x128xf32>
    %183 = arith.select %180, %182, %178 : vector<8x128xf32>
    %184 = vector.shape_cast %152 : vector<8x128xf32> to vector<1x8x128xf32>
    %185 = vector.broadcast %184 : vector<1x8x128xf32> to vector<8x8x128xf32>
    %186 = arith.mulf %0, %185 : vector<8x8x128xf32>
    %cst_99 = arith.constant dense<0.000000e+00> : vector<8x8xf32>
    %187 = vector.multi_reduction <add>, %186, %cst_99 [2] : vector<8x8x128xf32> to vector<8x8xf32>
    %cst_100 = arith.constant -1.000000e+09 : f32
    %188 = vector.broadcast %cst_100 : f32 to vector<8x8xf32>
    %189 = arith.select %3, %187, %188 : vector<8x8xi1>, vector<8x8xf32>
    %cst_101 = arith.constant dense<0xFF800000> : vector<8xf32>
    %190 = vector.multi_reduction <maximumf>, %189, %cst_101 [0] : vector<8x8xf32> to vector<8xf32>
    %191 = vector.shape_cast %190 : vector<8xf32> to vector<1x8xf32>
    %192 = vector.broadcast %191 : vector<1x8xf32> to vector<8x8xf32>
    %193 = arith.subf %189, %192 : vector<8x8xf32>
    %194 = math.exp %193 : vector<8x8xf32>
    %cst_102 = arith.constant dense<0.000000e+00> : vector<8xf32>
    %195 = vector.multi_reduction <add>, %194, %cst_102 [0] : vector<8x8xf32> to vector<8xf32>
    %196 = vector.shape_cast %195 : vector<8xf32> to vector<1x8xf32>
    %197 = vector.broadcast %196 : vector<1x8xf32> to vector<8x8xf32>
    %198 = arith.divf %194, %197 : vector<8x8xf32>
    %199 = vector.shape_cast %198 : vector<8x8xf32> to vector<8x8x1xf32>
    %200 = vector.broadcast %199 : vector<8x8x1xf32> to vector<8x8x128xf32>
    %201 = arith.mulf %200, %0 : vector<8x8x128xf32>
    %cst_103 = arith.constant dense<0.000000e+00> : vector<8x128xf32>
    %202 = vector.multi_reduction <add>, %201, %cst_103 [0] : vector<8x8x128xf32> to vector<8x128xf32>
    %c0_104 = arith.constant 0 : index
    %c0_105 = arith.constant 0 : index
    %203 = vector.load %arg12[%c0_104, %c0_105] : memref<8x384xf32, #tpu.memory_space<vmem>>, vector<8x128xf32>
    tpu.vector_store %arg12[%c0_104, %c0_105], %183 {strides = array<i32>} : memref<8x384xf32, #tpu.memory_space<vmem>>, vector<8x128xf32>,
    %c0_106 = arith.constant 0 : index
    %c128_107 = arith.constant 128 : index
    %204 = vector.load %arg12[%c0_106, %c128_107] : memref<8x384xf32, #tpu.memory_space<vmem>>, vector<8x128xf32>
    tpu.vector_store %arg12[%c0_106, %c128_107], %202 {strides = array<i32>} : memref<8x384xf32, #tpu.memory_space<vmem>>, vector<8x128xf32>,
    %c0_108 = arith.constant 0 : index
    %c256_109 = arith.constant 256 : index
    %205 = vector.load %arg12[%c0_108, %c256_109] : memref<8x384xf32, #tpu.memory_space<vmem>>, vector<8x128xf32>
    tpu.vector_store %arg12[%c0_108, %c256_109], %152 {strides = array<i32>} : memref<8x384xf32, #tpu.memory_space<vmem>>, vector<8x128xf32>,
    %c0_110 = arith.constant 0 : index
    %c0_111 = arith.constant 0 : index
    %206 = vector.load %arg12[%c0_110, %c0_111] : memref<8x384xf32, #tpu.memory_space<vmem>>, vector<8x384xf32>
    %c0_112 = arith.constant 0 : index
    %c0_113 = arith.constant 0 : index
    %207 = vector.load %arg5[%c0_112, %c0_113] : memref<384x512xf32, #tpu.memory_space<vmem>>, vector<384x512xf32>
    %cst_114 = arith.constant dense<0.000000e+00> : vector<8x512xf32>
    %208 = tpu.matmul %206, %207, %cst_114 {dimension_numbers = #tpu.dot_dimension_numbers<[1], [0], [0], [1], [0, 0, 1, 1], [], []>} : vector<8x384xf32>, vector<384x512xf32>, vector<8x512xf32> -> vector<8x512xf32>
    %c0_115 = arith.constant 0 : index
    %c0_116 = arith.constant 0 : index
    %209 = vector.load %arg6[%c0_115, %c0_116] : memref<1x512xf32, #tpu.memory_space<vmem>>, vector<1x512xf32>
    %210 = vector.broadcast %209 : vector<1x512xf32> to vector<8x512xf32>
    %211 = arith.addf %208, %210 : vector<8x512xf32>
    %212 = vector.extract_strided_slice %211 {offsets = [0, 0], sizes = [8, 128], strides = [1, 1]} : vector<8x512xf32> to vector<8x128xf32>
    %213 = arith.negf %212 : vector<8x128xf32>
    %214 = math.exp %213 : vector<8x128xf32>
    %cst_117 = arith.constant 1.000000e+00 : f32
    %215 = vector.broadcast %cst_117 : f32 to vector<8x128xf32>
    %216 = arith.addf %215, %214 : vector<8x128xf32>
    %217 = arith.divf %215, %216 : vector<8x128xf32>
    %218 = vector.extract_strided_slice %211 {offsets = [0, 128], sizes = [8, 128], strides = [1, 1]} : vector<8x512xf32> to vector<8x128xf32>
    %219 = arith.negf %218 : vector<8x128xf32>
    %220 = math.exp %219 : vector<8x128xf32>
    %cst_118 = arith.constant 1.000000e+00 : f32
    %221 = vector.broadcast %cst_118 : f32 to vector<8x128xf32>
    %222 = arith.addf %221, %220 : vector<8x128xf32>
    %223 = arith.divf %221, %222 : vector<8x128xf32>
    %224 = vector.extract_strided_slice %211 {offsets = [0, 256], sizes = [8, 128], strides = [1, 1]} : vector<8x512xf32> to vector<8x128xf32>
    %225 = math.tanh %224 : vector<8x128xf32>
    %226 = vector.extract_strided_slice %211 {offsets = [0, 384], sizes = [8, 128], strides = [1, 1]} : vector<8x512xf32> to vector<8x128xf32>
    %227 = arith.negf %226 : vector<8x128xf32>
    %228 = math.exp %227 : vector<8x128xf32>
    %cst_119 = arith.constant 1.000000e+00 : f32
    %229 = vector.broadcast %cst_119 : f32 to vector<8x128xf32>
    %230 = arith.addf %229, %228 : vector<8x128xf32>
    %231 = arith.divf %229, %230 : vector<8x128xf32>
    %232 = arith.mulf %223, %150 : vector<8x128xf32>
    %233 = arith.mulf %217, %225 : vector<8x128xf32>
    %234 = arith.addf %232, %233 : vector<8x128xf32>
    %235 = math.tanh %234 : vector<8x128xf32>
    %236 = arith.mulf %231, %235 : vector<8x128xf32>
    %c0_120 = arith.constant 0 : index
    %c256_121 = arith.constant 256 : index
    %237 = vector.load %arg12[%c0_120, %c256_121] : memref<8x384xf32, #tpu.memory_space<vmem>>, vector<8x128xf32>
    tpu.vector_store %arg12[%c0_120, %c256_121], %236 {strides = array<i32>} : memref<8x384xf32, #tpu.memory_space<vmem>>, vector<8x128xf32>,
    %c0_122 = arith.constant 0 : index
    %c0_123 = arith.constant 0 : index
    %238 = vector.load %arg12[%c0_122, %c0_123] : memref<8x384xf32, #tpu.memory_space<vmem>>, vector<8x384xf32>
    %c0_124 = arith.constant 0 : index
    %c0_125 = arith.constant 0 : index
    %239 = vector.load %arg7[%c0_124, %c0_125] : memref<384x128xf32, #tpu.memory_space<vmem>>, vector<384x128xf32>
    %cst_126 = arith.constant dense<0.000000e+00> : vector<8x128xf32>
    %240 = tpu.matmul %238, %239, %cst_126 {dimension_numbers = #tpu.dot_dimension_numbers<[1], [0], [0], [1], [0, 0, 1, 1], [], []>} : vector<8x384xf32>, vector<384x128xf32>, vector<8x128xf32> -> vector<8x128xf32>
    %c0_127 = arith.constant 0 : index
    %c0_128 = arith.constant 0 : index
    %241 = vector.load %arg8[%c0_127, %c0_128] : memref<1x128xf32, #tpu.memory_space<vmem>>, vector<1x128xf32>
    %242 = vector.broadcast %241 : vector<1x128xf32> to vector<8x128xf32>
    %243 = arith.addf %240, %242 : vector<8x128xf32>
    %c2_129 = arith.constant 2 : index
    %c0_130 = arith.constant 0 : index
    %c0_131 = arith.constant 0 : index
    %244 = vector.load %arg11[%c2_129, %c0_130, %c0_131] : memref<5x8x128xf32, #tpu.memory_space<vmem>>, vector<1x8x128xf32>
    %245 = vector.shape_cast %244 : vector<1x8x128xf32> to vector<8x128xf32>
    %246 = vector.shape_cast %243 : vector<8x128xf32> to vector<1x8x128xf32>
    tpu.vector_store %arg11[%c2_129, %c0_130, %c0_131], %246 {strides = array<i32>} : memref<5x8x128xf32, #tpu.memory_space<vmem>>, vector<1x8x128xf32>,
    %cst_132 = arith.constant -1.000000e+30 : f32
    %247 = vector.broadcast %cst_132 : f32 to vector<8x128xf32>
    %248 = arith.select %7, %243, %247 : vector<8x128xi1>, vector<8x128xf32>
    %cst_133 = arith.constant dense<0xFF800000> : vector<8xf32>
    %249 = vector.multi_reduction <maximumf>, %248, %cst_133 [1] : vector<8x128xf32> to vector<8xf32>
    %250 = vector.shape_cast %249 : vector<8xf32> to vector<8x1xf32>
    %251 = vector.broadcast %250 : vector<8x1xf32> to vector<8x128xf32>
    %252 = arith.cmpf oeq, %248, %251 : vector<8x128xf32>
    %cst_134 = arith.constant 1.000000e+09 : f32
    %253 = vector.broadcast %cst_134 : f32 to vector<8x128xf32>
    %254 = arith.select %252, %5, %253 : vector<8x128xi1>, vector<8x128xf32>
    %cst_135 = arith.constant dense<0x7F800000> : vector<8xf32>
    %255 = vector.multi_reduction <minimumf>, %254, %cst_135 [1] : vector<8x128xf32> to vector<8xf32>
    %256 = vector.shape_cast %255 : vector<8xf32> to vector<8x1xf32>
    %257 = vector.broadcast %256 : vector<8x1xf32> to vector<8x128xf32>
    %258 = arith.cmpf oeq, %5, %257 : vector<8x128xf32>
    %259 = arith.extui %258 : vector<8x128xi1> to vector<8x128xi32>
    %260 = arith.sitofp %259 : vector<8x128xi32> to vector<8x128xf32>
    %c0_136 = arith.constant 0 : index
    %c0_137 = arith.constant 0 : index
    %261 = vector.load %arg4[%c0_136, %c0_137] : memref<128x128xf32, #tpu.memory_space<vmem>>, vector<128x128xf32>
    %cst_138 = arith.constant dense<0.000000e+00> : vector<8x128xf32>
    %262 = tpu.matmul %260, %261, %cst_138 {dimension_numbers = #tpu.dot_dimension_numbers<[1], [0], [0], [1], [0, 0, 1, 1], [], []>} : vector<8x128xf32>, vector<128x128xf32>, vector<8x128xf32> -> vector<8x128xf32>
    %c3 = arith.constant 3 : index
    %263 = memref.load %arg0[%c3] : memref<5xi32, #tpu.memory_space<smem>>
    %c0_i32_139 = arith.constant 0 : i32
    %264 = arith.cmpi sgt, %263, %c0_i32_139 : i32
    %c3_140 = arith.constant 3 : index
    %c0_141 = arith.constant 0 : index
    %c0_142 = arith.constant 0 : index
    %265 = vector.load %arg1[%c3_140, %c0_141, %c0_142] : memref<5x8x128xf32, #tpu.memory_space<vmem>>, vector<1x8x128xf32>
    %266 = vector.shape_cast %265 : vector<1x8x128xf32> to vector<8x128xf32>
    %267 = arith.select %264, %266, %262 : vector<8x128xf32>
    %268 = vector.shape_cast %236 : vector<8x128xf32> to vector<1x8x128xf32>
    %269 = vector.broadcast %268 : vector<1x8x128xf32> to vector<8x8x128xf32>
    %270 = arith.mulf %0, %269 : vector<8x8x128xf32>
    %cst_143 = arith.constant dense<0.000000e+00> : vector<8x8xf32>
    %271 = vector.multi_reduction <add>, %270, %cst_143 [2] : vector<8x8x128xf32> to vector<8x8xf32>
    %cst_144 = arith.constant -1.000000e+09 : f32
    %272 = vector.broadcast %cst_144 : f32 to vector<8x8xf32>
    %273 = arith.select %3, %271, %272 : vector<8x8xi1>, vector<8x8xf32>
    %cst_145 = arith.constant dense<0xFF800000> : vector<8xf32>
    %274 = vector.multi_reduction <maximumf>, %273, %cst_145 [0] : vector<8x8xf32> to vector<8xf32>
    %275 = vector.shape_cast %274 : vector<8xf32> to vector<1x8xf32>
    %276 = vector.broadcast %275 : vector<1x8xf32> to vector<8x8xf32>
    %277 = arith.subf %273, %276 : vector<8x8xf32>
    %278 = math.exp %277 : vector<8x8xf32>
    %cst_146 = arith.constant dense<0.000000e+00> : vector<8xf32>
    %279 = vector.multi_reduction <add>, %278, %cst_146 [0] : vector<8x8xf32> to vector<8xf32>
    %280 = vector.shape_cast %279 : vector<8xf32> to vector<1x8xf32>
    %281 = vector.broadcast %280 : vector<1x8xf32> to vector<8x8xf32>
    %282 = arith.divf %278, %281 : vector<8x8xf32>
    %283 = vector.shape_cast %282 : vector<8x8xf32> to vector<8x8x1xf32>
    %284 = vector.broadcast %283 : vector<8x8x1xf32> to vector<8x8x128xf32>
    %285 = arith.mulf %284, %0 : vector<8x8x128xf32>
    %cst_147 = arith.constant dense<0.000000e+00> : vector<8x128xf32>
    %286 = vector.multi_reduction <add>, %285, %cst_147 [0] : vector<8x8x128xf32> to vector<8x128xf32>
    %c0_148 = arith.constant 0 : index
    %c0_149 = arith.constant 0 : index
    %287 = vector.load %arg12[%c0_148, %c0_149] : memref<8x384xf32, #tpu.memory_space<vmem>>, vector<8x128xf32>
    tpu.vector_store %arg12[%c0_148, %c0_149], %267 {strides = array<i32>} : memref<8x384xf32, #tpu.memory_space<vmem>>, vector<8x128xf32>,
    %c0_150 = arith.constant 0 : index
    %c128_151 = arith.constant 128 : index
    %288 = vector.load %arg12[%c0_150, %c128_151] : memref<8x384xf32, #tpu.memory_space<vmem>>, vector<8x128xf32>
    tpu.vector_store %arg12[%c0_150, %c128_151], %286 {strides = array<i32>} : memref<8x384xf32, #tpu.memory_space<vmem>>, vector<8x128xf32>,
    %c0_152 = arith.constant 0 : index
    %c256_153 = arith.constant 256 : index
    %289 = vector.load %arg12[%c0_152, %c256_153] : memref<8x384xf32, #tpu.memory_space<vmem>>, vector<8x128xf32>
    tpu.vector_store %arg12[%c0_152, %c256_153], %236 {strides = array<i32>} : memref<8x384xf32, #tpu.memory_space<vmem>>, vector<8x128xf32>,
    %c0_154 = arith.constant 0 : index
    %c0_155 = arith.constant 0 : index
    %290 = vector.load %arg12[%c0_154, %c0_155] : memref<8x384xf32, #tpu.memory_space<vmem>>, vector<8x384xf32>
    %c0_156 = arith.constant 0 : index
    %c0_157 = arith.constant 0 : index
    %291 = vector.load %arg5[%c0_156, %c0_157] : memref<384x512xf32, #tpu.memory_space<vmem>>, vector<384x512xf32>
    %cst_158 = arith.constant dense<0.000000e+00> : vector<8x512xf32>
    %292 = tpu.matmul %290, %291, %cst_158 {dimension_numbers = #tpu.dot_dimension_numbers<[1], [0], [0], [1], [0, 0, 1, 1], [], []>} : vector<8x384xf32>, vector<384x512xf32>, vector<8x512xf32> -> vector<8x512xf32>
    %c0_159 = arith.constant 0 : index
    %c0_160 = arith.constant 0 : index
    %293 = vector.load %arg6[%c0_159, %c0_160] : memref<1x512xf32, #tpu.memory_space<vmem>>, vector<1x512xf32>
    %294 = vector.broadcast %293 : vector<1x512xf32> to vector<8x512xf32>
    %295 = arith.addf %292, %294 : vector<8x512xf32>
    %296 = vector.extract_strided_slice %295 {offsets = [0, 0], sizes = [8, 128], strides = [1, 1]} : vector<8x512xf32> to vector<8x128xf32>
    %297 = arith.negf %296 : vector<8x128xf32>
    %298 = math.exp %297 : vector<8x128xf32>
    %cst_161 = arith.constant 1.000000e+00 : f32
    %299 = vector.broadcast %cst_161 : f32 to vector<8x128xf32>
    %300 = arith.addf %299, %298 : vector<8x128xf32>
    %301 = arith.divf %299, %300 : vector<8x128xf32>
    %302 = vector.extract_strided_slice %295 {offsets = [0, 128], sizes = [8, 128], strides = [1, 1]} : vector<8x512xf32> to vector<8x128xf32>
    %303 = arith.negf %302 : vector<8x128xf32>
    %304 = math.exp %303 : vector<8x128xf32>
    %cst_162 = arith.constant 1.000000e+00 : f32
    %305 = vector.broadcast %cst_162 : f32 to vector<8x128xf32>
    %306 = arith.addf %305, %304 : vector<8x128xf32>
    %307 = arith.divf %305, %306 : vector<8x128xf32>
    %308 = vector.extract_strided_slice %295 {offsets = [0, 256], sizes = [8, 128], strides = [1, 1]} : vector<8x512xf32> to vector<8x128xf32>
    %309 = math.tanh %308 : vector<8x128xf32>
    %310 = vector.extract_strided_slice %295 {offsets = [0, 384], sizes = [8, 128], strides = [1, 1]} : vector<8x512xf32> to vector<8x128xf32>
    %311 = arith.negf %310 : vector<8x128xf32>
    %312 = math.exp %311 : vector<8x128xf32>
    %cst_163 = arith.constant 1.000000e+00 : f32
    %313 = vector.broadcast %cst_163 : f32 to vector<8x128xf32>
    %314 = arith.addf %313, %312 : vector<8x128xf32>
    %315 = arith.divf %313, %314 : vector<8x128xf32>
    %316 = arith.mulf %307, %234 : vector<8x128xf32>
    %317 = arith.mulf %301, %309 : vector<8x128xf32>
    %318 = arith.addf %316, %317 : vector<8x128xf32>
    %319 = math.tanh %318 : vector<8x128xf32>
    %320 = arith.mulf %315, %319 : vector<8x128xf32>
    %c0_164 = arith.constant 0 : index
    %c256_165 = arith.constant 256 : index
    %321 = vector.load %arg12[%c0_164, %c256_165] : memref<8x384xf32, #tpu.memory_space<vmem>>, vector<8x128xf32>
    tpu.vector_store %arg12[%c0_164, %c256_165], %320 {strides = array<i32>} : memref<8x384xf32, #tpu.memory_space<vmem>>, vector<8x128xf32>,
    %c0_166 = arith.constant 0 : index
    %c0_167 = arith.constant 0 : index
    %322 = vector.load %arg12[%c0_166, %c0_167] : memref<8x384xf32, #tpu.memory_space<vmem>>, vector<8x384xf32>
    %c0_168 = arith.constant 0 : index
    %c0_169 = arith.constant 0 : index
    %323 = vector.load %arg7[%c0_168, %c0_169] : memref<384x128xf32, #tpu.memory_space<vmem>>, vector<384x128xf32>
    %cst_170 = arith.constant dense<0.000000e+00> : vector<8x128xf32>
    %324 = tpu.matmul %322, %323, %cst_170 {dimension_numbers = #tpu.dot_dimension_numbers<[1], [0], [0], [1], [0, 0, 1, 1], [], []>} : vector<8x384xf32>, vector<384x128xf32>, vector<8x128xf32> -> vector<8x128xf32>
    %c0_171 = arith.constant 0 : index
    %c0_172 = arith.constant 0 : index
    %325 = vector.load %arg8[%c0_171, %c0_172] : memref<1x128xf32, #tpu.memory_space<vmem>>, vector<1x128xf32>
    %326 = vector.broadcast %325 : vector<1x128xf32> to vector<8x128xf32>
    %327 = arith.addf %324, %326 : vector<8x128xf32>
    %c3_173 = arith.constant 3 : index
    %c0_174 = arith.constant 0 : index
    %c0_175 = arith.constant 0 : index
    %328 = vector.load %arg11[%c3_173, %c0_174, %c0_175] : memref<5x8x128xf32, #tpu.memory_space<vmem>>, vector<1x8x128xf32>
    %329 = vector.shape_cast %328 : vector<1x8x128xf32> to vector<8x128xf32>
    %330 = vector.shape_cast %327 : vector<8x128xf32> to vector<1x8x128xf32>
    tpu.vector_store %arg11[%c3_173, %c0_174, %c0_175], %330 {strides = array<i32>} : memref<5x8x128xf32, #tpu.memory_space<vmem>>, vector<1x8x128xf32>,
    %cst_176 = arith.constant -1.000000e+30 : f32
    %331 = vector.broadcast %cst_176 : f32 to vector<8x128xf32>
    %332 = arith.select %7, %327, %331 : vector<8x128xi1>, vector<8x128xf32>
    %cst_177 = arith.constant dense<0xFF800000> : vector<8xf32>
    %333 = vector.multi_reduction <maximumf>, %332, %cst_177 [1] : vector<8x128xf32> to vector<8xf32>
    %334 = vector.shape_cast %333 : vector<8xf32> to vector<8x1xf32>
    %335 = vector.broadcast %334 : vector<8x1xf32> to vector<8x128xf32>
    %336 = arith.cmpf oeq, %332, %335 : vector<8x128xf32>
    %cst_178 = arith.constant 1.000000e+09 : f32
    %337 = vector.broadcast %cst_178 : f32 to vector<8x128xf32>
    %338 = arith.select %336, %5, %337 : vector<8x128xi1>, vector<8x128xf32>
    %cst_179 = arith.constant dense<0x7F800000> : vector<8xf32>
    %339 = vector.multi_reduction <minimumf>, %338, %cst_179 [1] : vector<8x128xf32> to vector<8xf32>
    %340 = vector.shape_cast %339 : vector<8xf32> to vector<8x1xf32>
    %341 = vector.broadcast %340 : vector<8x1xf32> to vector<8x128xf32>
    %342 = arith.cmpf oeq, %5, %341 : vector<8x128xf32>
    %343 = arith.extui %342 : vector<8x128xi1> to vector<8x128xi32>
    %344 = arith.sitofp %343 : vector<8x128xi32> to vector<8x128xf32>
    %c0_180 = arith.constant 0 : index
    %c0_181 = arith.constant 0 : index
    %345 = vector.load %arg4[%c0_180, %c0_181] : memref<128x128xf32, #tpu.memory_space<vmem>>, vector<128x128xf32>
    %cst_182 = arith.constant dense<0.000000e+00> : vector<8x128xf32>
    %346 = tpu.matmul %344, %345, %cst_182 {dimension_numbers = #tpu.dot_dimension_numbers<[1], [0], [0], [1], [0, 0, 1, 1], [], []>} : vector<8x128xf32>, vector<128x128xf32>, vector<8x128xf32> -> vector<8x128xf32>
    %c4 = arith.constant 4 : index
    %347 = memref.load %arg0[%c4] : memref<5xi32, #tpu.memory_space<smem>>
    %c0_i32_183 = arith.constant 0 : i32
    %348 = arith.cmpi sgt, %347, %c0_i32_183 : i32
    %c4_184 = arith.constant 4 : index
    %c0_185 = arith.constant 0 : index
    %c0_186 = arith.constant 0 : index
    %349 = vector.load %arg1[%c4_184, %c0_185, %c0_186] : memref<5x8x128xf32, #tpu.memory_space<vmem>>, vector<1x8x128xf32>
    %350 = vector.shape_cast %349 : vector<1x8x128xf32> to vector<8x128xf32>
    %351 = arith.select %348, %350, %346 : vector<8x128xf32>
    %352 = vector.shape_cast %320 : vector<8x128xf32> to vector<1x8x128xf32>
    %353 = vector.broadcast %352 : vector<1x8x128xf32> to vector<8x8x128xf32>
    %354 = arith.mulf %0, %353 : vector<8x8x128xf32>
    %cst_187 = arith.constant dense<0.000000e+00> : vector<8x8xf32>
    %355 = vector.multi_reduction <add>, %354, %cst_187 [2] : vector<8x8x128xf32> to vector<8x8xf32>
    %cst_188 = arith.constant -1.000000e+09 : f32
    %356 = vector.broadcast %cst_188 : f32 to vector<8x8xf32>
    %357 = arith.select %3, %355, %356 : vector<8x8xi1>, vector<8x8xf32>
    %cst_189 = arith.constant dense<0xFF800000> : vector<8xf32>
    %358 = vector.multi_reduction <maximumf>, %357, %cst_189 [0] : vector<8x8xf32> to vector<8xf32>
    %359 = vector.shape_cast %358 : vector<8xf32> to vector<1x8xf32>
    %360 = vector.broadcast %359 : vector<1x8xf32> to vector<8x8xf32>
    %361 = arith.subf %357, %360 : vector<8x8xf32>
    %362 = math.exp %361 : vector<8x8xf32>
    %cst_190 = arith.constant dense<0.000000e+00> : vector<8xf32>
    %363 = vector.multi_reduction <add>, %362, %cst_190 [0] : vector<8x8xf32> to vector<8xf32>
    %364 = vector.shape_cast %363 : vector<8xf32> to vector<1x8xf32>
    %365 = vector.broadcast %364 : vector<1x8xf32> to vector<8x8xf32>
    %366 = arith.divf %362, %365 : vector<8x8xf32>
    %367 = vector.shape_cast %366 : vector<8x8xf32> to vector<8x8x1xf32>
    %368 = vector.broadcast %367 : vector<8x8x1xf32> to vector<8x8x128xf32>
    %369 = arith.mulf %368, %0 : vector<8x8x128xf32>
    %cst_191 = arith.constant dense<0.000000e+00> : vector<8x128xf32>
    %370 = vector.multi_reduction <add>, %369, %cst_191 [0] : vector<8x8x128xf32> to vector<8x128xf32>
    %c0_192 = arith.constant 0 : index
    %c0_193 = arith.constant 0 : index
    %371 = vector.load %arg12[%c0_192, %c0_193] : memref<8x384xf32, #tpu.memory_space<vmem>>, vector<8x128xf32>
    tpu.vector_store %arg12[%c0_192, %c0_193], %351 {strides = array<i32>} : memref<8x384xf32, #tpu.memory_space<vmem>>, vector<8x128xf32>,
    %c0_194 = arith.constant 0 : index
    %c128_195 = arith.constant 128 : index
    %372 = vector.load %arg12[%c0_194, %c128_195] : memref<8x384xf32, #tpu.memory_space<vmem>>, vector<8x128xf32>
    tpu.vector_store %arg12[%c0_194, %c128_195], %370 {strides = array<i32>} : memref<8x384xf32, #tpu.memory_space<vmem>>, vector<8x128xf32>,
    %c0_196 = arith.constant 0 : index
    %c256_197 = arith.constant 256 : index
    %373 = vector.load %arg12[%c0_196, %c256_197] : memref<8x384xf32, #tpu.memory_space<vmem>>, vector<8x128xf32>
    tpu.vector_store %arg12[%c0_196, %c256_197], %320 {strides = array<i32>} : memref<8x384xf32, #tpu.memory_space<vmem>>, vector<8x128xf32>,
    %c0_198 = arith.constant 0 : index
    %c0_199 = arith.constant 0 : index
    %374 = vector.load %arg12[%c0_198, %c0_199] : memref<8x384xf32, #tpu.memory_space<vmem>>, vector<8x384xf32>
    %c0_200 = arith.constant 0 : index
    %c0_201 = arith.constant 0 : index
    %375 = vector.load %arg5[%c0_200, %c0_201] : memref<384x512xf32, #tpu.memory_space<vmem>>, vector<384x512xf32>
    %cst_202 = arith.constant dense<0.000000e+00> : vector<8x512xf32>
    %376 = tpu.matmul %374, %375, %cst_202 {dimension_numbers = #tpu.dot_dimension_numbers<[1], [0], [0], [1], [0, 0, 1, 1], [], []>} : vector<8x384xf32>, vector<384x512xf32>, vector<8x512xf32> -> vector<8x512xf32>
    %c0_203 = arith.constant 0 : index
    %c0_204 = arith.constant 0 : index
    %377 = vector.load %arg6[%c0_203, %c0_204] : memref<1x512xf32, #tpu.memory_space<vmem>>, vector<1x512xf32>
    %378 = vector.broadcast %377 : vector<1x512xf32> to vector<8x512xf32>
    %379 = arith.addf %376, %378 : vector<8x512xf32>
    %380 = vector.extract_strided_slice %379 {offsets = [0, 0], sizes = [8, 128], strides = [1, 1]} : vector<8x512xf32> to vector<8x128xf32>
    %381 = arith.negf %380 : vector<8x128xf32>
    %382 = math.exp %381 : vector<8x128xf32>
    %cst_205 = arith.constant 1.000000e+00 : f32
    %383 = vector.broadcast %cst_205 : f32 to vector<8x128xf32>
    %384 = arith.addf %383, %382 : vector<8x128xf32>
    %385 = arith.divf %383, %384 : vector<8x128xf32>
    %386 = vector.extract_strided_slice %379 {offsets = [0, 128], sizes = [8, 128], strides = [1, 1]} : vector<8x512xf32> to vector<8x128xf32>
    %387 = arith.negf %386 : vector<8x128xf32>
    %388 = math.exp %387 : vector<8x128xf32>
    %cst_206 = arith.constant 1.000000e+00 : f32
    %389 = vector.broadcast %cst_206 : f32 to vector<8x128xf32>
    %390 = arith.addf %389, %388 : vector<8x128xf32>
    %391 = arith.divf %389, %390 : vector<8x128xf32>
    %392 = vector.extract_strided_slice %379 {offsets = [0, 256], sizes = [8, 128], strides = [1, 1]} : vector<8x512xf32> to vector<8x128xf32>
    %393 = math.tanh %392 : vector<8x128xf32>
    %394 = vector.extract_strided_slice %379 {offsets = [0, 384], sizes = [8, 128], strides = [1, 1]} : vector<8x512xf32> to vector<8x128xf32>
    %395 = arith.negf %394 : vector<8x128xf32>
    %396 = math.exp %395 : vector<8x128xf32>
    %cst_207 = arith.constant 1.000000e+00 : f32
    %397 = vector.broadcast %cst_207 : f32 to vector<8x128xf32>
    %398 = arith.addf %397, %396 : vector<8x128xf32>
    %399 = arith.divf %397, %398 : vector<8x128xf32>
    %400 = arith.mulf %391, %318 : vector<8x128xf32>
    %401 = arith.mulf %385, %393 : vector<8x128xf32>
    %402 = arith.addf %400, %401 : vector<8x128xf32>
    %403 = math.tanh %402 : vector<8x128xf32>
    %404 = arith.mulf %399, %403 : vector<8x128xf32>
    %c0_208 = arith.constant 0 : index
    %c256_209 = arith.constant 256 : index
    %405 = vector.load %arg12[%c0_208, %c256_209] : memref<8x384xf32, #tpu.memory_space<vmem>>, vector<8x128xf32>
    tpu.vector_store %arg12[%c0_208, %c256_209], %404 {strides = array<i32>} : memref<8x384xf32, #tpu.memory_space<vmem>>, vector<8x128xf32>,
    %c0_210 = arith.constant 0 : index
    %c0_211 = arith.constant 0 : index
    %406 = vector.load %arg12[%c0_210, %c0_211] : memref<8x384xf32, #tpu.memory_space<vmem>>, vector<8x384xf32>
    %c0_212 = arith.constant 0 : index
    %c0_213 = arith.constant 0 : index
    %407 = vector.load %arg7[%c0_212, %c0_213] : memref<384x128xf32, #tpu.memory_space<vmem>>, vector<384x128xf32>
    %cst_214 = arith.constant dense<0.000000e+00> : vector<8x128xf32>
    %408 = tpu.matmul %406, %407, %cst_214 {dimension_numbers = #tpu.dot_dimension_numbers<[1], [0], [0], [1], [0, 0, 1, 1], [], []>} : vector<8x384xf32>, vector<384x128xf32>, vector<8x128xf32> -> vector<8x128xf32>
    %c0_215 = arith.constant 0 : index
    %c0_216 = arith.constant 0 : index
    %409 = vector.load %arg8[%c0_215, %c0_216] : memref<1x128xf32, #tpu.memory_space<vmem>>, vector<1x128xf32>
    %410 = vector.broadcast %409 : vector<1x128xf32> to vector<8x128xf32>
    %411 = arith.addf %408, %410 : vector<8x128xf32>
    %c4_217 = arith.constant 4 : index
    %c0_218 = arith.constant 0 : index
    %c0_219 = arith.constant 0 : index
    %412 = vector.load %arg11[%c4_217, %c0_218, %c0_219] : memref<5x8x128xf32, #tpu.memory_space<vmem>>, vector<1x8x128xf32>
    %413 = vector.shape_cast %412 : vector<1x8x128xf32> to vector<8x128xf32>
    %414 = vector.shape_cast %411 : vector<8x128xf32> to vector<1x8x128xf32>
    tpu.vector_store %arg11[%c4_217, %c0_218, %c0_219], %414 {strides = array<i32>} : memref<5x8x128xf32, #tpu.memory_space<vmem>>, vector<1x8x128xf32>,
    return
  }
}

</mosaic_0001>

<bundles_post_ra>
// kernel: _seq2seq_forward.2
= control target key start
LH: loop header
LB: loop body
LE: loop exit
PB: predicated region body
PF: predicated region fallthrough
CT: control target
= control target key end

     0   :  { %10 = vsyncpa [#allocation3], 0  ;;  %s1620_s18 = smov [#allocation2]   ;;  %s1621_s20 = smov 512   ;;  %s2574_s0 = inlined_call_operand.vmem [shape: f32[8,8,512], index: 0, kind: input, shape index: {}]   ;;  %s2575_s1 = inlined_call_operand.hbm [shape: f32[128,512], index: 1, kind: input, shape index: {}]   ;;  %s2576_s2 = inlined_call_operand.vmem [shape: f32[8,8,128], index: 2, kind: output, shape index: {0}]   ;;  %s2577_s3 = inlined_call_operand.vmem [shape: f32[8,128], index: 3, kind: output, shape index: {1}]   ;;  %s2578_s4 = inlined_call_operand.vmem [shape: f32[8,128], index: 4, kind: output, shape index: {2}]  }
   0x1   :  { %s17_s17 = sshll.u32 %s2575_s1, 4  ;;  %s19_s19 = sshll.u32 %s1620_s18, 4  ;;  %s18_s17 = int_to_ptr.hbm [resolvable:$true] %s17_s17  ;;  %s20_s19 = int_to_ptr.vmem [resolvable:$true] %s19_s19 }
   0x2   :  { %s1622_s21 = smov 32  }
   0x3   :  { %25 = dma.hbm_to_vmem [thread:$0]  %s18_s17, 8192, %s20_s19, [#allocation3], %s1621_s20, %s1621_s20, %s1622_s21  }
   0x4   :  { %1618 = dma.done.wait [#allocation3], 8192  }
   0x5   :  { %1619 = vsyncadd [#allocation3], 4294959104  ;;  %v1652_v0 = vld [vmem:[#allocation2 + $0x1e0] sm:$0xff]  ;;  %v1654_v1 = vld [vmem:[#allocation2 + $0x1e8] sm:$0xff]  ;;  %v1623_v60 = vmov 0.0  }
   0x6   :  { %2685 = vst [vmem:[#allocation5_spill] sm:$0xff] %v1652_v0  ;;  %v1656_v2 = vld [vmem:[#allocation2 + $0x1f8] sm:$0xff]  ;;  %98 = vmatpush.msra.mxu0 %v1652_v0  ;;  %118 = vmatpush.msra.mxu1 %v1654_v1  ;;  %v1660_v3 = vld [vmem:[#allocation2 + $0x1c0] sm:$0xff]  ;;  %v1662_v4 = vld [vmem:[#allocation2 + $0x1c8] sm:$0xff] }
   0x7   :  { %v1664_v5 = vld [vmem:[#allocation2 + $0x1d8] sm:$0xff]  ;;  %158 = vmatpush.msra.mxu3 %v1656_v2  ;;  %v1667_v6 = vld [vmem:[#allocation2 + $0x1a0] sm:$0xff]  ;;  %v1669_v7 = vld [vmem:[#allocation2 + $0x1a8] sm:$0xff] }
   0x8   :  { %99 = vmatpush.msra.mxu0 %v1660_v3  ;;  %119 = vmatpush.msra.mxu1 %v1662_v4  ;;  %v1673_v8 = vld [vmem:[#allocation2 + $0x1b8] sm:$0xff]  ;;  %v1676_v9 = vld [vmem:[#allocation2 + $0x180] sm:$0xff]  ;;  %v1678_v10 = vld [vmem:[#allocation2 + $0x188] sm:$0xff] }
   0x9   :  { %159 = vmatpush.msra.mxu3 %v1664_v5  ;;  %v1682_v11 = vld [vmem:[#allocation2 + $0x198] sm:$0xff]  ;;  %v1685_v12 = vld [vmem:[#allocation2 + $0x160] sm:$0xff]  ;;  %v1687_v13 = vld [vmem:[#allocation2 + $0x168] sm:$0xff] }
   0xa   :  { %100 = vmatpush.msra.mxu0 %v1667_v6  ;;  %120 = vmatpush.msra.mxu1 %v1669_v7  ;;  %v1691_v14 = vld [vmem:[#allocation2 + $0x178] sm:$0xff]  ;;  %v1694_v15 = vld [vmem:[#allocation2 + $0x140] sm:$0xff]  ;;  %v1696_v16 = vld [vmem:[#allocation2 + $0x148] sm:$0xff] }
   0xb   :  { %160 = vmatpush.msra.mxu3 %v1673_v8  ;;  %v1698_v17 = vld [vmem:[#allocation2 + $0x1f0] sm:$0xff]  ;;  %v1702_v18 = vld [vmem:[#allocation2 + $0x158] sm:$0xff]  ;;  %v1707_v20 = vld [vmem:[#allocation2 + $0x120] sm:$0xff] }
   0xc   :  { %101 = vmatpush.msra.mxu0 %v1676_v9  ;;  %121 = vmatpush.msra.mxu1 %v1678_v10  ;;  %v1704_v19 = vld [vmem:[#allocation2 + $0x1d0] sm:$0xff]  ;;  %v1709_v21 = vld [vmem:[#allocation2 + $0x128] sm:$0xff]  ;;  %v1714_v22 = vld [vmem:[#allocation2 + $0x138] sm:$0xff] }
   0xd   :  { %161 = vmatpush.msra.mxu3 %v1682_v11  ;;  %138 = vmatpush.msra.mxu2 %v1698_v17  ;;  %v1716_v23 = vld [vmem:[#allocation2 + $0x1b0] sm:$0xff]  ;;  %v1719_v24 = vld [vmem:[#allocation2 + $0x100] sm:$0xff]  ;;  %v1721_v25 = vld [vmem:[#allocation2 + $0x108] sm:$0xff] }
   0xe   :  { %102 = vmatpush.msra.mxu0 %v1685_v12  ;;  %122 = vmatpush.msra.mxu1 %v1687_v13  ;;  %v1726_v26 = vld [vmem:[#allocation2 + $0x118] sm:$0xff]  ;;  %v1728_v27 = vld [vmem:[#allocation2 + $0x190] sm:$0xff]  ;;  %v1731_v28 = vld [vmem:[#allocation2 + $0xe0] sm:$0xff] }
   0xf   :  { %162 = vmatpush.msra.mxu3 %v1691_v14  ;;  %139 = vmatpush.msra.mxu2 %v1704_v19  ;;  %v1733_v29 = vld [vmem:[#allocation2 + $0xe8] sm:$0xff]  ;;  %v1738_v30 = vld [vmem:[#allocation2 + $0xf8] sm:$0xff]  ;;  %v1740_v31 = vld [vmem:[#allocation2 + $0x170] sm:$0xff] }
  0x10   :  { %103 = vmatpush.msra.mxu0 %v1694_v15  ;;  %123 = vmatpush.msra.mxu1 %v1696_v16  ;;  %v1743_v32 = vld [vmem:[#allocation2 + $0xc0] sm:$0xff]  ;;  %v1745_v33 = vld [vmem:[#allocation2 + $0xc8] sm:$0xff]  ;;  %v1750_v34 = vld [vmem:[#allocation2 + $0xd8] sm:$0xff] }
  0x11   :  { %163 = vmatpush.msra.mxu3 %v1702_v18  ;;  %140 = vmatpush.msra.mxu2 %v1716_v23  ;;  %2686 = vst [vmem:[#allocation6_spill] sm:$0xff] %v1750_v34  ;;  %v1752_v35 = vld [vmem:[#allocation2 + $0x150] sm:$0xff]  ;;  %v1755_v36 = vld [vmem:[#allocation2 + $0xa0] sm:$0xff]  ;;  %v1757_v37 = vld [vmem:[#allocation2 + $0xa8] sm:$0xff] }
  0x12   :  { %104 = vmatpush.msra.mxu0 %v1707_v20  ;;  %124 = vmatpush.msra.mxu1 %v1709_v21  ;;  %2687 = vst [vmem:[#allocation7_spill] sm:$0xff] %v1755_v36  ;;  %v1762_v38 = vld [vmem:[#allocation2 + $0xb8] sm:$0xff]  ;;  %v1764_v39 = vld [vmem:[#allocation2 + $0x130] sm:$0xff]  ;;  %v1767_v40 = vld [vmem:[#allocation2 + $0x80] sm:$0xff] }
  0x13   :  { %164 = vmatpush.msra.mxu3 %v1714_v22  ;;  %141 = vmatpush.msra.mxu2 %v1728_v27  ;;  %2688 = vst [vmem:[#allocation8_spill] sm:$0xff] %v1757_v37  ;;  %v1769_v41 = vld [vmem:[#allocation2 + $0x88] sm:$0xff]  ;;  %v1774_v42 = vld [vmem:[#allocation2 + $0x98] sm:$0xff]  ;;  %v1776_v43 = vld [vmem:[#allocation2 + $0x110] sm:$0xff] }
  0x14   :  { %105 = vmatpush.msra.mxu0 %v1719_v24  ;;  %125 = vmatpush.msra.mxu1 %v1721_v25  ;;  %2689 = vst [vmem:[#allocation9_spill] sm:$0xff] %v1762_v38  ;;  %v1779_v44 = vld [vmem:[#allocation2 + $0x60] sm:$0xff]  ;;  %v1781_v45 = vld [vmem:[#allocation2 + $0x68] sm:$0xff]  ;;  %v1786_v46 = vld [vmem:[#allocation2 + $0x78] sm:$0xff] }
  0x15   :  { %165 = vmatpush.msra.mxu3 %v1726_v26  ;;  %142 = vmatpush.msra.mxu2 %v1740_v31  ;;  %2690 = vst [vmem:[#allocation10_spill] sm:$0xff] %v1767_v40  ;;  %v1788_v47 = vld [vmem:[#allocation2 + $0xf0] sm:$0xff]  ;;  %v1791_v48 = vld [vmem:[#allocation2 + $0x40] sm:$0xff]  ;;  %v1793_v49 = vld [vmem:[#allocation2 + $0x48] sm:$0xff] }
  0x16   :  { %106 = vmatpush.msra.mxu0 %v1731_v28  ;;  %126 = vmatpush.msra.mxu1 %v1733_v29  ;;  %2691 = vst [vmem:[#allocation11_spill] sm:$0xff] %v1769_v41  ;;  %v1798_v50 = vld [vmem:[#allocation2 + $0x58] sm:$0xff]  ;;  %v1800_v51 = vld [vmem:[#allocation2 + $0xd0] sm:$0xff]  ;;  %v1803_v52 = vld [vmem:[#allocation2 + $0x20] sm:$0xff] }
  0x17   :  { %166 = vmatpush.msra.mxu3 %v1738_v30  ;;  %143 = vmatpush.msra.mxu2 %v1752_v35  ;;  %2692 = vst [vmem:[#allocation12_spill] sm:$0xff] %v1774_v42  ;;  %v1805_v53 = vld [vmem:[#allocation2 + $0x28] sm:$0xff]  ;;  %v1810_v54 = vld [vmem:[#allocation2 + $0x38] sm:$0xff]  ;;  %v1812_v55 = vld [vmem:[#allocation2 + $0xb0] sm:$0xff] }
  0x18   :  { %107 = vmatpush.msra.mxu0 %v1743_v32  ;;  %127 = vmatpush.msra.mxu1 %v1745_v33  ;;  %2693 = vst [vmem:[#allocation13_spill] sm:$0xff] %v1779_v44  ;;  %v1815_v56 = vld [vmem:[#allocation2] sm:$0xff]  ;;  %v1817_v57 = vld [vmem:[#allocation2 + $0x8] sm:$0xff]  ;;  %v1822_v58 = vld [vmem:[#allocation2 + $0x18] sm:$0xff] }
  0x19   :  { %167 = vmatpush.msra.mxu3 %v1750_v34  ;;  %2694 = vst [vmem:[#allocation14_spill] sm:$0xff] %v1781_v45  ;;  %144 = vmatpush.msra.mxu2 %v1764_v39  ;;  %v1828_v59 = vld [vmem:[#allocation2 + $0x90] sm:$0xff] }
  0x1a   :  { %108 = vmatpush.msra.mxu0 %v1755_v36  ;;  %128 = vmatpush.msra.mxu1 %v1757_v37  ;;  %2695 = vst [vmem:[#allocation15_spill] sm:$0xff] %v1786_v46  ;;  %v1831_v61 = vld [vmem:[#allocation2 + $0x70] sm:$0xff] }
  0x1b   :  { %168 = vmatpush.msra.mxu3 %v1762_v38  ;;  %2696 = vst [vmem:[#allocation16_spill] sm:$0xff] %v1791_v48  ;;  %145 = vmatpush.msra.mxu2 %v1776_v43  ;;  %v1835_v62 = vld [vmem:[#allocation2 + $0x50] sm:$0xff] }
  0x1c   :  { %109 = vmatpush.msra.mxu0 %v1767_v40  ;;  %129 = vmatpush.msra.mxu1 %v1769_v41  ;;  %2697 = vst [vmem:[#allocation17_spill] sm:$0xff] %v1793_v49  ;;  %v1841_v63 = vld [vmem:[#allocation2 + $0x30] sm:$0xff] }
  0x1d   :  { %169 = vmatpush.msra.mxu3 %v1774_v42  ;;  %2698 = vst [vmem:[#allocation18_spill] sm:$0xff] %v1798_v50  ;;  %146 = vmatpush.msra.mxu2 %v1788_v47 }
  0x1e   :  { %110 = vmatpush.msra.mxu0 %v1779_v44  ;;  %130 = vmatpush.msra.mxu1 %v1781_v45  ;;  %2699 = vst [vmem:[#allocation19_spill] sm:$0xff] %v1800_v51 }
  0x1f   :  { %170 = vmatpush.msra.mxu3 %v1786_v46  ;;  %2700 = vst [vmem:[#allocation20_spill] sm:$0xff] %v1803_v52  ;;  %147 = vmatpush.msra.mxu2 %v1800_v51 }
  0x20   :  { %2701 = vst [vmem:[#allocation21_spill] sm:$0xff] %v1805_v53  ;;  %111 = vmatpush.msra.mxu0 %v1791_v48  ;;  %131 = vmatpush.msra.mxu1 %v1793_v49 }
  0x21   :  { %2702 = vst [vmem:[#allocation22_spill] sm:$0xff] %v1810_v54  ;;  %171 = vmatpush.msra.mxu3 %v1798_v50  ;;  %148 = vmatpush.msra.mxu2 %v1812_v55 }
  0x22   :  { %2703 = vst [vmem:[#allocation23_spill] sm:$0xff] %v1812_v55  ;;  %112 = vmatpush.msra.mxu0 %v1803_v52  ;;  %132 = vmatpush.msra.mxu1 %v1805_v53 }
  0x23   :  { %2704 = vst [vmem:[#allocation24_spill] sm:$0xff] %v1815_v56  ;;  %172 = vmatpush.msra.mxu3 %v1810_v54  ;;  %149 = vmatpush.msra.mxu2 %v1828_v59 }
  0x24   :  { %2705 = vst [vmem:[#allocation25_spill] sm:$0xff] %v1817_v57  ;;  %113 = vmatpush.msra.mxu0 %v1815_v56  ;;  %133 = vmatpush.msra.mxu1 %v1817_v57 }
  0x25   :  { %2706 = vst [vmem:[#allocation26_spill] sm:$0xff] %v1822_v58  ;;  %173 = vmatpush.msra.mxu3 %v1822_v58  ;;  %114 = vmatmul.f32.vlgmr.msra.gmra.mxu0 %v1623_v60 }
  0x26   :  { %2707 = vst [vmem:[#allocation27_spill] sm:$0xff] %v1828_v59  ;;  %134 = vmatmul.f32.vlgmr.msra.gmra.mxu1 %v1623_v60  ;;  %174 = vmatmul.f32.vlgmr.msra.gmra.mxu3 %v1623_v60 }
  0x27   :  { %2708 = vst [vmem:[#allocation28_spill] sm:$0xff] %v1831_v61  ;;  %251 = vmatpush.msrb.mxu0 %v1652_v0  ;;  %271 = vmatpush.msrb.mxu1 %v1654_v1  ;;  %v1847_v0 = vld [vmem:[#allocation2 + $0x10] sm:$0xff] }
  0x28   :  { %2709 = vst [vmem:[#allocation29_spill] sm:$0xff] %v1835_v62  ;;  %311 = vmatpush.msrb.mxu3 %v1656_v2  ;;  %150 = vmatpush.msra.mxu2 %v1831_v61 }
  0x29   :  { %252 = vmatpush.msrb.mxu0 %v1660_v3  ;;  %2710 = vst [vmem:[#allocation30_spill] sm:$0xff] %v1841_v63  ;;  %272 = vmatpush.msrb.mxu1 %v1662_v4 }
  0x2a   :  { %312 = vmatpush.msrb.mxu3 %v1664_v5  ;;  %151 = vmatpush.msra.mxu2 %v1835_v62  ;;  %2711 = vst [vmem:[#allocation31_spill] sm:$0xff] %v1847_v0 }
  0x2b   :  { %253 = vmatpush.msrb.mxu0 %v1667_v6  ;;  %273 = vmatpush.msrb.mxu1 %v1669_v7 }
  0x2c   :  { %313 = vmatpush.msrb.mxu3 %v1673_v8  ;;  %152 = vmatpush.msra.mxu2 %v1841_v63 }
  0x2d   :  { %254 = vmatpush.msrb.mxu0 %v1676_v9  ;;  %274 = vmatpush.msrb.mxu1 %v1678_v10 }
  0x2e   :  { %314 = vmatpush.msrb.mxu3 %v1682_v11  ;;  %153 = vmatpush.msra.mxu2 %v1847_v0 }
  0x2f   :  { %255 = vmatpush.msrb.mxu0 %v1685_v12  ;;  %154 = vmatmul.f32.vlgmr.msra.gmra.mxu2 %v1623_v60  ;;  %v2712_v60 = vld [vmem:[#allocation5_spill] sm:$0xff] }
  0x30   :  { %275 = vmatpush.msrb.mxu1 %v1687_v13  ;;  %291 = vmatpush.msrb.mxu2 %v1698_v17 }
  0x31   :  { %315 = vmatpush.msrb.mxu3 %v1691_v14  ;;  %256 = vmatpush.msrb.mxu0 %v1694_v15 }
  0x32   :  { %276 = vmatpush.msrb.mxu1 %v1696_v16  ;;  %292 = vmatpush.msrb.mxu2 %v1704_v19 }
  0x33   :  { %316 = vmatpush.msrb.mxu3 %v1702_v18  ;;  %257 = vmatpush.msrb.mxu0 %v1707_v20 }
  0x34   :  { %277 = vmatpush.msrb.mxu1 %v1709_v21  ;;  %293 = vmatpush.msrb.mxu2 %v1716_v23 }
  0x35   :  { %317 = vmatpush.msrb.mxu3 %v1714_v22  ;;  %258 = vmatpush.msrb.mxu0 %v1719_v24 }
  0x36   :  { %278 = vmatpush.msrb.mxu1 %v1721_v25  ;;  %294 = vmatpush.msrb.mxu2 %v1728_v27 }
  0x37   :  { %318 = vmatpush.msrb.mxu3 %v1726_v26  ;;  %259 = vmatpush.msrb.mxu0 %v1731_v28 }
  0x38   :  { %279 = vmatpush.msrb.mxu1 %v1733_v29  ;;  %295 = vmatpush.msrb.mxu2 %v1740_v31 }
  0x39   :  { %319 = vmatpush.msrb.mxu3 %v1738_v30  ;;  %260 = vmatpush.msrb.mxu0 %v1743_v32 }
  0x3a   :  { %280 = vmatpush.msrb.mxu1 %v1745_v33  ;;  %296 = vmatpush.msrb.mxu2 %v1752_v35 }
  0x3b   :  { %320 = vmatpush.msrb.mxu3 %v1750_v34  ;;  %261 = vmatpush.msrb.mxu0 %v1755_v36 }
  0x3c   :  { %281 = vmatpush.msrb.mxu1 %v1757_v37  ;;  %297 = vmatpush.msrb.mxu2 %v1764_v39 }
  0x3d   :  { %321 = vmatpush.msrb.mxu3 %v1762_v38  ;;  %262 = vmatpush.msrb.mxu0 %v1767_v40 }
  0x3e   :  { %282 = vmatpush.msrb.mxu1 %v1769_v41  ;;  %298 = vmatpush.msrb.mxu2 %v1776_v43 }
  0x3f   :  { %322 = vmatpush.msrb.mxu3 %v1774_v42  ;;  %263 = vmatpush.msrb.mxu0 %v1779_v44 }
  0x40   :  { %283 = vmatpush.msrb.mxu1 %v1781_v45  ;;  %299 = vmatpush.msrb.mxu2 %v1788_v47 }
  0x41   :  { %323 = vmatpush.msrb.mxu3 %v1786_v46  ;;  %264 = vmatpush.msrb.mxu0 %v1791_v48 }
  0x42   :  { %284 = vmatpush.msrb.mxu1 %v1793_v49  ;;  %300 = vmatpush.msrb.mxu2 %v1800_v51 }
  0x43   :  { %324 = vmatpush.msrb.mxu3 %v1798_v50  ;;  %265 = vmatpush.msrb.mxu0 %v1803_v52 }
  0x44   :  { %285 = vmatpush.msrb.mxu1 %v1805_v53  ;;  %301 = vmatpush.msrb.mxu2 %v1812_v55 }
  0x45   :  { %325 = vmatpush.msrb.mxu3 %v1810_v54  ;;  %266 = vmatpush.msrb.mxu0 %v1815_v56 }
  0x46   :  { %286 = vmatpush.msrb.mxu1 %v1817_v57  ;;  %302 = vmatpush.msrb.mxu2 %v1828_v59 }
  0x47   :  { %326 = vmatpush.msrb.mxu3 %v1822_v58  ;;  %405 = vmatpush.msra.mxu0 %v2712_v60 }
  0x48   :  { %425 = vmatpush.msra.mxu1 %v1654_v1  ;;  %303 = vmatpush.msrb.mxu2 %v1831_v61 }
  0x49   :  { %465 = vmatpush.msra.mxu3 %v1656_v2  ;;  %406 = vmatpush.msra.mxu0 %v1660_v3 }
  0x4a   :  { %426 = vmatpush.msra.mxu1 %v1662_v4  ;;  %304 = vmatpush.msrb.mxu2 %v1835_v62 }
  0x4b   :  { %466 = vmatpush.msra.mxu3 %v1664_v5  ;;  %407 = vmatpush.msra.mxu0 %v1667_v6 }
  0x4c   :  { %427 = vmatpush.msra.mxu1 %v1669_v7  ;;  %305 = vmatpush.msrb.mxu2 %v1841_v63 }
  0x4d   :  { %467 = vmatpush.msra.mxu3 %v1673_v8  ;;  %408 = vmatpush.msra.mxu0 %v1676_v9 }
  0x4e   :  { %428 = vmatpush.msra.mxu1 %v1678_v10  ;;  %306 = vmatpush.msrb.mxu2 %v1847_v0 }
  0x4f   :  { %468 = vmatpush.msra.mxu3 %v1682_v11  ;;  %409 = vmatpush.msra.mxu0 %v1685_v12 }
  0x50   :  { %445 = vmatpush.msra.mxu2 %v1698_v17  ;;  %429 = vmatpush.msra.mxu1 %v1687_v13 }
  0x51   :  { %469 = vmatpush.msra.mxu3 %v1691_v14  ;;  %410 = vmatpush.msra.mxu0 %v1694_v15 }
  0x52   :  { %446 = vmatpush.msra.mxu2 %v1704_v19  ;;  %430 = vmatpush.msra.mxu1 %v1696_v16 }
  0x53   :  { %470 = vmatpush.msra.mxu3 %v1702_v18  ;;  %411 = vmatpush.msra.mxu0 %v1707_v20 }
  0x54   :  { %447 = vmatpush.msra.mxu2 %v1716_v23  ;;  %431 = vmatpush.msra.mxu1 %v1709_v21 }
  0x55   :  { %471 = vmatpush.msra.mxu3 %v1714_v22  ;;  %412 = vmatpush.msra.mxu0 %v1719_v24 }
  0x56   :  { %448 = vmatpush.msra.mxu2 %v1728_v27  ;;  %432 = vmatpush.msra.mxu1 %v1721_v25 }
  0x57   :  { %472 = vmatpush.msra.mxu3 %v1726_v26  ;;  %413 = vmatpush.msra.mxu0 %v1731_v28 }
  0x58   :  { %449 = vmatpush.msra.mxu2 %v1740_v31  ;;  %433 = vmatpush.msra.mxu1 %v1733_v29 }
  0x59   :  { %473 = vmatpush.msra.mxu3 %v1738_v30  ;;  %414 = vmatpush.msra.mxu0 %v1743_v32 }
  0x5a   :  { %450 = vmatpush.msra.mxu2 %v1752_v35  ;;  %434 = vmatpush.msra.mxu1 %v1745_v33 }
  0x5b   :  { %474 = vmatpush.msra.mxu3 %v1750_v34  ;;  %415 = vmatpush.msra.mxu0 %v1755_v36 }
  0x5c   :  { %451 = vmatpush.msra.mxu2 %v1764_v39  ;;  %435 = vmatpush.msra.mxu1 %v1757_v37 }
  0x5d   :  { %475 = vmatpush.msra.mxu3 %v1762_v38  ;;  %416 = vmatpush.msra.mxu0 %v1767_v40 }
  0x5e   :  { %452 = vmatpush.msra.mxu2 %v1776_v43  ;;  %436 = vmatpush.msra.mxu1 %v1769_v41 }
  0x5f   :  { %476 = vmatpush.msra.mxu3 %v1774_v42  ;;  %417 = vmatpush.msra.mxu0 %v1779_v44 }
  0x60   :  { %453 = vmatpush.msra.mxu2 %v1788_v47  ;;  %437 = vmatpush.msra.mxu1 %v1781_v45 }
  0x61   :  { %477 = vmatpush.msra.mxu3 %v1786_v46  ;;  %418 = vmatpush.msra.mxu0 %v1791_v48 }
  0x62   :  { %454 = vmatpush.msra.mxu2 %v1800_v51  ;;  %438 = vmatpush.msra.mxu1 %v1793_v49 }
  0x63   :  { %478 = vmatpush.msra.mxu3 %v1798_v50  ;;  %419 = vmatpush.msra.mxu0 %v1803_v52 }
  0x64   :  { %455 = vmatpush.msra.mxu2 %v1812_v55  ;;  %439 = vmatpush.msra.mxu1 %v1805_v53 }
  0x65   :  { %479 = vmatpush.msra.mxu3 %v1810_v54  ;;  %420 = vmatpush.msra.mxu0 %v1815_v56  ;;  %v94_v54 = vld [vmem:[%s2574_s0] sm:$0xff]  ;;  %v95_v56 = vld [vmem:[%s2574_s0 + $0x8] sm:$0xff] }
  0x66   :  { %456 = vmatpush.msra.mxu2 %v1828_v59  ;;  %440 = vmatpush.msra.mxu1 %v1817_v57 }
  0x67   :  { %480 = vmatpush.msra.mxu3 %v1822_v58 }
  0x68   :  { %457 = vmatpush.msra.mxu2 %v1831_v61 }
  0x6a   :  { %458 = vmatpush.msra.mxu2 %v1835_v62 }
  0x6c   :  { %459 = vmatpush.msra.mxu2 %v1841_v63  ;;  %v97_v63 = vld [vmem:[%s2574_s0 + $0x18] sm:$0xff] }
  0x6e   :  { %460 = vmatpush.msra.mxu2 %v1847_v0 }
  0xa2   :  { %v115_v53 = vpop.f32.mrf.mxu0 }
  0xa3   :  { %v178_v57 = vadd.f32 %v115_v53, %v94_v54  ;;  %v135_v52 = vpop.f32.mrf.mxu1 }
  0xa4   :  { %v179_v58 = vadd.f32 %v135_v52, %v95_v56  ;;  %v96_v52 = vld [vmem:[%s2574_s0 + $0x10] sm:$0xff] }
  0xa5   :  { %v1339_v50 = vmul.f32 -1.442695, %v178_v57 }
  0xa6   :  { %v1340_v49 = vmul.f32 -1.442695, %v179_v58 }
  0xa7   :  { %1402 = vpow2.f32 %v1339_v50 }
  0xa8   :  { %1404 = vpow2.f32 %v1340_v49 }
  0xa9   :  { %v175_v0 = vpop.f32.mrf.mxu3 }
  0xaa   :  { %v181_v62 = vadd.f32 %v175_v0, %v97_v63 }
  0xac   :  { %v1341_v48 = vmul.f32 -1.442695, %v181_v62 }
  0xad   :  { %v1403_v46 = vpop.eup %1402 }
  0xae   :  { %v1405_v61 = vpop.eup %1404  ;;  %v185_v45 = vadd.f32 1.0, %v1403_v46  ;;  %1406 = vpow2.f32 %v1341_v48 }
  0xaf   :  { %v204_v44 = vadd.f32 1.0, %v1405_v61 }
  0xb0   :  { %1408 = vrcp.f32 %v185_v45  ;;  %v197_v48 = vand.u32 2147483648, %v185_v45  ;;  %v195_v42 = vand.u32 2147483647, %v185_v45  ;;  %vm191_vm2 = vweird.f32 %v185_v45 }
  0xb1   :  { %1410 = vrcp.f32 %v204_v44  ;;  %v216_v61 = vand.u32 2147483648, %v204_v44  ;;  %v214_v41 = vand.u32 2147483647, %v204_v44  ;;  %vm210_vm3 = vweird.f32 %v204_v44 }
  0xb2   :  { %v155_v50 = vpop.f32.mrf.mxu2  ;;  %vm196_vm5 = vcmp.eq.f32.partialorder %v195_v42, 8.507059e+37 }
  0xb3   :  { %v180_v54 = vadd.f32 %v155_v50, %v96_v52  ;;  %vm215_vm7 = vcmp.eq.f32.partialorder %v214_v41, 8.507059e+37 }
  0xb4   :  { %v1407_v53 = vpop.eup %1406 }
  0xb5   :  { %v224_v56 = vadd.f32 1.0, %v1407_v53  ;;  %v198_v53 = vor.u32 1.1754944e-38, %v197_v48  ;;  %v2720_v48 = vld [vmem:[#allocation11_spill] sm:$0xff] }
  0xb6   :  { %v1409_v57 = vpop.eup %1408 }
  0xb7   :  { %v1411_v49 = vpop.eup %1410  ;;  %v187_v58 = vmul.f32 %v1409_v57, %v185_v45  ;;  %1412 = vrcp.f32 %v224_v56  ;;  %vm192_vm0 = vweird.f32 %v1409_v57  ;;  %v236_v45 = vand.u32 2147483648, %v224_v56 }
  0xb8   :  { %v206_v0 = vmul.f32 %v1411_v49, %v204_v44  ;;  %1414 = vtanh.f32 %v180_v54  ;;  %vm211_vm1 = vweird.f32 %v1411_v49  ;;  %vm193_vm4 = vmor %vm191_vm2, %vm192_vm0  ;;  %v217_v54 = vor.u32 1.1754944e-38, %v216_v61  ;;  %v2721_v61 = vld [vmem:[#allocation27_spill] sm:$0xff] }
  0xb9   :  { %v188_v62 = vsub.f32 1.0, %v187_v58  ;;  %vm212_vm6 = vmor %vm210_vm3, %vm211_vm1  ;;  %vm230_vm9 = vweird.f32 %v224_v56  ;;  %v237_v42 = vor.u32 1.1754944e-38, %v236_v45  ;;  %v2731_v45 = vld [vmem:[#allocation20_spill] sm:$0xff] }
  0xba   :  { %v207_v46 = vsub.f32 1.0, %v206_v0 }
  0xbb   :  { %v189_v63 = vmul.f32 %v1409_v57, %v188_v62 }
  0xbc   :  { %v208_v59 = vmul.f32 %v1411_v49, %v207_v46 }
  0xbd   :  { %v1413_v40 = vpop.eup %1412  ;;  %v190_v38 = vadd.f32 %v1409_v57, %v189_v63 }
  0xbe   :  { %v1415_v52 = vpop.eup %1414  ;;  %v226_v50 = vmul.f32 %v1413_v40, %v224_v56  ;;  %v209_v55 = vadd.f32 %v1411_v49, %v208_v59  ;;  %vm231_vm8 = vweird.f32 %v1413_v40  ;;  %v234_v59 = vand.u32 2147483647, %v224_v56  ;;  %v2718_v56 = vld [vmem:[#allocation9_spill] sm:$0xff] }
  0xbf   :  { %v194_v58 = vsel %vm193_vm4, %v1409_v57, %v190_v38  ;;  %vm232_vm10 = vmor %vm230_vm9, %vm231_vm8 }
  0xc0   :  { %v227_v0 = vsub.f32 1.0, %v226_v50  ;;  %v199_v62 = vsel %vm196_vm5, %v198_v53, %v194_v58  ;;  %v213_v37 = vsel %vm212_vm6, %v1411_v49, %v209_v55  ;;  %vm235_vm11 = vcmp.eq.f32.partialorder %v234_v59, 8.507059e+37  ;;  %v2719_v49 = vld [vmem:[#allocation10_spill] sm:$0xff]  ;;  %v2723_v50 = vld [vmem:[#allocation13_spill] sm:$0xff]  ;;  %v2726_v58 = vld [vmem:[#allocation15_spill] sm:$0xff] }
  0xc1   :  { %v218_v46 = vsel %vm215_vm7, %v217_v54, %v213_v37  ;;  %v241_v36 = vmul.f32 %v1415_v52, %v199_v62  ;;  %v2715_v37 = vld [vmem:[#allocation7_spill] sm:$0xff]  ;;  %v2722_v52 = vld [vmem:[#allocation12_spill] sm:$0xff]  ;;  %v2724_v53 = vld [vmem:[#allocation14_spill] sm:$0xff] }
  0xc2   :  { %v228_v34 = vmul.f32 %v1413_v40, %v227_v0  ;;  %v240_v51 = vmul.f32 0.0, %v218_v46  ;;  %v2725_v54 = vld [vmem:[#allocation28_spill] sm:$0xff]  ;;  %v2728_v62 = vld [vmem:[#allocation17_spill] sm:$0xff] }
  0xc3   :  { %v2727_v0 = vld [vmem:[#allocation16_spill] sm:$0xff]  ;;  %v2729_v46 = vld [vmem:[#allocation29_spill] sm:$0xff] }
  0xc4   :  { %v1984_v63 = vadd.f32 %v241_v36, %v240_v51  ;;  %v229_v44 = vadd.f32 %v1413_v40, %v228_v34  ;;  %v2713_v34 = vld [vmem:[#allocation19_spill] sm:$0xff]  ;;  %v2714_v36 = vld [vmem:[#allocation6_spill] sm:$0xff]  ;;  %v2732_v59 = vld [vmem:[#allocation21_spill] sm:$0xff] }
  0xc5   :  { %v2717_v51 = vld [vmem:[#allocation23_spill] sm:$0xff] }
  0xc6   :  { %1416 = vtanh.f32 %v1984_v63  ;;  %v233_v38 = vsel %vm232_vm10, %v1413_v40, %v229_v44  ;;  %v2716_v40 = vld [vmem:[#allocation8_spill] sm:$0xff]  ;;  %v2730_v44 = vld [vmem:[#allocation18_spill] sm:$0xff] }
  0xc7   :  { %v238_v55 = vsel %vm235_vm11, %v237_v42, %v233_v38  ;;  %v2733_v38 = vld [vmem:[#allocation30_spill] sm:$0xff] }
  0xc8   :  { %v2734_v42 = vld [vmem:[#allocation22_spill] sm:$0xff] }
  0xcc   :  { %v1417_v57 = vpop.eup %1416 }
  0xcd   :  { %v244_v41 = vmul.f32 %v1417_v57, %v238_v55  ;;  %v2735_v57 = vld [vmem:[#allocation24_spill] sm:$0xff]  ;;  %v2736_v55 = vld [vmem:[#allocation25_spill] sm:$0xff] }
  0xcf   :  { %245 = vst [vmem:[%s2576_s2] sm:$0xff] %v244_v41  ;;  %267 = vmatmul.f32.vlgmr.msrb.gmra.mxu0 %v244_v41  ;;  %287 = vmatmul.f32.vlgmr.msrb.gmra.mxu1 %v244_v41 }
  0xd0   :  { %307 = vmatmul.f32.vlgmr.msrb.gmra.mxu2 %v244_v41  ;;  %327 = vmatmul.f32.vlgmr.msrb.gmra.mxu3 %v244_v41  ;;  %v2737_v41 = vld [vmem:[#allocation31_spill] sm:$0xff] }
  0xd1   :  { %559 = vmatpush.msrb.mxu0 %v2712_v60  ;;  %579 = vmatpush.msrb.mxu1 %v1654_v1 }
  0xd2   :  { %599 = vmatpush.msrb.mxu2 %v1698_v17  ;;  %619 = vmatpush.msrb.mxu3 %v1656_v2 }
  0xd3   :  { %560 = vmatpush.msrb.mxu0 %v1660_v3  ;;  %580 = vmatpush.msrb.mxu1 %v1662_v4 }
  0xd4   :  { %600 = vmatpush.msrb.mxu2 %v1704_v19  ;;  %620 = vmatpush.msrb.mxu3 %v1664_v5 }
  0xd5   :  { %561 = vmatpush.msrb.mxu0 %v1667_v6  ;;  %581 = vmatpush.msrb.mxu1 %v1669_v7 }
  0xd6   :  { %601 = vmatpush.msrb.mxu2 %v1716_v23  ;;  %621 = vmatpush.msrb.mxu3 %v1673_v8 }
  0xd7   :  { %562 = vmatpush.msrb.mxu0 %v1676_v9  ;;  %582 = vmatpush.msrb.mxu1 %v1678_v10 }
  0xd8   :  { %602 = vmatpush.msrb.mxu2 %v1728_v27  ;;  %622 = vmatpush.msrb.mxu3 %v1682_v11 }
  0xd9   :  { %563 = vmatpush.msrb.mxu0 %v1685_v12  ;;  %583 = vmatpush.msrb.mxu1 %v1687_v13 }
  0xda   :  { %603 = vmatpush.msrb.mxu2 %v1740_v31  ;;  %623 = vmatpush.msrb.mxu3 %v1691_v14 }
  0xdb   :  { %564 = vmatpush.msrb.mxu0 %v1694_v15  ;;  %584 = vmatpush.msrb.mxu1 %v1696_v16 }
  0xdc   :  { %604 = vmatpush.msrb.mxu2 %v1752_v35  ;;  %624 = vmatpush.msrb.mxu3 %v1702_v18 }
  0xdd   :  { %565 = vmatpush.msrb.mxu0 %v1707_v20  ;;  %585 = vmatpush.msrb.mxu1 %v1709_v21 }
  0xde   :  { %605 = vmatpush.msrb.mxu2 %v1764_v39  ;;  %625 = vmatpush.msrb.mxu3 %v1714_v22 }
  0xdf   :  { %566 = vmatpush.msrb.mxu0 %v1719_v24  ;;  %586 = vmatpush.msrb.mxu1 %v1721_v25 }
  0xe0   :  { %606 = vmatpush.msrb.mxu2 %v1776_v43  ;;  %626 = vmatpush.msrb.mxu3 %v1726_v26 }
  0xe1   :  { %567 = vmatpush.msrb.mxu0 %v1731_v28  ;;  %587 = vmatpush.msrb.mxu1 %v1733_v29 }
  0xe2   :  { %607 = vmatpush.msrb.mxu2 %v1788_v47  ;;  %627 = vmatpush.msrb.mxu3 %v1738_v30 }
  0xe3   :  { %568 = vmatpush.msrb.mxu0 %v1743_v32  ;;  %588 = vmatpush.msrb.mxu1 %v1745_v33 }
  0xe4   :  { %608 = vmatpush.msrb.mxu2 %v2713_v34  ;;  %628 = vmatpush.msrb.mxu3 %v2714_v36 }
  0xe5   :  { %569 = vmatpush.msrb.mxu0 %v2715_v37  ;;  %589 = vmatpush.msrb.mxu1 %v2716_v40 }
  0xe6   :  { %609 = vmatpush.msrb.mxu2 %v2717_v51  ;;  %629 = vmatpush.msrb.mxu3 %v2718_v56 }
  0xe7   :  { %570 = vmatpush.msrb.mxu0 %v2719_v49  ;;  %590 = vmatpush.msrb.mxu1 %v2720_v48 }
  0xe8   :  { %610 = vmatpush.msrb.mxu2 %v2721_v61  ;;  %630 = vmatpush.msrb.mxu3 %v2722_v52 }
  0xe9   :  { %571 = vmatpush.msrb.mxu0 %v2723_v50  ;;  %591 = vmatpush.msrb.mxu1 %v2724_v53 }
  0xea   :  { %611 = vmatpush.msrb.mxu2 %v2725_v54  ;;  %631 = vmatpush.msrb.mxu3 %v2726_v58 }
  0xeb   :  { %572 = vmatpush.msrb.mxu0 %v2727_v0  ;;  %592 = vmatpush.msrb.mxu1 %v2728_v62  ;;  %v2738_v0 = vld [vmem:[#allocation26_spill] sm:$0xff] }
  0xec   :  { %612 = vmatpush.msrb.mxu2 %v2729_v46  ;;  %632 = vmatpush.msrb.mxu3 %v2730_v44  ;;  %v1342_v44 = vld [vmem:[%s2574_s0 + $0x20] sm:$0xff] }
  0xed   :  { %573 = vmatpush.msrb.mxu0 %v2731_v45  ;;  %593 = vmatpush.msrb.mxu1 %v2732_v59  ;;  %v1343_v59 = vld [vmem:[%s2574_s0 + $0x28] sm:$0xff] }
  0xee   :  { %613 = vmatpush.msrb.mxu2 %v2733_v38  ;;  %633 = vmatpush.msrb.mxu3 %v2734_v42 }
  0xef   :  { %574 = vmatpush.msrb.mxu0 %v2735_v57  ;;  %594 = vmatpush.msrb.mxu1 %v2736_v55 }
  0xf0   :  { %614 = vmatpush.msrb.mxu2 %v2737_v41  ;;  %634 = vmatpush.msrb.mxu3 %v2738_v0  ;;  %v1345_v41 = vld [vmem:[%s2574_s0 + $0x38] sm:$0xff] }
 0x14c   :  { %v268_v45 = vpop.f32.mrf.mxu0  ;;  %v288_v38 = vpop.f32.mrf.mxu1 }
 0x14d   :  { %v331_v46 = vadd.f32 %v1342_v44, %v268_v45  ;;  %v332_v42 = vadd.f32 %v1343_v59, %v288_v38 }
 0x14f   :  { %v1346_v62 = vmul.f32 -1.442695, %v331_v46  ;;  %v1347_v57 = vmul.f32 -1.442695, %v332_v42  ;;  %v1344_v46 = vld [vmem:[%s2574_s0 + $0x30] sm:$0xff] }
 0x151   :  { %1418 = vpow2.f32 %v1346_v62 }
 0x152   :  { %1420 = vpow2.f32 %v1347_v57 }
 0x153   :  { %v328_v0 = vpop.f32.mrf.mxu3  ;;  %v308_v62 = vpop.f32.mrf.mxu2 }
 0x154   :  { %v334_v55 = vadd.f32 %v1345_v41, %v328_v0  ;;  %v333_v38 = vadd.f32 %v1344_v46, %v308_v62 }
 0x156   :  { %v1348_v58 = vmul.f32 -1.442695, %v334_v55 }
 0x157   :  { %v1419_v54 = vpop.eup %1418 }
 0x158   :  { %v1421_v53 = vpop.eup %1420  ;;  %v338_v50 = vadd.f32 1.0, %v1419_v54  ;;  %1422 = vpow2.f32 %v1348_v58 }
 0x159   :  { %v357_v52 = vadd.f32 1.0, %v1421_v53 }
 0x15a   :  { %1424 = vrcp.f32 %v338_v50  ;;  %v350_v54 = vand.u32 2147483648, %v338_v50  ;;  %v348_v61 = vand.u32 2147483647, %v338_v50  ;;  %vm344_vm14 = vweird.f32 %v338_v50 }
 0x15b   :  { %1426 = vrcp.f32 %v357_v52  ;;  %v369_v53 = vand.u32 2147483648, %v357_v52  ;;  %v367_v49 = vand.u32 2147483647, %v357_v52  ;;  %vm363_vm15 = vweird.f32 %v357_v52 }
 0x15c   :  { %v351_v46 = vor.u32 1.1754944e-38, %v350_v54  ;;  %vm349_vm2 = vcmp.eq.f32.partialorder %v348_v61, 8.507059e+37 }
 0x15d   :  { %vm368_vm3 = vcmp.eq.f32.partialorder %v367_v49, 8.507059e+37 }
 0x15e   :  { %v1423_v44 = vpop.eup %1422 }
 0x15f   :  { %v377_v45 = vadd.f32 1.0, %v1423_v44 }
 0x160   :  { %v1425_v59 = vpop.eup %1424 }
 0x161   :  { %v1427_v42 = vpop.eup %1426  ;;  %v340_v57 = vmul.f32 %v1425_v59, %v338_v50  ;;  %1428 = vrcp.f32 %v377_v45  ;;  %vm345_vm12 = vweird.f32 %v1425_v59  ;;  %vm383_vm5 = vweird.f32 %v377_v45 }
 0x162   :  { %v359_v0 = vmul.f32 %v1427_v42, %v357_v52  ;;  %1430 = vtanh.f32 %v333_v38  ;;  %vm364_vm13 = vweird.f32 %v1427_v42  ;;  %vm346_vm0 = vmor %vm344_vm14, %vm345_vm12 }
 0x163   :  { %v341_v55 = vsub.f32 1.0, %v340_v57  ;;  %vm365_vm1 = vmor %vm363_vm15, %vm364_vm13  ;;  %v370_v57 = vor.u32 1.1754944e-38, %v369_v53 }
 0x164   :  { %v360_v41 = vsub.f32 1.0, %v359_v0 }
 0x165   :  { %v342_v58 = vmul.f32 %v1425_v59, %v341_v55 }
 0x166   :  { %v361_v48 = vmul.f32 %v1427_v42, %v360_v41 }
 0x167   :  { %v1429_v56 = vpop.eup %1428  ;;  %v343_v51 = vadd.f32 %v1425_v59, %v342_v58 }
 0x168   :  { %v362_v62 = vadd.f32 %v1427_v42, %v361_v48  ;;  %v379_v44 = vmul.f32 %v1429_v56, %v377_v45  ;;  %v1431_v38 = vpop.eup %1430  ;;  %vm384_vm4 = vweird.f32 %v1429_v56  ;;  %v389_v48 = vand.u32 2147483648, %v377_v45 }
 0x169   :  { %v347_v0 = vsel %vm346_vm0, %v1425_v59, %v343_v51  ;;  %v387_v51 = vand.u32 2147483647, %v377_v45  ;;  %vm385_vm6 = vmor %vm383_vm5, %vm384_vm4 }
 0x16a   :  { %v352_v40 = vsel %vm349_vm2, %v351_v46, %v347_v0  ;;  %v366_v55 = vsel %vm365_vm1, %v1427_v42, %v362_v62  ;;  %v380_v37 = vsub.f32 1.0, %v379_v44  ;;  %v390_v59 = vor.u32 1.1754944e-38, %v389_v48 }
 0x16b   :  { %v371_v41 = vsel %vm368_vm3, %v370_v57, %v366_v55  ;;  %v394_v36 = vmul.f32 %v1431_v38, %v352_v40  ;;  %vm388_vm7 = vcmp.eq.f32.partialorder %v387_v51, 8.507059e+37  ;;  %v1352_v40 = vld [vmem:[%s2574_s0 + $0x50] sm:$0xff] }
 0x16c   :  { %v393_v34 = vmul.f32 %v371_v41, %v1984_v63  ;;  %v381_v58 = vmul.f32 %v1429_v56, %v380_v37 }
 0x16e   :  { %v2067_v50 = vadd.f32 %v394_v36, %v393_v34  ;;  %v382_v52 = vadd.f32 %v1429_v56, %v381_v58 }
 0x170   :  { %1432 = vtanh.f32 %v2067_v50  ;;  %v386_v61 = vsel %vm385_vm6, %v1429_v56, %v382_v52 }
 0x171   :  { %v391_v42 = vsel %vm388_vm7, %v390_v59, %v386_v61 }
 0x176   :  { %v1433_v49 = vpop.eup %1432 }
 0x177   :  { %v397_v54 = vmul.f32 %v1433_v49, %v391_v42 }
 0x179   :  { %1349 = vst [vmem:[%s2576_s2 + $0x8] sm:$0xff] %v397_v54  ;;  %421 = vmatmul.f32.vlgmr.msra.gmra.mxu0 %v397_v54  ;;  %441 = vmatmul.f32.vlgmr.msra.gmra.mxu1 %v397_v54 }
 0x17a   :  { %461 = vmatmul.f32.vlgmr.msra.gmra.mxu2 %v397_v54  ;;  %481 = vmatmul.f32.vlgmr.msra.gmra.mxu3 %v397_v54 }
 0x17b   :  { %713 = vmatpush.msra.mxu0 %v2712_v60  ;;  %733 = vmatpush.msra.mxu1 %v1654_v1  ;;  %v2739_v1 = vld [vmem:[#allocation19_spill] sm:$0xff] }
 0x17c   :  { %753 = vmatpush.msra.mxu2 %v1698_v17  ;;  %773 = vmatpush.msra.mxu3 %v1656_v2  ;;  %v2740_v2 = vld [vmem:[#allocation6_spill] sm:$0xff]  ;;  %v2755_v17 = vld [vmem:[#allocation29_spill] sm:$0xff] }
 0x17d   :  { %714 = vmatpush.msra.mxu0 %v1660_v3  ;;  %734 = vmatpush.msra.mxu1 %v1662_v4  ;;  %v2741_v3 = vld [vmem:[#allocation7_spill] sm:$0xff]  ;;  %v2742_v4 = vld [vmem:[#allocation8_spill] sm:$0xff] }
 0x17e   :  { %754 = vmatpush.msra.mxu2 %v1704_v19  ;;  %774 = vmatpush.msra.mxu3 %v1664_v5  ;;  %v2743_v5 = vld [vmem:[#allocation23_spill] sm:$0xff]  ;;  %v2757_v19 = vld [vmem:[#allocation20_spill] sm:$0xff] }
 0x17f   :  { %715 = vmatpush.msra.mxu0 %v1667_v6  ;;  %735 = vmatpush.msra.mxu1 %v1669_v7  ;;  %v2744_v6 = vld [vmem:[#allocation9_spill] sm:$0xff]  ;;  %v2745_v7 = vld [vmem:[#allocation10_spill] sm:$0xff] }
 0x180   :  { %755 = vmatpush.msra.mxu2 %v1716_v23  ;;  %775 = vmatpush.msra.mxu3 %v1673_v8  ;;  %v2746_v8 = vld [vmem:[#allocation11_spill] sm:$0xff]  ;;  %v2761_v23 = vld [vmem:[#allocation24_spill] sm:$0xff] }
 0x181   :  { %716 = vmatpush.msra.mxu0 %v1676_v9  ;;  %736 = vmatpush.msra.mxu1 %v1678_v10  ;;  %v2747_v9 = vld [vmem:[#allocation27_spill] sm:$0xff]  ;;  %v2748_v10 = vld [vmem:[#allocation12_spill] sm:$0xff] }
 0x182   :  { %756 = vmatpush.msra.mxu2 %v1728_v27  ;;  %776 = vmatpush.msra.mxu3 %v1682_v11  ;;  %v2749_v11 = vld [vmem:[#allocation13_spill] sm:$0xff] }
 0x183   :  { %717 = vmatpush.msra.mxu0 %v1685_v12  ;;  %737 = vmatpush.msra.mxu1 %v1687_v13  ;;  %v2750_v12 = vld [vmem:[#allocation14_spill] sm:$0xff]  ;;  %v2751_v13 = vld [vmem:[#allocation28_spill] sm:$0xff]  ;;  %v1350_v27 = vld [vmem:[%s2574_s0 + $0x40] sm:$0xff] }
 0x184   :  { %757 = vmatpush.msra.mxu2 %v1740_v31  ;;  %777 = vmatpush.msra.mxu3 %v1691_v14  ;;  %v2752_v14 = vld [vmem:[#allocation15_spill] sm:$0xff] }
 0x185   :  { %718 = vmatpush.msra.mxu0 %v1694_v15  ;;  %738 = vmatpush.msra.mxu1 %v1696_v16  ;;  %v2753_v15 = vld [vmem:[#allocation16_spill] sm:$0xff]  ;;  %v2754_v16 = vld [vmem:[#allocation17_spill] sm:$0xff] }
 0x186   :  { %758 = vmatpush.msra.mxu2 %v1752_v35  ;;  %778 = vmatpush.msra.mxu3 %v1702_v18  ;;  %v2756_v18 = vld [vmem:[#allocation18_spill] sm:$0xff] }
 0x187   :  { %719 = vmatpush.msra.mxu0 %v1707_v20  ;;  %739 = vmatpush.msra.mxu1 %v1709_v21  ;;  %v2758_v20 = vld [vmem:[#allocation21_spill] sm:$0xff]  ;;  %v2759_v21 = vld [vmem:[#allocation30_spill] sm:$0xff] }
 0x188   :  { %759 = vmatpush.msra.mxu2 %v1764_v39  ;;  %779 = vmatpush.msra.mxu3 %v1714_v22  ;;  %v2760_v22 = vld [vmem:[#allocation22_spill] sm:$0xff]  ;;  %v1353_v39 = vld [vmem:[%s2574_s0 + $0x58] sm:$0xff] }
 0x189   :  { %720 = vmatpush.msra.mxu0 %v1719_v24  ;;  %740 = vmatpush.msra.mxu1 %v1721_v25  ;;  %v2762_v24 = vld [vmem:[#allocation25_spill] sm:$0xff]  ;;  %v2763_v25 = vld [vmem:[#allocation31_spill] sm:$0xff] }
 0x18a   :  { %760 = vmatpush.msra.mxu2 %v1776_v43  ;;  %780 = vmatpush.msra.mxu3 %v1726_v26  ;;  %v2764_v26 = vld [vmem:[#allocation26_spill] sm:$0xff] }
 0x18b   :  { %721 = vmatpush.msra.mxu0 %v1731_v28  ;;  %741 = vmatpush.msra.mxu1 %v1733_v29  ;;  %v1351_v28 = vld [vmem:[%s2574_s0 + $0x48] sm:$0xff] }
 0x18c   :  { %761 = vmatpush.msra.mxu2 %v1788_v47  ;;  %781 = vmatpush.msra.mxu3 %v1738_v30 }
 0x18d   :  { %722 = vmatpush.msra.mxu0 %v1743_v32  ;;  %742 = vmatpush.msra.mxu1 %v1745_v33 }
 0x18e   :  { %762 = vmatpush.msra.mxu2 %v2739_v1  ;;  %782 = vmatpush.msra.mxu3 %v2740_v2 }
 0x18f   :  { %723 = vmatpush.msra.mxu0 %v2741_v3  ;;  %743 = vmatpush.msra.mxu1 %v2742_v4 }
 0x190   :  { %763 = vmatpush.msra.mxu2 %v2743_v5  ;;  %783 = vmatpush.msra.mxu3 %v2744_v6 }
 0x191   :  { %724 = vmatpush.msra.mxu0 %v2745_v7  ;;  %744 = vmatpush.msra.mxu1 %v2746_v8 }
 0x192   :  { %764 = vmatpush.msra.mxu2 %v2747_v9  ;;  %784 = vmatpush.msra.mxu3 %v2748_v10 }
 0x193   :  { %725 = vmatpush.msra.mxu0 %v2749_v11  ;;  %745 = vmatpush.msra.mxu1 %v2750_v12 }
 0x194   :  { %765 = vmatpush.msra.mxu2 %v2751_v13  ;;  %785 = vmatpush.msra.mxu3 %v2752_v14 }
 0x195   :  { %726 = vmatpush.msra.mxu0 %v2753_v15  ;;  %746 = vmatpush.msra.mxu1 %v2754_v16 }
 0x196   :  { %766 = vmatpush.msra.mxu2 %v2755_v17  ;;  %786 = vmatpush.msra.mxu3 %v2756_v18 }
 0x197   :  { %727 = vmatpush.msra.mxu0 %v2757_v19  ;;  %747 = vmatpush.msra.mxu1 %v2758_v20 }
 0x198   :  { %767 = vmatpush.msra.mxu2 %v2759_v21  ;;  %787 = vmatpush.msra.mxu3 %v2760_v22  ;;  %v2159_v21 = vld [vmem:[#allocation2 + $0x1e8] sm:$0xff]  ;;  %v2162_v22 = vld [vmem:[#allocation2 + $0x1f0] sm:$0xff] }
 0x199   :  { %728 = vmatpush.msra.mxu0 %v2761_v23  ;;  %748 = vmatpush.msra.mxu1 %v2762_v24  ;;  %v2165_v23 = vld [vmem:[#allocation2 + $0x1f8] sm:$0xff]  ;;  %v2168_v24 = vld [vmem:[#allocation2 + $0x1c0] sm:$0xff] }
 0x19a   :  { %768 = vmatpush.msra.mxu2 %v2763_v25  ;;  %788 = vmatpush.msra.mxu3 %v2764_v26  ;;  %v2171_v25 = vld [vmem:[#allocation2 + $0x1c8] sm:$0xff]  ;;  %v2174_v26 = vld [vmem:[#allocation2 + $0x1d0] sm:$0xff] }
 0x1f6   :  { %v422_v29 = vpop.f32.mrf.mxu0  ;;  %v442_v30 = vpop.f32.mrf.mxu1 }
 0x1f7   :  { %v485_v31 = vadd.f32 %v1350_v27, %v422_v29  ;;  %v486_v32 = vadd.f32 %v1351_v28, %v442_v30  ;;  %v2177_v27 = vld [vmem:[#allocation2 + $0x1d8] sm:$0xff]  ;;  %v2180_v28 = vld [vmem:[#allocation2 + $0x1a0] sm:$0xff]  ;;  %v2183_v29 = vld [vmem:[#allocation2 + $0x1a8] sm:$0xff] }
 0x1f8   :  { %v2186_v30 = vld [vmem:[#allocation2 + $0x1b0] sm:$0xff] }
 0x1f9   :  { %v1354_v33 = vmul.f32 -1.442695, %v485_v31  ;;  %v1355_v35 = vmul.f32 -1.442695, %v486_v32  ;;  %v2189_v31 = vld [vmem:[#allocation2 + $0x1b8] sm:$0xff]  ;;  %v2192_v32 = vld [vmem:[#allocation2 + $0x180] sm:$0xff] }
 0x1fb   :  { %1434 = vpow2.f32 %v1354_v33  ;;  %v2195_v33 = vld [vmem:[#allocation2 + $0x188] sm:$0xff] }
 0x1fc   :  { %1436 = vpow2.f32 %v1355_v35  ;;  %v2198_v35 = vld [vmem:[#allocation2 + $0x190] sm:$0xff] }
 0x1fd   :  { %v482_v43 = vpop.f32.mrf.mxu3  ;;  %v462_v56 = vpop.f32.mrf.mxu2 }
 0x1fe   :  { %v488_v47 = vadd.f32 %v1353_v39, %v482_v43  ;;  %v487_v62 = vadd.f32 %v1352_v40, %v462_v56  ;;  %v2201_v39 = vld [vmem:[#allocation2 + $0x198] sm:$0xff]  ;;  %v2204_v43 = vld [vmem:[#allocation2 + $0x160] sm:$0xff] }
 0x1ff   :  { %v2225_v40 = vld [vmem:[#allocation2 + $0x158] sm:$0xff]  ;;  %v2228_v56 = vld [vmem:[#allocation2 + $0x120] sm:$0xff] }
 0x200   :  { %v1356_v60 = vmul.f32 -1.442695, %v488_v47  ;;  %v2207_v47 = vld [vmem:[#allocation2 + $0x168] sm:$0xff] }
 0x201   :  { %v1435_v63 = vpop.eup %1434 }
 0x202   :  { %v1437_v34 = vpop.eup %1436  ;;  %v492_v36 = vadd.f32 1.0, %v1435_v63  ;;  %1438 = vpow2.f32 %v1356_v60  ;;  %v2210_v60 = vld [vmem:[#allocation2 + $0x170] sm:$0xff]  ;;  %v2213_v63 = vld [vmem:[#allocation2 + $0x178] sm:$0xff] }
 0x203   :  { %v511_v37 = vadd.f32 1.0, %v1437_v34  ;;  %v2216_v34 = vld [vmem:[#allocation2 + $0x140] sm:$0xff] }
 0x204   :  { %1440 = vrcp.f32 %v492_v36  ;;  %v504_v41 = vand.u32 2147483648, %v492_v36  ;;  %v502_v48 = vand.u32 2147483647, %v492_v36  ;;  %vm498_vm10 = vweird.f32 %v492_v36 }
 0x205   :  { %1442 = vrcp.f32 %v511_v37  ;;  %v523_v58 = vand.u32 2147483648, %v511_v37  ;;  %v521_v61 = vand.u32 2147483647, %v511_v37  ;;  %vm517_vm11 = vweird.f32 %v511_v37 }
 0x206   :  { %v505_v42 = vor.u32 1.1754944e-38, %v504_v41  ;;  %vm503_vm14 = vcmp.eq.f32.partialorder %v502_v48, 8.507059e+37  ;;  %v2258_v41 = vld [vmem:[#allocation2 + $0xf0] sm:$0xff]  ;;  %v2267_v48 = vld [vmem:[#allocation2 + $0xc8] sm:$0xff] }
 0x207   :  { %v524_v2 = vor.u32 1.1754944e-38, %v523_v58  ;;  %vm522_vm15 = vcmp.eq.f32.partialorder %v521_v61, 8.507059e+37  ;;  %v2261_v58 = vld [vmem:[#allocation2 + $0xf8] sm:$0xff] }
 0x208   :  { %v1439_v45 = vpop.eup %1438  ;;  %v2273_v61 = vld [vmem:[#allocation2 + $0xd8] sm:$0xff] }
 0x209   :  { %v531_v53 = vadd.f32 1.0, %v1439_v45  ;;  %v2231_v45 = vld [vmem:[#allocation2 + $0x128] sm:$0xff]  ;;  %2766 = vst [vmem:[#allocation19_spill] sm:$0xff] %v2273_v61 }
 0x20a   :  { %v1441_v46 = vpop.eup %1440 }
 0x20b   :  { %v1443_v44 = vpop.eup %1442  ;;  %v494_v57 = vmul.f32 %v1441_v46, %v492_v36  ;;  %1444 = vrcp.f32 %v531_v53  ;;  %vm499_vm8 = vweird.f32 %v1441_v46  ;;  %v543_v14 = vand.u32 2147483648, %v531_v53  ;;  %v2219_v36 = vld [vmem:[#allocation2 + $0x148] sm:$0xff] }
 0x20c   :  { %v513_v0 = vmul.f32 %v1443_v44, %v511_v37  ;;  %1446 = vtanh.f32 %v487_v62  ;;  %vm518_vm9 = vweird.f32 %v1443_v44  ;;  %vm500_vm12 = vmor %vm498_vm10, %vm499_vm8  ;;  %vm537_vm1 = vweird.f32 %v531_v53  ;;  %v2222_v37 = vld [vmem:[#allocation2 + $0x150] sm:$0xff]  ;;  %v2240_v62 = vld [vmem:[#allocation2 + $0x100] sm:$0xff] }
 0x20d   :  { %v495_v38 = vsub.f32 1.0, %v494_v57  ;;  %vm519_vm13 = vmor %vm517_vm11, %vm518_vm9  ;;  %v541_v15 = vand.u32 2147483647, %v531_v53  ;;  %v544_v17 = vor.u32 1.1754944e-38, %v543_v14  ;;  %v2246_v57 = vld [vmem:[#allocation2 + $0x110] sm:$0xff]  ;;  %v2324_v14 = vld [vmem:[#allocation2 + $0x20] sm:$0xff] }
 0x20e   :  { %v514_v55 = vsub.f32 1.0, %v513_v0  ;;  %v2249_v0 = vld [vmem:[#allocation2 + $0x118] sm:$0xff]  ;;  %2783 = vst [vmem:[#allocation18_spill] sm:$0xff] %v2324_v14 }
 0x20f   :  { %v496_v52 = vmul.f32 %v1441_v46, %v495_v38  ;;  %vm542_vm3 = vcmp.eq.f32.partialorder %v541_v15, 8.507059e+37  ;;  %v2252_v38 = vld [vmem:[#allocation2 + $0xe0] sm:$0xff]  ;;  %v2327_v15 = vld [vmem:[#allocation2 + $0x28] sm:$0xff] }
 0x210   :  { %v515_v51 = vmul.f32 %v1443_v44, %v514_v55  ;;  %v2255_v55 = vld [vmem:[#allocation2 + $0xe8] sm:$0xff]  ;;  %2784 = vst [vmem:[#allocation20_spill] sm:$0xff] %v2327_v15 }
 0x211   :  { %v1445_v59 = vpop.eup %1444  ;;  %v497_v49 = vadd.f32 %v1441_v46, %v496_v52  ;;  %v2264_v52 = vld [vmem:[#allocation2 + $0xc0] sm:$0xff] }
 0x212   :  { %v516_v54 = vadd.f32 %v1443_v44, %v515_v51  ;;  %v533_v1 = vmul.f32 %v1445_v59, %v531_v53  ;;  %v1447_v4 = vpop.eup %1446  ;;  %vm538_vm0 = vweird.f32 %v1445_v59  ;;  %v2234_v53 = vld [vmem:[#allocation2 + $0x130] sm:$0xff] }
 0x213   :  { %v501_v3 = vsel %vm500_vm12, %v1441_v46, %v497_v49  ;;  %vm539_vm2 = vmor %vm537_vm1, %vm538_vm0  ;;  %v2237_v46 = vld [vmem:[#allocation2 + $0x138] sm:$0xff]  ;;  %v2270_v51 = vld [vmem:[#allocation2 + $0xd0] sm:$0xff] }
 0x214   :  { %v506_v5 = vsel %vm503_vm14, %v505_v42, %v501_v3  ;;  %v520_v6 = vsel %vm519_vm13, %v1443_v44, %v516_v54  ;;  %v534_v7 = vsub.f32 1.0, %v533_v1  ;;  %v2243_v44 = vld [vmem:[#allocation2 + $0x108] sm:$0xff]  ;;  %2765 = vst [vmem:[#allocation5_spill] sm:$0xff] %v2270_v51  ;;  %v2282_v42 = vld [vmem:[#allocation2 + $0xb0] sm:$0xff]  ;;  %v2285_v54 = vld [vmem:[#allocation2 + $0xb8] sm:$0xff] }
 0x215   :  { %v525_v8 = vsel %vm522_vm15, %v524_v2, %v520_v6  ;;  %v548_v9 = vmul.f32 %v1447_v4, %v506_v5  ;;  %v2279_v49 = vld [vmem:[#allocation2 + $0xa8] sm:$0xff]  ;;  %2769 = vst [vmem:[#allocation8_spill] sm:$0xff] %v2282_v42  ;;  %v2288_v1 = vld [vmem:[#allocation2 + $0x80] sm:$0xff]  ;;  %v2294_v3 = vld [vmem:[#allocation2 + $0x90] sm:$0xff] }
 0x216   :  { %v547_v10 = vmul.f32 %v525_v8, %v2067_v50  ;;  %v535_v11 = vmul.f32 %v1445_v59, %v534_v7  ;;  %v2156_v50 = vld [vmem:[#allocation2 + $0x1e0] sm:$0xff]  ;;  %2768 = vst [vmem:[#allocation7_spill] sm:$0xff] %v2279_v49  ;;  %v2291_v2 = vld [vmem:[#allocation2 + $0x88] sm:$0xff]  ;;  %v2297_v4 = vld [vmem:[#allocation2 + $0x98] sm:$0xff] }
 0x217   :  { %2770 = vst [vmem:[#allocation23_spill] sm:$0xff] %v2285_v54  ;;  %v2300_v5 = vld [vmem:[#allocation2 + $0x60] sm:$0xff]  ;;  %v2303_v6 = vld [vmem:[#allocation2 + $0x68] sm:$0xff]  ;;  %v2306_v7 = vld [vmem:[#allocation2 + $0x70] sm:$0xff] }
 0x218   :  { %v2150_v12 = vadd.f32 %v548_v9, %v547_v10  ;;  %v536_v13 = vadd.f32 %v1445_v59, %v535_v11  ;;  %2771 = vst [vmem:[#allocation9_spill] sm:$0xff] %v2288_v1  ;;  %v2309_v8 = vld [vmem:[#allocation2 + $0x78] sm:$0xff]  ;;  %v2312_v9 = vld [vmem:[#allocation2 + $0x40] sm:$0xff]  ;;  %v2315_v10 = vld [vmem:[#allocation2 + $0x48] sm:$0xff] }
 0x219   :  { %2772 = vst [vmem:[#allocation10_spill] sm:$0xff] %v2291_v2  ;;  %v2318_v11 = vld [vmem:[#allocation2 + $0x50] sm:$0xff] }
 0x21a   :  { %1448 = vtanh.f32 %v2150_v12  ;;  %v540_v16 = vsel %vm539_vm2, %v1445_v59, %v536_v13  ;;  %v2276_v59 = vld [vmem:[#allocation2 + $0xa0] sm:$0xff]  ;;  %2773 = vst [vmem:[#allocation11_spill] sm:$0xff] %v2294_v3  ;;  %v2321_v13 = vld [vmem:[#allocation2 + $0x58] sm:$0xff] }
 0x21b   :  { %v545_v19 = vsel %vm542_vm3, %v544_v17, %v540_v16  ;;  %2767 = vst [vmem:[#allocation6_spill] sm:$0xff] %v2276_v59  ;;  %v2330_v16 = vld [vmem:[#allocation2 + $0x30] sm:$0xff]  ;;  %v2333_v17 = vld [vmem:[#allocation2 + $0x38] sm:$0xff] }
 0x21c   :  { %2774 = vst [vmem:[#allocation27_spill] sm:$0xff] %v2297_v4 }
 0x21d   :  { %2775 = vst [vmem:[#allocation12_spill] sm:$0xff] %v2300_v5 }
 0x21e   :  { %2776 = vst [vmem:[#allocation13_spill] sm:$0xff] %v2303_v6 }
 0x21f   :  { %2777 = vst [vmem:[#allocation14_spill] sm:$0xff] %v2306_v7 }
 0x220   :  { %v1449_v18 = vpop.eup %1448  ;;  %2778 = vst [vmem:[#allocation28_spill] sm:$0xff] %v2309_v8 }
 0x221   :  { %v551_v20 = vmul.f32 %v1449_v18, %v545_v19  ;;  %2779 = vst [vmem:[#allocation15_spill] sm:$0xff] %v2312_v9  ;;  %v2336_v18 = vld [vmem:[#allocation2] sm:$0xff]  ;;  %v2339_v19 = vld [vmem:[#allocation2 + $0x8] sm:$0xff] }
 0x222   :  { %2780 = vst [vmem:[#allocation16_spill] sm:$0xff] %v2315_v10 }
 0x223   :  { %1357 = vst [vmem:[%s2576_s2 + $0x10] sm:$0xff] %v551_v20  ;;  %575 = vmatmul.f32.vlgmr.msrb.gmra.mxu0 %v551_v20  ;;  %595 = vmatmul.f32.vlgmr.msrb.gmra.mxu1 %v551_v20 }
 0x224   :  { %615 = vmatmul.f32.vlgmr.msrb.gmra.mxu2 %v551_v20  ;;  %635 = vmatmul.f32.vlgmr.msrb.gmra.mxu3 %v551_v20  ;;  %2781 = vst [vmem:[#allocation17_spill] sm:$0xff] %v2318_v11  ;;  %v2342_v20 = vld [vmem:[#allocation2 + $0x10] sm:$0xff] }
 0x225   :  { %867 = vmatpush.msrb.mxu0 %v2156_v50  ;;  %887 = vmatpush.msrb.mxu1 %v2159_v21  ;;  %2782 = vst [vmem:[#allocation29_spill] sm:$0xff] %v2321_v13 }
 0x226   :  { %907 = vmatpush.msrb.mxu2 %v2162_v22  ;;  %927 = vmatpush.msrb.mxu3 %v2165_v23  ;;  %2785 = vst [vmem:[#allocation21_spill] sm:$0xff] %v2330_v16 }
 0x227   :  { %868 = vmatpush.msrb.mxu0 %v2168_v24  ;;  %888 = vmatpush.msrb.mxu1 %v2171_v25  ;;  %2786 = vst [vmem:[#allocation30_spill] sm:$0xff] %v2333_v17 }
 0x228   :  { %908 = vmatpush.msrb.mxu2 %v2174_v26  ;;  %928 = vmatpush.msrb.mxu3 %v2177_v27  ;;  %2787 = vst [vmem:[#allocation22_spill] sm:$0xff] %v2336_v18 }
 0x229   :  { %869 = vmatpush.msrb.mxu0 %v2180_v28  ;;  %889 = vmatpush.msrb.mxu1 %v2183_v29  ;;  %2788 = vst [vmem:[#allocation24_spill] sm:$0xff] %v2339_v19 }
 0x22a   :  { %909 = vmatpush.msrb.mxu2 %v2186_v30  ;;  %929 = vmatpush.msrb.mxu3 %v2189_v31  ;;  %2789 = vst [vmem:[#allocation25_spill] sm:$0xff] %v2342_v20 }
 0x22b   :  { %870 = vmatpush.msrb.mxu0 %v2192_v32  ;;  %890 = vmatpush.msrb.mxu1 %v2195_v33 }
 0x22c   :  { %910 = vmatpush.msrb.mxu2 %v2198_v35  ;;  %930 = vmatpush.msrb.mxu3 %v2201_v39 }
 0x22d   :  { %871 = vmatpush.msrb.mxu0 %v2204_v43  ;;  %891 = vmatpush.msrb.mxu1 %v2207_v47 }
 0x22e   :  { %911 = vmatpush.msrb.mxu2 %v2210_v60  ;;  %931 = vmatpush.msrb.mxu3 %v2213_v63 }
 0x22f   :  { %872 = vmatpush.msrb.mxu0 %v2216_v34  ;;  %892 = vmatpush.msrb.mxu1 %v2219_v36 }
 0x230   :  { %912 = vmatpush.msrb.mxu2 %v2222_v37  ;;  %932 = vmatpush.msrb.mxu3 %v2225_v40 }
 0x231   :  { %873 = vmatpush.msrb.mxu0 %v2228_v56  ;;  %893 = vmatpush.msrb.mxu1 %v2231_v45 }
 0x232   :  { %913 = vmatpush.msrb.mxu2 %v2234_v53  ;;  %933 = vmatpush.msrb.mxu3 %v2237_v46 }
 0x233   :  { %874 = vmatpush.msrb.mxu0 %v2240_v62  ;;  %894 = vmatpush.msrb.mxu1 %v2243_v44 }
 0x234   :  { %914 = vmatpush.msrb.mxu2 %v2246_v57  ;;  %934 = vmatpush.msrb.mxu3 %v2249_v0 }
 0x235   :  { %875 = vmatpush.msrb.mxu0 %v2252_v38  ;;  %895 = vmatpush.msrb.mxu1 %v2255_v55 }
 0x236   :  { %915 = vmatpush.msrb.mxu2 %v2258_v41  ;;  %935 = vmatpush.msrb.mxu3 %v2261_v58 }
 0x237   :  { %876 = vmatpush.msrb.mxu0 %v2264_v52  ;;  %896 = vmatpush.msrb.mxu1 %v2267_v48 }
 0x238   :  { %916 = vmatpush.msrb.mxu2 %v2270_v51  ;;  %936 = vmatpush.msrb.mxu3 %v2273_v61 }
 0x239   :  { %877 = vmatpush.msrb.mxu0 %v2276_v59  ;;  %897 = vmatpush.msrb.mxu1 %v2279_v49 }
 0x23a   :  { %917 = vmatpush.msrb.mxu2 %v2282_v42  ;;  %937 = vmatpush.msrb.mxu3 %v2285_v54 }
 0x23b   :  { %878 = vmatpush.msrb.mxu0 %v2288_v1  ;;  %898 = vmatpush.msrb.mxu1 %v2291_v2 }
 0x23c   :  { %918 = vmatpush.msrb.mxu2 %v2294_v3  ;;  %938 = vmatpush.msrb.mxu3 %v2297_v4 }
 0x23d   :  { %879 = vmatpush.msrb.mxu0 %v2300_v5  ;;  %899 = vmatpush.msrb.mxu1 %v2303_v6 }
 0x23e   :  { %919 = vmatpush.msrb.mxu2 %v2306_v7  ;;  %939 = vmatpush.msrb.mxu3 %v2309_v8 }
 0x23f   :  { %880 = vmatpush.msrb.mxu0 %v2312_v9  ;;  %900 = vmatpush.msrb.mxu1 %v2315_v10 }
 0x240   :  { %920 = vmatpush.msrb.mxu2 %v2318_v11  ;;  %940 = vmatpush.msrb.mxu3 %v2321_v13 }
 0x241   :  { %881 = vmatpush.msrb.mxu0 %v2324_v14  ;;  %901 = vmatpush.msrb.mxu1 %v2327_v15  ;;  %v2345_v15 = vld [vmem:[#allocation2 + $0x18] sm:$0xff] }
 0x242   :  { %921 = vmatpush.msrb.mxu2 %v2330_v16  ;;  %941 = vmatpush.msrb.mxu3 %v2333_v17  ;;  %2790 = vst [vmem:[#allocation31_spill] sm:$0xff] %v2345_v15  ;;  %v1358_v17 = vld [vmem:[%s2574_s0 + $0x60] sm:$0xff] }
 0x243   :  { %882 = vmatpush.msrb.mxu0 %v2336_v18  ;;  %902 = vmatpush.msrb.mxu1 %v2339_v19  ;;  %v1359_v18 = vld [vmem:[%s2574_s0 + $0x68] sm:$0xff] }
 0x244   :  { %922 = vmatpush.msrb.mxu2 %v2342_v20  ;;  %942 = vmatpush.msrb.mxu3 %v2345_v15  ;;  %v1361_v20 = vld [vmem:[%s2574_s0 + $0x78] sm:$0xff] }
 0x2a0   :  { %v576_v16 = vpop.f32.mrf.mxu0  ;;  %v596_v14 = vpop.f32.mrf.mxu1 }
 0x2a1   :  { %v639_v13 = vadd.f32 %v1358_v17, %v576_v16  ;;  %v640_v19 = vadd.f32 %v1359_v18, %v596_v14 }
 0x2a3   :  { %v1362_v11 = vmul.f32 -1.442695, %v639_v13  ;;  %v1363_v10 = vmul.f32 -1.442695, %v640_v19  ;;  %v1360_v13 = vld [vmem:[%s2574_s0 + $0x70] sm:$0xff] }
 0x2a5   :  { %1450 = vpow2.f32 %v1362_v11 }
 0x2a6   :  { %1452 = vpow2.f32 %v1363_v10 }
 0x2a7   :  { %v636_v15 = vpop.f32.mrf.mxu3  ;;  %v616_v11 = vpop.f32.mrf.mxu2 }
 0x2a8   :  { %v642_v9 = vadd.f32 %v1361_v20, %v636_v15  ;;  %v641_v18 = vadd.f32 %v1360_v13, %v616_v11 }
 0x2aa   :  { %v1364_v8 = vmul.f32 -1.442695, %v642_v9 }
 0x2ab   :  { %v1451_v7 = vpop.eup %1450 }
 0x2ac   :  { %v1453_v6 = vpop.eup %1452  ;;  %v646_v5 = vadd.f32 1.0, %v1451_v7  ;;  %1454 = vpow2.f32 %v1364_v8 }
 0x2ad   :  { %v665_v4 = vadd.f32 1.0, %v1453_v6 }
 0x2ae   :  { %1456 = vrcp.f32 %v646_v5  ;;  %v658_v7 = vand.u32 2147483648, %v646_v5  ;;  %v656_v3 = vand.u32 2147483647, %v646_v5  ;;  %vm652_vm6 = vweird.f32 %v646_v5 }
 0x2af   :  { %1458 = vrcp.f32 %v665_v4  ;;  %v677_v6 = vand.u32 2147483648, %v665_v4  ;;  %v675_v1 = vand.u32 2147483647, %v665_v4  ;;  %vm671_vm7 = vweird.f32 %v665_v4 }
 0x2b0   :  { %v659_v13 = vor.u32 1.1754944e-38, %v658_v7  ;;  %vm657_vm10 = vcmp.eq.f32.partialorder %v656_v3, 8.507059e+37 }
 0x2b1   :  { %vm676_vm11 = vcmp.eq.f32.partialorder %v675_v1, 8.507059e+37 }
 0x2b2   :  { %v1455_v14 = vpop.eup %1454 }
 0x2b3   :  { %v685_v16 = vadd.f32 1.0, %v1455_v14 }
 0x2b4   :  { %v1457_v17 = vpop.eup %1456 }
 0x2b5   :  { %v1459_v10 = vpop.eup %1458  ;;  %v648_v19 = vmul.f32 %v1457_v17, %v646_v5  ;;  %1460 = vrcp.f32 %v685_v16  ;;  %vm653_vm4 = vweird.f32 %v1457_v17  ;;  %vm691_vm13 = vweird.f32 %v685_v16 }
 0x2b6   :  { %v667_v9 = vmul.f32 %v1459_v10, %v665_v4  ;;  %1462 = vtanh.f32 %v641_v18  ;;  %vm672_vm5 = vweird.f32 %v1459_v10  ;;  %vm654_vm8 = vmor %vm652_vm6, %vm653_vm4 }
 0x2b7   :  { %v649_v15 = vsub.f32 1.0, %v648_v19  ;;  %vm673_vm9 = vmor %vm671_vm7, %vm672_vm5  ;;  %v678_v19 = vor.u32 1.1754944e-38, %v677_v6  ;;  %v2798_v6 = vld [vmem:[#allocation10_spill] sm:$0xff] }
 0x2b8   :  { %v668_v20 = vsub.f32 1.0, %v667_v9 }
 0x2b9   :  { %v650_v8 = vmul.f32 %v1457_v17, %v649_v15 }
 0x2ba   :  { %v669_v2 = vmul.f32 %v1459_v10, %v668_v20 }
 0x2bb   :  { %v1461_v54 = vpop.eup %1460  ;;  %v651_v42 = vadd.f32 %v1457_v17, %v650_v8 }
 0x2bc   :  { %v670_v11 = vadd.f32 %v1459_v10, %v669_v2  ;;  %v687_v14 = vmul.f32 %v1461_v54, %v685_v16  ;;  %v1463_v18 = vpop.eup %1462  ;;  %vm692_vm12 = vweird.f32 %v1461_v54  ;;  %v697_v2 = vand.u32 2147483648, %v685_v16 }
 0x2bd   :  { %v655_v9 = vsel %vm654_vm8, %v1457_v17, %v651_v42  ;;  %v695_v42 = vand.u32 2147483647, %v685_v16  ;;  %vm693_vm14 = vmor %vm691_vm13, %vm692_vm12  ;;  %v2797_v16 = vld [vmem:[#allocation9_spill] sm:$0xff] }
 0x2be   :  { %v660_v49 = vsel %vm657_vm10, %v659_v13, %v655_v9  ;;  %v674_v15 = vsel %vm673_vm9, %v1459_v10, %v670_v11  ;;  %v688_v59 = vsub.f32 1.0, %v687_v14  ;;  %v698_v17 = vor.u32 1.1754944e-38, %v697_v2  ;;  %v2799_v13 = vld [vmem:[#allocation11_spill] sm:$0xff]  ;;  %v2801_v14 = vld [vmem:[#allocation12_spill] sm:$0xff]  ;;  %v2803_v9 = vld [vmem:[#allocation14_spill] sm:$0xff] }
 0x2bf   :  { %v679_v20 = vsel %vm676_vm11, %v678_v19, %v674_v15  ;;  %v702_v61 = vmul.f32 %v1463_v18, %v660_v49  ;;  %vm696_vm15 = vcmp.eq.f32.partialorder %v695_v42, 8.507059e+37  ;;  %v2795_v49 = vld [vmem:[#allocation8_spill] sm:$0xff]  ;;  %v2800_v11 = vld [vmem:[#allocation27_spill] sm:$0xff]  ;;  %v2802_v19 = vld [vmem:[#allocation13_spill] sm:$0xff] }
 0x2c0   :  { %v701_v51 = vmul.f32 %v679_v20, %v2150_v12  ;;  %v689_v8 = vmul.f32 %v1461_v54, %v688_v59  ;;  %v2791_v12 = vld [vmem:[#allocation5_spill] sm:$0xff]  ;;  %v2794_v59 = vld [vmem:[#allocation7_spill] sm:$0xff]  ;;  %v2804_v18 = vld [vmem:[#allocation28_spill] sm:$0xff] }
 0x2c1   :  { %v2805_v15 = vld [vmem:[#allocation15_spill] sm:$0xff]  ;;  %v2806_v20 = vld [vmem:[#allocation16_spill] sm:$0xff]  ;;  %v2809_v2 = vld [vmem:[#allocation18_spill] sm:$0xff] }
 0x2c2   :  { %v2361_v5 = vadd.f32 %v702_v61, %v701_v51  ;;  %v690_v4 = vadd.f32 %v1461_v54, %v689_v8  ;;  %v2792_v51 = vld [vmem:[#allocation19_spill] sm:$0xff]  ;;  %v2793_v61 = vld [vmem:[#allocation6_spill] sm:$0xff]  ;;  %v2807_v8 = vld [vmem:[#allocation17_spill] sm:$0xff] }
 0x2c3   :  { %v2810_v42 = vld [vmem:[#allocation20_spill] sm:$0xff] }
 0x2c4   :  { %1464 = vtanh.f32 %v2361_v5  ;;  %v694_v3 = vsel %vm693_vm14, %v1461_v54, %v690_v4  ;;  %v2796_v54 = vld [vmem:[#allocation23_spill] sm:$0xff]  ;;  %v2808_v4 = vld [vmem:[#allocation29_spill] sm:$0xff] }
 0x2c5   :  { %v699_v10 = vsel %vm696_vm15, %v698_v17, %v694_v3  ;;  %v2811_v3 = vld [vmem:[#allocation21_spill] sm:$0xff]  ;;  %v2812_v17 = vld [vmem:[#allocation30_spill] sm:$0xff] }
 0x2ca   :  { %v1465_v1 = vpop.eup %1464 }
 0x2cb   :  { %v705_v7 = vmul.f32 %v1465_v1, %v699_v10  ;;  %v2813_v1 = vld [vmem:[#allocation22_spill] sm:$0xff]  ;;  %v2814_v10 = vld [vmem:[#allocation24_spill] sm:$0xff] }
 0x2cd   :  { %1365 = vst [vmem:[%s2576_s2 + $0x18] sm:$0xff] %v705_v7  ;;  %729 = vmatmul.f32.vlgmr.msra.gmra.mxu0 %v705_v7  ;;  %749 = vmatmul.f32.vlgmr.msra.gmra.mxu1 %v705_v7 }
 0x2ce   :  { %769 = vmatmul.f32.vlgmr.msra.gmra.mxu2 %v705_v7  ;;  %789 = vmatmul.f32.vlgmr.msra.gmra.mxu3 %v705_v7  ;;  %v2815_v7 = vld [vmem:[#allocation25_spill] sm:$0xff] }
 0x2cf   :  { %1021 = vmatpush.msra.mxu0 %v2156_v50  ;;  %1041 = vmatpush.msra.mxu1 %v2159_v21 }
 0x2d0   :  { %1061 = vmatpush.msra.mxu2 %v2162_v22  ;;  %1081 = vmatpush.msra.mxu3 %v2165_v23 }
 0x2d1   :  { %1022 = vmatpush.msra.mxu0 %v2168_v24  ;;  %1042 = vmatpush.msra.mxu1 %v2171_v25 }
 0x2d2   :  { %1062 = vmatpush.msra.mxu2 %v2174_v26  ;;  %1082 = vmatpush.msra.mxu3 %v2177_v27 }
 0x2d3   :  { %1023 = vmatpush.msra.mxu0 %v2180_v28  ;;  %1043 = vmatpush.msra.mxu1 %v2183_v29 }
 0x2d4   :  { %1063 = vmatpush.msra.mxu2 %v2186_v30  ;;  %1083 = vmatpush.msra.mxu3 %v2189_v31 }
 0x2d5   :  { %1024 = vmatpush.msra.mxu0 %v2192_v32  ;;  %1044 = vmatpush.msra.mxu1 %v2195_v33 }
 0x2d6   :  { %1064 = vmatpush.msra.mxu2 %v2198_v35  ;;  %1084 = vmatpush.msra.mxu3 %v2201_v39 }
 0x2d7   :  { %1025 = vmatpush.msra.mxu0 %v2204_v43  ;;  %1045 = vmatpush.msra.mxu1 %v2207_v47 }
 0x2d8   :  { %1065 = vmatpush.msra.mxu2 %v2210_v60  ;;  %1085 = vmatpush.msra.mxu3 %v2213_v63 }
 0x2d9   :  { %1026 = vmatpush.msra.mxu0 %v2216_v34  ;;  %1046 = vmatpush.msra.mxu1 %v2219_v36 }
 0x2da   :  { %1066 = vmatpush.msra.mxu2 %v2222_v37  ;;  %1086 = vmatpush.msra.mxu3 %v2225_v40 }
 0x2db   :  { %1027 = vmatpush.msra.mxu0 %v2228_v56  ;;  %1047 = vmatpush.msra.mxu1 %v2231_v45 }
 0x2dc   :  { %1067 = vmatpush.msra.mxu2 %v2234_v53  ;;  %1087 = vmatpush.msra.mxu3 %v2237_v46 }
 0x2dd   :  { %1028 = vmatpush.msra.mxu0 %v2240_v62  ;;  %1048 = vmatpush.msra.mxu1 %v2243_v44 }
 0x2de   :  { %1068 = vmatpush.msra.mxu2 %v2246_v57  ;;  %1088 = vmatpush.msra.mxu3 %v2249_v0 }
 0x2df   :  { %1029 = vmatpush.msra.mxu0 %v2252_v38  ;;  %1049 = vmatpush.msra.mxu1 %v2255_v55 }
 0x2e0   :  { %1069 = vmatpush.msra.mxu2 %v2258_v41  ;;  %1089 = vmatpush.msra.mxu3 %v2261_v58 }
 0x2e1   :  { %1030 = vmatpush.msra.mxu0 %v2264_v52  ;;  %1050 = vmatpush.msra.mxu1 %v2267_v48 }
 0x2e2   :  { %1070 = vmatpush.msra.mxu2 %v2791_v12  ;;  %1090 = vmatpush.msra.mxu3 %v2792_v51 }
 0x2e3   :  { %1031 = vmatpush.msra.mxu0 %v2793_v61  ;;  %1051 = vmatpush.msra.mxu1 %v2794_v59 }
 0x2e4   :  { %1071 = vmatpush.msra.mxu2 %v2795_v49  ;;  %1091 = vmatpush.msra.mxu3 %v2796_v54 }
 0x2e5   :  { %1032 = vmatpush.msra.mxu0 %v2797_v16  ;;  %1052 = vmatpush.msra.mxu1 %v2798_v6 }
 0x2e6   :  { %1072 = vmatpush.msra.mxu2 %v2799_v13  ;;  %1092 = vmatpush.msra.mxu3 %v2800_v11 }
 0x2e7   :  { %1033 = vmatpush.msra.mxu0 %v2801_v14  ;;  %1053 = vmatpush.msra.mxu1 %v2802_v19 }
 0x2e8   :  { %1073 = vmatpush.msra.mxu2 %v2803_v9  ;;  %1093 = vmatpush.msra.mxu3 %v2804_v18 }
 0x2e9   :  { %1034 = vmatpush.msra.mxu0 %v2805_v15  ;;  %1054 = vmatpush.msra.mxu1 %v2806_v20  ;;  %v2816_v15 = vld [vmem:[#allocation31_spill] sm:$0xff] }
 0x2ea   :  { %1074 = vmatpush.msra.mxu2 %v2807_v8  ;;  %1094 = vmatpush.msra.mxu3 %v2808_v4  ;;  %v1366_v4 = vld [vmem:[%s2574_s0 + $0x80] sm:$0xff] }
 0x2eb   :  { %1035 = vmatpush.msra.mxu0 %v2809_v2  ;;  %1055 = vmatpush.msra.mxu1 %v2810_v42  ;;  %v1367_v42 = vld [vmem:[%s2574_s0 + $0x88] sm:$0xff] }
 0x2ec   :  { %1075 = vmatpush.msra.mxu2 %v2811_v3  ;;  %1095 = vmatpush.msra.mxu3 %v2812_v17 }
 0x2ed   :  { %1036 = vmatpush.msra.mxu0 %v2813_v1  ;;  %1056 = vmatpush.msra.mxu1 %v2814_v10 }
 0x2ee   :  { %1076 = vmatpush.msra.mxu2 %v2815_v7  ;;  %1096 = vmatpush.msra.mxu3 %v2816_v15  ;;  %v1369_v7 = vld [vmem:[%s2574_s0 + $0x98] sm:$0xff] }
 0x34a   :  { %v730_v2 = vpop.f32.mrf.mxu0  ;;  %v750_v3 = vpop.f32.mrf.mxu1 }
 0x34b   :  { %v793_v8 = vadd.f32 %v1366_v4, %v730_v2  ;;  %v794_v17 = vadd.f32 %v1367_v42, %v750_v3 }
 0x34d   :  { %v1370_v20 = vmul.f32 -1.442695, %v793_v8  ;;  %v1371_v1 = vmul.f32 -1.442695, %v794_v17  ;;  %v1368_v8 = vld [vmem:[%s2574_s0 + $0x90] sm:$0xff] }
 0x34f   :  { %1466 = vpow2.f32 %v1370_v20 }
 0x350   :  { %1468 = vpow2.f32 %v1371_v1 }
 0x351   :  { %v790_v15 = vpop.f32.mrf.mxu3  ;;  %v770_v20 = vpop.f32.mrf.mxu2 }
 0x352   :  { %v796_v10 = vadd.f32 %v1369_v7, %v790_v15  ;;  %v795_v3 = vadd.f32 %v1368_v8, %v770_v20 }
 0x354   :  { %v1372_v18 = vmul.f32 -1.442695, %v796_v10 }
 0x355   :  { %v1467_v9 = vpop.eup %1466 }
 0x356   :  { %v1469_v19 = vpop.eup %1468  ;;  %v800_v14 = vadd.f32 1.0, %v1467_v9  ;;  %1470 = vpow2.f32 %v1372_v18 }
 0x357   :  { %v819_v11 = vadd.f32 1.0, %v1469_v19 }
 0x358   :  { %1472 = vrcp.f32 %v800_v14  ;;  %v812_v9 = vand.u32 2147483648, %v800_v14  ;;  %v810_v13 = vand.u32 2147483647, %v800_v14  ;;  %vm806_vm2 = vweird.f32 %v800_v14 }
 0x359   :  { %1474 = vrcp.f32 %v819_v11  ;;  %v831_v19 = vand.u32 2147483648, %v819_v11  ;;  %v829_v16 = vand.u32 2147483647, %v819_v11  ;;  %vm825_vm3 = vweird.f32 %v819_v11 }
 0x35a   :  { %v813_v8 = vor.u32 1.1754944e-38, %v812_v9  ;;  %vm811_vm6 = vcmp.eq.f32.partialorder %v810_v13, 8.507059e+37 }
 0x35b   :  { %vm830_vm7 = vcmp.eq.f32.partialorder %v829_v16, 8.507059e+37 }
 0x35c   :  { %v1471_v4 = vpop.eup %1470 }
 0x35d   :  { %v839_v2 = vadd.f32 1.0, %v1471_v4 }
 0x35e   :  { %v1473_v42 = vpop.eup %1472 }
 0x35f   :  { %v1475_v17 = vpop.eup %1474  ;;  %v802_v1 = vmul.f32 %v1473_v42, %v800_v14  ;;  %1476 = vrcp.f32 %v839_v2  ;;  %vm807_vm0 = vweird.f32 %v1473_v42  ;;  %vm845_vm9 = vweird.f32 %v839_v2 }
 0x360   :  { %v821_v15 = vmul.f32 %v1475_v17, %v819_v11  ;;  %1478 = vtanh.f32 %v795_v3  ;;  %vm826_vm1 = vweird.f32 %v1475_v17  ;;  %vm808_vm4 = vmor %vm806_vm2, %vm807_vm0 }
 0x361   :  { %v803_v10 = vsub.f32 1.0, %v802_v1  ;;  %vm827_vm5 = vmor %vm825_vm3, %vm826_vm1  ;;  %v832_v1 = vor.u32 1.1754944e-38, %v831_v19 }
 0x362   :  { %v822_v7 = vsub.f32 1.0, %v821_v15 }
 0x363   :  { %v804_v18 = vmul.f32 %v1473_v42, %v803_v10 }
 0x364   :  { %v823_v6 = vmul.f32 %v1475_v17, %v822_v7 }
 0x365   :  { %v1477_v54 = vpop.eup %1476  ;;  %v805_v49 = vadd.f32 %v1473_v42, %v804_v18 }
 0x366   :  { %v824_v20 = vadd.f32 %v1475_v17, %v823_v6  ;;  %v841_v4 = vmul.f32 %v1477_v54, %v839_v2  ;;  %v1479_v3 = vpop.eup %1478  ;;  %vm846_vm8 = vweird.f32 %v1477_v54  ;;  %v851_v6 = vand.u32 2147483648, %v839_v2 }
 0x367   :  { %v809_v15 = vsel %vm808_vm4, %v1473_v42, %v805_v49  ;;  %v849_v49 = vand.u32 2147483647, %v839_v2  ;;  %vm847_vm10 = vmor %vm845_vm9, %vm846_vm8 }
 0x368   :  { %v814_v59 = vsel %vm811_vm6, %v813_v8, %v809_v15  ;;  %v828_v10 = vsel %vm827_vm5, %v1475_v17, %v824_v20  ;;  %v842_v61 = vsub.f32 1.0, %v841_v4  ;;  %v852_v42 = vor.u32 1.1754944e-38, %v851_v6 }
 0x369   :  { %v833_v7 = vsel %vm830_vm7, %v832_v1, %v828_v10  ;;  %v856_v51 = vmul.f32 %v1479_v3, %v814_v59  ;;  %vm850_vm11 = vcmp.eq.f32.partialorder %v849_v49, 8.507059e+37  ;;  %v1376_v59 = vld [vmem:[%s2574_s0 + $0xb0] sm:$0xff] }
 0x36a   :  { %v855_v12 = vmul.f32 %v833_v7, %v2361_v5  ;;  %v843_v18 = vmul.f32 %v1477_v54, %v842_v61 }
 0x36c   :  { %v2444_v14 = vadd.f32 %v856_v51, %v855_v12  ;;  %v844_v11 = vadd.f32 %v1477_v54, %v843_v18 }
 0x36e   :  { %1480 = vtanh.f32 %v2444_v14  ;;  %v848_v13 = vsel %vm847_vm10, %v1477_v54, %v844_v11 }
 0x36f   :  { %v853_v17 = vsel %vm850_vm11, %v852_v42, %v848_v13 }
 0x374   :  { %v1481_v16 = vpop.eup %1480 }
 0x375   :  { %v859_v9 = vmul.f32 %v1481_v16, %v853_v17 }
 0x377   :  { %1373 = vst [vmem:[%s2576_s2 + $0x20] sm:$0xff] %v859_v9  ;;  %883 = vmatmul.f32.vlgmr.msrb.gmra.mxu0 %v859_v9  ;;  %903 = vmatmul.f32.vlgmr.msrb.gmra.mxu1 %v859_v9 }
 0x378   :  { %923 = vmatmul.f32.vlgmr.msrb.gmra.mxu2 %v859_v9  ;;  %943 = vmatmul.f32.vlgmr.msrb.gmra.mxu3 %v859_v9 }
 0x379   :  { %1175 = vmatpush.msrb.mxu0 %v2156_v50  ;;  %1195 = vmatpush.msrb.mxu1 %v2159_v21  ;;  %v2817_v50 = vld [vmem:[#allocation5_spill] sm:$0xff]  ;;  %v2818_v21 = vld [vmem:[#allocation19_spill] sm:$0xff] }
 0x37a   :  { %1215 = vmatpush.msrb.mxu2 %v2162_v22  ;;  %1235 = vmatpush.msrb.mxu3 %v2165_v23  ;;  %v2819_v22 = vld [vmem:[#allocation6_spill] sm:$0xff]  ;;  %v2820_v23 = vld [vmem:[#allocation7_spill] sm:$0xff] }
 0x37b   :  { %1176 = vmatpush.msrb.mxu0 %v2168_v24  ;;  %1196 = vmatpush.msrb.mxu1 %v2171_v25  ;;  %v2821_v24 = vld [vmem:[#allocation8_spill] sm:$0xff]  ;;  %v2822_v25 = vld [vmem:[#allocation23_spill] sm:$0xff] }
 0x37c   :  { %1216 = vmatpush.msrb.mxu2 %v2174_v26  ;;  %1236 = vmatpush.msrb.mxu3 %v2177_v27  ;;  %v2823_v26 = vld [vmem:[#allocation9_spill] sm:$0xff]  ;;  %v2824_v27 = vld [vmem:[#allocation10_spill] sm:$0xff] }
 0x37d   :  { %1177 = vmatpush.msrb.mxu0 %v2180_v28  ;;  %1197 = vmatpush.msrb.mxu1 %v2183_v29  ;;  %v2825_v28 = vld [vmem:[#allocation11_spill] sm:$0xff] }
 0x37e   :  { %1217 = vmatpush.msrb.mxu2 %v2186_v30  ;;  %1237 = vmatpush.msrb.mxu3 %v2189_v31  ;;  %v2826_v29 = vld [vmem:[#allocation27_spill] sm:$0xff]  ;;  %v2827_v30 = vld [vmem:[#allocation12_spill] sm:$0xff]  ;;  %v2828_v31 = vld [vmem:[#allocation13_spill] sm:$0xff] }
 0x37f   :  { %1178 = vmatpush.msrb.mxu0 %v2192_v32  ;;  %1198 = vmatpush.msrb.mxu1 %v2195_v33  ;;  %v2829_v32 = vld [vmem:[#allocation14_spill] sm:$0xff]  ;;  %v2830_v33 = vld [vmem:[#allocation28_spill] sm:$0xff] }
 0x380   :  { %1218 = vmatpush.msrb.mxu2 %v2198_v35  ;;  %1238 = vmatpush.msrb.mxu3 %v2201_v39  ;;  %v2831_v35 = vld [vmem:[#allocation15_spill] sm:$0xff]  ;;  %v2832_v39 = vld [vmem:[#allocation16_spill] sm:$0xff] }
 0x381   :  { %1179 = vmatpush.msrb.mxu0 %v2204_v43  ;;  %1199 = vmatpush.msrb.mxu1 %v2207_v47  ;;  %v2833_v43 = vld [vmem:[#allocation17_spill] sm:$0xff] }
 0x382   :  { %1219 = vmatpush.msrb.mxu2 %v2210_v60  ;;  %1239 = vmatpush.msrb.mxu3 %v2213_v63  ;;  %v2834_v47 = vld [vmem:[#allocation29_spill] sm:$0xff]  ;;  %v2835_v60 = vld [vmem:[#allocation18_spill] sm:$0xff]  ;;  %v2836_v63 = vld [vmem:[#allocation20_spill] sm:$0xff] }
 0x383   :  { %1180 = vmatpush.msrb.mxu0 %v2216_v34  ;;  %1200 = vmatpush.msrb.mxu1 %v2219_v36  ;;  %v2837_v34 = vld [vmem:[#allocation21_spill] sm:$0xff]  ;;  %v2838_v36 = vld [vmem:[#allocation30_spill] sm:$0xff] }
 0x384   :  { %1220 = vmatpush.msrb.mxu2 %v2222_v37  ;;  %1240 = vmatpush.msrb.mxu3 %v2225_v40  ;;  %v2839_v37 = vld [vmem:[#allocation22_spill] sm:$0xff]  ;;  %v2840_v40 = vld [vmem:[#allocation24_spill] sm:$0xff] }
 0x385   :  { %1181 = vmatpush.msrb.mxu0 %v2228_v56  ;;  %1201 = vmatpush.msrb.mxu1 %v2231_v45  ;;  %v2841_v56 = vld [vmem:[#allocation25_spill] sm:$0xff]  ;;  %v2842_v45 = vld [vmem:[#allocation31_spill] sm:$0xff] }
 0x386   :  { %1221 = vmatpush.msrb.mxu2 %v2234_v53  ;;  %1241 = vmatpush.msrb.mxu3 %v2237_v46  ;;  %v1374_v53 = vld [vmem:[%s2574_s0 + $0xa0] sm:$0xff]  ;;  %v1375_v46 = vld [vmem:[%s2574_s0 + $0xa8] sm:$0xff] }
 0x387   :  { %1182 = vmatpush.msrb.mxu0 %v2240_v62  ;;  %1202 = vmatpush.msrb.mxu1 %v2243_v44 }
 0x388   :  { %1222 = vmatpush.msrb.mxu2 %v2246_v57  ;;  %1242 = vmatpush.msrb.mxu3 %v2249_v0 }
 0x389   :  { %1183 = vmatpush.msrb.mxu0 %v2252_v38  ;;  %1203 = vmatpush.msrb.mxu1 %v2255_v55 }
 0x38a   :  { %1223 = vmatpush.msrb.mxu2 %v2258_v41  ;;  %1243 = vmatpush.msrb.mxu3 %v2261_v58  ;;  %v1377_v41 = vld [vmem:[%s2574_s0 + $0xb8] sm:$0xff] }
 0x38b   :  { %1184 = vmatpush.msrb.mxu0 %v2264_v52  ;;  %1204 = vmatpush.msrb.mxu1 %v2267_v48 }
 0x38c   :  { %1224 = vmatpush.msrb.mxu2 %v2817_v50  ;;  %1244 = vmatpush.msrb.mxu3 %v2818_v21 }
 0x38d   :  { %1185 = vmatpush.msrb.mxu0 %v2819_v22  ;;  %1205 = vmatpush.msrb.mxu1 %v2820_v23 }
 0x38e   :  { %1225 = vmatpush.msrb.mxu2 %v2821_v24  ;;  %1245 = vmatpush.msrb.mxu3 %v2822_v25 }
 0x38f   :  { %1186 = vmatpush.msrb.mxu0 %v2823_v26  ;;  %1206 = vmatpush.msrb.mxu1 %v2824_v27 }
 0x390   :  { %1226 = vmatpush.msrb.mxu2 %v2825_v28  ;;  %1246 = vmatpush.msrb.mxu3 %v2826_v29 }
 0x391   :  { %1187 = vmatpush.msrb.mxu0 %v2827_v30  ;;  %1207 = vmatpush.msrb.mxu1 %v2828_v31 }
 0x392   :  { %1227 = vmatpush.msrb.mxu2 %v2829_v32  ;;  %1247 = vmatpush.msrb.mxu3 %v2830_v33 }
 0x393   :  { %1188 = vmatpush.msrb.mxu0 %v2831_v35  ;;  %1208 = vmatpush.msrb.mxu1 %v2832_v39 }
 0x394   :  { %1228 = vmatpush.msrb.mxu2 %v2833_v43  ;;  %1248 = vmatpush.msrb.mxu3 %v2834_v47 }
 0x395   :  { %1189 = vmatpush.msrb.mxu0 %v2835_v60  ;;  %1209 = vmatpush.msrb.mxu1 %v2836_v63 }
 0x396   :  { %1229 = vmatpush.msrb.mxu2 %v2837_v34  ;;  %1249 = vmatpush.msrb.mxu3 %v2838_v36  ;;  %v1383_v34 = vld [vmem:[%s2574_s0 + $0xc8] sm:$0xff] }
 0x397   :  { %1190 = vmatpush.msrb.mxu0 %v2839_v37  ;;  %1210 = vmatpush.msrb.mxu1 %v2840_v40 }
 0x398   :  { %1230 = vmatpush.msrb.mxu2 %v2841_v56  ;;  %1250 = vmatpush.msrb.mxu3 %v2842_v45 }
 0x3f4   :  { %v884_v62 = vpop.f32.mrf.mxu0  ;;  %v904_v44 = vpop.f32.mrf.mxu1 }
 0x3f5   :  { %v947_v57 = vadd.f32 %v1374_v53, %v884_v62  ;;  %v948_v0 = vadd.f32 %v1375_v46, %v904_v44  ;;  %v1385_v46 = vld [vmem:[%s2574_s0 + $0xd8] sm:$0xff] }
 0x3f7   :  { %v1378_v38 = vmul.f32 -1.442695, %v947_v57  ;;  %v1379_v55 = vmul.f32 -1.442695, %v948_v0 }
 0x3f9   :  { %1482 = vpow2.f32 %v1378_v38 }
 0x3fa   :  { %1484 = vpow2.f32 %v1379_v55 }
 0x3fb   :  { %v944_v58 = vpop.f32.mrf.mxu3  ;;  %v924_v54 = vpop.f32.mrf.mxu2 }
 0x3fc   :  { %v950_v52 = vadd.f32 %v1377_v41, %v944_v58  ;;  %v949_v20 = vadd.f32 %v1376_v59, %v924_v54  ;;  %v1384_v58 = vld [vmem:[%s2574_s0 + $0xd0] sm:$0xff] }
 0x3fe   :  { %v1380_v48 = vmul.f32 -1.442695, %v950_v52 }
 0x3ff   :  { %v1483_v5 = vpop.eup %1482 }
 0x400   :  { %v1485_v12 = vpop.eup %1484  ;;  %v954_v51 = vadd.f32 1.0, %v1483_v5  ;;  %1486 = vpow2.f32 %v1380_v48 }
 0x401   :  { %v973_v61 = vadd.f32 1.0, %v1485_v12 }
 0x402   :  { %1488 = vrcp.f32 %v954_v51  ;;  %v966_v7 = vand.u32 2147483648, %v954_v51  ;;  %v964_v6 = vand.u32 2147483647, %v954_v51  ;;  %vm960_vm14 = vweird.f32 %v954_v51 }
 0x403   :  { %1490 = vrcp.f32 %v973_v61  ;;  %v985_v18 = vand.u32 2147483648, %v973_v61  ;;  %v983_v13 = vand.u32 2147483647, %v973_v61  ;;  %vm979_vm15 = vweird.f32 %v973_v61 }
 0x404   :  { %v967_v17 = vor.u32 1.1754944e-38, %v966_v7  ;;  %vm965_vm2 = vcmp.eq.f32.partialorder %v964_v6, 8.507059e+37 }
 0x405   :  { %v986_v21 = vor.u32 1.1754944e-38, %v985_v18  ;;  %vm984_vm3 = vcmp.eq.f32.partialorder %v983_v13, 8.507059e+37 }
 0x406   :  { %v1487_v2 = vpop.eup %1486 }
 0x407   :  { %v993_v19 = vadd.f32 1.0, %v1487_v2 }
 0x408   :  { %v1489_v8 = vpop.eup %1488 }
 0x409   :  { %v1491_v4 = vpop.eup %1490  ;;  %v956_v1 = vmul.f32 %v1489_v8, %v954_v51  ;;  %1492 = vrcp.f32 %v993_v19  ;;  %vm961_vm12 = vweird.f32 %v1489_v8  ;;  %v1005_v33 = vand.u32 2147483648, %v993_v19 }
 0x40a   :  { %v975_v15 = vmul.f32 %v1491_v4, %v973_v61  ;;  %1494 = vtanh.f32 %v949_v20  ;;  %vm980_vm13 = vweird.f32 %v1491_v4  ;;  %vm962_vm0 = vmor %vm960_vm14, %vm961_vm12  ;;  %vm999_vm5 = vweird.f32 %v993_v19 }
 0x40b   :  { %v957_v3 = vsub.f32 1.0, %v956_v1  ;;  %vm981_vm1 = vmor %vm979_vm15, %vm980_vm13  ;;  %v1003_v35 = vand.u32 2147483647, %v993_v19  ;;  %v1006_v43 = vor.u32 1.1754944e-38, %v1005_v33 }
 0x40c   :  { %v976_v10 = vsub.f32 1.0, %v975_v15 }
 0x40d   :  { %v958_v11 = vmul.f32 %v1489_v8, %v957_v3  ;;  %vm1004_vm7 = vcmp.eq.f32.partialorder %v1003_v35, 8.507059e+37  ;;  %v1391_v35 = vld [vmem:[%s2574_s0 + $0xe8] sm:$0xff] }
 0x40e   :  { %v977_v49 = vmul.f32 %v1491_v4, %v976_v10 }
 0x40f   :  { %v1493_v42 = vpop.eup %1492  ;;  %v959_v16 = vadd.f32 %v1489_v8, %v958_v11 }
 0x410   :  { %v978_v9 = vadd.f32 %v1491_v4, %v977_v49  ;;  %v995_v50 = vmul.f32 %v1493_v42, %v993_v19  ;;  %v1495_v23 = vpop.eup %1494  ;;  %vm1000_vm4 = vweird.f32 %v1493_v42 }
 0x411   :  { %v963_v22 = vsel %vm962_vm0, %v1489_v8, %v959_v16  ;;  %vm1001_vm6 = vmor %vm999_vm5, %vm1000_vm4 }
 0x412   :  { %v968_v24 = vsel %vm965_vm2, %v967_v17, %v963_v22  ;;  %v982_v25 = vsel %vm981_vm1, %v1491_v4, %v978_v9  ;;  %v996_v26 = vsub.f32 1.0, %v995_v50 }
 0x413   :  { %v987_v27 = vsel %vm984_vm3, %v986_v21, %v982_v25  ;;  %v1010_v28 = vmul.f32 %v1495_v23, %v968_v24 }
 0x414   :  { %v1009_v29 = vmul.f32 %v987_v27, %v2444_v14  ;;  %v997_v30 = vmul.f32 %v1493_v42, %v996_v26  ;;  %v1382_v14 = vld [vmem:[%s2574_s0 + $0xc0] sm:$0xff] }
 0x416   :  { %v2527_v31 = vadd.f32 %v1010_v28, %v1009_v29  ;;  %v998_v32 = vadd.f32 %v1493_v42, %v997_v30 }
 0x418   :  { %1496 = vtanh.f32 %v2527_v31  ;;  %v1002_v39 = vsel %vm1001_vm6, %v1493_v42, %v998_v32 }
 0x419   :  { %v1007_v60 = vsel %vm1004_vm7, %v1006_v43, %v1002_v39 }
 0x41e   :  { %v1497_v47 = vpop.eup %1496 }
 0x41f   :  { %v1013_v63 = vmul.f32 %v1497_v47, %v1007_v60 }
 0x421   :  { %1381 = vst [vmem:[%s2576_s2 + $0x28] sm:$0xff] %v1013_v63  ;;  %1037 = vmatmul.f32.vlgmr.msra.gmra.mxu0 %v1013_v63  ;;  %1057 = vmatmul.f32.vlgmr.msra.gmra.mxu1 %v1013_v63 }
 0x422   :  { %1077 = vmatmul.f32.vlgmr.msra.gmra.mxu2 %v1013_v63  ;;  %1097 = vmatmul.f32.vlgmr.msra.gmra.mxu3 %v1013_v63 }
 0x49e   :  { %v1038_v36 = vpop.f32.mrf.mxu0  ;;  %v1058_v37 = vpop.f32.mrf.mxu1 }
 0x49f   :  { %v1101_v40 = vadd.f32 %v1382_v14, %v1038_v36  ;;  %v1102_v56 = vadd.f32 %v1383_v34, %v1058_v37  ;;  %v1393_v34 = vld [vmem:[%s2574_s0 + $0xf8] sm:$0xff] }
 0x4a1   :  { %v1386_v45 = vmul.f32 -1.442695, %v1101_v40  ;;  %v1387_v53 = vmul.f32 -1.442695, %v1102_v56 }
 0x4a3   :  { %1498 = vpow2.f32 %v1386_v45 }
 0x4a4   :  { %1500 = vpow2.f32 %v1387_v53 }
 0x4a5   :  { %v1098_v62 = vpop.f32.mrf.mxu3  ;;  %v1078_v52 = vpop.f32.mrf.mxu2 }
 0x4a6   :  { %v1104_v44 = vadd.f32 %v1385_v46, %v1098_v62  ;;  %v1103_v51 = vadd.f32 %v1384_v58, %v1078_v52  ;;  %v1392_v62 = vld [vmem:[%s2574_s0 + $0xf0] sm:$0xff] }
 0x4a8   :  { %v1388_v57 = vmul.f32 -1.442695, %v1104_v44 }
 0x4a9   :  { %v1499_v0 = vpop.eup %1498 }
 0x4aa   :  { %v1501_v38 = vpop.eup %1500  ;;  %v1108_v55 = vadd.f32 1.0, %v1499_v0  ;;  %1502 = vpow2.f32 %v1388_v57 }
 0x4ab   :  { %v1127_v41 = vadd.f32 1.0, %v1501_v38 }
 0x4ac   :  { %1504 = vrcp.f32 %v1108_v55  ;;  %v1120_v8 = vand.u32 2147483648, %v1108_v55  ;;  %v1118_v1 = vand.u32 2147483647, %v1108_v55  ;;  %vm1114_vm10 = vweird.f32 %v1108_v55 }
 0x4ad   :  { %1506 = vrcp.f32 %v1127_v41  ;;  %v1139_v20 = vand.u32 2147483648, %v1127_v41  ;;  %v1137_v3 = vand.u32 2147483647, %v1127_v41  ;;  %vm1133_vm11 = vweird.f32 %v1127_v41 }
 0x4ae   :  { %v1121_v18 = vor.u32 1.1754944e-38, %v1120_v8  ;;  %vm1119_vm14 = vcmp.eq.f32.partialorder %v1118_v1, 8.507059e+37 }
 0x4af   :  { %v1140_v49 = vor.u32 1.1754944e-38, %v1139_v20  ;;  %vm1138_vm15 = vcmp.eq.f32.partialorder %v1137_v3, 8.507059e+37 }
 0x4b0   :  { %v1503_v48 = vpop.eup %1502 }
 0x4b1   :  { %v1147_v5 = vadd.f32 1.0, %v1503_v48 }
 0x4b2   :  { %v1505_v12 = vpop.eup %1504 }
 0x4b3   :  { %v1507_v61 = vpop.eup %1506  ;;  %v1110_v59 = vmul.f32 %v1505_v12, %v1108_v55  ;;  %1508 = vrcp.f32 %v1147_v5  ;;  %vm1115_vm8 = vweird.f32 %v1505_v12  ;;  %v1159_v26 = vand.u32 2147483648, %v1147_v5 }
 0x4b4   :  { %v1129_v54 = vmul.f32 %v1507_v61, %v1127_v41  ;;  %1510 = vtanh.f32 %v1103_v51  ;;  %vm1134_vm9 = vweird.f32 %v1507_v61  ;;  %vm1116_vm12 = vmor %vm1114_vm10, %vm1115_vm8  ;;  %vm1153_vm1 = vweird.f32 %v1147_v5 }
 0x4b5   :  { %v1111_v2 = vsub.f32 1.0, %v1110_v59  ;;  %vm1135_vm13 = vmor %vm1133_vm11, %vm1134_vm9  ;;  %v1157_v27 = vand.u32 2147483647, %v1147_v5  ;;  %v1160_v29 = vor.u32 1.1754944e-38, %v1159_v26 }
 0x4b6   :  { %v1130_v19 = vsub.f32 1.0, %v1129_v54 }
 0x4b7   :  { %v1112_v4 = vmul.f32 %v1505_v12, %v1111_v2  ;;  %vm1158_vm3 = vcmp.eq.f32.partialorder %v1157_v27, 8.507059e+37 }
 0x4b8   :  { %v1131_v15 = vmul.f32 %v1507_v61, %v1130_v19 }
 0x4b9   :  { %v1509_v10 = vpop.eup %1508  ;;  %v1113_v7 = vadd.f32 %v1505_v12, %v1112_v4 }
 0x4ba   :  { %v1132_v11 = vadd.f32 %v1507_v61, %v1131_v15  ;;  %v1149_v6 = vmul.f32 %v1509_v10, %v1147_v5  ;;  %v1511_v42 = vpop.eup %1510  ;;  %vm1154_vm0 = vweird.f32 %v1509_v10 }
 0x4bb   :  { %v1117_v13 = vsel %vm1116_vm12, %v1505_v12, %v1113_v7  ;;  %vm1155_vm2 = vmor %vm1153_vm1, %vm1154_vm0 }
 0x4bc   :  { %v1122_v16 = vsel %vm1119_vm14, %v1121_v18, %v1117_v13  ;;  %v1136_v17 = vsel %vm1135_vm13, %v1507_v61, %v1132_v11  ;;  %v1150_v9 = vsub.f32 1.0, %v1149_v6 }
 0x4bd   :  { %v1141_v50 = vsel %vm1138_vm15, %v1140_v49, %v1136_v17  ;;  %v1164_v21 = vmul.f32 %v1511_v42, %v1122_v16 }
 0x4be   :  { %v1163_v22 = vmul.f32 %v1141_v50, %v2527_v31  ;;  %v1151_v23 = vmul.f32 %v1509_v10, %v1150_v9  ;;  %v1390_v31 = vld [vmem:[%s2574_s0 + $0xe0] sm:$0xff] }
 0x4c0   :  { %v2546_v24 = vadd.f32 %v1164_v21, %v1163_v22  ;;  %v1152_v25 = vadd.f32 %v1509_v10, %v1151_v23 }
 0x4c2   :  { %1512 = vtanh.f32 %v2546_v24  ;;  %v1156_v28 = vsel %vm1155_vm2, %v1509_v10, %v1152_v25 }
 0x4c3   :  { %v1161_v32 = vsel %vm1158_vm3, %v1160_v29, %v1156_v28 }
 0x4c8   :  { %v1513_v30 = vpop.eup %1512 }
 0x4c9   :  { %v1167_v33 = vmul.f32 %v1513_v30, %v1161_v32 }
 0x4cb   :  { %1389 = vst [vmem:[%s2576_s2 + $0x30] sm:$0xff] %v1167_v33  ;;  %1191 = vmatmul.f32.vlgmr.msrb.gmra.mxu0 %v1167_v33  ;;  %1211 = vmatmul.f32.vlgmr.msrb.gmra.mxu1 %v1167_v33 }
 0x4cc   :  { %1231 = vmatmul.f32.vlgmr.msrb.gmra.mxu2 %v1167_v33  ;;  %1251 = vmatmul.f32.vlgmr.msrb.gmra.mxu3 %v1167_v33 }
 0x548   :  { %v1192_v39 = vpop.f32.mrf.mxu0  ;;  %v1212_v43 = vpop.f32.mrf.mxu1 }
 0x549   :  { %v1255_v47 = vadd.f32 %v1390_v31, %v1192_v39  ;;  %v1256_v60 = vadd.f32 %v1391_v35, %v1212_v43 }
 0x54b   :  { %v1394_v63 = vmul.f32 -1.442695, %v1255_v47  ;;  %v1395_v14 = vmul.f32 -1.442695, %v1256_v60 }
 0x54d   :  { %1514 = vpow2.f32 %v1394_v63 }
 0x54e   :  { %1516 = vpow2.f32 %v1395_v14 }
 0x54f   :  { %v1252_v36 = vpop.f32.mrf.mxu3  ;;  %v1232_v44 = vpop.f32.mrf.mxu2 }
 0x550   :  { %v1258_v37 = vadd.f32 %v1393_v34, %v1252_v36  ;;  %v1257_v55 = vadd.f32 %v1392_v62, %v1232_v44 }
 0x552   :  { %v1396_v40 = vmul.f32 -1.442695, %v1258_v37 }
 0x553   :  { %v1515_v56 = vpop.eup %1514 }
 0x554   :  { %v1517_v45 = vpop.eup %1516  ;;  %v1262_v53 = vadd.f32 1.0, %v1515_v56  ;;  %1518 = vpow2.f32 %v1396_v40 }
 0x555   :  { %v1281_v46 = vadd.f32 1.0, %v1517_v45 }
 0x556   :  { %1520 = vrcp.f32 %v1262_v53  ;;  %v1274_v12 = vand.u32 2147483648, %v1262_v53  ;;  %v1272_v59 = vand.u32 2147483647, %v1262_v53  ;;  %vm1268_vm6 = vweird.f32 %v1262_v53 }
 0x557   :  { %1522 = vrcp.f32 %v1281_v46  ;;  %v1293_v51 = vand.u32 2147483648, %v1281_v46  ;;  %v1291_v2 = vand.u32 2147483647, %v1281_v46  ;;  %vm1287_vm7 = vweird.f32 %v1281_v46 }
 0x558   :  { %v1275_v20 = vor.u32 1.1754944e-38, %v1274_v12  ;;  %vm1273_vm10 = vcmp.eq.f32.partialorder %v1272_v59, 8.507059e+37 }
 0x559   :  { %v1294_v15 = vor.u32 1.1754944e-38, %v1293_v51  ;;  %vm1292_vm11 = vcmp.eq.f32.partialorder %v1291_v2, 8.507059e+37 }
 0x55a   :  { %v1519_v57 = vpop.eup %1518 }
 0x55b   :  { %v1301_v0 = vadd.f32 1.0, %v1519_v57 }
 0x55c   :  { %v1521_v38 = vpop.eup %1520 }
 0x55d   :  { %v1523_v41 = vpop.eup %1522  ;;  %v1264_v58 = vmul.f32 %v1521_v38, %v1262_v53  ;;  %1524 = vrcp.f32 %v1301_v0  ;;  %vm1269_vm4 = vweird.f32 %v1521_v38  ;;  %v1313_v9 = vand.u32 2147483648, %v1301_v0 }
 0x55e   :  { %v1283_v52 = vmul.f32 %v1523_v41, %v1281_v46  ;;  %1526 = vtanh.f32 %v1257_v55  ;;  %vm1288_vm5 = vweird.f32 %v1523_v41  ;;  %vm1270_vm8 = vmor %vm1268_vm6, %vm1269_vm4  ;;  %vm1307_vm13 = vweird.f32 %v1301_v0 }
 0x55f   :  { %v1265_v48 = vsub.f32 1.0, %v1264_v58  ;;  %vm1289_vm9 = vmor %vm1287_vm7, %vm1288_vm5  ;;  %v1311_v50 = vand.u32 2147483647, %v1301_v0  ;;  %v1314_v22 = vor.u32 1.1754944e-38, %v1313_v9 }
 0x560   :  { %v1284_v5 = vsub.f32 1.0, %v1283_v52 }
 0x561   :  { %v1266_v61 = vmul.f32 %v1521_v38, %v1265_v48  ;;  %vm1312_vm15 = vcmp.eq.f32.partialorder %v1311_v50, 8.507059e+37 }
 0x562   :  { %v1285_v54 = vmul.f32 %v1523_v41, %v1284_v5 }
 0x563   :  { %v1525_v19 = vpop.eup %1524  ;;  %v1267_v8 = vadd.f32 %v1521_v38, %v1266_v61 }
 0x564   :  { %v1286_v4 = vadd.f32 %v1523_v41, %v1285_v54  ;;  %v1303_v1 = vmul.f32 %v1525_v19, %v1301_v0  ;;  %v1527_v10 = vpop.eup %1526  ;;  %vm1308_vm12 = vweird.f32 %v1525_v19 }
 0x565   :  { %v1271_v3 = vsel %vm1270_vm8, %v1521_v38, %v1267_v8  ;;  %vm1309_vm14 = vmor %vm1307_vm13, %vm1308_vm12 }
 0x566   :  { %v1276_v7 = vsel %vm1273_vm10, %v1275_v20, %v1271_v3  ;;  %v1290_v18 = vsel %vm1289_vm9, %v1523_v41, %v1286_v4  ;;  %v1304_v11 = vsub.f32 1.0, %v1303_v1 }
 0x567   :  { %v1295_v6 = vsel %vm1292_vm11, %v1294_v15, %v1290_v18  ;;  %v1318_v49 = vmul.f32 %v1527_v10, %v1276_v7 }
 0x568   :  { %v1317_v13 = vmul.f32 %v1295_v6, %v2546_v24  ;;  %v1305_v42 = vmul.f32 %v1525_v19, %v1304_v11 }
 0x56a   :  { %v1319_v16 = vadd.f32 %v1318_v49, %v1317_v13  ;;  %v1306_v17 = vadd.f32 %v1525_v19, %v1305_v42 }
 0x56c   :  { %1528 = vtanh.f32 %v1319_v16  ;;  %1325 = vst [vmem:[%s2578_s4] sm:$0xff] %v1319_v16  ;;  %v1310_v21 = vsel %vm1309_vm14, %v1525_v19, %v1306_v17 }
 0x56d   :  { %v1315_v25 = vsel %vm1312_vm15, %v1314_v22, %v1310_v21 }
 0x572   :  { %v1529_v23 = vpop.eup %1528 }
 0x573   :  { %v1321_v26 = vmul.f32 %v1529_v23, %v1315_v25 }
 0x575   :  { %1397 = vst [vmem:[%s2576_s2 + $0x38] sm:$0xff] %v1321_v26 }
 0x576   :  { %1324 = vst [vmem:[%s2577_s3] sm:$0xff] %v1321_v26 }
 0x577   :  { %1338 = vsyncpa [#allocation3], 1 }

// kernel: _seq2seq_forward.3
= control target key start
LH: loop header
LB: loop body
LE: loop exit
PB: predicated region body
PF: predicated region fallthrough
CT: control target
= control target key end

     0   :  { %16 = vsyncpa [#allocation5], 0  ;;  %s6269_s0 = inlined_call_operand.vmem [shape: s32[5], index: 0, kind: input, shape index: {}]   ;;  %s6270_s1 = inlined_call_operand.vmem [shape: f32[5,8,128], index: 1, kind: input, shape index: {}]   ;;  %s6271_s2 = inlined_call_operand.vmem [shape: f32[8,8,128], index: 2, kind: input, shape index: {}]   ;;  %s6272_s3 = inlined_call_operand.vmem [shape: f32[8,8], index: 3, kind: input, shape index: {}]   ;;  %s6273_s4 = inlined_call_operand.vmem [shape: f32[128,128], index: 4, kind: input, shape index: {}]   ;;  %s6274_s5 = inlined_call_operand.hbm [shape: f32[384,512], index: 5, kind: input, shape index: {}]   ;;  %s6275_s6 = inlined_call_operand.vmem [shape: f32[1,512], index: 6, kind: input, shape index: {}]   ;;  %s6276_s7 = inlined_call_operand.vmem [shape: f32[384,128], index: 7, kind: input, shape index: {}]   ;;  %s6277_s8 = inlined_call_operand.vmem [shape: f32[1,128], index: 8, kind: input, shape index: {}]   ;;  %s6278_s9 = inlined_call_operand.vmem [shape: f32[8,128], index: 9, kind: input, shape index: {}]   ;;  %s6279_s10 = inlined_call_operand.vmem [shape: f32[8,128], index: 10, kind: input, shape index: {}]   ;;  %s6280_s11 = inlined_call_operand.vmem [shape: f32[5,8,128], index: 11, kind: output, shape index: {}]  }
   0x1   :  { %s23_s19 = sshll.u32 %s6269_s0, 4  ;;  %s24_s19 = int_to_ptr.vmem [resolvable:$true] %s23_s19 }
   0x2   :  { %17 = vsyncpa [#allocation4], 0  ;;  %s39_s22 = sshll.u32 %s6274_s5, 4  ;;  %s4450_s23 = smov [#allocation3]   ;;  %s40_s22 = int_to_ptr.hbm [resolvable:$true] %s39_s22 }
   0x3   :  { %26 = dma.vmem_to_smem %s24_s19, 16, %s4450_s23, [#allocation5]  }
   0x4   :  { %s4451_s24 = smov [#allocation6]   ;;  %s4452_s26 = smov 512  }
   0x5   :  { %s41_s25 = sshll.u32 %s4451_s24, 4  ;;  %s4453_s27 = smov 32   ;;  %s42_s25 = int_to_ptr.vmem [resolvable:$true] %s41_s25 }
   0x6   :  { %47 = dma.hbm_to_vmem [thread:$0]  %s40_s22, 24576, %s42_s25, [#allocation4], %s4452_s26, %s4452_s26, %s4453_s27  }
   0x7   :  { %4446 = dma.done.wait [#allocation5], 16  }
   0x8   :  { %4447 = vsyncadd [#allocation5], 4294967280 }
   0x9   :  { %4448 = dma.done.wait [#allocation4], 24576  }
   0xa   :  { %4449 = vsyncadd [#allocation4], 4294942720 }
   0xb   :  { %66 = sfence }
   0xc   :  { %v4524_v0 = vld [vmem:[%s6271_s2] sm:$0xff]  ;;  %v4534_v2 = vld [vmem:[%s6271_s2 + $0x10] sm:$0xff]  ;;  %v4550_v7 = vld [vmem:[%s6271_s2 + $0x8] sm:$0xff]  ;;  %v77_v19 = vlaneseq  ;;  %vm130_vm0 = vcmask 1041409   ;;  %vm132_vm1 = vcmask 1042434   ;;  %vm134_vm2 = vcmask 1043459  }
   0xd   :  { %v4529_v1 = vld [vmem:[%s6278_s9] sm:$0xff]  ;;  %v4555_v8 = vld [vmem:[%s6271_s2 + $0x18] sm:$0xff]  ;;  %v4560_v9 = vld [vmem:[%s6271_s2 + $0x28] sm:$0xff]  ;;  %vm136_vm3 = vcmask 1044484   ;;  %vm138_vm4 = vcmask 1045509   ;;  %vm140_vm5 = vcmask 1046534  }
   0xe   :  { %v90_v3 = vmul.f32 %v4529_v1, %v4524_v0  ;;  %v92_v4 = vmul.f32 %v4529_v1, %v4534_v2  ;;  %v4543_v5 = vld [vmem:[%s6271_s2 + $0x20] sm:$0xff]  ;;  %v91_v10 = vmul.f32 %v4529_v1, %v4550_v7  ;;  %v93_v11 = vmul.f32 %v4529_v1, %v4555_v8  ;;  %v4571_v13 = vld [vmem:[%s6271_s2 + $0x30] sm:$0xff]  ;;  %v4576_v14 = vld [vmem:[%s6271_s2 + $0x38] sm:$0xff]  ;;  %s4229_s22 = sld [smem:[#allocation3 + $0x1]] }
   0xf   :  { %v94_v6 = vmul.f32 %v4529_v1, %v4543_v5  ;;  %v95_v12 = vmul.f32 %v4529_v1, %v4560_v9  ;;  %v96_v15 = vmul.f32 %v4529_v1, %v4571_v13  ;;  %v97_v16 = vmul.f32 %v4529_v1, %v4576_v14  ;;  %v4597_v35 = vld [vmem:[%s6272_s3] sm:$0xff]  ;;  %s4620_s3 = sld [smem:[#allocation3]] }
  0x10   :  { %98 = vadd.xlane.f32.xlu0 %v90_v3  ;;  %102 = vadd.xlane.f32.xlu1 %v92_v4  ;;  %v4582_v21 = vand.u32 127, %v77_v19  ;;  %vm142_vm6 = vcmask 1047559   ;;  %vm6282_vm7 = vcmp.gt.f32.partialorder %v4597_v35, 0.5  ;;  %vm6281_vm8 = vcmask 64512   ;;  %s4237_s5 = sld [smem:[#allocation3 + $0x2]] }
  0x11   :  { %106 = vadd.xlane.f32.xlu2 %v94_v6  ;;  %v181_v53 = vshrl.u32 %v77_v19, 7 }
  0x13   :  { %4271 = vset.pattern.permute.xlu1 %v181_v53  ;;  %4270 = vset.pattern.permute.xlu0 %v181_v53 }
  0x14   :  { %4269 = vset.pattern.permute.xlu2 %v181_v53  ;;  %v280_v53 = vld [vmem:[#allocation6 + $0xc0] sm:$0xff]  ;;  %p925_p1 = scmp.gt.s32.totalorder %s4229_s22, 0 }
  0x15   :  { %p84_p0 = scmp.gt.s32.totalorder %s4620_s3, 0 }
  0x16   :  { %p1760_p2 = scmp.gt.s32.totalorder %s4237_s5, 0 }
  0x17   :  { %s86_s27 = scalar_select %p84_p0, 1, 0 }
  0x18   :  { %100 = vadd.xlane.f32.xlu0 %v91_v10  ;;  %104 = vadd.xlane.f32.xlu1 %v93_v11  ;;  %s1763_s29 = scalar_select %p1760_p2, 1, 0 }
  0x19   :  { %108 = vadd.xlane.f32.xlu2 %v95_v12 }
  0x20   :  { %110 = vadd.xlane.f32.xlu0 %v96_v15  ;;  %112 = vadd.xlane.f32.xlu1 %v97_v16  ;;  %v444_v15 = vld [vmem:[#allocation6 + $0x5e0] sm:$0xff] }
  0x21   :  { %v440_v16 = vld [vmem:[#allocation6 + $0x5c0] sm:$0xff]  ;;  %498 = vmatpush.msra.mxu2 %v444_v15 }
  0x22   :  { %v352_v15 = vld [vmem:[#allocation6 + $0x300] sm:$0xff] }
  0x23   :  { %499 = vmatpush.msra.mxu2 %v440_v16  ;;  %v388_v16 = vld [vmem:[#allocation6 + $0x420] sm:$0xff] }
  0x83   :  { %v99_v17 = vpop.xlane.xlu0 %98  ;;  %v103_v18 = vpop.xlane.xlu1 %102 }
  0x84   :  { %v107_v20 = vpop.xlane.xlu2 %106  ;;  %v122_v24 = vperm.slane %v99_v17, %v4582_v21  ;;  %v124_v27 = vperm.slane %v103_v18, %v4582_v21  ;;  %v316_v18 = vld [vmem:[#allocation6 + $0x1e0] sm:$0xff] }
  0x85   :  { %v126_v31 = vperm.slane %v107_v20, %v4582_v21  ;;  %v436_v20 = vld [vmem:[#allocation6 + $0x5a0] sm:$0xff]  ;;  %458 = vmatpush.msra.mxu0 %v316_v18 }
  0x86   :  { %500 = vmatpush.msra.mxu2 %v436_v20  ;;  %v260_v18 = vld [vmem:[#allocation6 + $0x20] sm:$0xff] }
  0x87   :  { %v384_v20 = vld [vmem:[#allocation6 + $0x400] sm:$0xff] }
  0x8b   :  { %v101_v22 = vpop.xlane.xlu0 %100  ;;  %v105_v23 = vpop.xlane.xlu1 %104 }
  0x8c   :  { %v123_v25 = vperm.slane %v101_v22, %v4582_v21  ;;  %v125_v26 = vperm.slane %v105_v23, %v4582_v21  ;;  %v109_v29 = vpop.xlane.xlu2 %108  ;;  %v312_v22 = vld [vmem:[#allocation6 + $0x1c0] sm:$0xff] }
  0x8d   :  { %v127_v33 = vperm.slane %v109_v29, %v4582_v21  ;;  %459 = vmatpush.msra.mxu0 %v312_v22  ;;  %v304_v29 = vld [vmem:[#allocation6 + $0x180] sm:$0xff] }
  0x8e   :  { %v131_v28 = vsel %vm130_vm0, %v123_v25, %v122_v24  ;;  %v308_v24 = vld [vmem:[#allocation6 + $0x1a0] sm:$0xff] }
  0x8f   :  { %v133_v30 = vsel %vm132_vm1, %v124_v27, %v131_v28  ;;  %v432_v28 = vld [vmem:[#allocation6 + $0x580] sm:$0xff]  ;;  %460 = vmatpush.msra.mxu0 %v308_v24  ;;  %v318_v24 = vld [vmem:[#allocation6 + $0x1f0] sm:$0xff] }
  0x90   :  { %v135_v32 = vsel %vm134_vm2, %v125_v26, %v133_v30  ;;  %v428_v30 = vld [vmem:[#allocation6 + $0x560] sm:$0xff]  ;;  %501 = vmatpush.msra.mxu2 %v432_v28  ;;  %v314_v28 = vld [vmem:[#allocation6 + $0x1d0] sm:$0xff] }
  0x91   :  { %v137_v34 = vsel %vm136_vm3, %v126_v31, %v135_v32  ;;  %v300_v31 = vld [vmem:[#allocation6 + $0x160] sm:$0xff]  ;;  %461 = vmatpush.msra.mxu0 %v304_v29  ;;  %v377_v29 = vld [vmem:[#allocation6 + $0x3c8] sm:$0xff] }
  0x92   :  { %v139_v40 = vsel %vm138_vm4, %v127_v33, %v137_v34  ;;  %v424_v32 = vld [vmem:[#allocation6 + $0x540] sm:$0xff]  ;;  %v317_v33 = vld [vmem:[#allocation6 + $0x1e8] sm:$0xff]  ;;  %502 = vmatpush.msra.mxu2 %v428_v30  ;;  %v310_v30 = vld [vmem:[#allocation6 + $0x1b0] sm:$0xff] }
  0x93   :  { %v111_v36 = vpop.xlane.xlu0 %110  ;;  %v113_v37 = vpop.xlane.xlu1 %112  ;;  %v296_v34 = vld [vmem:[#allocation6 + $0x140] sm:$0xff]  ;;  %518 = vmatpush.msra.mxu3 %v317_v33  ;;  %462 = vmatpush.msra.mxu0 %v300_v31  ;;  %v373_v31 = vld [vmem:[#allocation6 + $0x3a8] sm:$0xff]  ;;  %v302_v33 = vld [vmem:[#allocation6 + $0x170] sm:$0xff] }
  0x94   :  { %v128_v38 = vperm.slane %v111_v36, %v4582_v21  ;;  %v129_v39 = vperm.slane %v113_v37, %v4582_v21  ;;  %v380_v36 = vld [vmem:[#allocation6 + $0x3e0] sm:$0xff]  ;;  %v313_v37 = vld [vmem:[#allocation6 + $0x1c8] sm:$0xff]  ;;  %503 = vmatpush.msra.mxu2 %v424_v32 }
  0x95   :  { %478 = vmatpush.msra.mxu1 %v380_v36  ;;  %519 = vmatpush.msra.mxu3 %v313_v37  ;;  %v369_v32 = vld [vmem:[#allocation6 + $0x388] sm:$0xff]  ;;  %v298_v36 = vld [vmem:[#allocation6 + $0x150] sm:$0xff] }
  0x96   :  { %v141_v41 = vsel %vm140_vm5, %v128_v38, %v139_v40  ;;  %v420_v38 = vld [vmem:[#allocation6 + $0x520] sm:$0xff]  ;;  %463 = vmatpush.msra.mxu0 %v296_v34  ;;  %v365_v34 = vld [vmem:[#allocation6 + $0x368] sm:$0xff]  ;;  %v294_v37 = vld [vmem:[#allocation6 + $0x130] sm:$0xff] }
  0x97   :  { %v143_v42 = vsel %vm142_vm6, %v129_v39, %v141_v41  ;;  %v376_v39 = vld [vmem:[#allocation6 + $0x3c0] sm:$0xff]  ;;  %v309_v41 = vld [vmem:[#allocation6 + $0x1a8] sm:$0xff]  ;;  %504 = vmatpush.msra.mxu2 %v420_v38  ;;  %v290_v38 = vld [vmem:[#allocation6 + $0x110] sm:$0xff] }
  0x98   :  { %v145_v43 = vsel %vm6282_vm7, %v143_v42, -1e+09  ;;  %v292_v40 = vld [vmem:[#allocation6 + $0x120] sm:$0xff]  ;;  %479 = vmatpush.msra.mxu1 %v376_v39  ;;  %520 = vmatpush.msra.mxu3 %v309_v41  ;;  %v286_v39 = vld [vmem:[#allocation6 + $0xf0] sm:$0xff]  ;;  %v277_v41 = vld [vmem:[#allocation6 + $0xa8] sm:$0xff] }
  0x99   :  { %v147_v44 = vsel %vm6281_vm8, %v145_v43, -inf  ;;  %464 = vmatpush.msra.mxu0 %v292_v40  ;;  %v344_v40 = vld [vmem:[#allocation6 + $0x2c0] sm:$0xff] }
  0x9a   :  { %v148_v45 = vrot.slane %v147_v44, 4 }
  0x9c   :  { %v149_v46 = vmax.f32 %v147_v44, %v148_v45  ;;  %v288_v45 = vld [vmem:[#allocation6 + $0x100] sm:$0xff] }
  0x9d   :  { %465 = vmatpush.msra.mxu0 %v288_v45  ;;  %v357_v45 = vld [vmem:[#allocation6 + $0x328] sm:$0xff] }
  0x9e   :  { %v150_v47 = vrot.slane %v149_v46, 2 }
  0xa0   :  { %v151_v48 = vmax.f32 %v149_v46, %v150_v47  ;;  %v372_v46 = vld [vmem:[#allocation6 + $0x3a0] sm:$0xff] }
  0xa1   :  { %v412_v47 = vld [vmem:[#allocation6 + $0x4e0] sm:$0xff]  ;;  %480 = vmatpush.msra.mxu1 %v372_v46  ;;  %v278_v46 = vld [vmem:[#allocation6 + $0xb0] sm:$0xff] }
  0xa2   :  { %v152_v49 = vrot.slane %v151_v48, 1 }
  0xa4   :  { %v153_v50 = vmax.f32 %v151_v48, %v152_v49  ;;  %v305_v48 = vld [vmem:[#allocation6 + $0x188] sm:$0xff]  ;;  %v284_v49 = vld [vmem:[#allocation6 + $0xe0] sm:$0xff] }
  0xa5   :  { %521 = vmatpush.msra.mxu3 %v305_v48  ;;  %466 = vmatpush.msra.mxu0 %v284_v49  ;;  %v269_v48 = vld [vmem:[#allocation6 + $0x68] sm:$0xff] }
  0xa6   :  { %v154_v51 = vsub.f32 %v145_v43, %v153_v50  ;;  %v416_v43 = vld [vmem:[#allocation6 + $0x500] sm:$0xff]  ;;  %v353_v49 = vld [vmem:[#allocation6 + $0x308] sm:$0xff] }
  0xa7   :  { %505 = vmatpush.msra.mxu2 %v416_v43  ;;  %v368_v50 = vld [vmem:[#allocation6 + $0x380] sm:$0xff]  ;;  %467 = vmatpush.msra.mxu0 %v280_v53  ;;  %v349_v53 = vld [vmem:[#allocation6 + $0x2e8] sm:$0xff] }
  0xa8   :  { %v155_v52 = vmul.f32 1.442695, %v154_v51  ;;  %v408_v51 = vld [vmem:[#allocation6 + $0x4c0] sm:$0xff]  ;;  %481 = vmatpush.msra.mxu1 %v368_v50  ;;  %v274_v50 = vld [vmem:[#allocation6 + $0x90] sm:$0xff] }
  0xa9   :  { %506 = vmatpush.msra.mxu2 %v412_v47  ;;  %v340_v43 = vld [vmem:[#allocation6 + $0x2a0] sm:$0xff] }
  0xaa   :  { %4277 = vpow2.f32 %v155_v52  ;;  %v301_v52 = vld [vmem:[#allocation6 + $0x168] sm:$0xff]  ;;  %v336_v47 = vld [vmem:[#allocation6 + $0x280] sm:$0xff] }
  0xab   :  { %507 = vmatpush.msra.mxu2 %v408_v51  ;;  %522 = vmatpush.msra.mxu3 %v301_v52  ;;  %v332_v51 = vld [vmem:[#allocation6 + $0x260] sm:$0xff]  ;;  %v265_v52 = vld [vmem:[#allocation6 + $0x48] sm:$0xff] }
  0xb0   :  { %v4278_v54 = vpop.eup %4277 }
  0xb1   :  { %v157_v55 = vsel %vm6281_vm8, %v4278_v54, 0.0 }
  0xb2   :  { %v158_v56 = vrot.slane %v157_v55, 4 }
  0xb4   :  { %v159_v57 = vadd.f32 %v158_v56, %v157_v55  ;;  %v404_v55 = vld [vmem:[#allocation6 + $0x4a0] sm:$0xff]  ;;  %v297_v56 = vld [vmem:[#allocation6 + $0x148] sm:$0xff] }
  0xb5   :  { %508 = vmatpush.msra.mxu2 %v404_v55  ;;  %523 = vmatpush.msra.mxu3 %v297_v56  ;;  %v328_v55 = vld [vmem:[#allocation6 + $0x240] sm:$0xff]  ;;  %v261_v56 = vld [vmem:[#allocation6 + $0x28] sm:$0xff] }
  0xb6   :  { %v160_v58 = vrot.slane %v159_v57, 2 }
  0xb8   :  { %v161_v59 = vadd.f32 %v160_v58, %v159_v57  ;;  %v276_v57 = vld [vmem:[#allocation6 + $0xa0] sm:$0xff] }
  0xb9   :  { %468 = vmatpush.msra.mxu0 %v276_v57  ;;  %v345_v57 = vld [vmem:[#allocation6 + $0x2c8] sm:$0xff] }
  0xba   :  { %v162_v60 = vrot.slane %v161_v59, 1 }
  0xbc   :  { %v163_v61 = vadd.f32 %v162_v60, %v161_v59  ;;  %v400_v59 = vld [vmem:[#allocation6 + $0x480] sm:$0xff] }
  0xbd   :  { %509 = vmatpush.msra.mxu2 %v400_v59  ;;  %v324_v59 = vld [vmem:[#allocation6 + $0x220] sm:$0xff] }
  0xbe   :  { %4279 = vrcp.f32 %v163_v61  ;;  %v175_v4 = vand.u32 2147483648, %v163_v61  ;;  %v173_v10 = vand.u32 2147483647, %v163_v61  ;;  %vm169_vm10 = vweird.f32 %v163_v61 }
  0xc0   :  { %v176_v12 = vor.u32 1.1754944e-38, %v175_v4  ;;  %vm174_vm12 = vcmp.eq.f32.partialorder %v173_v10, 8.507059e+37  ;;  %v268_v4 = vld [vmem:[#allocation6 + $0x60] sm:$0xff] }
  0xc1   :  { %v392_v10 = vld [vmem:[#allocation6 + $0x440] sm:$0xff] }
  0xc4   :  { %v4280_v62 = vpop.eup %4279 }
  0xc5   :  { %v165_v63 = vmul.f32 %v4280_v62, %v163_v61  ;;  %vm170_vm9 = vweird.f32 %v4280_v62  ;;  %v272_v61 = vld [vmem:[#allocation6 + $0x80] sm:$0xff] }
  0xc6   :  { %vm171_vm11 = vmor %vm169_vm10, %vm170_vm9  ;;  %469 = vmatpush.msra.mxu0 %v272_v61  ;;  %v341_v61 = vld [vmem:[#allocation6 + $0x2a8] sm:$0xff] }
  0xc7   :  { %v166_v3 = vsub.f32 1.0, %v165_v63  ;;  %v396_v63 = vld [vmem:[#allocation6 + $0x460] sm:$0xff] }
  0xc8   :  { %510 = vmatpush.msra.mxu2 %v396_v63  ;;  %470 = vmatpush.msra.mxu0 %v268_v4  ;;  %v382_v63 = vld [vmem:[#allocation6 + $0x3f0] sm:$0xff]  ;;  %v337_v4 = vld [vmem:[#allocation6 + $0x288] sm:$0xff] }
  0xc9   :  { %v167_v6 = vmul.f32 %v4280_v62, %v166_v3  ;;  %v293_v3 = vld [vmem:[#allocation6 + $0x128] sm:$0xff] }
  0xca   :  { %524 = vmatpush.msra.mxu3 %v293_v3  ;;  %511 = vmatpush.msra.mxu2 %v392_v10  ;;  %v320_v3 = vld [vmem:[#allocation6 + $0x200] sm:$0xff]  ;;  %v445_v10 = vld [vmem:[#allocation6 + $0x5e8] sm:$0xff] }
  0xcb   :  { %v168_v11 = vadd.f32 %v4280_v62, %v167_v6  ;;  %v356_v6 = vld [vmem:[#allocation6 + $0x320] sm:$0xff] }
  0xcc   :  { %512 = vmatpush.msra.mxu2 %v388_v16  ;;  %v441_v16 = vld [vmem:[#allocation6 + $0x5c8] sm:$0xff] }
  0xcd   :  { %v172_v17 = vsel %vm171_vm11, %v4280_v62, %v168_v11  ;;  %v360_v62 = vld [vmem:[#allocation6 + $0x340] sm:$0xff]  ;;  %v289_v11 = vld [vmem:[#allocation6 + $0x108] sm:$0xff] }
  0xce   :  { %v177_v19 = vsel %vm174_vm12, %v176_v12, %v172_v17  ;;  %v264_v12 = vld [vmem:[#allocation6 + $0x40] sm:$0xff]  ;;  %v285_v17 = vld [vmem:[#allocation6 + $0xe8] sm:$0xff]  ;;  %525 = vmatpush.msra.mxu3 %v289_v11  ;;  %513 = vmatpush.msra.mxu2 %v384_v20  ;;  %v378_v11 = vld [vmem:[#allocation6 + $0x3d0] sm:$0xff] }
  0xcf   :  { %v4609_v23 = vmul.f32 %v4278_v54, %v177_v19  ;;  %v364_v54 = vld [vmem:[#allocation6 + $0x360] sm:$0xff]  ;;  %471 = vmatpush.msra.mxu0 %v264_v12  ;;  %514 = vmatmul.f32.vlgmr.msra.gmra.mxu2 %v4529_v1  ;;  %v361_v1 = vld [vmem:[#allocation6 + $0x348] sm:$0xff]  ;;  %v383_v12 = vld [vmem:[#allocation6 + $0x3f8] sm:$0xff] }
  0xd0   :  { %482 = vmatpush.msra.mxu1 %v364_v54  ;;  %v348_v19 = vld [vmem:[#allocation6 + $0x2e0] sm:$0xff]  ;;  %526 = vmatpush.msra.mxu3 %v285_v17  ;;  %v270_v54 = vld [vmem:[#allocation6 + $0x70] sm:$0xff]  ;;  %v437_v20 = vld [vmem:[#allocation6 + $0x5a8] sm:$0xff] }
  0xd1   :  { %v193_v25 = vperm.slane %v4609_v23, 2  ;;  %v186_v26 = vperm.slane %v4609_v23, 1  ;;  %v179_v27 = vperm.slane %v4609_v23, 0  ;;  %v214_v42 = vperm.slane %v4609_v23, 5  ;;  %472 = vmatpush.msra.mxu0 %v260_v18  ;;  %578 = vmatpush.msrb.mxu2 %v318_v24  ;;  %v374_v17 = vld [vmem:[#allocation6 + $0x3b0] sm:$0xff]  ;;  %v379_v18 = vld [vmem:[#allocation6 + $0x3d8] sm:$0xff] }
  0xd2   :  { %v200_v44 = vperm.slane %v4609_v23, 3  ;;  %v228_v58 = vperm.slane %v4609_v23, 7  ;;  %v207_v60 = vperm.slane %v4609_v23, 4  ;;  %483 = vmatpush.msra.mxu1 %v360_v62  ;;  %v221_v22 = vperm.slane %v4609_v23, 6  ;;  %v306_v23 = vld [vmem:[#allocation6 + $0x190] sm:$0xff]  ;;  %v375_v24 = vld [vmem:[#allocation6 + $0x3b8] sm:$0xff] }
  0xd3   :  { %198 = vperm.xlu1 %4271, %v193_v25   ;;  %191 = vperm.xlu0 %4270, %v186_v26   ;;  %v256_v25 = vld [vmem:[#allocation6] sm:$0xff]  ;;  %v381_v26 = vld [vmem:[#allocation6 + $0x3e8] sm:$0xff]  ;;  %v262_v62 = vld [vmem:[#allocation6 + $0x30] sm:$0xff] }
  0xd4   :  { %184 = vperm.xlu2 %4269, %v179_v27   ;;  %484 = vmatpush.msra.mxu1 %v356_v6  ;;  %v281_v27 = vld [vmem:[#allocation6 + $0xc8] sm:$0xff]  ;;  %v258_v6 = vld [vmem:[#allocation6 + $0x10] sm:$0xff] }
  0xd5   :  { %473 = vmatpush.msra.mxu0 %v256_v25  ;;  %527 = vmatpush.msra.mxu3 %v281_v27  ;;  %v87_v25 = vstv %s86_s27  ;;  %v433_v27 = vld [vmem:[#allocation6 + $0x588] sm:$0xff] }
  0xd6   :  { %485 = vmatpush.msra.mxu1 %v352_v15  ;;  %579 = vmatpush.msrb.mxu2 %v314_v28  ;;  %v333_v15 = vld [vmem:[#allocation6 + $0x268] sm:$0xff]  ;;  %v366_v28 = vld [vmem:[#allocation6 + $0x370] sm:$0xff]  ;;  %vm4630_vm13 = vcmp.eq.s32.totalorder %v87_v25, 1 }
  0xd7   :  { %538 = vmatpush.msrb.mxu0 %v381_v26  ;;  %528 = vmatpush.msra.mxu3 %v277_v41  ;;  %v325_v26 = vld [vmem:[#allocation6 + $0x228] sm:$0xff] }
  0xd8   :  { %486 = vmatpush.msra.mxu1 %v348_v19  ;;  %580 = vmatpush.msrb.mxu2 %v310_v30  ;;  %v329_v19 = vld [vmem:[#allocation6 + $0x248] sm:$0xff] }
  0xd9   :  { %539 = vmatpush.msrb.mxu0 %v377_v29  ;;  %v371_v29 = vld [vmem:[#allocation6 + $0x398] sm:$0xff]  ;;  %v321_v30 = vld [vmem:[#allocation6 + $0x208] sm:$0xff] }
  0xda   :  { %581 = vmatpush.msrb.mxu2 %v306_v23  ;;  %487 = vmatpush.msra.mxu1 %v344_v40  ;;  %v363_v40 = vld [vmem:[#allocation6 + $0x358] sm:$0xff]  ;;  %v421_v41 = vld [vmem:[#allocation6 + $0x528] sm:$0xff] }
  0xdb   :  { %219 = vperm.xlu1 %4271, %v214_v42   ;;  %540 = vmatpush.msrb.mxu0 %v373_v31  ;;  %v282_v42 = vld [vmem:[#allocation6 + $0xd0] sm:$0xff]  ;;  %v4628_v31 = vld [vmem:[%s6270_s1] sm:$0xff]  ;;  %v385_v25 = vld [vmem:[#allocation6 + $0x408] sm:$0xff] }
  0xdc   :  { %205 = vperm.xlu2 %4269, %v200_v44   ;;  %582 = vmatpush.msrb.mxu2 %v302_v33  ;;  %v273_v44 = vld [vmem:[#allocation6 + $0x88] sm:$0xff]  ;;  %v362_v33 = vld [vmem:[#allocation6 + $0x350] sm:$0xff] }
  0xdd   :  { %541 = vmatpush.msrb.mxu0 %v369_v32  ;;  %488 = vmatpush.msra.mxu1 %v340_v43  ;;  %v429_v32 = vld [vmem:[#allocation6 + $0x568] sm:$0xff]  ;;  %v359_v43 = vld [vmem:[#allocation6 + $0x338] sm:$0xff] }
  0xde   :  { %583 = vmatpush.msrb.mxu2 %v298_v36  ;;  %529 = vmatpush.msra.mxu3 %v273_v44  ;;  %v367_v36 = vld [vmem:[#allocation6 + $0x378] sm:$0xff]  ;;  %v417_v44 = vld [vmem:[#allocation6 + $0x508] sm:$0xff] }
  0xdf   :  { %542 = vmatpush.msrb.mxu0 %v365_v34  ;;  %489 = vmatpush.msra.mxu1 %v336_v47  ;;  %v446_v34 = vld [vmem:[#allocation6 + $0x5f0] sm:$0xff]  ;;  %v355_v47 = vld [vmem:[#allocation6 + $0x318] sm:$0xff]  ;;  %v790_v23 = vld [vmem:[%s6276_s7 + $0xc8] sm:$0xff] }
  0xe0   :  { %584 = vmatpush.msrb.mxu2 %v294_v37  ;;  %530 = vmatpush.msra.mxu3 %v269_v48  ;;  %v425_v37 = vld [vmem:[#allocation6 + $0x548] sm:$0xff] }
  0xe1   :  { %543 = vmatpush.msrb.mxu0 %v361_v1  ;;  %490 = vmatpush.msra.mxu1 %v332_v51  ;;  %v354_v1 = vld [vmem:[#allocation6 + $0x310] sm:$0xff]  ;;  %v413_v48 = vld [vmem:[#allocation6 + $0x4e8] sm:$0xff]  ;;  %v351_v51 = vld [vmem:[#allocation6 + $0x2f8] sm:$0xff] }
  0xe2   :  { %585 = vmatpush.msrb.mxu2 %v290_v38  ;;  %531 = vmatpush.msra.mxu3 %v265_v52  ;;  %v358_v38 = vld [vmem:[#allocation6 + $0x330] sm:$0xff]  ;;  %v409_v52 = vld [vmem:[#allocation6 + $0x4c8] sm:$0xff] }
  0xe3   :  { %233 = vperm.xlu1 %4271, %v228_v58   ;;  %544 = vmatpush.msrb.mxu0 %v357_v45  ;;  %v266_v58 = vld [vmem:[#allocation6 + $0x50] sm:$0xff] }
  0xe4   :  { %212 = vperm.xlu2 %4269, %v207_v60   ;;  %586 = vmatpush.msrb.mxu2 %v286_v39  ;;  %v257_v60 = vld [vmem:[#allocation6 + $0x8] sm:$0xff]  ;;  %v442_v39 = vld [vmem:[#allocation6 + $0x5d0] sm:$0xff] }
  0xe5   :  { %545 = vmatpush.msrb.mxu0 %v353_v49  ;;  %491 = vmatpush.msra.mxu1 %v328_v55  ;;  %v350_v45 = vld [vmem:[#allocation6 + $0x2f0] sm:$0xff]  ;;  %v347_v55 = vld [vmem:[#allocation6 + $0x2d8] sm:$0xff] }
  0xe6   :  { %587 = vmatpush.msrb.mxu2 %v282_v42  ;;  %532 = vmatpush.msra.mxu3 %v261_v56  ;;  %v438_v42 = vld [vmem:[#allocation6 + $0x5b0] sm:$0xff]  ;;  %v405_v56 = vld [vmem:[#allocation6 + $0x4a8] sm:$0xff] }
  0xe7   :  { %546 = vmatpush.msrb.mxu0 %v349_v53  ;;  %492 = vmatpush.msra.mxu1 %v324_v59  ;;  %v346_v49 = vld [vmem:[#allocation6 + $0x2d0] sm:$0xff]  ;;  %v343_v59 = vld [vmem:[#allocation6 + $0x2b8] sm:$0xff] }
  0xe8   :  { %588 = vmatpush.msrb.mxu2 %v278_v46  ;;  %533 = vmatpush.msra.mxu3 %v257_v60  ;;  %v434_v46 = vld [vmem:[#allocation6 + $0x590] sm:$0xff]  ;;  %v401_v60 = vld [vmem:[#allocation6 + $0x488] sm:$0xff] }
  0xe9   :  { %547 = vmatpush.msrb.mxu0 %v345_v57  ;;  %493 = vmatpush.msra.mxu1 %v320_v3  ;;  %v342_v53 = vld [vmem:[#allocation6 + $0x2b0] sm:$0xff] }
  0xea   :  { %589 = vmatpush.msrb.mxu2 %v274_v50  ;;  %598 = vmatpush.msrb.mxu3 %v382_v63  ;;  %v430_v50 = vld [vmem:[#allocation6 + $0x570] sm:$0xff]  ;;  %v339_v63 = vld [vmem:[#allocation6 + $0x298] sm:$0xff] }
  0xeb   :  { %548 = vmatpush.msrb.mxu0 %v341_v61  ;;  %558 = vmatpush.msrb.mxu1 %v445_v10  ;;  %v338_v57 = vld [vmem:[#allocation6 + $0x290] sm:$0xff] }
  0xec   :  { %226 = vperm.xlu2 %4269, %v221_v22   ;;  %590 = vmatpush.msrb.mxu2 %v270_v54  ;;  %v370_v22 = vld [vmem:[#allocation6 + $0x390] sm:$0xff] }
  0xed   :  { %549 = vmatpush.msrb.mxu0 %v337_v4  ;;  %599 = vmatpush.msrb.mxu3 %v378_v11  ;;  %v426_v54 = vld [vmem:[#allocation6 + $0x550] sm:$0xff]  ;;  %v397_v4 = vld [vmem:[#allocation6 + $0x468] sm:$0xff]  ;;  %v335_v11 = vld [vmem:[#allocation6 + $0x278] sm:$0xff] }
  0xee   :  { %591 = vmatpush.msrb.mxu2 %v266_v58  ;;  %559 = vmatpush.msrb.mxu1 %v441_v16  ;;  %v422_v58 = vld [vmem:[#allocation6 + $0x530] sm:$0xff] }
  0xef   :  { %550 = vmatpush.msrb.mxu0 %v333_v15  ;;  %600 = vmatpush.msrb.mxu3 %v374_v17  ;;  %v334_v61 = vld [vmem:[#allocation6 + $0x270] sm:$0xff]  ;;  %v331_v17 = vld [vmem:[#allocation6 + $0x258] sm:$0xff] }
  0xf0   :  { %592 = vmatpush.msrb.mxu2 %v262_v62  ;;  %560 = vmatpush.msrb.mxu1 %v437_v20  ;;  %v418_v62 = vld [vmem:[#allocation6 + $0x510] sm:$0xff] }
  0xf1   :  { %551 = vmatpush.msrb.mxu0 %v329_v19  ;;  %601 = vmatpush.msrb.mxu3 %v370_v22  ;;  %v414_v10 = vld [vmem:[#allocation6 + $0x4f0] sm:$0xff]  ;;  %v327_v22 = vld [vmem:[#allocation6 + $0x238] sm:$0xff] }
  0xf2   :  { %593 = vmatpush.msrb.mxu2 %v258_v6  ;;  %561 = vmatpush.msrb.mxu1 %v433_v27  ;;  %v330_v6 = vld [vmem:[#allocation6 + $0x250] sm:$0xff]  ;;  %v323_v27 = vld [vmem:[#allocation6 + $0x218] sm:$0xff] }
  0xf3   :  { %552 = vmatpush.msrb.mxu0 %v325_v26  ;;  %602 = vmatpush.msrb.mxu3 %v366_v28  ;;  %v326_v15 = vld [vmem:[#allocation6 + $0x230] sm:$0xff]  ;;  %v443_v28 = vld [vmem:[#allocation6 + $0x5d8] sm:$0xff] }
  0xf4   :  { %658 = vmatpush.msra.mxu2 %v383_v12  ;;  %4259 = vmatmul.msk.f32.vlgmr.msra.gmra.mxu0 %vm4630_vm13, %v4628_v31  ;;  %v393_v12 = vld [vmem:[#allocation6 + $0x448] sm:$0xff]  ;;  %v410_v16 = vld [vmem:[#allocation6 + $0x4d0] sm:$0xff] }
  0xf5   :  { %553 = vmatpush.msrb.mxu0 %v321_v30  ;;  %562 = vmatpush.msrb.mxu1 %v429_v32  ;;  %v322_v19 = vld [vmem:[#allocation6 + $0x210] sm:$0xff]  ;;  %v439_v32 = vld [vmem:[#allocation6 + $0x5b8] sm:$0xff] }
  0xf6   :  { %659 = vmatpush.msra.mxu2 %v379_v18  ;;  %603 = vmatpush.msrb.mxu3 %v362_v33  ;;  %v389_v18 = vld [vmem:[#allocation6 + $0x428] sm:$0xff]  ;;  %v406_v20 = vld [vmem:[#allocation6 + $0x4b0] sm:$0xff] }
  0xf7   :  { %618 = vmatpush.msra.mxu0 %v446_v34  ;;  %563 = vmatpush.msrb.mxu1 %v425_v37  ;;  %v402_v26 = vld [vmem:[#allocation6 + $0x490] sm:$0xff]  ;;  %v435_v34 = vld [vmem:[#allocation6 + $0x598] sm:$0xff] }
  0xf8   :  { %660 = vmatpush.msra.mxu2 %v375_v24  ;;  %604 = vmatpush.msrb.mxu3 %v358_v38  ;;  %v447_v24 = vld [vmem:[#allocation6 + $0x5f8] sm:$0xff]  ;;  %v394_v33 = vld [vmem:[#allocation6 + $0x450] sm:$0xff] }
  0xf9   :  { %619 = vmatpush.msra.mxu0 %v442_v39  ;;  %564 = vmatpush.msrb.mxu1 %v421_v41  ;;  %v431_v37 = vld [vmem:[#allocation6 + $0x578] sm:$0xff]  ;;  %v386_v38 = vld [vmem:[#allocation6 + $0x410] sm:$0xff] }
  0xfa   :  { %661 = vmatpush.msra.mxu2 %v371_v29  ;;  %605 = vmatpush.msrb.mxu3 %v354_v1  ;;  %v398_v29 = vld [vmem:[#allocation6 + $0x470] sm:$0xff]  ;;  %v427_v39 = vld [vmem:[#allocation6 + $0x558] sm:$0xff] }
  0xfb   :  { %620 = vmatpush.msra.mxu0 %v438_v42  ;;  %565 = vmatpush.msrb.mxu1 %v417_v44  ;;  %v423_v1 = vld [vmem:[#allocation6 + $0x538] sm:$0xff] }
  0xfc   :  { %662 = vmatpush.msra.mxu2 %v367_v36  ;;  %606 = vmatpush.msrb.mxu3 %v350_v45  ;;  %v390_v36 = vld [vmem:[#allocation6 + $0x430] sm:$0xff]  ;;  %v419_v45 = vld [vmem:[#allocation6 + $0x518] sm:$0xff] }
  0xfd   :  { %621 = vmatpush.msra.mxu0 %v434_v46  ;;  %566 = vmatpush.msrb.mxu1 %v413_v48  ;;  %v415_v48 = vld [vmem:[#allocation6 + $0x4f8] sm:$0xff] }
  0xfe   :  { %663 = vmatpush.msra.mxu2 %v363_v40  ;;  %607 = vmatpush.msrb.mxu3 %v346_v49 }
  0xff   :  { %622 = vmatpush.msra.mxu0 %v430_v50  ;;  %567 = vmatpush.msrb.mxu1 %v409_v52 }
 0x100   :  { %664 = vmatpush.msra.mxu2 %v359_v43  ;;  %608 = vmatpush.msrb.mxu3 %v342_v53 }
 0x101   :  { %623 = vmatpush.msra.mxu0 %v426_v54  ;;  %568 = vmatpush.msrb.mxu1 %v405_v56  ;;  %v407_v54 = vld [vmem:[#allocation6 + $0x4b8] sm:$0xff] }
 0x102   :  { %665 = vmatpush.msra.mxu2 %v355_v47  ;;  %609 = vmatpush.msrb.mxu3 %v338_v57  ;;  %v403_v56 = vld [vmem:[#allocation6 + $0x498] sm:$0xff] }
 0x103   :  { %624 = vmatpush.msra.mxu0 %v422_v58  ;;  %569 = vmatpush.msrb.mxu1 %v401_v60  ;;  %v399_v57 = vld [vmem:[#allocation6 + $0x478] sm:$0xff] }
 0x104   :  { %666 = vmatpush.msra.mxu2 %v351_v51  ;;  %610 = vmatpush.msrb.mxu3 %v334_v61  ;;  %v411_v51 = vld [vmem:[#allocation6 + $0x4d8] sm:$0xff] }
 0x105   :  { %625 = vmatpush.msra.mxu0 %v418_v62  ;;  %4260 = vmatmul.msk.f32.vlgmr.msra.gmra.mxu3 %vm4630_vm13, %v4628_v31 }
 0x106   :  { %667 = vmatpush.msra.mxu2 %v347_v55  ;;  %570 = vmatpush.msrb.mxu1 %v397_v4  ;;  %v315_v4 = vld [vmem:[#allocation6 + $0x1d8] sm:$0xff] }
 0x107   :  { %4261 = vmatmul.msk.f32.vlgmr.msrb.gmra.mxu2 %vm4630_vm13, %v4628_v31  ;;  %611 = vmatpush.msrb.mxu3 %v330_v6  ;;  %v779_v6 = vld [vmem:[%s6276_s7 + $0x70] sm:$0xff] }
 0x108   :  { %668 = vmatpush.msra.mxu2 %v343_v59  ;;  %626 = vmatpush.msra.mxu0 %v414_v10  ;;  %v307_v10 = vld [vmem:[#allocation6 + $0x198] sm:$0xff] }
 0x109   :  { %571 = vmatpush.msrb.mxu1 %v393_v12  ;;  %612 = vmatpush.msrb.mxu3 %v326_v15  ;;  %v303_v12 = vld [vmem:[#allocation6 + $0x178] sm:$0xff]  ;;  %v777_v15 = vld [vmem:[%s6276_s7 + $0x60] sm:$0xff] }
 0x10a   :  { %669 = vmatpush.msra.mxu2 %v339_v63  ;;  %627 = vmatpush.msra.mxu0 %v410_v16  ;;  %v4377_v16 = vld [vmem:[%s6278_s9] sm:$0xff]  ;;  %s928_s9 = scalar_select %p925_p1, 1, 0 }
 0x10b   :  { %572 = vmatpush.msrb.mxu1 %v389_v18  ;;  %613 = vmatpush.msrb.mxu3 %v322_v19  ;;  %v776_v18 = vld [vmem:[%s6276_s7 + $0x58] sm:$0xff] }
 0x10c   :  { %670 = vmatpush.msra.mxu2 %v335_v11  ;;  %628 = vmatpush.msra.mxu0 %v406_v20  ;;  %v778_v11 = vld [vmem:[%s6276_s7 + $0x68] sm:$0xff]  ;;  %v295_v19 = vld [vmem:[#allocation6 + $0x138] sm:$0xff]  ;;  %v775_v20 = vld [vmem:[%s6276_s7 + $0x50] sm:$0xff] }
 0x10d   :  { %678 = vmatpush.msra.mxu3 %v447_v24  ;;  %573 = vmatpush.msrb.mxu1 %v385_v25  ;;  %v774_v24 = vld [vmem:[%s6276_s7 + $0x48] sm:$0xff]  ;;  %v287_v25 = vld [vmem:[#allocation6 + $0xf8] sm:$0xff] }
 0x10e   :  { %671 = vmatpush.msra.mxu2 %v331_v17  ;;  %629 = vmatpush.msra.mxu0 %v402_v26  ;;  %v299_v17 = vld [vmem:[#allocation6 + $0x158] sm:$0xff]  ;;  %v773_v26 = vld [vmem:[%s6276_s7 + $0x40] sm:$0xff] }
 0x10f   :  { %679 = vmatpush.msra.mxu3 %v443_v28  ;;  %v772_v28 = vld [vmem:[%s6276_s7 + $0x38] sm:$0xff] }
 0x110   :  { %672 = vmatpush.msra.mxu2 %v327_v22  ;;  %630 = vmatpush.msra.mxu0 %v398_v29  ;;  %v291_v22 = vld [vmem:[#allocation6 + $0x118] sm:$0xff] }
 0x111   :  { %680 = vmatpush.msra.mxu3 %v439_v32  ;;  %v279_v29 = vld [vmem:[#allocation6 + $0xb8] sm:$0xff] }
 0x112   :  { %673 = vmatpush.msra.mxu2 %v323_v27  ;;  %631 = vmatpush.msra.mxu0 %v394_v33  ;;  %v283_v27 = vld [vmem:[#allocation6 + $0xd8] sm:$0xff]  ;;  %v770_v33 = vld [vmem:[%s6276_s7 + $0x28] sm:$0xff] }
 0x113   :  { %681 = vmatpush.msra.mxu3 %v435_v34  ;;  %v275_v32 = vld [vmem:[#allocation6 + $0x98] sm:$0xff] }
 0x114   :  { %632 = vmatpush.msra.mxu0 %v390_v36  ;;  %v271_v34 = vld [vmem:[#allocation6 + $0x78] sm:$0xff]  ;;  %v769_v36 = vld [vmem:[%s6276_s7 + $0x20] sm:$0xff] }
 0x115   :  { %682 = vmatpush.msra.mxu3 %v431_v37  ;;  %v267_v37 = vld [vmem:[#allocation6 + $0x58] sm:$0xff] }
 0x116   :  { %633 = vmatpush.msra.mxu0 %v386_v38  ;;  %v768_v38 = vld [vmem:[%s6276_s7 + $0x18] sm:$0xff] }
 0x117   :  { %683 = vmatpush.msra.mxu3 %v427_v39  ;;  %v263_v39 = vld [vmem:[#allocation6 + $0x38] sm:$0xff] }
 0x119   :  { %684 = vmatpush.msra.mxu3 %v423_v1  ;;  %v766_v1 = vld [vmem:[%s6276_s7 + $0x8] sm:$0xff] }
 0x11b   :  { %685 = vmatpush.msra.mxu3 %v419_v45  ;;  %v794_v45 = vld [vmem:[%s6276_s7 + $0xe8] sm:$0xff] }
 0x11d   :  { %686 = vmatpush.msra.mxu3 %v415_v48  ;;  %v791_v48 = vld [vmem:[%s6276_s7 + $0xd0] sm:$0xff] }
 0x11f   :  { %687 = vmatpush.msra.mxu3 %v411_v51  ;;  %v786_v51 = vld [vmem:[%s6276_s7 + $0xa8] sm:$0xff] }
 0x121   :  { %688 = vmatpush.msra.mxu3 %v407_v54  ;;  %v782_v54 = vld [vmem:[%s6276_s7 + $0x88] sm:$0xff] }
 0x123   :  { %689 = vmatpush.msra.mxu3 %v403_v56  ;;  %v811_v56 = vld [vmem:[%s6276_s7 + $0x170] sm:$0xff] }
 0x125   :  { %690 = vmatpush.msra.mxu3 %v399_v57  ;;  %v809_v57 = vld [vmem:[%s6276_s7 + $0x160] sm:$0xff] }
 0x12e   :  { %v185_v3 = vpop.permute.xlu2 %184 }
 0x12f   :  { %v235_v42 = vmul.f32 %v185_v3, %v4524_v0  ;;  %v387_v3 = vld [vmem:[#allocation6 + $0x418] sm:$0xff] }
 0x136   :  { %v206_v30 = vpop.permute.xlu2 %205 }
 0x137   :  { %v238_v49 = vmul.f32 %v206_v30, %v4555_v8  ;;  %v395_v8 = vld [vmem:[#allocation6 + $0x458] sm:$0xff]  ;;  %v771_v30 = vld [vmem:[%s6276_s7 + $0x30] sm:$0xff] }
 0x138   :  { %691 = vmatpush.msra.mxu3 %v395_v8  ;;  %v808_v8 = vld [vmem:[%s6276_s7 + $0x158] sm:$0xff] }
 0x13e   :  { %v213_v44 = vpop.permute.xlu2 %212 }
 0x13f   :  { %v239_v52 = vmul.f32 %v213_v44, %v4543_v5  ;;  %v391_v5 = vld [vmem:[#allocation6 + $0x438] sm:$0xff]  ;;  %v795_v44 = vld [vmem:[%s6276_s7 + $0xf0] sm:$0xff] }
 0x140   :  { %692 = vmatpush.msra.mxu3 %v391_v5 }
 0x142   :  { %693 = vmatpush.msra.mxu3 %v387_v3  ;;  %v804_v3 = vld [vmem:[%s6276_s7 + $0x138] sm:$0xff] }
 0x145   :  { %v199_v40 = vpop.permute.xlu1 %198  ;;  %v192_v41 = vpop.permute.xlu0 %191 }
 0x146   :  { %v236_v43 = vmul.f32 %v192_v41, %v4550_v7  ;;  %v237_v46 = vmul.f32 %v199_v40, %v4534_v2  ;;  %v227_v2 = vpop.permute.xlu2 %226  ;;  %v767_v40 = vld [vmem:[%s6276_s7 + $0x10] sm:$0xff]  ;;  %v259_v41 = vld [vmem:[#allocation6 + $0x18] sm:$0xff] }
 0x147   :  { %v241_v59 = vmul.f32 %v227_v2, %v4571_v13  ;;  %v780_v13 = vld [vmem:[%s6276_s7 + $0x78] sm:$0xff]  ;;  %v810_v2 = vld [vmem:[%s6276_s7 + $0x168] sm:$0xff] }
 0x148   :  { %v243_v47 = vadd.f32 %v236_v43, %v235_v42  ;;  %v796_v42 = vld [vmem:[%s6276_s7 + $0xf8] sm:$0xff]  ;;  %v765_v43 = vld [vmem:[%s6276_s7] sm:$0xff] }
 0x14a   :  { %v244_v50 = vadd.f32 %v243_v47, %v237_v46  ;;  %v793_v46 = vld [vmem:[%s6276_s7 + $0xe0] sm:$0xff]  ;;  %v792_v47 = vld [vmem:[%s6276_s7 + $0xd8] sm:$0xff] }
 0x14c   :  { %v245_v53 = vadd.f32 %v244_v50, %v238_v49  ;;  %v788_v49 = vld [vmem:[%s6276_s7 + $0xb8] sm:$0xff]  ;;  %v787_v50 = vld [vmem:[%s6276_s7 + $0xb0] sm:$0xff] }
 0x14d   :  { %v220_v0 = vpop.permute.xlu1 %219 }
 0x14e   :  { %v240_v7 = vmul.f32 %v220_v0, %v4560_v9  ;;  %v246_v55 = vadd.f32 %v245_v53, %v239_v52  ;;  %v319_v9 = vld [vmem:[#allocation6 + $0x1f8] sm:$0xff]  ;;  %v785_v52 = vld [vmem:[%s6276_s7 + $0xa0] sm:$0xff]  ;;  %v783_v0 = vld [vmem:[%s6276_s7 + $0x90] sm:$0xff] }
 0x14f   :  { %v784_v53 = vld [vmem:[%s6276_s7 + $0x98] sm:$0xff] }
 0x150   :  { %v247_v58 = vadd.f32 %v246_v55, %v240_v7  ;;  %v781_v7 = vld [vmem:[%s6276_s7 + $0x80] sm:$0xff]  ;;  %v812_v55 = vld [vmem:[%s6276_s7 + $0x178] sm:$0xff] }
 0x151   :  { %857 = vmatpush.msrb.mxu2 %v812_v55 }
 0x152   :  { %v248_v62 = vadd.f32 %v247_v58, %v241_v59  ;;  %v4778_v58 = vld [vmem:[%s6275_s6] sm:$0xf] }
 0x153   :  { %858 = vmatpush.msrb.mxu2 %v811_v56  ;;  %v450_v59 = vperm.slane %v4778_v58, 0  ;;  %v1234_v56 = vld [vmem:[#allocation6 + $0x480] sm:$0xff] }
 0x155   :  { %v234_v60 = vpop.permute.xlu1 %233  ;;  %859 = vmatpush.msrb.mxu2 %v810_v2 }
 0x156   :  { %v242_v61 = vmul.f32 %v234_v60, %v4576_v14  ;;  %v311_v14 = vld [vmem:[#allocation6 + $0x1b8] sm:$0xff]  ;;  %v807_v60 = vld [vmem:[%s6276_s7 + $0x150] sm:$0xff] }
 0x157   :  { %860 = vmatpush.msrb.mxu2 %v809_v57 }
 0x158   :  { %v4651_v63 = vadd.f32 %v248_v62, %v242_v61  ;;  %v806_v61 = vld [vmem:[%s6276_s7 + $0x148] sm:$0xff] }
 0x159   :  { %861 = vmatpush.msrb.mxu2 %v808_v8 }
 0x15a   :  { %494 = vmatmul.f32.vlgmr.msra.gmra.mxu1 %v4651_v63  ;;  %554 = vmatmul.f32.vlgmr.msrb.gmra.mxu0 %v4651_v63 }
 0x15b   :  { %614 = vmatmul.f32.vlgmr.msrb.gmra.mxu3 %v4651_v63  ;;  %638 = vmatpush.msra.mxu1 %v319_v9  ;;  %v451_v9 = vperm.slane %v4778_v58, 1 }
 0x15c   :  { %674 = vmatmul.f32.vlgmr.msra.gmra.mxu2 %v4651_v63  ;;  %817 = vmatpush.msrb.mxu0 %v780_v13 }
 0x15d   :  { %639 = vmatpush.msra.mxu1 %v315_v4  ;;  %862 = vmatpush.msrb.mxu2 %v807_v60 }
 0x15e   :  { %818 = vmatpush.msrb.mxu0 %v779_v6  ;;  %v803_v6 = vld [vmem:[%s6276_s7 + $0x130] sm:$0xff] }
 0x15f   :  { %640 = vmatpush.msra.mxu1 %v311_v14  ;;  %863 = vmatpush.msrb.mxu2 %v806_v61 }
 0x160   :  { %819 = vmatpush.msrb.mxu0 %v778_v11 }
 0x161   :  { %641 = vmatpush.msra.mxu1 %v307_v10  ;;  %v515_v10 = vpop.f32.mrf.mxu2 }
 0x162   :  { %574 = vmatmul.f32.vlgmr.msrb.gmra.mxu1 %v4377_v16  ;;  %634 = vmatmul.f32.vlgmr.msra.gmra.mxu0 %v4377_v16 }
 0x163   :  { %642 = vmatpush.msra.mxu1 %v303_v12  ;;  %694 = vmatmul.f32.vlgmr.msra.gmra.mxu3 %v4377_v16 }
 0x164   :  { %820 = vmatpush.msrb.mxu0 %v777_v15  ;;  %v802_v15 = vld [vmem:[%s6276_s7 + $0x128] sm:$0xff] }
 0x165   :  { %643 = vmatpush.msra.mxu1 %v299_v17  ;;  %v801_v17 = vld [vmem:[%s6276_s7 + $0x120] sm:$0xff] }
 0x166   :  { %821 = vmatpush.msrb.mxu0 %v776_v18 }
 0x167   :  { %644 = vmatpush.msra.mxu1 %v295_v19 }
 0x168   :  { %822 = vmatpush.msrb.mxu0 %v775_v20  ;;  %v800_v20 = vld [vmem:[%s6276_s7 + $0x118] sm:$0xff] }
 0x169   :  { %645 = vmatpush.msra.mxu1 %v291_v22 }
 0x16a   :  { %823 = vmatpush.msrb.mxu0 %v774_v24 }
 0x16b   :  { %646 = vmatpush.msra.mxu1 %v287_v25  ;;  %v799_v25 = vld [vmem:[%s6276_s7 + $0x110] sm:$0xff] }
 0x16c   :  { %824 = vmatpush.msrb.mxu0 %v773_v26 }
 0x16d   :  { %647 = vmatpush.msra.mxu1 %v283_v27  ;;  %v798_v27 = vld [vmem:[%s6276_s7 + $0x108] sm:$0xff] }
 0x16e   :  { %825 = vmatpush.msrb.mxu0 %v772_v28  ;;  %v797_v28 = vld [vmem:[%s6276_s7 + $0x100] sm:$0xff] }
 0x16f   :  { %648 = vmatpush.msra.mxu1 %v279_v29  ;;  %v1278_v29 = vld [vmem:[#allocation6 + $0x5e0] sm:$0xff] }
 0x170   :  { %826 = vmatpush.msrb.mxu0 %v771_v30 }
 0x171   :  { %649 = vmatpush.msra.mxu1 %v275_v32  ;;  %v475_v5 = vpop.f32.mrf.mxu0  ;;  %v1274_v32 = vld [vmem:[#allocation6 + $0x5c0] sm:$0xff] }
 0x172   :  { %827 = vmatpush.msrb.mxu0 %v770_v33  ;;  %v476_v62 = vadd.f32 %v475_v5, %v450_v59  ;;  %v1270_v33 = vld [vmem:[#allocation6 + $0x5a0] sm:$0xff] }
 0x173   :  { %650 = vmatpush.msra.mxu1 %v271_v34  ;;  %v1226_v5 = vld [vmem:[#allocation6 + $0x440] sm:$0xff] }
 0x174   :  { %828 = vmatpush.msrb.mxu0 %v769_v36 }
 0x175   :  { %651 = vmatpush.msra.mxu1 %v267_v37 }
 0x176   :  { %829 = vmatpush.msrb.mxu0 %v768_v38  ;;  %v1266_v38 = vld [vmem:[#allocation6 + $0x580] sm:$0xff] }
 0x177   :  { %652 = vmatpush.msra.mxu1 %v263_v39  ;;  %v1262_v39 = vld [vmem:[#allocation6 + $0x560] sm:$0xff] }
 0x178   :  { %830 = vmatpush.msrb.mxu0 %v767_v40 }
 0x179   :  { %653 = vmatpush.msra.mxu1 %v259_v41  ;;  %v1258_v41 = vld [vmem:[#allocation6 + $0x540] sm:$0xff] }
 0x17a   :  { %4262 = vmatmul.msk.f32.vlgmr.msra.gmra.mxu1 %vm4630_vm13, %v4628_v31  ;;  %831 = vmatpush.msrb.mxu0 %v766_v1 }
 0x17b   :  { %837 = vmatpush.msrb.mxu1 %v796_v42  ;;  %v1254_v42 = vld [vmem:[#allocation6 + $0x520] sm:$0xff] }
 0x17c   :  { %832 = vmatpush.msrb.mxu0 %v765_v43 }
 0x17d   :  { %838 = vmatpush.msrb.mxu1 %v795_v44  ;;  %4263 = vmatmul.msk.f32.vlgmr.msrb.gmra.mxu0 %vm4630_vm13, %v4628_v31  ;;  %v789_v31 = vld [vmem:[%s6276_s7 + $0xc0] sm:$0xff] }
 0x17e   :  { %v1250_v44 = vld [vmem:[#allocation6 + $0x500] sm:$0xff] }
 0x17f   :  { %839 = vmatpush.msrb.mxu1 %v794_v45 }
 0x181   :  { %840 = vmatpush.msrb.mxu1 %v793_v46  ;;  %v453_v46 = vperm.slane %v4778_v58, 3 }
 0x183   :  { %841 = vmatpush.msrb.mxu1 %v792_v47 }
 0x185   :  { %842 = vmatpush.msrb.mxu1 %v791_v48  ;;  %v1246_v48 = vld [vmem:[#allocation6 + $0x4e0] sm:$0xff] }
 0x187   :  { %843 = vmatpush.msrb.mxu1 %v790_v23  ;;  %v452_v23 = vperm.slane %v4778_v58, 2  ;;  %v1230_v58 = vld [vmem:[#allocation6 + $0x460] sm:$0xff] }
 0x188   :  { %v535_v4 = vpop.f32.mrf.mxu3 }
 0x189   :  { %844 = vmatpush.msrb.mxu1 %v789_v31  ;;  %v536_v11 = vadd.f32 %v535_v4, %v451_v9 }
 0x18a   :  { %v595_v40 = vpop.f32.mrf.mxu2 }
 0x18b   :  { %845 = vmatpush.msrb.mxu1 %v788_v49 }
 0x18d   :  { %846 = vmatpush.msrb.mxu1 %v787_v50  ;;  %v1242_v50 = vld [vmem:[#allocation6 + $0x4c0] sm:$0xff] }
 0x18f   :  { %847 = vmatpush.msrb.mxu1 %v786_v51 }
 0x191   :  { %848 = vmatpush.msrb.mxu1 %v785_v52 }
 0x193   :  { %849 = vmatpush.msrb.mxu1 %v784_v53 }
 0x195   :  { %850 = vmatpush.msrb.mxu1 %v783_v0 }
 0x197   :  { %851 = vmatpush.msrb.mxu1 %v782_v54  ;;  %v1238_v54 = vld [vmem:[#allocation6 + $0x4a0] sm:$0xff] }
 0x199   :  { %852 = vmatpush.msrb.mxu1 %v781_v7  ;;  %v596_v7 = vadd.f32 %v595_v40, %v452_v23  ;;  %v4272_v23 = vld [vmem:[%s6277_s8] ss:$0 sm:$0xff] }
 0x19a   :  { %853 = vmatmul.f32.vlgmr.msrb.gmra.mxu1 %v4651_v63  ;;  %v805_v63 = vld [vmem:[%s6276_s7 + $0x140] sm:$0xff] }
 0x19b   :  { %864 = vmatpush.msrb.mxu2 %v805_v63  ;;  %v1222_v63 = vld [vmem:[#allocation6 + $0x420] sm:$0xff] }
 0x19d   :  { %865 = vmatpush.msrb.mxu2 %v804_v3  ;;  %v1218_v3 = vld [vmem:[#allocation6 + $0x400] sm:$0xff] }
 0x19f   :  { %866 = vmatpush.msrb.mxu2 %v803_v6 }
 0x1a1   :  { %867 = vmatpush.msrb.mxu2 %v802_v15 }
 0x1a3   :  { %868 = vmatpush.msrb.mxu2 %v801_v17 }
 0x1a5   :  { %869 = vmatpush.msrb.mxu2 %v800_v20  ;;  %v82_v20 = vld [vmem:[%s6279_s10] sm:$0xff]  ;;  %s4245_s10 = sld [smem:[#allocation3 + $0x3]] }
 0x1a7   :  { %870 = vmatpush.msrb.mxu2 %v799_v25 }
 0x1a9   :  { %871 = vmatpush.msrb.mxu2 %v798_v27 }
 0x1ab   :  { %872 = vmatpush.msrb.mxu2 %v797_v28  ;;  %p2595_p3 = scmp.gt.s32.totalorder %s4245_s10, 0 }
 0x1ad   :  { %1332 = vmatpush.msra.mxu2 %v1278_v29  ;;  %s2598_s19 = scalar_select %p2595_p3, 1, 0 }
 0x1af   :  { %1333 = vmatpush.msra.mxu2 %v1274_v32 }
 0x1b1   :  { %1334 = vmatpush.msra.mxu2 %v1270_v33 }
 0x1b3   :  { %1335 = vmatpush.msra.mxu2 %v1266_v38 }
 0x1b5   :  { %1336 = vmatpush.msra.mxu2 %v1262_v39 }
 0x1b7   :  { %1337 = vmatpush.msra.mxu2 %v1258_v41 }
 0x1b9   :  { %1338 = vmatpush.msra.mxu2 %v1254_v42 }
 0x1bb   :  { %1339 = vmatpush.msra.mxu2 %v1250_v44 }
 0x1bd   :  { %1340 = vmatpush.msra.mxu2 %v1246_v48 }
 0x1bf   :  { %1341 = vmatpush.msra.mxu2 %v1242_v50 }
 0x1c1   :  { %1342 = vmatpush.msra.mxu2 %v1238_v54  ;;  %v4897_v54 = vld [vmem:[%s6271_s2 + $0x10] sm:$0xff] }
 0x1c3   :  { %1343 = vmatpush.msra.mxu2 %v1234_v56 }
 0x1c5   :  { %1344 = vmatpush.msra.mxu2 %v1230_v58  ;;  %v901_v58 = vld [vmem:[%s6273_s4 + $0x68] sm:$0xff] }
 0x1c7   :  { %1345 = vmatpush.msra.mxu2 %v1226_v5  ;;  %v899_v5 = vld [vmem:[%s6273_s4 + $0x58] sm:$0xff] }
 0x1c9   :  { %1346 = vmatpush.msra.mxu2 %v1222_v63  ;;  %v897_v63 = vld [vmem:[%s6273_s4 + $0x48] sm:$0xff] }
 0x1cb   :  { %1347 = vmatpush.msra.mxu2 %v1218_v3  ;;  %v4939_v3 = vld [vmem:[%s6271_s2 + $0x8] sm:$0xff] }
 0x1d7   :  { %v495_v13 = vpop.f32.mrf.mxu1  ;;  %v555_v16 = vpop.f32.mrf.mxu0 }
 0x1d8   :  { %v496_v14 = vadd.f32 %v495_v13, %v476_v62  ;;  %v556_v19 = vadd.f32 %v555_v16, %v536_v11 }
 0x1da   :  { %v516_v12 = vadd.f32 %v515_v10, %v496_v14  ;;  %v892_v10 = vld [vmem:[%s6273_s4 + $0x20] sm:$0xff] }
 0x1dc   :  { %v4224_v18 = vmul.f32 -1.442695, %v516_v12 }
 0x1de   :  { %4281 = vpow2.f32 %v4224_v18  ;;  %v615_v1 = vpop.f32.mrf.mxu3 }
 0x1df   :  { %v575_v22 = vpop.f32.mrf.mxu1  ;;  %v675_v52 = vpop.f32.mrf.mxu2  ;;  %v616_v59 = vadd.f32 %v615_v1, %v596_v7 }
 0x1e0   :  { %v576_v24 = vadd.f32 %v575_v22, %v556_v19  ;;  %v635_v61 = vpop.f32.mrf.mxu0 }
 0x1e1   :  { %v636_v13 = vadd.f32 %v635_v61, %v616_v59  ;;  %v900_v59 = vld [vmem:[%s6273_s4 + $0x60] sm:$0xff] }
 0x1e2   :  { %v4225_v26 = vmul.f32 -1.442695, %v576_v24 }
 0x1e4   :  { %4283 = vpow2.f32 %v4225_v26  ;;  %v4282_v30 = vpop.eup %4281 }
 0x1e5   :  { %v4818_v36 = vadd.f32 1.0, %v4282_v30 }
 0x1e6   :  { %v695_v0 = vpop.f32.mrf.mxu3 }
 0x1e7   :  { %v713_v11 = vand.u32 2147483648, %v4818_v36  ;;  %vm707_vm11 = vweird.f32 %v4818_v36  ;;  %v711_v12 = vand.u32 2147483647, %v4818_v36 }
 0x1e9   :  { %v714_v22 = vor.u32 1.1754944e-38, %v713_v11  ;;  %v4958_v11 = vld [vmem:[%s6271_s2 + $0x20] sm:$0xff] }
 0x1ea   :  { %v4284_v34 = vpop.eup %4283 }
 0x1eb   :  { %v4820_v37 = vadd.f32 1.0, %v4284_v34 }
 0x1ed   :  { %4285 = vrcp.f32 %v4820_v37  ;;  %v732_v4 = vand.u32 2147483648, %v4820_v37  ;;  %vm726_vm15 = vweird.f32 %v4820_v37  ;;  %v730_v6 = vand.u32 2147483647, %v4820_v37 }
 0x1ee   :  { %4287 = vrcp.f32 %v4818_v36 }
 0x1ef   :  { %v733_v17 = vor.u32 1.1754944e-38, %v732_v4  ;;  %vm731_vm13 = vcmp.eq.f32.partialorder %v730_v6, 8.507059e+37  ;;  %v893_v6 = vld [vmem:[%s6273_s4 + $0x28] sm:$0xff] }
 0x1f3   :  { %v4824_v43 = vpop.eup %4285 }
 0x1f4   :  { %v4826_v45 = vpop.eup %4287  ;;  %v722_v47 = vmul.f32 %v4824_v43, %v4820_v37  ;;  %vm727_vm14 = vweird.f32 %v4824_v43 }
 0x1f5   :  { %v703_v31 = vmul.f32 %v4826_v45, %v4818_v36  ;;  %vm708_vm9 = vweird.f32 %v4826_v45  ;;  %vm4843_vm10 = vmor %vm726_vm15, %vm727_vm14  ;;  %vm712_vm14 = vcmp.eq.f32.partialorder %v711_v12, 8.507059e+37 }
 0x1f6   :  { %v723_v53 = vsub.f32 1.0, %v722_v47  ;;  %vm709_vm12 = vmor %vm707_vm11, %vm708_vm9  ;;  %v4881_v47 = vld [vmem:[%s6271_s2 + $0x30] sm:$0xff] }
 0x1f7   :  { %v655_v49 = vpop.f32.mrf.mxu1  ;;  %v704_v2 = vsub.f32 1.0, %v703_v31 }
 0x1f8   :  { %v656_v51 = vadd.f32 %v655_v49, %v453_v46  ;;  %v724_v8 = vmul.f32 %v4824_v43, %v723_v53 }
 0x1f9   :  { %v705_v62 = vmul.f32 %v4826_v45, %v704_v2  ;;  %v903_v2 = vld [vmem:[%s6273_s4 + $0x78] sm:$0xff] }
 0x1fa   :  { %v676_v55 = vadd.f32 %v675_v52, %v656_v51  ;;  %v725_v9 = vadd.f32 %v4824_v43, %v724_v8  ;;  %v834_v31 = vpop.f32.mrf.mxu0  ;;  %904 = vmatpush.msrb.mxu3 %v903_v2  ;;  %v4918_v8 = vcvt.s32.f32 %v4582_v21 }
 0x1fb   :  { %v706_v14 = vadd.f32 %v4826_v45, %v705_v62  ;;  %v835_v49 = vadd.f32 %v4272_v23, %v834_v31  ;;  %v898_v62 = vld [vmem:[%s6273_s4 + $0x50] sm:$0xff] }
 0x1fc   :  { %v696_v57 = vadd.f32 %v695_v0, %v676_v55  ;;  %v729_v15 = vsel %vm4843_vm10, %v4824_v43, %v725_v9  ;;  %v4866_v43 = vld [vmem:[%s6271_s2] sm:$0xff]  ;;  %v4904_v55 = vld [vmem:[%s6271_s2 + $0x28] sm:$0xff] }
 0x1fd   :  { %v710_v18 = vsel %vm709_vm12, %v4826_v45, %v706_v14  ;;  %v734_v24 = vsel %vm731_vm13, %v733_v17, %v729_v15  ;;  %v4874_v45 = vld [vmem:[%s6271_s2 + $0x18] sm:$0xff]  ;;  %vm80_vm12 = vcmp.lt.s32.totalorder %v4582_v21, 24  ;;  %v896_v9 = vld [vmem:[%s6273_s4 + $0x40] sm:$0xff]  ;;  %v894_v14 = vld [vmem:[%s6273_s4 + $0x30] sm:$0xff] }
 0x1fe   :  { %v4226_v60 = vmul.f32 -1.442695, %v696_v57  ;;  %v715_v25 = vsel %vm712_vm14, %v714_v22, %v710_v18  ;;  %v756_v26 = vmul.f32 %v734_v24, %v82_v20  ;;  %v902_v57 = vld [vmem:[%s6273_s4 + $0x70] sm:$0xff]  ;;  %v891_v15 = vld [vmem:[%s6273_s4 + $0x18] sm:$0xff]  ;;  %v889_v17 = vld [vmem:[%s6273_s4 + $0x8] sm:$0xff] }
 0x1ff   :  { %905 = vmatpush.msrb.mxu3 %v902_v57  ;;  %v4974_v18 = vld [vmem:[%s6271_s2 + $0x38] sm:$0xff]  ;;  %v888_v20 = vld [vmem:[%s6273_s4] sm:$0xff] }
 0x200   :  { %4289 = vpow2.f32 %v4226_v60 }
 0x201   :  { %4291 = vtanh.f32 %v636_v13  ;;  %906 = vmatpush.msrb.mxu3 %v901_v58  ;;  %v895_v13 = vld [vmem:[%s6273_s4 + $0x38] sm:$0xff] }
 0x203   :  { %907 = vmatpush.msrb.mxu3 %v900_v59 }
 0x205   :  { %908 = vmatpush.msrb.mxu3 %v899_v5 }
 0x206   :  { %v4290_v16 = vpop.eup %4289 }
 0x207   :  { %v740_v19 = vadd.f32 1.0, %v4290_v16  ;;  %v4292_v27 = vpop.eup %4291  ;;  %909 = vmatpush.msrb.mxu3 %v898_v62  ;;  %v890_v16 = vld [vmem:[%s6273_s4 + $0x10] sm:$0xff] }
 0x208   :  { %v757_v28 = vmul.f32 %v4292_v27, %v715_v25  ;;  %v4454_v25 = vmov 1.0  }
 0x209   :  { %4293 = vrcp.f32 %v740_v19  ;;  %v752_v34 = vand.u32 2147483648, %v740_v19  ;;  %v750_v37 = vand.u32 2147483647, %v740_v19  ;;  %vm746_vm9 = vweird.f32 %v740_v19  ;;  %910 = vmatpush.msrb.mxu3 %v897_v63 }
 0x20a   :  { %v4857_v30 = vadd.f32 %v757_v28, %v756_v26 }
 0x20b   :  { %v753_v39 = vor.u32 1.1754944e-38, %v752_v34  ;;  %vm751_vm11 = vcmp.eq.f32.partialorder %v750_v37, 8.507059e+37  ;;  %911 = vmatpush.msrb.mxu3 %v896_v9 }
 0x20c   :  { %4295 = vtanh.f32 %v4857_v30 }
 0x20d   :  { %912 = vmatpush.msrb.mxu3 %v895_v13 }
 0x20f   :  { %v4294_v29 = vpop.eup %4293  ;;  %913 = vmatpush.msrb.mxu3 %v894_v14 }
 0x210   :  { %v742_v32 = vmul.f32 %v4294_v29, %v740_v19  ;;  %vm747_vm15 = vweird.f32 %v4294_v29 }
 0x211   :  { %vm748_vm10 = vmor %vm746_vm9, %vm747_vm15  ;;  %914 = vmatpush.msrb.mxu3 %v893_v6 }
 0x212   :  { %v743_v33 = vsub.f32 1.0, %v742_v32  ;;  %v4296_v41 = vpop.eup %4295 }
 0x213   :  { %915 = vmatpush.msrb.mxu3 %v892_v10  ;;  %v1150_v10 = vld [vmem:[#allocation6 + $0x1e0] sm:$0xff] }
 0x214   :  { %v744_v36 = vmul.f32 %v4294_v29, %v743_v33  ;;  %1292 = vmatpush.msra.mxu0 %v1150_v10  ;;  %v1107_v10 = vld [vmem:[#allocation6 + $0x88] sm:$0xff] }
 0x215   :  { %916 = vmatpush.msrb.mxu3 %v891_v15  ;;  %v1152_v15 = vld [vmem:[#allocation6 + $0x1f0] sm:$0xff] }
 0x216   :  { %v745_v38 = vadd.f32 %v4294_v29, %v744_v36 }
 0x217   :  { %v854_v50 = vpop.f32.mrf.mxu1  ;;  %917 = vmatpush.msrb.mxu3 %v890_v16 }
 0x218   :  { %v749_v40 = vsel %vm748_vm10, %v4294_v29, %v745_v38  ;;  %v855_v51 = vadd.f32 %v854_v50, %v835_v49 }
 0x219   :  { %v754_v1 = vsel %vm751_vm11, %v753_v39, %v749_v40  ;;  %918 = vmatpush.msrb.mxu3 %v889_v17  ;;  %v1146_v17 = vld [vmem:[#allocation6 + $0x1c0] sm:$0xff] }
 0x21a   :  { %v4860_v42 = vmul.f32 %v4296_v41, %v754_v1  ;;  %1293 = vmatpush.msra.mxu0 %v1146_v17  ;;  %v1104_v17 = vld [vmem:[#allocation6 + $0x70] sm:$0xff] }
 0x21b   :  { %919 = vmatpush.msrb.mxu3 %v888_v20  ;;  %v1148_v20 = vld [vmem:[#allocation6 + $0x1d0] sm:$0xff] }
 0x21c   :  { %873 = vmatmul.f32.vlgmr.msrb.gmra.mxu2 %v4860_v42  ;;  %v932_v44 = vmul.f32 %v4866_v43, %v4860_v42  ;;  %v935_v46 = vmul.f32 %v4874_v45, %v4860_v42  ;;  %v938_v48 = vmul.f32 %v4881_v47, %v4860_v42  ;;  %v934_v7 = vmul.f32 %v4897_v54, %v4860_v42 }
 0x21d   :  { %v937_v56 = vmul.f32 %v4904_v55, %v4860_v42  ;;  %v933_v4 = vmul.f32 %v4939_v3, %v4860_v42  ;;  %v936_v12 = vmul.f32 %v4958_v11, %v4860_v42  ;;  %v939_v19 = vmul.f32 %v4974_v18, %v4860_v42  ;;  %1412 = vmatpush.msrb.mxu2 %v1152_v15  ;;  %v1102_v15 = vld [vmem:[#allocation6 + $0x60] sm:$0xff] }
 0x21e   :  { %940 = vadd.xlane.f32.xlu1 %v932_v44 }
 0x21f   :  { %1413 = vmatpush.msrb.mxu2 %v1148_v20  ;;  %v1099_v20 = vld [vmem:[#allocation6 + $0x48] sm:$0xff] }
 0x224   :  { %1348 = vmatmul.f32.vlgmr.msra.gmra.mxu2 %v4860_v42 }
 0x226   :  { %946 = vadd.xlane.f32.xlu1 %v935_v46 }
 0x22e   :  { %952 = vadd.xlane.f32.xlu1 %v938_v48 }
 0x291   :  { %v941_v24 = vpop.xlane.xlu1 %940 }
 0x292   :  { %v964_v29 = vperm.slane %v941_v24, %v4582_v21  ;;  %v1143_v24 = vld [vmem:[#allocation6 + $0x1a8] sm:$0xff] }
 0x299   :  { %v947_v32 = vpop.xlane.xlu1 %946 }
 0x29a   :  { %v967_v38 = vperm.slane %v947_v32, %v4582_v21  ;;  %v1139_v32 = vld [vmem:[#allocation6 + $0x188] sm:$0xff] }
 0x29f   :  { %v874_v52 = vpop.f32.mrf.mxu2 }
 0x2a0   :  { %v875_v53 = vadd.f32 %v874_v52, %v855_v51 }
 0x2a1   :  { %v953_v44 = vpop.xlane.xlu1 %952 }
 0x2a2   :  { %877 = vst [vmem:[%s6280_s11] sm:$0xff] %v875_v53  ;;  %v878_v0 = vsel %vm80_vm12, %v875_v53, -1e+30  ;;  %v970_v23 = vperm.slane %v953_v44, %v4582_v21  ;;  %v1131_v44 = vld [vmem:[#allocation6 + $0x148] sm:$0xff] }
 0x2a3   :  { %879 = vmax.xlane.f32.xlu0 %v878_v0 }
 0x2ab   :  { %944 = vadd.xlane.f32.xlu0 %v934_v7 }
 0x2b3   :  { %950 = vadd.xlane.f32.xlu0 %v937_v56 }
 0x316   :  { %v880_v60 = vpop.xlane.xlu0 %879 }
 0x317   :  { %vm881_vm13 = vcmp.eq.f32.partialorder %v878_v0, %v880_v60 }
 0x318   :  { %v882_v61 = vsel %vm881_vm13, %v4918_v8, 1e+09 }
 0x319   :  { %883 = vmin.xlane.f32.xlu2 %v882_v61 }
 0x31e   :  { %v945_v26 = vpop.xlane.xlu0 %944 }
 0x31f   :  { %v966_v34 = vperm.slane %v945_v26, %v4582_v21 }
 0x321   :  { %942 = vadd.xlane.f32.xlu2 %v933_v4 }
 0x326   :  { %v951_v40 = vpop.xlane.xlu0 %950 }
 0x327   :  { %v969_v46 = vperm.slane %v951_v40, %v4582_v21  ;;  %v1136_v40 = vld [vmem:[#allocation6 + $0x170] sm:$0xff] }
 0x329   :  { %948 = vadd.xlane.f32.xlu2 %v936_v12  ;;  %v1151_v12 = vld [vmem:[#allocation6 + $0x1e8] sm:$0xff] }
 0x32a   :  { %1352 = vmatpush.msra.mxu3 %v1151_v12  ;;  %v1108_v12 = vld [vmem:[#allocation6 + $0x90] sm:$0xff] }
 0x331   :  { %954 = vadd.xlane.f32.xlu2 %v939_v19  ;;  %v1147_v19 = vld [vmem:[#allocation6 + $0x1c8] sm:$0xff] }
 0x332   :  { %1353 = vmatpush.msra.mxu3 %v1147_v19  ;;  %v1098_v19 = vld [vmem:[#allocation6 + $0x40] sm:$0xff] }
 0x334   :  { %1354 = vmatpush.msra.mxu3 %v1143_v24 }
 0x336   :  { %1355 = vmatpush.msra.mxu3 %v1139_v32  ;;  %v1090_v32 = vld [vmem:[#allocation6] sm:$0xff] }
 0x38c   :  { %v884_v22 = vpop.xlane.xlu2 %883 }
 0x38d   :  { %vm885_vm14 = vcmp.eq.f32.partialorder %v4918_v8, %v884_v22  ;;  %v1142_v22 = vld [vmem:[#allocation6 + $0x1a0] sm:$0xff] }
 0x38e   :  { %4228 = vmatmul.msk.f32.vlgmr.msrb.gmra.mxu3 %vm885_vm14, %v4454_v25  ;;  %1294 = vmatpush.msra.mxu0 %v1142_v22  ;;  %v1100_v22 = vld [vmem:[#allocation6 + $0x50] sm:$0xff] }
 0x394   :  { %v943_v27 = vpop.xlane.xlu2 %942 }
 0x395   :  { %v965_v28 = vperm.slane %v943_v27, %v4582_v21  ;;  %v1144_v27 = vld [vmem:[#allocation6 + $0x1b0] sm:$0xff] }
 0x396   :  { %1414 = vmatpush.msrb.mxu2 %v1144_v27 }
 0x397   :  { %v972_v33 = vsel %vm130_vm0, %v965_v28, %v964_v29  ;;  %v1138_v29 = vld [vmem:[#allocation6 + $0x180] sm:$0xff] }
 0x398   :  { %v973_v36 = vsel %vm132_vm1, %v966_v34, %v972_v33  ;;  %1295 = vmatpush.msra.mxu0 %v1138_v29  ;;  %v1096_v29 = vld [vmem:[#allocation6 + $0x30] sm:$0xff] }
 0x399   :  { %v974_v41 = vsel %vm134_vm2, %v967_v38, %v973_v36  ;;  %v1140_v36 = vld [vmem:[#allocation6 + $0x190] sm:$0xff]  ;;  %v1135_v38 = vld [vmem:[#allocation6 + $0x168] sm:$0xff] }
 0x39a   :  { %1415 = vmatpush.msrb.mxu2 %v1140_v36  ;;  %1356 = vmatpush.msra.mxu3 %v1135_v38  ;;  %v1214_v36 = vld [vmem:[#allocation6 + $0x3e0] sm:$0xff] }
 0x39b   :  { %v1210_v38 = vld [vmem:[#allocation6 + $0x3c0] sm:$0xff]  ;;  %1312 = vmatpush.msra.mxu1 %v1214_v36  ;;  %v1213_v36 = vld [vmem:[#allocation6 + $0x3d8] sm:$0xff] }
 0x39c   :  { %v949_v37 = vpop.xlane.xlu2 %948  ;;  %1416 = vmatpush.msrb.mxu2 %v1136_v40  ;;  %1357 = vmatpush.msra.mxu3 %v1131_v44  ;;  %v1206_v40 = vld [vmem:[#allocation6 + $0x3a0] sm:$0xff]  ;;  %v1207_v44 = vld [vmem:[#allocation6 + $0x3a8] sm:$0xff] }
 0x39d   :  { %v968_v39 = vperm.slane %v949_v37, %v4582_v21  ;;  %v1134_v37 = vld [vmem:[#allocation6 + $0x160] sm:$0xff]  ;;  %1313 = vmatpush.msra.mxu1 %v1210_v38  ;;  %v1209_v38 = vld [vmem:[#allocation6 + $0x3b8] sm:$0xff] }
 0x39e   :  { %1296 = vmatpush.msra.mxu0 %v1134_v37  ;;  %v1215_v37 = vld [vmem:[#allocation6 + $0x3e8] sm:$0xff] }
 0x39f   :  { %v975_v1 = vsel %vm136_vm3, %v968_v39, %v974_v41  ;;  %1314 = vmatpush.msra.mxu1 %v1206_v40  ;;  %v1275_v40 = vld [vmem:[#allocation6 + $0x5c8] sm:$0xff] }
 0x3a0   :  { %v976_v48 = vsel %vm138_vm4, %v969_v46, %v975_v1  ;;  %v1130_v1 = vld [vmem:[#allocation6 + $0x140] sm:$0xff] }
 0x3a1   :  { %v977_v50 = vsel %vm140_vm5, %v970_v23, %v976_v48  ;;  %v1132_v48 = vld [vmem:[#allocation6 + $0x150] sm:$0xff]  ;;  %1297 = vmatpush.msra.mxu0 %v1130_v1 }
 0x3a2   :  { %1417 = vmatpush.msrb.mxu2 %v1132_v48  ;;  %v1212_v1 = vld [vmem:[#allocation6 + $0x3d0] sm:$0xff] }
 0x3a3   :  { %v1208_v48 = vld [vmem:[#allocation6 + $0x3b0] sm:$0xff] }
 0x3a4   :  { %v955_v31 = vpop.xlane.xlu2 %954 }
 0x3a5   :  { %v971_v49 = vperm.slane %v955_v31, %v4582_v21  ;;  %v1126_v31 = vld [vmem:[#allocation6 + $0x120] sm:$0xff] }
 0x3a6   :  { %1298 = vmatpush.msra.mxu0 %v1126_v31  ;;  %v1198_v31 = vld [vmem:[#allocation6 + $0x360] sm:$0xff] }
 0x3a7   :  { %v978_v51 = vsel %vm142_vm6, %v971_v49, %v977_v50  ;;  %v1127_v49 = vld [vmem:[#allocation6 + $0x128] sm:$0xff] }
 0x3a8   :  { %v980_v52 = vsel %vm6282_vm7, %v978_v51, -1e+09  ;;  %v1128_v51 = vld [vmem:[#allocation6 + $0x130] sm:$0xff]  ;;  %1358 = vmatpush.msra.mxu3 %v1127_v49  ;;  %v1199_v49 = vld [vmem:[#allocation6 + $0x368] sm:$0xff] }
 0x3a9   :  { %v981_v53 = vsel %vm6281_vm8, %v980_v52, -inf  ;;  %1418 = vmatpush.msrb.mxu2 %v1128_v51  ;;  %v1195_v51 = vld [vmem:[#allocation6 + $0x348] sm:$0xff] }
 0x3aa   :  { %v982_v0 = vrot.slane %v981_v53, 4 }
 0x3ac   :  { %v983_v7 = vmax.f32 %v981_v53, %v982_v0 }
 0x3ae   :  { %v984_v56 = vrot.slane %v983_v7, 2 }
 0x3b0   :  { %v985_v2 = vmax.f32 %v983_v7, %v984_v56  ;;  %v1122_v7 = vld [vmem:[#allocation6 + $0x100] sm:$0xff]  ;;  %v1123_v56 = vld [vmem:[#allocation6 + $0x108] sm:$0xff] }
 0x3b1   :  { %1299 = vmatpush.msra.mxu0 %v1122_v7  ;;  %1359 = vmatpush.msra.mxu3 %v1123_v56  ;;  %v4230_v7 = vld [vmem:[%s6270_s1 + $0x8] sm:$0xff] }
 0x3b2   :  { %v986_v57 = vrot.slane %v985_v2, 1 }
 0x3b4   :  { %v987_v58 = vmax.f32 %v985_v2, %v986_v57  ;;  %v1124_v2 = vld [vmem:[#allocation6 + $0x110] sm:$0xff]  ;;  %v1118_v57 = vld [vmem:[#allocation6 + $0xe0] sm:$0xff] }
 0x3b5   :  { %1419 = vmatpush.msrb.mxu2 %v1124_v2  ;;  %1300 = vmatpush.msra.mxu0 %v1118_v57  ;;  %v1186_v57 = vld [vmem:[#allocation6 + $0x300] sm:$0xff] }
 0x3b6   :  { %v988_v59 = vsub.f32 %v980_v52, %v987_v58  ;;  %v1119_v58 = vld [vmem:[#allocation6 + $0xe8] sm:$0xff] }
 0x3b7   :  { %1360 = vmatpush.msra.mxu3 %v1119_v58  ;;  %v1187_v58 = vld [vmem:[#allocation6 + $0x308] sm:$0xff] }
 0x3b8   :  { %v989_v60 = vmul.f32 1.442695, %v988_v59  ;;  %v1120_v59 = vld [vmem:[#allocation6 + $0xf0] sm:$0xff] }
 0x3b9   :  { %1420 = vmatpush.msrb.mxu2 %v1120_v59  ;;  %v1204_v59 = vld [vmem:[#allocation6 + $0x390] sm:$0xff] }
 0x3ba   :  { %4297 = vpow2.f32 %v989_v60  ;;  %v1114_v60 = vld [vmem:[#allocation6 + $0xc0] sm:$0xff] }
 0x3bb   :  { %1301 = vmatpush.msra.mxu0 %v1114_v60  ;;  %v1182_v60 = vld [vmem:[#allocation6 + $0x2e0] sm:$0xff] }
 0x3c0   :  { %v4298_v5 = vpop.eup %4297 }
 0x3c1   :  { %v991_v61 = vsel %vm6281_vm8, %v4298_v5, 0.0 }
 0x3c2   :  { %v992_v62 = vrot.slane %v991_v61, 4 }
 0x3c4   :  { %v993_v63 = vadd.f32 %v992_v62, %v991_v61  ;;  %v1116_v61 = vld [vmem:[#allocation6 + $0xd0] sm:$0xff]  ;;  %v1110_v62 = vld [vmem:[#allocation6 + $0xa0] sm:$0xff] }
 0x3c5   :  { %1421 = vmatpush.msrb.mxu2 %v1116_v61  ;;  %1302 = vmatpush.msra.mxu0 %v1110_v62  ;;  %v1200_v61 = vld [vmem:[#allocation6 + $0x370] sm:$0xff]  ;;  %v1178_v62 = vld [vmem:[#allocation6 + $0x2c0] sm:$0xff] }
 0x3c6   :  { %v994_v9 = vrot.slane %v993_v63, 2 }
 0x3c8   :  { %v995_v4 = vadd.f32 %v994_v9, %v993_v63 }
 0x3ca   :  { %v996_v13 = vrot.slane %v995_v4, 1 }
 0x3cc   :  { %v997_v14 = vadd.f32 %v996_v13, %v995_v4  ;;  %v1111_v4 = vld [vmem:[#allocation6 + $0xa8] sm:$0xff] }
 0x3ce   :  { %4299 = vrcp.f32 %v997_v14  ;;  %v1009_v28 = vand.u32 2147483648, %v997_v14  ;;  %v1007_v34 = vand.u32 2147483647, %v997_v14  ;;  %vm1003_vm9 = vweird.f32 %v997_v14 }
 0x3d0   :  { %v1010_v41 = vor.u32 1.1754944e-38, %v1009_v28  ;;  %vm1008_vm11 = vcmp.eq.f32.partialorder %v1007_v34, 8.507059e+37  ;;  %v1095_v28 = vld [vmem:[#allocation6 + $0x28] sm:$0xff]  ;;  %v1092_v34 = vld [vmem:[#allocation6 + $0x10] sm:$0xff] }
 0x3d4   :  { %v4300_v6 = vpop.eup %4299 }
 0x3d5   :  { %v999_v16 = vmul.f32 %v4300_v6, %v997_v14  ;;  %vm1004_vm15 = vweird.f32 %v4300_v6  ;;  %v1112_v14 = vld [vmem:[#allocation6 + $0xb0] sm:$0xff] }
 0x3d6   :  { %vm1005_vm10 = vmor %vm1003_vm9, %vm1004_vm15  ;;  %1422 = vmatpush.msrb.mxu2 %v1112_v14  ;;  %v1192_v14 = vld [vmem:[#allocation6 + $0x330] sm:$0xff] }
 0x3d7   :  { %v1000_v26 = vsub.f32 1.0, %v999_v16  ;;  %v1103_v16 = vld [vmem:[#allocation6 + $0x68] sm:$0xff] }
 0x3d8   :  { %1423 = vmatpush.msrb.mxu2 %v1108_v12  ;;  %v1188_v12 = vld [vmem:[#allocation6 + $0x310] sm:$0xff] }
 0x3d9   :  { %v1001_v33 = vmul.f32 %v4300_v6, %v1000_v26  ;;  %v1094_v26 = vld [vmem:[#allocation6 + $0x20] sm:$0xff] }
 0x3da   :  { %1424 = vmatpush.msrb.mxu2 %v1104_v17  ;;  %v1184_v17 = vld [vmem:[#allocation6 + $0x2f0] sm:$0xff] }
 0x3db   :  { %v1002_v39 = vadd.f32 %v4300_v6, %v1001_v33  ;;  %v1091_v33 = vld [vmem:[#allocation6 + $0x8] sm:$0xff] }
 0x3dc   :  { %1425 = vmatpush.msrb.mxu2 %v1100_v22  ;;  %v1180_v22 = vld [vmem:[#allocation6 + $0x2d0] sm:$0xff] }
 0x3dd   :  { %v1006_v46 = vsel %vm1005_vm10, %v4300_v6, %v1002_v39  ;;  %v1106_v6 = vld [vmem:[#allocation6 + $0x80] sm:$0xff]  ;;  %v1211_v39 = vld [vmem:[#allocation6 + $0x3c8] sm:$0xff] }
 0x3de   :  { %v1011_v23 = vsel %vm1008_vm11, %v1010_v41, %v1006_v46  ;;  %1303 = vmatpush.msra.mxu0 %v1106_v6  ;;  %1426 = vmatpush.msrb.mxu2 %v1096_v29  ;;  %v1216_v41 = vld [vmem:[#allocation6 + $0x3f0] sm:$0xff]  ;;  %v1202_v46 = vld [vmem:[#allocation6 + $0x380] sm:$0xff] }
 0x3df   :  { %v5002_v50 = vmul.f32 %v4298_v5, %v1011_v23  ;;  %v1115_v5 = vld [vmem:[#allocation6 + $0xc8] sm:$0xff]  ;;  %1315 = vmatpush.msra.mxu1 %v1202_v46  ;;  %v1170_v6 = vld [vmem:[#allocation6 + $0x280] sm:$0xff] }
 0x3e0   :  { %1361 = vmatpush.msra.mxu3 %v1115_v5  ;;  %1304 = vmatpush.msra.mxu0 %v1102_v15  ;;  %v1203_v23 = vld [vmem:[#allocation6 + $0x388] sm:$0xff]  ;;  %v1166_v15 = vld [vmem:[#allocation6 + $0x260] sm:$0xff] }
 0x3e1   :  { %v1027_v52 = vperm.slane %v5002_v50, 2  ;;  %v1020_v53 = vperm.slane %v5002_v50, 1  ;;  %v1013_v0 = vperm.slane %v5002_v50, 0  ;;  %v1055_v63 = vperm.slane %v5002_v50, 6  ;;  %1427 = vmatpush.msrb.mxu2 %v1092_v34  ;;  %1316 = vmatpush.msra.mxu1 %v1198_v31  ;;  %v1183_v5 = vld [vmem:[#allocation6 + $0x2e8] sm:$0xff]  ;;  %v1154_v29 = vld [vmem:[#allocation6 + $0x200] sm:$0xff] }
 0x3e2   :  { %v1041_v9 = vperm.slane %v5002_v50, 4  ;;  %v1034_v13 = vperm.slane %v5002_v50, 3  ;;  %1362 = vmatpush.msra.mxu3 %v1111_v4  ;;  %v1062_v24 = vperm.slane %v5002_v50, 7  ;;  %1305 = vmatpush.msra.mxu0 %v1098_v19  ;;  %v1048_v27 = vperm.slane %v5002_v50, 5  ;;  %v1194_v50 = vld [vmem:[#allocation6 + $0x340] sm:$0xff]  ;;  %v1279_v34 = vld [vmem:[#allocation6 + $0x5e8] sm:$0xff] }
 0x3e3   :  { %1032 = vperm.xlu2 %4269, %v1027_v52   ;;  %1025 = vperm.xlu1 %4271, %v1020_v53   ;;  %v1190_v52 = vld [vmem:[#allocation6 + $0x320] sm:$0xff]  ;;  %v1191_v53 = vld [vmem:[#allocation6 + $0x328] sm:$0xff] }
 0x3e4   :  { %1018 = vperm.xlu0 %4270, %v1013_v0   ;;  %1363 = vmatpush.msra.mxu3 %v1107_v10  ;;  %v929_v0 = vstv %s928_s9  ;;  %v1174_v4 = vld [vmem:[#allocation6 + $0x2a0] sm:$0xff]  ;;  %v1171_v10 = vld [vmem:[#allocation6 + $0x288] sm:$0xff] }
 0x3e5   :  { %1306 = vmatpush.msra.mxu0 %v1094_v26  ;;  %1317 = vmatpush.msra.mxu1 %v1194_v50  ;;  %vm930_vm13 = vcmp.eq.s32.totalorder %v929_v0, 1  ;;  %v1162_v19 = vld [vmem:[#allocation6 + $0x240] sm:$0xff]  ;;  %v1159_v26 = vld [vmem:[#allocation6 + $0x228] sm:$0xff]  ;;  %v1156_v50 = vld [vmem:[#allocation6 + $0x210] sm:$0xff] }
 0x3e6   :  { %1364 = vmatpush.msra.mxu3 %v1103_v16  ;;  %v1167_v16 = vld [vmem:[#allocation6 + $0x268] sm:$0xff]  ;;  %v1281_v0 = vld [vmem:[#allocation6 + $0x5f8] sm:$0xff] }
 0x3e7   :  { %1307 = vmatpush.msra.mxu0 %v1090_v32  ;;  %1318 = vmatpush.msra.mxu1 %v1190_v52  ;;  %v1155_v32 = vld [vmem:[#allocation6 + $0x208] sm:$0xff]  ;;  %v1264_v52 = vld [vmem:[#allocation6 + $0x570] sm:$0xff] }
 0x3e8   :  { %1365 = vmatpush.msra.mxu3 %v1099_v20  ;;  %v1163_v20 = vld [vmem:[#allocation6 + $0x248] sm:$0xff] }
 0x3e9   :  { %1372 = vmatpush.msrb.mxu0 %v1215_v37  ;;  %1319 = vmatpush.msra.mxu1 %v1186_v57  ;;  %v1280_v37 = vld [vmem:[#allocation6 + $0x5f0] sm:$0xff]  ;;  %v1271_v46 = vld [vmem:[#allocation6 + $0x5a8] sm:$0xff]  ;;  %v1197_v57 = vld [vmem:[#allocation6 + $0x358] sm:$0xff] }
 0x3ea   :  { %1366 = vmatpush.msra.mxu3 %v1095_v28  ;;  %v1217_v28 = vld [vmem:[#allocation6 + $0x3f8] sm:$0xff]  ;;  %v1267_v31 = vld [vmem:[#allocation6 + $0x588] sm:$0xff] }
 0x3eb   :  { %1060 = vperm.xlu2 %4269, %v1055_v63   ;;  %1046 = vperm.xlu1 %4271, %v1041_v9   ;;  %v1179_v63 = vld [vmem:[#allocation6 + $0x2c8] sm:$0xff]  ;;  %v1196_v9 = vld [vmem:[#allocation6 + $0x350] sm:$0xff] }
 0x3ec   :  { %1039 = vperm.xlu0 %4270, %v1034_v13   ;;  %1367 = vmatpush.msra.mxu3 %v1091_v33  ;;  %v1175_v13 = vld [vmem:[#allocation6 + $0x2a8] sm:$0xff]  ;;  %v1172_v33 = vld [vmem:[#allocation6 + $0x290] sm:$0xff] }
 0x3ed   :  { %1373 = vmatpush.msrb.mxu0 %v1211_v39  ;;  %1320 = vmatpush.msra.mxu1 %v1182_v60  ;;  %v1168_v39 = vld [vmem:[#allocation6 + $0x270] sm:$0xff] }
 0x3ee   :  { %1432 = vmatpush.msrb.mxu3 %v1216_v41  ;;  %1492 = vmatpush.msra.mxu2 %v1217_v28  ;;  %v1276_v41 = vld [vmem:[#allocation6 + $0x5d0] sm:$0xff]  ;;  %v1173_v28 = vld [vmem:[#allocation6 + $0x298] sm:$0xff] }
 0x3ef   :  { %1374 = vmatpush.msrb.mxu0 %v1207_v44  ;;  %1321 = vmatpush.msra.mxu1 %v1178_v62  ;;  %v1164_v44 = vld [vmem:[#allocation6 + $0x250] sm:$0xff]  ;;  %v1251_v62 = vld [vmem:[#allocation6 + $0x508] sm:$0xff] }
 0x3f0   :  { %1433 = vmatpush.msrb.mxu3 %v1212_v1  ;;  %1493 = vmatpush.msra.mxu2 %v1213_v36  ;;  %v1205_v1 = vld [vmem:[#allocation6 + $0x398] sm:$0xff]  ;;  %v1256_v60 = vld [vmem:[#allocation6 + $0x530] sm:$0xff] }
 0x3f1   :  { %1375 = vmatpush.msrb.mxu0 %v1203_v23  ;;  %1322 = vmatpush.msra.mxu1 %v1174_v4  ;;  %v1160_v23 = vld [vmem:[#allocation6 + $0x230] sm:$0xff]  ;;  %v1269_v4 = vld [vmem:[#allocation6 + $0x598] sm:$0xff] }
 0x3f2   :  { %1434 = vmatpush.msrb.mxu3 %v1208_v48  ;;  %1494 = vmatpush.msra.mxu2 %v1209_v38  ;;  %v1272_v48 = vld [vmem:[#allocation6 + $0x5b0] sm:$0xff]  ;;  %v1249_v36 = vld [vmem:[#allocation6 + $0x4f8] sm:$0xff] }
 0x3f3   :  { %1067 = vperm.xlu1 %4271, %v1062_v24   ;;  %1376 = vmatpush.msrb.mxu0 %v1199_v49  ;;  %v1158_v24 = vld [vmem:[#allocation6 + $0x220] sm:$0xff]  ;;  %v1268_v49 = vld [vmem:[#allocation6 + $0x590] sm:$0xff] }
 0x3f4   :  { %1053 = vperm.xlu0 %4270, %v1048_v27   ;;  %1435 = vmatpush.msrb.mxu3 %v1204_v59  ;;  %v1176_v27 = vld [vmem:[#allocation6 + $0x2b0] sm:$0xff]  ;;  %v1255_v59 = vld [vmem:[#allocation6 + $0x528] sm:$0xff] }
 0x3f5   :  { %1377 = vmatpush.msrb.mxu0 %v1195_v51  ;;  %1323 = vmatpush.msra.mxu1 %v1170_v6  ;;  %v1263_v51 = vld [vmem:[#allocation6 + $0x568] sm:$0xff]  ;;  %v1185_v6 = vld [vmem:[#allocation6 + $0x2f8] sm:$0xff]  ;;  %v1228_v38 = vld [vmem:[#allocation6 + $0x450] sm:$0xff] }
 0x3f6   :  { %1436 = vmatpush.msrb.mxu3 %v1200_v61  ;;  %1495 = vmatpush.msra.mxu2 %v1205_v1  ;;  %v1273_v61 = vld [vmem:[#allocation6 + $0x5b8] sm:$0xff]  ;;  %v1224_v1 = vld [vmem:[#allocation6 + $0x430] sm:$0xff] }
 0x3f7   :  { %1378 = vmatpush.msrb.mxu0 %v1191_v53  ;;  %1324 = vmatpush.msra.mxu1 %v1166_v15  ;;  %v1201_v53 = vld [vmem:[#allocation6 + $0x378] sm:$0xff]  ;;  %v1244_v15 = vld [vmem:[#allocation6 + $0x4d0] sm:$0xff] }
 0x3f8   :  { %1437 = vmatpush.msrb.mxu3 %v1196_v9  ;;  %1496 = vmatpush.msra.mxu2 %v1201_v53  ;;  %v1189_v9 = vld [vmem:[#allocation6 + $0x318] sm:$0xff] }
 0x3f9   :  { %1379 = vmatpush.msrb.mxu0 %v1187_v58  ;;  %1325 = vmatpush.msra.mxu1 %v1162_v19  ;;  %v1277_v58 = vld [vmem:[#allocation6 + $0x5d8] sm:$0xff]  ;;  %v1239_v19 = vld [vmem:[#allocation6 + $0x4a8] sm:$0xff] }
 0x3fa   :  { %1438 = vmatpush.msrb.mxu3 %v1192_v14  ;;  %1497 = vmatpush.msra.mxu2 %v1197_v57  ;;  %v1248_v14 = vld [vmem:[#allocation6 + $0x4f0] sm:$0xff]  ;;  %v1225_v53 = vld [vmem:[#allocation6 + $0x438] sm:$0xff] }
 0x3fb   :  { %1380 = vmatpush.msrb.mxu0 %v1183_v5  ;;  %1326 = vmatpush.msra.mxu1 %v1158_v24  ;;  %v1193_v5 = vld [vmem:[#allocation6 + $0x338] sm:$0xff] }
 0x3fc   :  { %1439 = vmatpush.msrb.mxu3 %v1188_v12  ;;  %1498 = vmatpush.msra.mxu2 %v1193_v5  ;;  %v1243_v12 = vld [vmem:[#allocation6 + $0x4c8] sm:$0xff]  ;;  %v1257_v24 = vld [vmem:[#allocation6 + $0x538] sm:$0xff] }
 0x3fd   :  { %1381 = vmatpush.msrb.mxu0 %v1179_v63  ;;  %1327 = vmatpush.msra.mxu1 %v1154_v29  ;;  %v1252_v63 = vld [vmem:[#allocation6 + $0x510] sm:$0xff]  ;;  %v1253_v29 = vld [vmem:[#allocation6 + $0x518] sm:$0xff] }
 0x3fe   :  { %1440 = vmatpush.msrb.mxu3 %v1184_v17  ;;  %1499 = vmatpush.msra.mxu2 %v1189_v9  ;;  %v1261_v17 = vld [vmem:[#allocation6 + $0x558] sm:$0xff] }
 0x3ff   :  { %1382 = vmatpush.msrb.mxu0 %v1175_v13  ;;  %1392 = vmatpush.msrb.mxu1 %v1279_v34  ;;  %v1247_v13 = vld [vmem:[#allocation6 + $0x4e8] sm:$0xff]  ;;  %v1169_v34 = vld [vmem:[#allocation6 + $0x278] sm:$0xff] }
 0x400   :  { %1441 = vmatpush.msrb.mxu3 %v1180_v22  ;;  %1500 = vmatpush.msra.mxu2 %v1185_v6  ;;  %v1177_v22 = vld [vmem:[#allocation6 + $0x2b8] sm:$0xff] }
 0x401   :  { %1383 = vmatpush.msrb.mxu0 %v1171_v10  ;;  %1393 = vmatpush.msrb.mxu1 %v1275_v40  ;;  %v1265_v10 = vld [vmem:[#allocation6 + $0x578] sm:$0xff] }
 0x402   :  { %1442 = vmatpush.msrb.mxu3 %v1176_v27  ;;  %v1236_v27 = vld [vmem:[#allocation6 + $0x490] sm:$0xff]  ;;  %v1245_v40 = vld [vmem:[#allocation6 + $0x4d8] sm:$0xff] }
 0x403   :  { %1384 = vmatpush.msrb.mxu0 %v1167_v16  ;;  %1394 = vmatpush.msrb.mxu1 %v1271_v46  ;;  %v1181_v16 = vld [vmem:[#allocation6 + $0x2d8] sm:$0xff] }
 0x404   :  { %1443 = vmatpush.msrb.mxu3 %v1172_v33  ;;  %1501 = vmatpush.msra.mxu2 %v1181_v16  ;;  %v1232_v33 = vld [vmem:[#allocation6 + $0x470] sm:$0xff]  ;;  %v1241_v46 = vld [vmem:[#allocation6 + $0x4b8] sm:$0xff] }
 0x405   :  { %1385 = vmatpush.msrb.mxu0 %v1163_v20  ;;  %1395 = vmatpush.msrb.mxu1 %v1267_v31  ;;  %v1240_v20 = vld [vmem:[#allocation6 + $0x4b0] sm:$0xff]  ;;  %v1157_v31 = vld [vmem:[#allocation6 + $0x218] sm:$0xff] }
 0x406   :  { %1444 = vmatpush.msrb.mxu3 %v1168_v39  ;;  %1502 = vmatpush.msra.mxu2 %v1177_v22  ;;  %v1165_v39 = vld [vmem:[#allocation6 + $0x258] sm:$0xff] }
 0x407   :  { %1386 = vmatpush.msrb.mxu0 %v1159_v26  ;;  %1396 = vmatpush.msrb.mxu1 %v1263_v51  ;;  %v1235_v26 = vld [vmem:[#allocation6 + $0x488] sm:$0xff]  ;;  %v1229_v51 = vld [vmem:[#allocation6 + $0x458] sm:$0xff] }
 0x408   :  { %1445 = vmatpush.msrb.mxu3 %v1164_v44  ;;  %1503 = vmatpush.msra.mxu2 %v1173_v28  ;;  %v1161_v44 = vld [vmem:[#allocation6 + $0x238] sm:$0xff] }
 0x409   :  { %1387 = vmatpush.msrb.mxu0 %v1155_v32  ;;  %v1231_v32 = vld [vmem:[#allocation6 + $0x468] sm:$0xff]  ;;  %v1137_v22 = vld [vmem:[#allocation6 + $0x178] sm:$0xff] }
 0x40a   :  { %1446 = vmatpush.msrb.mxu3 %v1160_v23  ;;  %1504 = vmatpush.msra.mxu2 %v1169_v34  ;;  %v1220_v23 = vld [vmem:[#allocation6 + $0x410] sm:$0xff]  ;;  %v1129_v28 = vld [vmem:[#allocation6 + $0x138] sm:$0xff] }
 0x40b   :  { %v1121_v34 = vld [vmem:[#allocation6 + $0xf8] sm:$0xff] }
 0x40c   :  { %1447 = vmatpush.msrb.mxu3 %v1156_v50  ;;  %1505 = vmatpush.msra.mxu2 %v1165_v39  ;;  %v1233_v50 = vld [vmem:[#allocation6 + $0x478] sm:$0xff]  ;;  %v1604_v39 = vld [vmem:[%s6276_s7 + $0x28] sm:$0xff] }
 0x40e   :  { %1506 = vmatpush.msra.mxu2 %v1161_v44  ;;  %v1602_v44 = vld [vmem:[%s6276_s7 + $0x18] sm:$0xff] }
 0x410   :  { %1507 = vmatpush.msra.mxu2 %v1157_v31  ;;  %v1600_v31 = vld [vmem:[%s6276_s7 + $0x8] sm:$0xff] }
 0x411   :  { %v921_v56 = vpop.f32.mrf.mxu3 }
 0x412   :  { %v5015_v2 = vsel %vm930_vm13, %v4230_v7, %v921_v56  ;;  %v1259_v7 = vld [vmem:[#allocation6 + $0x548] sm:$0xff]  ;;  %v1260_v56 = vld [vmem:[#allocation6 + $0x550] sm:$0xff] }
 0x413   :  { %1308 = vmatmul.f32.vlgmr.msra.gmra.mxu0 %v5015_v2  ;;  %1368 = vmatmul.f32.vlgmr.msra.gmra.mxu3 %v5015_v2 }
 0x414   :  { %1428 = vmatmul.f32.vlgmr.msrb.gmra.mxu2 %v5015_v2  ;;  %1452 = vmatpush.msra.mxu0 %v1280_v37  ;;  %v1227_v37 = vld [vmem:[#allocation6 + $0x448] sm:$0xff] }
 0x415   :  { %1512 = vmatpush.msra.mxu3 %v1281_v0  ;;  %1397 = vmatpush.msrb.mxu1 %v1259_v7  ;;  %v1221_v7 = vld [vmem:[#allocation6 + $0x418] sm:$0xff] }
 0x416   :  { %1453 = vmatpush.msra.mxu0 %v1276_v41  ;;  %v1223_v41 = vld [vmem:[#allocation6 + $0x428] sm:$0xff] }
 0x417   :  { %1513 = vmatpush.msra.mxu3 %v1277_v58  ;;  %1398 = vmatpush.msrb.mxu1 %v1255_v59 }
 0x418   :  { %1454 = vmatpush.msra.mxu0 %v1272_v48  ;;  %v1219_v48 = vld [vmem:[#allocation6 + $0x408] sm:$0xff] }
 0x419   :  { %1514 = vmatpush.msra.mxu3 %v1273_v61  ;;  %1399 = vmatpush.msrb.mxu1 %v1251_v62 }
 0x41a   :  { %1455 = vmatpush.msra.mxu0 %v1268_v49  ;;  %v1237_v49 = vld [vmem:[#allocation6 + $0x498] sm:$0xff] }
 0x41b   :  { %1515 = vmatpush.msra.mxu3 %v1269_v4  ;;  %1400 = vmatpush.msrb.mxu1 %v1247_v13 }
 0x41c   :  { %1456 = vmatpush.msra.mxu0 %v1264_v52 }
 0x41d   :  { %1516 = vmatpush.msra.mxu3 %v1265_v10  ;;  %1401 = vmatpush.msrb.mxu1 %v1243_v12 }
 0x41e   :  { %1457 = vmatpush.msra.mxu0 %v1260_v56 }
 0x41f   :  { %1517 = vmatpush.msra.mxu3 %v1261_v17  ;;  %1402 = vmatpush.msrb.mxu1 %v1239_v19  ;;  %v1141_v19 = vld [vmem:[#allocation6 + $0x198] sm:$0xff] }
 0x420   :  { %1458 = vmatpush.msra.mxu0 %v1256_v60 }
 0x421   :  { %1518 = vmatpush.msra.mxu3 %v1257_v24  ;;  %1403 = vmatpush.msrb.mxu1 %v1235_v26  ;;  %v1610_v24 = vld [vmem:[%s6276_s7 + $0x58] sm:$0xff] }
 0x422   :  { %1459 = vmatpush.msra.mxu0 %v1252_v63  ;;  %v1133_v26 = vld [vmem:[#allocation6 + $0x158] sm:$0xff] }
 0x423   :  { %1519 = vmatpush.msra.mxu3 %v1253_v29  ;;  %1404 = vmatpush.msrb.mxu1 %v1231_v32  ;;  %v1608_v29 = vld [vmem:[%s6276_s7 + $0x48] sm:$0xff]  ;;  %v1125_v32 = vld [vmem:[#allocation6 + $0x118] sm:$0xff] }
 0x424   :  { %1460 = vmatpush.msra.mxu0 %v1248_v14 }
 0x425   :  { %1520 = vmatpush.msra.mxu3 %v1249_v36  ;;  %1405 = vmatpush.msrb.mxu1 %v1227_v37  ;;  %v1117_v36 = vld [vmem:[#allocation6 + $0xd8] sm:$0xff]  ;;  %v1605_v37 = vld [vmem:[%s6276_s7 + $0x30] sm:$0xff] }
 0x426   :  { %1461 = vmatpush.msra.mxu0 %v1244_v15 }
 0x427   :  { %1521 = vmatpush.msra.mxu3 %v1245_v40  ;;  %1406 = vmatpush.msrb.mxu1 %v1223_v41  ;;  %v1109_v40 = vld [vmem:[#allocation6 + $0x98] sm:$0xff]  ;;  %v1603_v41 = vld [vmem:[%s6276_s7 + $0x20] sm:$0xff] }
 0x428   :  { %1462 = vmatpush.msra.mxu0 %v1240_v20  ;;  %v1611_v20 = vld [vmem:[%s6276_s7 + $0x60] sm:$0xff] }
 0x429   :  { %1522 = vmatpush.msra.mxu3 %v1241_v46  ;;  %1407 = vmatpush.msrb.mxu1 %v1219_v48  ;;  %v1101_v46 = vld [vmem:[#allocation6 + $0x58] sm:$0xff]  ;;  %v1601_v48 = vld [vmem:[%s6276_s7 + $0x10] sm:$0xff] }
 0x42a   :  { %1463 = vmatpush.msra.mxu0 %v1236_v27  ;;  %v1609_v27 = vld [vmem:[%s6276_s7 + $0x50] sm:$0xff] }
 0x42b   :  { %1523 = vmatpush.msra.mxu3 %v1237_v49  ;;  %v1093_v49 = vld [vmem:[#allocation6 + $0x18] sm:$0xff] }
 0x42c   :  { %1464 = vmatpush.msra.mxu0 %v1232_v33  ;;  %v1607_v33 = vld [vmem:[%s6276_s7 + $0x40] sm:$0xff] }
 0x42d   :  { %1524 = vmatpush.msra.mxu3 %v1233_v50  ;;  %v1599_v50 = vld [vmem:[%s6276_s7] sm:$0xff] }
 0x42e   :  { %1465 = vmatpush.msra.mxu0 %v1228_v38  ;;  %v1113_v38 = vld [vmem:[#allocation6 + $0xb8] sm:$0xff] }
 0x42f   :  { %1525 = vmatpush.msra.mxu3 %v1229_v51  ;;  %v1630_v51 = vld [vmem:[%s6276_s7 + $0xf8] sm:$0xff] }
 0x430   :  { %1466 = vmatpush.msra.mxu0 %v1224_v1  ;;  %v1105_v1 = vld [vmem:[#allocation6 + $0x78] sm:$0xff] }
 0x431   :  { %1526 = vmatpush.msra.mxu3 %v1225_v53  ;;  %v1628_v53 = vld [vmem:[%s6276_s7 + $0xe8] sm:$0xff] }
 0x432   :  { %1467 = vmatpush.msra.mxu0 %v1220_v23  ;;  %v1097_v23 = vld [vmem:[#allocation6 + $0x38] sm:$0xff] }
 0x433   :  { %1527 = vmatpush.msra.mxu3 %v1221_v7  ;;  %v1626_v7 = vld [vmem:[%s6276_s7 + $0xd8] sm:$0xff] }
 0x43d   :  { %v1033_v58 = vpop.permute.xlu2 %1032 }
 0x43e   :  { %v1071_v61 = vmul.f32 %v4897_v54, %v1033_v58  ;;  %v1153_v54 = vld [vmem:[#allocation6 + $0x1f8] sm:$0xff] }
 0x43f   :  { %v1622_v58 = vld [vmem:[%s6276_s7 + $0xb8] sm:$0xff] }
 0x445   :  { %v1061_v13 = vpop.permute.xlu2 %1060 }
 0x455   :  { %v1026_v52 = vpop.permute.xlu1 %1025 }
 0x456   :  { %v1019_v0 = vpop.permute.xlu0 %1018  ;;  %v1070_v56 = vmul.f32 %v4939_v3, %v1026_v52  ;;  %v1629_v52 = vld [vmem:[%s6276_s7 + $0xf0] sm:$0xff] }
 0x457   :  { %v1069_v57 = vmul.f32 %v4866_v43, %v1019_v0  ;;  %v1075_v43 = vmul.f32 %v4881_v47, %v1061_v13  ;;  %v1613_v47 = vld [vmem:[%s6276_s7 + $0x70] sm:$0xff]  ;;  %v1627_v0 = vld [vmem:[%s6276_s7 + $0xe0] sm:$0xff] }
 0x458   :  { %v1645_v13 = vld [vmem:[%s6276_s7 + $0x170] sm:$0xff] }
 0x459   :  { %v1077_v59 = vadd.f32 %v1070_v56, %v1069_v57  ;;  %v1624_v56 = vld [vmem:[%s6276_s7 + $0xc8] sm:$0xff]  ;;  %v1623_v57 = vld [vmem:[%s6276_s7 + $0xc0] sm:$0xff] }
 0x45b   :  { %v1078_v63 = vadd.f32 %v1077_v59, %v1071_v61  ;;  %v1621_v59 = vld [vmem:[%s6276_s7 + $0xb0] sm:$0xff]  ;;  %v1618_v61 = vld [vmem:[%s6276_s7 + $0x98] sm:$0xff] }
 0x45d   :  { %v1047_v60 = vpop.permute.xlu1 %1046 }
 0x45e   :  { %v1040_v5 = vpop.permute.xlu0 %1039  ;;  %v1073_v4 = vmul.f32 %v4958_v11, %v1047_v60  ;;  %v1149_v11 = vld [vmem:[#allocation6 + $0x1d8] sm:$0xff]  ;;  %v1620_v60 = vld [vmem:[%s6276_s7 + $0xa8] sm:$0xff] }
 0x45f   :  { %v1072_v62 = vmul.f32 %v4874_v45, %v1040_v5  ;;  %v1614_v45 = vld [vmem:[%s6276_s7 + $0x78] sm:$0xff]  ;;  %v1619_v5 = vld [vmem:[%s6276_s7 + $0xa0] sm:$0xff] }
 0x461   :  { %v1079_v9 = vadd.f32 %v1078_v63, %v1072_v62  ;;  %v1617_v62 = vld [vmem:[%s6276_s7 + $0x90] sm:$0xff]  ;;  %v1616_v63 = vld [vmem:[%s6276_s7 + $0x88] sm:$0xff] }
 0x463   :  { %v1080_v6 = vadd.f32 %v1079_v9, %v1073_v4  ;;  %v1615_v9 = vld [vmem:[%s6276_s7 + $0x80] sm:$0xff]  ;;  %v1646_v4 = vld [vmem:[%s6276_s7 + $0x178] sm:$0xff] }
 0x464   :  { %1691 = vmatpush.msrb.mxu2 %v1646_v4  ;;  %v2073_v4 = vld [vmem:[#allocation6 + $0x4a0] sm:$0xff] }
 0x465   :  { %v1068_v3 = vpop.permute.xlu1 %1067 }
 0x466   :  { %v1054_v14 = vpop.permute.xlu0 %1053  ;;  %v1076_v15 = vmul.f32 %v4974_v18, %v1068_v3  ;;  %v1612_v18 = vld [vmem:[%s6276_s7 + $0x68] sm:$0xff]  ;;  %1692 = vmatpush.msrb.mxu2 %v1645_v13  ;;  %v5154_v3 = vld [vmem:[%s6275_s6] sm:$0xf] }
 0x467   :  { %v1074_v10 = vmul.f32 %v4904_v55, %v1054_v14  ;;  %v1145_v55 = vld [vmem:[#allocation6 + $0x1b8] sm:$0xff]  ;;  %v1644_v14 = vld [vmem:[%s6276_s7 + $0x168] sm:$0xff] }
 0x468   :  { %1693 = vmatpush.msrb.mxu2 %v1644_v14  ;;  %v2069_v14 = vld [vmem:[#allocation6 + $0x480] sm:$0xff] }
 0x469   :  { %v1081_v12 = vadd.f32 %v1080_v6, %v1074_v10  ;;  %v1643_v6 = vld [vmem:[%s6276_s7 + $0x160] sm:$0xff]  ;;  %v1642_v10 = vld [vmem:[%s6276_s7 + $0x158] sm:$0xff] }
 0x46a   :  { %1694 = vmatpush.msrb.mxu2 %v1643_v6 }
 0x46b   :  { %v1082_v16 = vadd.f32 %v1081_v12, %v1075_v43  ;;  %v1641_v43 = vld [vmem:[%s6276_s7 + $0x150] sm:$0xff]  ;;  %v1284_v12 = vperm.slane %v5154_v3, 0 }
 0x46c   :  { %1695 = vmatpush.msrb.mxu2 %v1642_v10 }
 0x46d   :  { %v5028_v17 = vadd.f32 %v1082_v16, %v1076_v15  ;;  %v1640_v15 = vld [vmem:[%s6276_s7 + $0x148] sm:$0xff] }
 0x46e   :  { %1696 = vmatpush.msrb.mxu2 %v1641_v43 }
 0x46f   :  { %1328 = vmatmul.f32.vlgmr.msra.gmra.mxu1 %v5028_v17  ;;  %1388 = vmatmul.f32.vlgmr.msrb.gmra.mxu0 %v5028_v17 }
 0x470   :  { %1448 = vmatmul.f32.vlgmr.msrb.gmra.mxu3 %v5028_v17  ;;  %1472 = vmatpush.msra.mxu1 %v1153_v54 }
 0x471   :  { %1508 = vmatmul.f32.vlgmr.msra.gmra.mxu2 %v5028_v17  ;;  %1651 = vmatpush.msrb.mxu0 %v1614_v45  ;;  %v1638_v45 = vld [vmem:[%s6276_s7 + $0x138] sm:$0xff] }
 0x472   :  { %1473 = vmatpush.msra.mxu1 %v1149_v11  ;;  %1697 = vmatpush.msrb.mxu2 %v1640_v15  ;;  %v2065_v15 = vld [vmem:[#allocation6 + $0x460] sm:$0xff] }
 0x473   :  { %1652 = vmatpush.msrb.mxu0 %v1613_v47  ;;  %v1285_v47 = vperm.slane %v5154_v3, 1 }
 0x474   :  { %1474 = vmatpush.msra.mxu1 %v1145_v55 }
 0x475   :  { %1653 = vmatpush.msrb.mxu0 %v1612_v18  ;;  %v1637_v18 = vld [vmem:[%s6276_s7 + $0x130] sm:$0xff] }
 0x476   :  { %1475 = vmatpush.msra.mxu1 %v1141_v19  ;;  %v1349_v19 = vpop.f32.mrf.mxu2 }
 0x477   :  { %1654 = vmatpush.msrb.mxu0 %v1611_v20  ;;  %1408 = vmatmul.f32.vlgmr.msrb.gmra.mxu1 %v4860_v42 }
 0x478   :  { %1468 = vmatmul.f32.vlgmr.msra.gmra.mxu0 %v4860_v42  ;;  %1476 = vmatpush.msra.mxu1 %v1137_v22 }
 0x479   :  { %1528 = vmatmul.f32.vlgmr.msra.gmra.mxu3 %v4860_v42  ;;  %1655 = vmatpush.msrb.mxu0 %v1610_v24  ;;  %v1606_v42 = vld [vmem:[%s6276_s7 + $0x38] sm:$0xff]  ;;  %v1636_v24 = vld [vmem:[%s6276_s7 + $0x128] sm:$0xff] }
 0x47a   :  { %1477 = vmatpush.msra.mxu1 %v1133_v26 }
 0x47b   :  { %1656 = vmatpush.msrb.mxu0 %v1609_v27 }
 0x47c   :  { %1478 = vmatpush.msra.mxu1 %v1129_v28  ;;  %v1635_v28 = vld [vmem:[%s6276_s7 + $0x120] sm:$0xff] }
 0x47d   :  { %1657 = vmatpush.msrb.mxu0 %v1608_v29 }
 0x47e   :  { %1479 = vmatpush.msra.mxu1 %v1125_v32 }
 0x47f   :  { %1658 = vmatpush.msrb.mxu0 %v1607_v33  ;;  %v1634_v33 = vld [vmem:[%s6276_s7 + $0x118] sm:$0xff] }
 0x480   :  { %1480 = vmatpush.msra.mxu1 %v1121_v34 }
 0x481   :  { %1659 = vmatpush.msrb.mxu0 %v1606_v42 }
 0x482   :  { %1481 = vmatpush.msra.mxu1 %v1117_v36  ;;  %v1633_v36 = vld [vmem:[%s6276_s7 + $0x110] sm:$0xff] }
 0x483   :  { %1660 = vmatpush.msrb.mxu0 %v1605_v37 }
 0x484   :  { %1482 = vmatpush.msra.mxu1 %v1113_v38  ;;  %v1632_v38 = vld [vmem:[%s6276_s7 + $0x108] sm:$0xff] }
 0x485   :  { %1661 = vmatpush.msrb.mxu0 %v1604_v39  ;;  %v1631_v39 = vld [vmem:[%s6276_s7 + $0x100] sm:$0xff] }
 0x486   :  { %1483 = vmatpush.msra.mxu1 %v1109_v40  ;;  %v2113_v40 = vld [vmem:[#allocation6 + $0x5e0] sm:$0xff] }
 0x487   :  { %1662 = vmatpush.msrb.mxu0 %v1603_v41 }
 0x488   :  { %1484 = vmatpush.msra.mxu1 %v1105_v1  ;;  %v2109_v1 = vld [vmem:[#allocation6 + $0x5c0] sm:$0xff] }
 0x489   :  { %1663 = vmatpush.msrb.mxu0 %v1602_v44  ;;  %v2105_v44 = vld [vmem:[#allocation6 + $0x5a0] sm:$0xff] }
 0x48a   :  { %1485 = vmatpush.msra.mxu1 %v1101_v46 }
 0x48b   :  { %1664 = vmatpush.msrb.mxu0 %v1601_v48 }
 0x48c   :  { %1486 = vmatpush.msra.mxu1 %v1097_v23 }
 0x48d   :  { %1665 = vmatpush.msrb.mxu0 %v1600_v31  ;;  %v2101_v31 = vld [vmem:[#allocation6 + $0x580] sm:$0xff] }
 0x48e   :  { %1487 = vmatpush.msra.mxu1 %v1093_v49  ;;  %v2097_v49 = vld [vmem:[#allocation6 + $0x560] sm:$0xff] }
 0x48f   :  { %1666 = vmatpush.msrb.mxu0 %v1599_v50  ;;  %1488 = vmatmul.f32.vlgmr.msra.gmra.mxu1 %v5015_v2  ;;  %v2093_v50 = vld [vmem:[#allocation6 + $0x540] sm:$0xff] }
 0x490   :  { %1667 = vmatmul.f32.vlgmr.msrb.gmra.mxu0 %v5015_v2  ;;  %1671 = vmatpush.msrb.mxu1 %v1630_v51  ;;  %v1625_v2 = vld [vmem:[%s6276_s7 + $0xd0] sm:$0xff]  ;;  %v1309_v16 = vpop.f32.mrf.mxu0 }
 0x491   :  { %v1310_v54 = vadd.f32 %v1309_v16, %v1284_v12 }
 0x492   :  { %1672 = vmatpush.msrb.mxu1 %v1629_v52 }
 0x494   :  { %1673 = vmatpush.msrb.mxu1 %v1628_v53  ;;  %v2089_v53 = vld [vmem:[#allocation6 + $0x520] sm:$0xff] }
 0x496   :  { %1674 = vmatpush.msrb.mxu1 %v1627_v0  ;;  %v1369_v20 = vpop.f32.mrf.mxu3 }
 0x497   :  { %v1370_v27 = vadd.f32 %v1369_v20, %v1285_v47  ;;  %v1429_v51 = vpop.f32.mrf.mxu2  ;;  %v2057_v47 = vld [vmem:[#allocation6 + $0x420] sm:$0xff] }
 0x498   :  { %1675 = vmatpush.msrb.mxu1 %v1626_v7  ;;  %v2085_v7 = vld [vmem:[#allocation6 + $0x500] sm:$0xff] }
 0x49a   :  { %1676 = vmatpush.msrb.mxu1 %v1625_v2 }
 0x49c   :  { %1677 = vmatpush.msrb.mxu1 %v1624_v56  ;;  %v1287_v56 = vperm.slane %v5154_v3, 3 }
 0x49e   :  { %1678 = vmatpush.msrb.mxu1 %v1623_v57 }
 0x4a0   :  { %1679 = vmatpush.msrb.mxu1 %v1622_v58  ;;  %v2081_v58 = vld [vmem:[#allocation6 + $0x4e0] sm:$0xff] }
 0x4a2   :  { %1680 = vmatpush.msrb.mxu1 %v1621_v59 }
 0x4a4   :  { %1681 = vmatpush.msrb.mxu1 %v1620_v60 }
 0x4a6   :  { %1682 = vmatpush.msrb.mxu1 %v1619_v5  ;;  %v2077_v5 = vld [vmem:[#allocation6 + $0x4c0] sm:$0xff] }
 0x4a8   :  { %1683 = vmatpush.msrb.mxu1 %v1618_v61  ;;  %v1286_v61 = vperm.slane %v5154_v3, 2 }
 0x4aa   :  { %1684 = vmatpush.msrb.mxu1 %v1617_v62  ;;  %v1430_v43 = vadd.f32 %v1429_v51, %v1286_v61 }
 0x4ac   :  { %1685 = vmatpush.msrb.mxu1 %v1616_v63 }
 0x4ae   :  { %1686 = vmatpush.msrb.mxu1 %v1615_v9 }
 0x4af   :  { %1687 = vmatmul.f32.vlgmr.msrb.gmra.mxu1 %v5028_v17  ;;  %v1639_v17 = vld [vmem:[%s6276_s7 + $0x140] sm:$0xff] }
 0x4b0   :  { %1698 = vmatpush.msrb.mxu2 %v1639_v17 }
 0x4b2   :  { %1699 = vmatpush.msrb.mxu2 %v1638_v45  ;;  %v2061_v45 = vld [vmem:[#allocation6 + $0x440] sm:$0xff] }
 0x4b4   :  { %1700 = vmatpush.msrb.mxu2 %v1637_v18  ;;  %v2053_v18 = vld [vmem:[#allocation6 + $0x400] sm:$0xff] }
 0x4b6   :  { %1701 = vmatpush.msrb.mxu2 %v1636_v24 }
 0x4b8   :  { %1702 = vmatpush.msrb.mxu2 %v1635_v28 }
 0x4ba   :  { %1703 = vmatpush.msrb.mxu2 %v1634_v33 }
 0x4bc   :  { %1704 = vmatpush.msrb.mxu2 %v1633_v36 }
 0x4be   :  { %1705 = vmatpush.msrb.mxu2 %v1632_v38 }
 0x4c0   :  { %1706 = vmatpush.msrb.mxu2 %v1631_v39 }
 0x4c2   :  { %2167 = vmatpush.msra.mxu2 %v2113_v40 }
 0x4c4   :  { %2168 = vmatpush.msra.mxu2 %v2109_v1 }
 0x4c6   :  { %2169 = vmatpush.msra.mxu2 %v2105_v44 }
 0x4c8   :  { %2170 = vmatpush.msra.mxu2 %v2101_v31 }
 0x4ca   :  { %2171 = vmatpush.msra.mxu2 %v2097_v49 }
 0x4cc   :  { %2172 = vmatpush.msra.mxu2 %v2093_v50 }
 0x4ce   :  { %2173 = vmatpush.msra.mxu2 %v2089_v53 }
 0x4d0   :  { %2174 = vmatpush.msra.mxu2 %v2085_v7 }
 0x4d2   :  { %2175 = vmatpush.msra.mxu2 %v2081_v58 }
 0x4d4   :  { %2176 = vmatpush.msra.mxu2 %v2077_v5 }
 0x4d6   :  { %2177 = vmatpush.msra.mxu2 %v2073_v4 }
 0x4d8   :  { %2178 = vmatpush.msra.mxu2 %v2069_v14 }
 0x4da   :  { %2179 = vmatpush.msra.mxu2 %v2065_v15  ;;  %v1738_v15 = vld [vmem:[%s6273_s4 + $0x78] sm:$0xff] }
 0x4db   :  { %1739 = vmatpush.msrb.mxu3 %v1738_v15 }
 0x4dc   :  { %2180 = vmatpush.msra.mxu2 %v2061_v45  ;;  %v1734_v45 = vld [vmem:[%s6273_s4 + $0x58] sm:$0xff] }
 0x4de   :  { %2181 = vmatpush.msra.mxu2 %v2057_v47 }
 0x4e0   :  { %2182 = vmatpush.msra.mxu2 %v2053_v18  ;;  %v1731_v18 = vld [vmem:[%s6273_s4 + $0x40] sm:$0xff] }
 0x4ec   :  { %v1329_v11 = vpop.f32.mrf.mxu1  ;;  %v1389_v26 = vpop.f32.mrf.mxu0 }
 0x4ed   :  { %v1330_v55 = vadd.f32 %v1329_v11, %v1310_v54  ;;  %v1390_v32 = vadd.f32 %v1389_v26, %v1370_v27 }
 0x4ef   :  { %v1350_v22 = vadd.f32 %v1349_v19, %v1330_v55 }
 0x4f1   :  { %v4231_v29 = vmul.f32 -1.442695, %v1350_v22 }
 0x4f3   :  { %4301 = vpow2.f32 %v4231_v29  ;;  %v1449_v52 = vpop.f32.mrf.mxu3 }
 0x4f4   :  { %v1409_v34 = vpop.f32.mrf.mxu1  ;;  %v1509_v63 = vpop.f32.mrf.mxu2  ;;  %v1450_v17 = vadd.f32 %v1449_v52, %v1430_v43  ;;  %v5268_v43 = vld [vmem:[%s6271_s2 + $0x38] sm:$0xff] }
 0x4f5   :  { %v1410_v42 = vadd.f32 %v1409_v34, %v1390_v32  ;;  %v1469_v3 = vpop.f32.mrf.mxu0 }
 0x4f6   :  { %v1470_v20 = vadd.f32 %v1469_v3, %v1450_v17  ;;  %v1736_v17 = vld [vmem:[%s6273_s4 + $0x68] sm:$0xff] }
 0x4f7   :  { %v4232_v37 = vmul.f32 -1.442695, %v1410_v42 }
 0x4f9   :  { %4303 = vpow2.f32 %v4232_v37  ;;  %v4302_v41 = vpop.eup %4301 }
 0x4fa   :  { %v5191_v48 = vadd.f32 1.0, %v4302_v41 }
 0x4fc   :  { %v1529_v10 = vpop.f32.mrf.mxu3  ;;  %v1547_v26 = vand.u32 2147483648, %v5191_v48  ;;  %vm1541_vm11 = vweird.f32 %v5191_v48  ;;  %v1545_v27 = vand.u32 2147483647, %v5191_v48 }
 0x4fe   :  { %v1548_v42 = vor.u32 1.1754944e-38, %v1547_v26  ;;  %vm1546_vm7 = vcmp.eq.f32.partialorder %v1545_v27, 8.507059e+37  ;;  %v1728_v26 = vld [vmem:[%s6273_s4 + $0x28] sm:$0xff]  ;;  %v1727_v27 = vld [vmem:[%s6273_s4 + $0x20] sm:$0xff] }
 0x4ff   :  { %v4304_v46 = vpop.eup %4303 }
 0x500   :  { %v5193_v23 = vadd.f32 1.0, %v4304_v46 }
 0x502   :  { %4305 = vrcp.f32 %v5193_v23  ;;  %v1566_v19 = vand.u32 2147483648, %v5193_v23  ;;  %vm1560_vm15 = vweird.f32 %v5193_v23  ;;  %v1564_v24 = vand.u32 2147483647, %v5193_v23 }
 0x503   :  { %4307 = vrcp.f32 %v5191_v48 }
 0x504   :  { %v1567_v32 = vor.u32 1.1754944e-38, %v1566_v19  ;;  %vm1565_vm8 = vcmp.eq.f32.partialorder %v1564_v24, 8.507059e+37  ;;  %v1730_v19 = vld [vmem:[%s6273_s4 + $0x38] sm:$0xff]  ;;  %v1729_v24 = vld [vmem:[%s6273_s4 + $0x30] sm:$0xff] }
 0x508   :  { %v4306_v0 = vpop.eup %4305 }
 0x509   :  { %v5197_v2 = vpop.eup %4307  ;;  %v1556_v57 = vmul.f32 %v4306_v0, %v5193_v23  ;;  %vm1561_vm14 = vweird.f32 %v4306_v0 }
 0x50a   :  { %v1537_v59 = vmul.f32 %v5197_v2, %v5191_v48  ;;  %vm1542_vm9 = vweird.f32 %v5197_v2  ;;  %vm1562_vm10 = vmor %vm1560_vm15, %vm1561_vm14 }
 0x50b   :  { %v1557_v9 = vsub.f32 1.0, %v1556_v57  ;;  %vm1543_vm13 = vmor %vm1541_vm11, %vm1542_vm9  ;;  %v5239_v57 = vld [vmem:[%s6271_s2 + $0x30] sm:$0xff]  ;;  %vm6287_vm11 = vcmp.gt.f32.partialorder %v4597_v35, 0.5 }
 0x50c   :  { %v1489_v60 = vpop.f32.mrf.mxu1  ;;  %v1538_v6 = vsub.f32 1.0, %v1537_v59  ;;  %v4273_v59 = vld [vmem:[%s6277_s8] ss:$0 sm:$0xff] }
 0x50d   :  { %v1490_v62 = vadd.f32 %v1489_v60, %v1287_v56  ;;  %v1558_v16 = vmul.f32 %v4306_v0, %v1557_v9  ;;  %v1668_v60 = vpop.f32.mrf.mxu0 }
 0x50e   :  { %v1539_v11 = vmul.f32 %v5197_v2, %v1538_v6  ;;  %v1669_v61 = vadd.f32 %v4273_v59, %v1668_v60  ;;  %v5261_v6 = vld [vmem:[%s6271_s2 + $0x20] sm:$0xff] }
 0x50f   :  { %v1510_v13 = vadd.f32 %v1509_v63, %v1490_v62  ;;  %v1559_v55 = vadd.f32 %v4306_v0, %v1558_v16  ;;  %v1737_v16 = vld [vmem:[%s6273_s4 + $0x70] sm:$0xff] }
 0x510   :  { %v1540_v22 = vadd.f32 %v5197_v2, %v1539_v11  ;;  %1740 = vmatpush.msrb.mxu3 %v1737_v16  ;;  %v1733_v11 = vld [vmem:[%s6273_s4 + $0x50] sm:$0xff] }
 0x511   :  { %v1530_v12 = vadd.f32 %v1529_v10, %v1510_v13  ;;  %v1563_v28 = vsel %vm1562_vm10, %v4306_v0, %v1559_v55  ;;  %v5224_v0 = vld [vmem:[%s6271_s2] sm:$0xff]  ;;  %v5254_v13 = vld [vmem:[%s6271_s2 + $0x8] sm:$0xff] }
 0x512   :  { %v1544_v33 = vsel %vm1543_vm13, %v5197_v2, %v1540_v22  ;;  %v1568_v36 = vsel %vm1565_vm8, %v1567_v32, %v1563_v28  ;;  %v5232_v2 = vld [vmem:[%s6271_s2 + $0x18] sm:$0xff]  ;;  %1741 = vmatpush.msrb.mxu3 %v1736_v17  ;;  %v1732_v55 = vld [vmem:[%s6273_s4 + $0x48] sm:$0xff]  ;;  %vm6288_vm13 = vcmask 64512  }
 0x513   :  { %v4233_v54 = vmul.f32 -1.442695, %v1530_v12  ;;  %v1549_v37 = vsel %vm1546_vm7, %v1548_v42, %v1544_v33  ;;  %v1590_v38 = vmul.f32 %v1568_v36, %v4857_v30  ;;  %v1726_v28 = vld [vmem:[%s6273_s4 + $0x18] sm:$0xff]  ;;  %v1725_v33 = vld [vmem:[%s6273_s4 + $0x10] sm:$0xff]  ;;  %v1723_v42 = vld [vmem:[%s6273_s4] sm:$0xff] }
 0x515   :  { %4309 = vpow2.f32 %v4233_v54  ;;  %v1735_v54 = vld [vmem:[%s6273_s4 + $0x60] sm:$0xff] }
 0x516   :  { %4311 = vtanh.f32 %v1470_v20  ;;  %1742 = vmatpush.msrb.mxu3 %v1735_v54  ;;  %v5303_v20 = vld [vmem:[%s6271_s2 + $0x10] sm:$0xff] }
 0x518   :  { %1743 = vmatpush.msrb.mxu3 %v1734_v45 }
 0x51a   :  { %1744 = vmatpush.msrb.mxu3 %v1733_v11 }
 0x51b   :  { %v4310_v29 = vpop.eup %4309 }
 0x51c   :  { %v1574_v34 = vadd.f32 1.0, %v4310_v29  ;;  %v4312_v39 = vpop.eup %4311  ;;  %1745 = vmatpush.msrb.mxu3 %v1732_v55  ;;  %v5322_v29 = vld [vmem:[%s6271_s2 + $0x28] sm:$0xff] }
 0x51d   :  { %v1591_v40 = vmul.f32 %v4312_v39, %v1549_v37 }
 0x51e   :  { %4313 = vrcp.f32 %v1574_v34  ;;  %v1586_v48 = vand.u32 2147483648, %v1574_v34  ;;  %v1584_v31 = vand.u32 2147483647, %v1574_v34  ;;  %vm1580_vm8 = vweird.f32 %v1574_v34  ;;  %1746 = vmatpush.msrb.mxu3 %v1731_v18 }
 0x51f   :  { %v5215_v1 = vadd.f32 %v1591_v40, %v1590_v38 }
 0x520   :  { %v1587_v50 = vor.u32 1.1754944e-38, %v1586_v48  ;;  %vm1585_vm7 = vcmp.eq.f32.partialorder %v1584_v31, 8.507059e+37  ;;  %1747 = vmatpush.msrb.mxu3 %v1730_v19 }
 0x521   :  { %4315 = vtanh.f32 %v5215_v1 }
 0x522   :  { %1748 = vmatpush.msrb.mxu3 %v1729_v24 }
 0x524   :  { %v4314_v41 = vpop.eup %4313  ;;  %1749 = vmatpush.msrb.mxu3 %v1728_v26  ;;  %v1985_v26 = vld [vmem:[#allocation6 + $0x1e0] sm:$0xff] }
 0x525   :  { %v1576_v44 = vmul.f32 %v4314_v41, %v1574_v34  ;;  %vm1581_vm14 = vweird.f32 %v4314_v41  ;;  %v1724_v34 = vld [vmem:[%s6273_s4 + $0x8] sm:$0xff]  ;;  %2127 = vmatpush.msra.mxu0 %v1985_v26 }
 0x526   :  { %vm1582_vm15 = vmor %vm1580_vm8, %vm1581_vm14  ;;  %1750 = vmatpush.msrb.mxu3 %v1727_v27  ;;  %v1986_v27 = vld [vmem:[#allocation6 + $0x1e8] sm:$0xff] }
 0x527   :  { %v1577_v46 = vsub.f32 1.0, %v1576_v44  ;;  %v4316_v30 = vpop.eup %4315  ;;  %vm6289_vm14 = vmmov %vm6288_vm13  ;;  %v1942_v26 = vld [vmem:[#allocation6 + $0x88] sm:$0xff] }
 0x528   :  { %1751 = vmatpush.msrb.mxu3 %v1726_v28  ;;  %v1987_v28 = vld [vmem:[#allocation6 + $0x1f0] sm:$0xff] }
 0x529   :  { %v1578_v23 = vmul.f32 %v4314_v41, %v1577_v46 }
 0x52a   :  { %1752 = vmatpush.msrb.mxu3 %v1725_v33  ;;  %v1981_v33 = vld [vmem:[#allocation6 + $0x1c0] sm:$0xff] }
 0x52b   :  { %v1579_v49 = vadd.f32 %v4314_v41, %v1578_v23  ;;  %2128 = vmatpush.msra.mxu0 %v1981_v33  ;;  %v1939_v33 = vld [vmem:[#allocation6 + $0x70] sm:$0xff] }
 0x52c   :  { %v1688_v5 = vpop.f32.mrf.mxu1  ;;  %1753 = vmatpush.msrb.mxu3 %v1724_v34  ;;  %v1982_v34 = vld [vmem:[#allocation6 + $0x1c8] sm:$0xff] }
 0x52d   :  { %v1583_v51 = vsel %vm1582_vm15, %v4314_v41, %v1579_v49  ;;  %v1689_v62 = vadd.f32 %v1688_v5, %v1669_v61 }
 0x52e   :  { %v1588_v52 = vsel %vm1585_vm7, %v1587_v50, %v1583_v51  ;;  %1754 = vmatpush.msrb.mxu3 %v1723_v42  ;;  %v1983_v42 = vld [vmem:[#allocation6 + $0x1d0] sm:$0xff] }
 0x52f   :  { %v5218_v53 = vmul.f32 %v4316_v30, %v1588_v52 }
 0x530   :  { %2187 = vmatpush.msra.mxu3 %v1986_v27  ;;  %v1943_v27 = vld [vmem:[#allocation6 + $0x90] sm:$0xff] }
 0x531   :  { %1707 = vmatmul.f32.vlgmr.msrb.gmra.mxu2 %v5218_v53  ;;  %v1767_v7 = vmul.f32 %v5224_v0, %v5218_v53  ;;  %v1770_v56 = vmul.f32 %v5232_v2, %v5218_v53  ;;  %v1773_v58 = vmul.f32 %v5239_v57, %v5218_v53  ;;  %v1768_v14 = vmul.f32 %v5254_v13, %v5218_v53 }
 0x532   :  { %v1771_v10 = vmul.f32 %v5261_v6, %v5218_v53  ;;  %v1774_v12 = vmul.f32 %v5268_v43, %v5218_v53  ;;  %v1769_v22 = vmul.f32 %v5303_v20, %v5218_v53  ;;  %v1772_v32 = vmul.f32 %v5322_v29, %v5218_v53  ;;  %2247 = vmatpush.msrb.mxu2 %v1987_v28  ;;  %v1937_v28 = vld [vmem:[#allocation6 + $0x60] sm:$0xff] }
 0x533   :  { %1775 = vadd.xlane.f32.xlu1 %v1767_v7  ;;  %2188 = vmatpush.msra.mxu3 %v1982_v34  ;;  %v1933_v34 = vld [vmem:[#allocation6 + $0x40] sm:$0xff] }
 0x534   :  { %2248 = vmatpush.msrb.mxu2 %v1983_v42  ;;  %v1934_v42 = vld [vmem:[#allocation6 + $0x48] sm:$0xff] }
 0x539   :  { %2183 = vmatmul.f32.vlgmr.msra.gmra.mxu2 %v5218_v53 }
 0x53b   :  { %1781 = vadd.xlane.f32.xlu1 %v1770_v56 }
 0x543   :  { %1787 = vadd.xlane.f32.xlu1 %v1773_v58 }
 0x5a6   :  { %v1776_v36 = vpop.xlane.xlu1 %1775 }
 0x5a7   :  { %v1799_v46 = vperm.slane %v1776_v36, %v4582_v21  ;;  %v1977_v36 = vld [vmem:[#allocation6 + $0x1a0] sm:$0xff] }
 0x5a8   :  { %2129 = vmatpush.msra.mxu0 %v1977_v36  ;;  %v1935_v36 = vld [vmem:[#allocation6 + $0x50] sm:$0xff] }
 0x5ae   :  { %v1782_v39 = vpop.xlane.xlu1 %1781 }
 0x5af   :  { %v1802_v49 = vperm.slane %v1782_v39, %v4582_v21  ;;  %v1979_v39 = vld [vmem:[#allocation6 + $0x1b0] sm:$0xff] }
 0x5b0   :  { %2249 = vmatpush.msrb.mxu2 %v1979_v39 }
 0x5b4   :  { %v1708_v63 = vpop.f32.mrf.mxu2 }
 0x5b5   :  { %v1709_v9 = vadd.f32 %v1708_v63, %v1689_v62 }
 0x5b6   :  { %v1788_v50 = vpop.xlane.xlu1 %1787 }
 0x5b7   :  { %4234 = vst [vmem:[%s6280_s11 + $0x8] sm:$0xff] %v1709_v9  ;;  %v1713_v4 = vsel %vm80_vm12, %v1709_v9, -1e+30  ;;  %v1805_v58 = vperm.slane %v1788_v50, %v4582_v21 }
 0x5b8   :  { %1714 = vmax.xlane.f32.xlu0 %v1713_v4 }
 0x5c0   :  { %1777 = vadd.xlane.f32.xlu0 %v1768_v14 }
 0x5c8   :  { %1783 = vadd.xlane.f32.xlu0 %v1771_v10 }
 0x5d0   :  { %1789 = vadd.xlane.f32.xlu0 %v1774_v12 }
 0x62b   :  { %v1715_v3 = vpop.xlane.xlu0 %1714 }
 0x62c   :  { %vm1716_vm9 = vcmp.eq.f32.partialorder %v1713_v4, %v1715_v3 }
 0x62d   :  { %v1717_v47 = vsel %vm1716_vm9, %v4918_v8, 1e+09 }
 0x62e   :  { %1718 = vmin.xlane.f32.xlu2 %v1717_v47 }
 0x633   :  { %v1778_v37 = vpop.xlane.xlu0 %1777 }
 0x634   :  { %v1800_v41 = vperm.slane %v1778_v37, %v4582_v21  ;;  %v1978_v37 = vld [vmem:[#allocation6 + $0x1a8] sm:$0xff] }
 0x635   :  { %2189 = vmatpush.msra.mxu3 %v1978_v37 }
 0x636   :  { %1779 = vadd.xlane.f32.xlu2 %v1769_v22  ;;  %v1807_v23 = vsel %vm130_vm0, %v1800_v41, %v1799_v46  ;;  %v1973_v41 = vld [vmem:[#allocation6 + $0x180] sm:$0xff] }
 0x637   :  { %2130 = vmatpush.msra.mxu0 %v1973_v41  ;;  %v1931_v41 = vld [vmem:[#allocation6 + $0x30] sm:$0xff] }
 0x63b   :  { %v1784_v40 = vpop.xlane.xlu0 %1783 }
 0x63c   :  { %v1803_v30 = vperm.slane %v1784_v40, %v4582_v21 }
 0x63e   :  { %1785 = vadd.xlane.f32.xlu2 %v1772_v32 }
 0x643   :  { %v1790_v52 = vpop.xlane.xlu0 %1789 }
 0x644   :  { %v1806_v60 = vperm.slane %v1790_v52, %v4582_v21  ;;  %v1965_v52 = vld [vmem:[#allocation6 + $0x140] sm:$0xff] }
 0x6a1   :  { %v1719_v38 = vpop.xlane.xlu2 %1718 }
 0x6a2   :  { %vm1720_vm10 = vcmp.eq.f32.partialorder %v4918_v8, %v1719_v38 }
 0x6a3   :  { %4236 = vmatmul.msk.f32.vlgmr.msrb.gmra.mxu3 %vm1720_vm10, %v4454_v25 }
 0x6a9   :  { %v1780_v44 = vpop.xlane.xlu2 %1779 }
 0x6aa   :  { %v1801_v48 = vperm.slane %v1780_v44, %v4582_v21  ;;  %v1974_v44 = vld [vmem:[#allocation6 + $0x188] sm:$0xff] }
 0x6ab   :  { %2190 = vmatpush.msra.mxu3 %v1974_v44  ;;  %v1925_v44 = vld [vmem:[#allocation6] sm:$0xff] }
 0x6ac   :  { %v1808_v31 = vsel %vm132_vm1, %v1801_v48, %v1807_v23  ;;  %v1975_v23 = vld [vmem:[#allocation6 + $0x190] sm:$0xff] }
 0x6ad   :  { %v1809_v51 = vsel %vm134_vm2, %v1802_v49, %v1808_v31  ;;  %v1969_v31 = vld [vmem:[#allocation6 + $0x160] sm:$0xff]  ;;  %v1970_v49 = vld [vmem:[#allocation6 + $0x168] sm:$0xff]  ;;  %2250 = vmatpush.msrb.mxu2 %v1975_v23 }
 0x6ae   :  { %v1810_v59 = vsel %vm136_vm3, %v1803_v30, %v1809_v51  ;;  %v1971_v51 = vld [vmem:[#allocation6 + $0x170] sm:$0xff]  ;;  %2131 = vmatpush.msra.mxu0 %v1969_v31  ;;  %2191 = vmatpush.msra.mxu3 %v1970_v49  ;;  %v2049_v23 = vld [vmem:[#allocation6 + $0x3e0] sm:$0xff]  ;;  %v2050_v31 = vld [vmem:[#allocation6 + $0x3e8] sm:$0xff] }
 0x6af   :  { %2251 = vmatpush.msrb.mxu2 %v1971_v51  ;;  %v2045_v49 = vld [vmem:[#allocation6 + $0x3c0] sm:$0xff]  ;;  %2147 = vmatpush.msra.mxu1 %v2049_v23  ;;  %v2115_v23 = vld [vmem:[#allocation6 + $0x5f0] sm:$0xff] }
 0x6b0   :  { %2132 = vmatpush.msra.mxu0 %v1965_v52  ;;  %v2041_v51 = vld [vmem:[#allocation6 + $0x3a0] sm:$0xff]  ;;  %v2051_v52 = vld [vmem:[#allocation6 + $0x3f0] sm:$0xff] }
 0x6b1   :  { %v1786_v7 = vpop.xlane.xlu2 %1785  ;;  %2148 = vmatpush.msra.mxu1 %v2045_v49  ;;  %v2110_v49 = vld [vmem:[#allocation6 + $0x5c8] sm:$0xff] }
 0x6b2   :  { %v1804_v56 = vperm.slane %v1786_v7, %v4582_v21  ;;  %v1966_v7 = vld [vmem:[#allocation6 + $0x148] sm:$0xff] }
 0x6b3   :  { %2192 = vmatpush.msra.mxu3 %v1966_v7  ;;  %v2037_v7 = vld [vmem:[#allocation6 + $0x380] sm:$0xff]  ;;  %2149 = vmatpush.msra.mxu1 %v2041_v51  ;;  %v2111_v51 = vld [vmem:[#allocation6 + $0x5d0] sm:$0xff] }
 0x6b4   :  { %v1811_v5 = vsel %vm138_vm4, %v1804_v56, %v1810_v59 }
 0x6b5   :  { %v1812_v61 = vsel %vm140_vm5, %v1805_v58, %v1811_v5  ;;  %v1967_v58 = vld [vmem:[#allocation6 + $0x150] sm:$0xff]  ;;  %v1962_v5 = vld [vmem:[#allocation6 + $0x128] sm:$0xff]  ;;  %2150 = vmatpush.msra.mxu1 %v2037_v7 }
 0x6b6   :  { %v1813_v62 = vsel %vm142_vm6, %v1806_v60, %v1812_v61  ;;  %v1961_v60 = vld [vmem:[#allocation6 + $0x120] sm:$0xff]  ;;  %2252 = vmatpush.msrb.mxu2 %v1967_v58  ;;  %2193 = vmatpush.msra.mxu3 %v1962_v5  ;;  %v2047_v58 = vld [vmem:[#allocation6 + $0x3d0] sm:$0xff]  ;;  %v2034_v5 = vld [vmem:[#allocation6 + $0x368] sm:$0xff] }
 0x6b7   :  { %v1815_v63 = vsel %vm6287_vm11, %v1813_v62, -1e+09  ;;  %v1963_v62 = vld [vmem:[#allocation6 + $0x130] sm:$0xff]  ;;  %2133 = vmatpush.msra.mxu0 %v1961_v60  ;;  %v2033_v60 = vld [vmem:[#allocation6 + $0x360] sm:$0xff] }
 0x6b8   :  { %v1816_v9 = vsel %vm6288_vm13, %v1815_v63, -inf  ;;  %2253 = vmatpush.msrb.mxu2 %v1963_v62  ;;  %v2029_v62 = vld [vmem:[#allocation6 + $0x340] sm:$0xff]  ;;  %2151 = vmatpush.msra.mxu1 %v2033_v60  ;;  %v2107_v7 = vld [vmem:[#allocation6 + $0x5b0] sm:$0xff] }
 0x6b9   :  { %v1817_v4 = vrot.slane %v1816_v9, 4  ;;  %v2103_v60 = vld [vmem:[#allocation6 + $0x590] sm:$0xff] }
 0x6ba   :  { %2152 = vmatpush.msra.mxu1 %v2029_v62  ;;  %v2098_v62 = vld [vmem:[#allocation6 + $0x568] sm:$0xff] }
 0x6bb   :  { %v1818_v14 = vmax.f32 %v1816_v9, %v1817_v4 }
 0x6bd   :  { %v1819_v10 = vrot.slane %v1818_v14, 2 }
 0x6bf   :  { %v1820_v12 = vmax.f32 %v1818_v14, %v1819_v10  ;;  %v1957_v14 = vld [vmem:[#allocation6 + $0x100] sm:$0xff]  ;;  %v1958_v10 = vld [vmem:[#allocation6 + $0x108] sm:$0xff] }
 0x6c0   :  { %2134 = vmatpush.msra.mxu0 %v1957_v14  ;;  %2194 = vmatpush.msra.mxu3 %v1958_v10  ;;  %v2026_v14 = vld [vmem:[#allocation6 + $0x328] sm:$0xff]  ;;  %v2021_v10 = vld [vmem:[#allocation6 + $0x300] sm:$0xff] }
 0x6c1   :  { %v1821_v15 = vrot.slane %v1820_v12, 1 }
 0x6c3   :  { %v1822_v16 = vmax.f32 %v1820_v12, %v1821_v15  ;;  %v1959_v12 = vld [vmem:[#allocation6 + $0x110] sm:$0xff]  ;;  %v1953_v15 = vld [vmem:[#allocation6 + $0xe0] sm:$0xff] }
 0x6c4   :  { %2254 = vmatpush.msrb.mxu2 %v1959_v12  ;;  %2135 = vmatpush.msra.mxu0 %v1953_v15  ;;  %v2022_v12 = vld [vmem:[#allocation6 + $0x308] sm:$0xff]  ;;  %v2017_v15 = vld [vmem:[#allocation6 + $0x2e0] sm:$0xff] }
 0x6c5   :  { %v1823_v17 = vsub.f32 %v1815_v63, %v1822_v16  ;;  %v1954_v16 = vld [vmem:[#allocation6 + $0xe8] sm:$0xff] }
 0x6c6   :  { %2195 = vmatpush.msra.mxu3 %v1954_v16  ;;  %v2018_v16 = vld [vmem:[#allocation6 + $0x2e8] sm:$0xff] }
 0x6c7   :  { %v1824_v54 = vmul.f32 1.442695, %v1823_v17  ;;  %v1955_v17 = vld [vmem:[#allocation6 + $0xf0] sm:$0xff] }
 0x6c8   :  { %2255 = vmatpush.msrb.mxu2 %v1955_v17  ;;  %v1764_v17 = vstv %s1763_s29 }
 0x6c9   :  { %4317 = vpow2.f32 %v1824_v54  ;;  %v1949_v54 = vld [vmem:[#allocation6 + $0xc0] sm:$0xff]  ;;  %vm1765_vm10 = vcmp.eq.s32.totalorder %v1764_v17, 1  ;;  %v2091_v17 = vld [vmem:[#allocation6 + $0x530] sm:$0xff] }
 0x6ca   :  { %2136 = vmatpush.msra.mxu0 %v1949_v54  ;;  %v4238_v54 = vld [vmem:[%s6270_s1 + $0x10] sm:$0xff] }
 0x6cf   :  { %v4318_v45 = vpop.eup %4317 }
 0x6d0   :  { %v1826_v3 = vsel %vm6289_vm14, %v4318_v45, 0.0 }
 0x6d1   :  { %v1827_v11 = vrot.slane %v1826_v3, 4 }
 0x6d3   :  { %v1828_v47 = vadd.f32 %v1827_v11, %v1826_v3  ;;  %v1951_v3 = vld [vmem:[#allocation6 + $0xd0] sm:$0xff]  ;;  %v1945_v11 = vld [vmem:[#allocation6 + $0xa0] sm:$0xff] }
 0x6d4   :  { %2256 = vmatpush.msrb.mxu2 %v1951_v3  ;;  %2137 = vmatpush.msra.mxu0 %v1945_v11  ;;  %v2013_v11 = vld [vmem:[#allocation6 + $0x2c0] sm:$0xff] }
 0x6d5   :  { %v1829_v55 = vrot.slane %v1828_v47, 2 }
 0x6d7   :  { %v1830_v18 = vadd.f32 %v1829_v55, %v1828_v47 }
 0x6d9   :  { %v1831_v19 = vrot.slane %v1830_v18, 1 }
 0x6db   :  { %v1832_v22 = vadd.f32 %v1831_v19, %v1830_v18  ;;  %v1946_v18 = vld [vmem:[#allocation6 + $0xa8] sm:$0xff] }
 0x6dd   :  { %4319 = vrcp.f32 %v1832_v22  ;;  %v1844_v40 = vand.u32 2147483648, %v1832_v22  ;;  %v1842_v48 = vand.u32 2147483647, %v1832_v22  ;;  %vm1838_vm15 = vweird.f32 %v1832_v22 }
 0x6df   :  { %v1845_v30 = vor.u32 1.1754944e-38, %v1844_v40  ;;  %vm1843_vm9 = vcmp.eq.f32.partialorder %v1842_v48, 8.507059e+37  ;;  %v1930_v40 = vld [vmem:[#allocation6 + $0x28] sm:$0xff]  ;;  %v1927_v48 = vld [vmem:[#allocation6 + $0x10] sm:$0xff] }
 0x6e3   :  { %v4320_v24 = vpop.eup %4319 }
 0x6e4   :  { %v1834_v32 = vmul.f32 %v4320_v24, %v1832_v22  ;;  %vm1839_vm8 = vweird.f32 %v4320_v24  ;;  %v1947_v22 = vld [vmem:[#allocation6 + $0xb0] sm:$0xff] }
 0x6e5   :  { %vm1840_vm7 = vmor %vm1838_vm15, %vm1839_vm8  ;;  %2257 = vmatpush.msrb.mxu2 %v1947_v22  ;;  %v2027_v22 = vld [vmem:[#allocation6 + $0x330] sm:$0xff] }
 0x6e6   :  { %v1835_v38 = vsub.f32 1.0, %v1834_v32  ;;  %v1938_v32 = vld [vmem:[#allocation6 + $0x68] sm:$0xff] }
 0x6e7   :  { %2258 = vmatpush.msrb.mxu2 %v1943_v27  ;;  %v2023_v27 = vld [vmem:[#allocation6 + $0x310] sm:$0xff] }
 0x6e8   :  { %v1836_v46 = vmul.f32 %v4320_v24, %v1835_v38  ;;  %v1929_v38 = vld [vmem:[#allocation6 + $0x20] sm:$0xff] }
 0x6e9   :  { %2259 = vmatpush.msrb.mxu2 %v1939_v33  ;;  %v2019_v33 = vld [vmem:[#allocation6 + $0x2f0] sm:$0xff] }
 0x6ea   :  { %v1837_v50 = vadd.f32 %v4320_v24, %v1836_v46  ;;  %v1926_v46 = vld [vmem:[#allocation6 + $0x8] sm:$0xff] }
 0x6eb   :  { %2260 = vmatpush.msrb.mxu2 %v1935_v36  ;;  %v2015_v36 = vld [vmem:[#allocation6 + $0x2d0] sm:$0xff] }
 0x6ec   :  { %v1841_v56 = vsel %vm1840_vm7, %v4320_v24, %v1837_v50  ;;  %v1941_v24 = vld [vmem:[#allocation6 + $0x80] sm:$0xff]  ;;  %v2046_v50 = vld [vmem:[#allocation6 + $0x3c8] sm:$0xff] }
 0x6ed   :  { %v1846_v59 = vsel %vm1843_vm9, %v1845_v30, %v1841_v56  ;;  %2138 = vmatpush.msra.mxu0 %v1941_v24  ;;  %2261 = vmatpush.msrb.mxu2 %v1931_v41  ;;  %v2042_v30 = vld [vmem:[#allocation6 + $0x3a8] sm:$0xff]  ;;  %v2005_v24 = vld [vmem:[#allocation6 + $0x280] sm:$0xff] }
 0x6ee   :  { %v5356_v61 = vmul.f32 %v4318_v45, %v1846_v59  ;;  %v1950_v45 = vld [vmem:[#allocation6 + $0xc8] sm:$0xff]  ;;  %v2043_v59 = vld [vmem:[#allocation6 + $0x3b0] sm:$0xff] }
 0x6ef   :  { %2196 = vmatpush.msra.mxu3 %v1950_v45  ;;  %2139 = vmatpush.msra.mxu0 %v1937_v28  ;;  %v2038_v56 = vld [vmem:[#allocation6 + $0x388] sm:$0xff]  ;;  %v2001_v28 = vld [vmem:[#allocation6 + $0x260] sm:$0xff] }
 0x6f0   :  { %v1862_v63 = vperm.slane %v5356_v61, 2  ;;  %v1855_v9 = vperm.slane %v5356_v61, 1  ;;  %v1848_v4 = vperm.slane %v5356_v61, 0  ;;  %v1876_v47 = vperm.slane %v5356_v61, 4  ;;  %2262 = vmatpush.msrb.mxu2 %v1927_v48  ;;  %v1990_v41 = vld [vmem:[#allocation6 + $0x208] sm:$0xff]  ;;  %v2052_v48 = vld [vmem:[#allocation6 + $0x3f8] sm:$0xff] }
 0x6f1   :  { %v1883_v55 = vperm.slane %v5356_v61, 5  ;;  %v1869_v19 = vperm.slane %v5356_v61, 3  ;;  %2197 = vmatpush.msra.mxu3 %v1946_v18  ;;  %v1897_v37 = vperm.slane %v5356_v61, 7  ;;  %2140 = vmatpush.msra.mxu0 %v1933_v34  ;;  %v1890_v39 = vperm.slane %v5356_v61, 6  ;;  %v2039_v61 = vld [vmem:[#allocation6 + $0x390] sm:$0xff]  ;;  %v2009_v18 = vld [vmem:[#allocation6 + $0x2a0] sm:$0xff] }
 0x6f2   :  { %1867 = vperm.xlu0 %4270, %v1862_v63   ;;  %1860 = vperm.xlu1 %4271, %v1855_v9   ;;  %v2030_v63 = vld [vmem:[#allocation6 + $0x348] sm:$0xff]  ;;  %v2035_v9 = vld [vmem:[#allocation6 + $0x370] sm:$0xff]  ;;  %v1997_v34 = vld [vmem:[#allocation6 + $0x240] sm:$0xff] }
 0x6f3   :  { %1853 = vperm.xlu2 %4269, %v1848_v4   ;;  %2198 = vmatpush.msra.mxu3 %v1942_v26  ;;  %v2025_v4 = vld [vmem:[#allocation6 + $0x320] sm:$0xff]  ;;  %v2006_v26 = vld [vmem:[#allocation6 + $0x288] sm:$0xff] }
 0x6f4   :  { %2141 = vmatpush.msra.mxu0 %v1929_v38  ;;  %2153 = vmatpush.msra.mxu1 %v2025_v4  ;;  %v1994_v38 = vld [vmem:[#allocation6 + $0x228] sm:$0xff]  ;;  %v2116_v4 = vld [vmem:[#allocation6 + $0x5f8] sm:$0xff] }
 0x6f5   :  { %2199 = vmatpush.msra.mxu3 %v1938_v32  ;;  %v2002_v32 = vld [vmem:[#allocation6 + $0x268] sm:$0xff]  ;;  %2327 = vmatpush.msra.mxu2 %v2052_v48  ;;  %v2004_v48 = vld [vmem:[#allocation6 + $0x278] sm:$0xff] }
 0x6f6   :  { %2142 = vmatpush.msra.mxu0 %v1925_v44  ;;  %2154 = vmatpush.msra.mxu1 %v2021_v10  ;;  %v2007_v44 = vld [vmem:[#allocation6 + $0x290] sm:$0xff] }
 0x6f7   :  { %2200 = vmatpush.msra.mxu3 %v1934_v42  ;;  %v1998_v42 = vld [vmem:[#allocation6 + $0x248] sm:$0xff]  ;;  %v2095_v10 = vld [vmem:[#allocation6 + $0x550] sm:$0xff] }
 0x6f8   :  { %2207 = vmatpush.msrb.mxu0 %v2050_v31  ;;  %2155 = vmatpush.msra.mxu1 %v2017_v15  ;;  %v2003_v31 = vld [vmem:[#allocation6 + $0x270] sm:$0xff]  ;;  %v2112_v15 = vld [vmem:[#allocation6 + $0x5d8] sm:$0xff] }
 0x6f9   :  { %2201 = vmatpush.msra.mxu3 %v1930_v40  ;;  %v1989_v40 = vld [vmem:[#allocation6 + $0x200] sm:$0xff] }
 0x6fa   :  { %1881 = vperm.xlu0 %4270, %v1876_v47   ;;  %1888 = vperm.xlu1 %4271, %v1883_v55   ;;  %v2014_v47 = vld [vmem:[#allocation6 + $0x2c8] sm:$0xff]  ;;  %v2031_v55 = vld [vmem:[#allocation6 + $0x350] sm:$0xff] }
 0x6fb   :  { %1874 = vperm.xlu2 %4269, %v1869_v19   ;;  %2202 = vmatpush.msra.mxu3 %v1926_v46  ;;  %v2010_v19 = vld [vmem:[#allocation6 + $0x2a8] sm:$0xff] }
 0x6fc   :  { %2208 = vmatpush.msrb.mxu0 %v2046_v50  ;;  %2156 = vmatpush.msra.mxu1 %v2013_v11  ;;  %v2114_v46 = vld [vmem:[#allocation6 + $0x5e8] sm:$0xff]  ;;  %v2048_v50 = vld [vmem:[#allocation6 + $0x3d8] sm:$0xff] }
 0x6fd   :  { %2267 = vmatpush.msrb.mxu3 %v2051_v52  ;;  %2328 = vmatpush.msra.mxu2 %v2048_v50  ;;  %v2106_v52 = vld [vmem:[#allocation6 + $0x5a8] sm:$0xff]  ;;  %v2000_v50 = vld [vmem:[#allocation6 + $0x258] sm:$0xff] }
 0x6fe   :  { %2209 = vmatpush.msrb.mxu0 %v2042_v30  ;;  %2157 = vmatpush.msra.mxu1 %v2009_v18  ;;  %v1999_v30 = vld [vmem:[#allocation6 + $0x250] sm:$0xff]  ;;  %v2086_v11 = vld [vmem:[#allocation6 + $0x508] sm:$0xff]  ;;  %v2104_v18 = vld [vmem:[#allocation6 + $0x598] sm:$0xff] }
 0x6ff   :  { %2268 = vmatpush.msrb.mxu3 %v2047_v58  ;;  %v1995_v58 = vld [vmem:[#allocation6 + $0x230] sm:$0xff] }
 0x700   :  { %2210 = vmatpush.msrb.mxu0 %v2038_v56  ;;  %2158 = vmatpush.msra.mxu1 %v2005_v24  ;;  %v2044_v56 = vld [vmem:[#allocation6 + $0x3b8] sm:$0xff] }
 0x701   :  { %2269 = vmatpush.msrb.mxu3 %v2043_v59  ;;  %v2102_v59 = vld [vmem:[#allocation6 + $0x588] sm:$0xff]  ;;  %2329 = vmatpush.msra.mxu2 %v2044_v56  ;;  %v2020_v24 = vld [vmem:[#allocation6 + $0x2f8] sm:$0xff] }
 0x702   :  { %1902 = vperm.xlu0 %4270, %v1897_v37   ;;  %2211 = vmatpush.msrb.mxu0 %v2034_v5  ;;  %v1993_v37 = vld [vmem:[#allocation6 + $0x220] sm:$0xff]  ;;  %v2040_v5 = vld [vmem:[#allocation6 + $0x398] sm:$0xff] }
 0x703   :  { %1895 = vperm.xlu2 %4269, %v1890_v39   ;;  %2270 = vmatpush.msrb.mxu3 %v2039_v61  ;;  %v2011_v39 = vld [vmem:[#allocation6 + $0x2b0] sm:$0xff]  ;;  %v2076_v56 = vld [vmem:[#allocation6 + $0x4b8] sm:$0xff] }
 0x704   :  { %2212 = vmatpush.msrb.mxu0 %v2030_v63  ;;  %2159 = vmatpush.msra.mxu1 %v2001_v28  ;;  %v1991_v61 = vld [vmem:[#allocation6 + $0x210] sm:$0xff] }
 0x705   :  { %2271 = vmatpush.msrb.mxu3 %v2035_v9  ;;  %v2099_v63 = vld [vmem:[#allocation6 + $0x570] sm:$0xff]  ;;  %v2036_v9 = vld [vmem:[#allocation6 + $0x378] sm:$0xff]  ;;  %2330 = vmatpush.msra.mxu2 %v2040_v5 }
 0x706   :  { %2213 = vmatpush.msrb.mxu0 %v2026_v14  ;;  %2160 = vmatpush.msra.mxu1 %v1997_v34  ;;  %v2094_v14 = vld [vmem:[#allocation6 + $0x548] sm:$0xff]  ;;  %v2079_v28 = vld [vmem:[#allocation6 + $0x4d0] sm:$0xff]  ;;  %v2072_v5 = vld [vmem:[#allocation6 + $0x498] sm:$0xff] }
 0x707   :  { %2272 = vmatpush.msrb.mxu3 %v2031_v55  ;;  %2331 = vmatpush.msra.mxu2 %v2036_v9  ;;  %v2024_v55 = vld [vmem:[#allocation6 + $0x318] sm:$0xff]  ;;  %v2074_v34 = vld [vmem:[#allocation6 + $0x4a8] sm:$0xff] }
 0x708   :  { %2214 = vmatpush.msrb.mxu0 %v2022_v12  ;;  %2161 = vmatpush.msra.mxu1 %v1993_v37  ;;  %v2032_v12 = vld [vmem:[#allocation6 + $0x358] sm:$0xff] }
 0x709   :  { %2273 = vmatpush.msrb.mxu3 %v2027_v22  ;;  %2332 = vmatpush.msra.mxu2 %v2032_v12  ;;  %v2083_v22 = vld [vmem:[#allocation6 + $0x4f0] sm:$0xff]  ;;  %v2092_v37 = vld [vmem:[#allocation6 + $0x538] sm:$0xff] }
 0x70a   :  { %2215 = vmatpush.msrb.mxu0 %v2018_v16  ;;  %2162 = vmatpush.msra.mxu1 %v1989_v40  ;;  %v2090_v16 = vld [vmem:[#allocation6 + $0x528] sm:$0xff]  ;;  %v2008_v40 = vld [vmem:[#allocation6 + $0x298] sm:$0xff] }
 0x70b   :  { %2274 = vmatpush.msrb.mxu3 %v2023_v27  ;;  %v2078_v27 = vld [vmem:[#allocation6 + $0x4c8] sm:$0xff]  ;;  %v2060_v9 = vld [vmem:[#allocation6 + $0x438] sm:$0xff] }
 0x70c   :  { %2216 = vmatpush.msrb.mxu0 %v2014_v47  ;;  %2227 = vmatpush.msrb.mxu1 %v2114_v46  ;;  %v2087_v47 = vld [vmem:[#allocation6 + $0x510] sm:$0xff] }
 0x70d   :  { %2275 = vmatpush.msrb.mxu3 %v2019_v33  ;;  %v2096_v33 = vld [vmem:[#allocation6 + $0x558] sm:$0xff]  ;;  %v2067_v46 = vld [vmem:[#allocation6 + $0x470] sm:$0xff] }
 0x70e   :  { %2217 = vmatpush.msrb.mxu0 %v2010_v19  ;;  %2228 = vmatpush.msrb.mxu1 %v2110_v49  ;;  %v2082_v19 = vld [vmem:[#allocation6 + $0x4e8] sm:$0xff]  ;;  %v2063_v49 = vld [vmem:[#allocation6 + $0x450] sm:$0xff] }
 0x70f   :  { %2276 = vmatpush.msrb.mxu3 %v2015_v36  ;;  %v2012_v36 = vld [vmem:[#allocation6 + $0x2b8] sm:$0xff] }
 0x710   :  { %2218 = vmatpush.msrb.mxu0 %v2006_v26  ;;  %2229 = vmatpush.msrb.mxu1 %v2106_v52  ;;  %v2100_v26 = vld [vmem:[#allocation6 + $0x578] sm:$0xff]  ;;  %v2059_v52 = vld [vmem:[#allocation6 + $0x430] sm:$0xff] }
 0x711   :  { %2277 = vmatpush.msrb.mxu3 %v2011_v39  ;;  %v2071_v39 = vld [vmem:[#allocation6 + $0x490] sm:$0xff] }
 0x712   :  { %2219 = vmatpush.msrb.mxu0 %v2002_v32  ;;  %2230 = vmatpush.msrb.mxu1 %v2102_v59  ;;  %v2016_v32 = vld [vmem:[#allocation6 + $0x2d8] sm:$0xff]  ;;  %v2055_v59 = vld [vmem:[#allocation6 + $0x410] sm:$0xff] }
 0x713   :  { %2278 = vmatpush.msrb.mxu3 %v2007_v44  ;;  %v2066_v44 = vld [vmem:[#allocation6 + $0x468] sm:$0xff] }
 0x714   :  { %2220 = vmatpush.msrb.mxu0 %v1998_v42  ;;  %2231 = vmatpush.msrb.mxu1 %v2098_v62  ;;  %v2075_v42 = vld [vmem:[#allocation6 + $0x4b0] sm:$0xff] }
 0x715   :  { %2279 = vmatpush.msrb.mxu3 %v2003_v31  ;;  %v2062_v31 = vld [vmem:[#allocation6 + $0x448] sm:$0xff] }
 0x716   :  { %2221 = vmatpush.msrb.mxu0 %v1994_v38  ;;  %2232 = vmatpush.msrb.mxu1 %v2094_v14  ;;  %v2070_v38 = vld [vmem:[#allocation6 + $0x488] sm:$0xff] }
 0x717   :  { %2280 = vmatpush.msrb.mxu3 %v1999_v30  ;;  %v2058_v30 = vld [vmem:[#allocation6 + $0x428] sm:$0xff] }
 0x718   :  { %2222 = vmatpush.msrb.mxu0 %v1990_v41  ;;  %2233 = vmatpush.msrb.mxu1 %v2090_v16  ;;  %v2088_v41 = vld [vmem:[#allocation6 + $0x518] sm:$0xff] }
 0x719   :  { %2281 = vmatpush.msrb.mxu3 %v1995_v58  ;;  %v2054_v58 = vld [vmem:[#allocation6 + $0x408] sm:$0xff] }
 0x71a   :  { %2234 = vmatpush.msrb.mxu1 %v2086_v11 }
 0x71b   :  { %2282 = vmatpush.msrb.mxu3 %v1991_v61  ;;  %v2068_v61 = vld [vmem:[#allocation6 + $0x478] sm:$0xff] }
 0x71c   :  { %2235 = vmatpush.msrb.mxu1 %v2082_v19 }
 0x71e   :  { %2236 = vmatpush.msrb.mxu1 %v2078_v27 }
 0x720   :  { %2237 = vmatpush.msrb.mxu1 %v2074_v34  ;;  %v1976_v34 = vld [vmem:[#allocation6 + $0x198] sm:$0xff] }
 0x722   :  { %2238 = vmatpush.msrb.mxu1 %v2070_v38  ;;  %v1968_v38 = vld [vmem:[#allocation6 + $0x158] sm:$0xff] }
 0x724   :  { %2239 = vmatpush.msrb.mxu1 %v2066_v44  ;;  %v1960_v44 = vld [vmem:[#allocation6 + $0x118] sm:$0xff] }
 0x726   :  { %v1756_v45 = vpop.f32.mrf.mxu3  ;;  %2240 = vmatpush.msrb.mxu1 %v2062_v31  ;;  %v2440_v31 = vld [vmem:[%s6276_s7 + $0x30] sm:$0xff] }
 0x727   :  { %v5369_v3 = vsel %vm1765_vm10, %v4238_v54, %v1756_v45  ;;  %v2028_v54 = vld [vmem:[#allocation6 + $0x338] sm:$0xff] }
 0x728   :  { %2143 = vmatmul.f32.vlgmr.msra.gmra.mxu0 %v5369_v3  ;;  %2203 = vmatmul.f32.vlgmr.msra.gmra.mxu3 %v5369_v3  ;;  %v2108_v45 = vld [vmem:[#allocation6 + $0x5b8] sm:$0xff] }
 0x729   :  { %2263 = vmatmul.f32.vlgmr.msrb.gmra.mxu2 %v5369_v3  ;;  %2287 = vmatpush.msra.mxu0 %v2115_v23  ;;  %v2084_v23 = vld [vmem:[#allocation6 + $0x4f8] sm:$0xff] }
 0x72a   :  { %2347 = vmatpush.msra.mxu3 %v2116_v4  ;;  %2333 = vmatpush.msra.mxu2 %v2028_v54  ;;  %v2056_v4 = vld [vmem:[#allocation6 + $0x418] sm:$0xff] }
 0x72b   :  { %2288 = vmatpush.msra.mxu0 %v2111_v51  ;;  %v2080_v51 = vld [vmem:[#allocation6 + $0x4d8] sm:$0xff]  ;;  %2241 = vmatpush.msrb.mxu1 %v2058_v30  ;;  %v2438_v30 = vld [vmem:[%s6276_s7 + $0x20] sm:$0xff] }
 0x72c   :  { %2348 = vmatpush.msra.mxu3 %v2112_v15  ;;  %2334 = vmatpush.msra.mxu2 %v2024_v55 }
 0x72d   :  { %2289 = vmatpush.msra.mxu0 %v2107_v7  ;;  %v1996_v7 = vld [vmem:[#allocation6 + $0x238] sm:$0xff]  ;;  %2242 = vmatpush.msrb.mxu1 %v2054_v58  ;;  %v2436_v58 = vld [vmem:[%s6276_s7 + $0x10] sm:$0xff] }
 0x72e   :  { %2349 = vmatpush.msra.mxu3 %v2108_v45  ;;  %2335 = vmatpush.msra.mxu2 %v2020_v24 }
 0x72f   :  { %2290 = vmatpush.msra.mxu0 %v2103_v60  ;;  %v1992_v60 = vld [vmem:[#allocation6 + $0x218] sm:$0xff] }
 0x730   :  { %2350 = vmatpush.msra.mxu3 %v2104_v18  ;;  %2336 = vmatpush.msra.mxu2 %v2016_v32 }
 0x731   :  { %2291 = vmatpush.msra.mxu0 %v2099_v63  ;;  %v2064_v63 = vld [vmem:[#allocation6 + $0x458] sm:$0xff] }
 0x732   :  { %2351 = vmatpush.msra.mxu3 %v2100_v26  ;;  %2337 = vmatpush.msra.mxu2 %v2012_v36  ;;  %v1972_v36 = vld [vmem:[#allocation6 + $0x178] sm:$0xff] }
 0x733   :  { %2292 = vmatpush.msra.mxu0 %v2095_v10 }
 0x734   :  { %2352 = vmatpush.msra.mxu3 %v2096_v33  ;;  %2338 = vmatpush.msra.mxu2 %v2008_v40  ;;  %v1988_v33 = vld [vmem:[#allocation6 + $0x1f8] sm:$0xff] }
 0x735   :  { %2293 = vmatpush.msra.mxu0 %v2091_v17  ;;  %v1964_v40 = vld [vmem:[#allocation6 + $0x138] sm:$0xff] }
 0x736   :  { %2353 = vmatpush.msra.mxu3 %v2092_v37  ;;  %2339 = vmatpush.msra.mxu2 %v2004_v48  ;;  %v2445_v37 = vld [vmem:[%s6276_s7 + $0x58] sm:$0xff] }
 0x737   :  { %2294 = vmatpush.msra.mxu0 %v2087_v47  ;;  %v1956_v48 = vld [vmem:[#allocation6 + $0xf8] sm:$0xff] }
 0x738   :  { %2354 = vmatpush.msra.mxu3 %v2088_v41  ;;  %2340 = vmatpush.msra.mxu2 %v2000_v50  ;;  %v2443_v41 = vld [vmem:[%s6276_s7 + $0x48] sm:$0xff] }
 0x739   :  { %2295 = vmatpush.msra.mxu0 %v2083_v22  ;;  %v2439_v50 = vld [vmem:[%s6276_s7 + $0x28] sm:$0xff] }
 0x73a   :  { %2355 = vmatpush.msra.mxu3 %v2084_v23  ;;  %2341 = vmatpush.msra.mxu2 %v1996_v7  ;;  %v1952_v23 = vld [vmem:[#allocation6 + $0xd8] sm:$0xff] }
 0x73b   :  { %2296 = vmatpush.msra.mxu0 %v2079_v28  ;;  %v2437_v7 = vld [vmem:[%s6276_s7 + $0x18] sm:$0xff] }
 0x73c   :  { %2356 = vmatpush.msra.mxu3 %v2080_v51  ;;  %2342 = vmatpush.msra.mxu2 %v1992_v60  ;;  %v1944_v51 = vld [vmem:[#allocation6 + $0x98] sm:$0xff]  ;;  %v2435_v60 = vld [vmem:[%s6276_s7 + $0x8] sm:$0xff] }
 0x73d   :  { %2297 = vmatpush.msra.mxu0 %v2075_v42  ;;  %v2446_v42 = vld [vmem:[%s6276_s7 + $0x60] sm:$0xff] }
 0x73e   :  { %2357 = vmatpush.msra.mxu3 %v2076_v56  ;;  %v1936_v56 = vld [vmem:[#allocation6 + $0x58] sm:$0xff] }
 0x73f   :  { %2298 = vmatpush.msra.mxu0 %v2071_v39  ;;  %v2444_v39 = vld [vmem:[%s6276_s7 + $0x50] sm:$0xff] }
 0x740   :  { %2358 = vmatpush.msra.mxu3 %v2072_v5  ;;  %v1928_v5 = vld [vmem:[#allocation6 + $0x18] sm:$0xff] }
 0x741   :  { %2299 = vmatpush.msra.mxu0 %v2067_v46  ;;  %v2442_v46 = vld [vmem:[%s6276_s7 + $0x40] sm:$0xff] }
 0x742   :  { %2359 = vmatpush.msra.mxu3 %v2068_v61  ;;  %v2434_v61 = vld [vmem:[%s6276_s7] sm:$0xff] }
 0x743   :  { %2300 = vmatpush.msra.mxu0 %v2063_v49  ;;  %v1948_v49 = vld [vmem:[#allocation6 + $0xb8] sm:$0xff] }
 0x744   :  { %2360 = vmatpush.msra.mxu3 %v2064_v63  ;;  %v2464_v63 = vld [vmem:[%s6276_s7 + $0xf0] sm:$0xff] }
 0x745   :  { %2301 = vmatpush.msra.mxu0 %v2059_v52  ;;  %v1940_v52 = vld [vmem:[#allocation6 + $0x78] sm:$0xff] }
 0x746   :  { %2361 = vmatpush.msra.mxu3 %v2060_v9  ;;  %v2463_v9 = vld [vmem:[%s6276_s7 + $0xe8] sm:$0xff] }
 0x747   :  { %2302 = vmatpush.msra.mxu0 %v2055_v59  ;;  %v1932_v59 = vld [vmem:[#allocation6 + $0x38] sm:$0xff] }
 0x748   :  { %2362 = vmatpush.msra.mxu3 %v2056_v4  ;;  %v2462_v4 = vld [vmem:[%s6276_s7 + $0xe0] sm:$0xff] }
 0x74d   :  { %v1854_v62 = vpop.permute.xlu2 %1853 }
 0x74e   :  { %v1904_v12 = vmul.f32 %v5224_v0, %v1854_v62  ;;  %v2465_v62 = vld [vmem:[%s6276_s7 + $0xf8] sm:$0xff] }
 0x755   :  { %v1875_v16 = vpop.permute.xlu2 %1874 }
 0x756   :  { %v1907_v11 = vmul.f32 %v5232_v2, %v1875_v16  ;;  %v2449_v2 = vld [vmem:[%s6276_s7 + $0x78] sm:$0xff]  ;;  %v2456_v16 = vld [vmem:[%s6276_s7 + $0xb0] sm:$0xff] }
 0x75d   :  { %v1896_v26 = vpop.permute.xlu2 %1895 }
 0x75e   :  { %v1910_v0 = vmul.f32 %v5239_v57, %v1896_v26  ;;  %v2448_v57 = vld [vmem:[%s6276_s7 + $0x70] sm:$0xff]  ;;  %v2477_v26 = vld [vmem:[%s6276_s7 + $0x158] sm:$0xff] }
 0x764   :  { %v1868_v14 = vpop.permute.xlu0 %1867  ;;  %v1861_v10 = vpop.permute.xlu1 %1860 }
 0x765   :  { %v1905_v15 = vmul.f32 %v5254_v13, %v1861_v10  ;;  %v1906_v17 = vmul.f32 %v5303_v20, %v1868_v14  ;;  %v2461_v14 = vld [vmem:[%s6276_s7 + $0xd8] sm:$0xff]  ;;  %v2459_v10 = vld [vmem:[%s6276_s7 + $0xc8] sm:$0xff] }
 0x767   :  { %v1912_v54 = vadd.f32 %v1905_v15, %v1904_v12  ;;  %v2458_v12 = vld [vmem:[%s6276_s7 + $0xc0] sm:$0xff]  ;;  %v2457_v15 = vld [vmem:[%s6276_s7 + $0xb8] sm:$0xff] }
 0x769   :  { %v1913_v45 = vadd.f32 %v1912_v54, %v1906_v17  ;;  %v2455_v17 = vld [vmem:[%s6276_s7 + $0xa8] sm:$0xff]  ;;  %v2454_v54 = vld [vmem:[%s6276_s7 + $0xa0] sm:$0xff] }
 0x76b   :  { %v1914_v19 = vadd.f32 %v1913_v45, %v1907_v11  ;;  %v2453_v45 = vld [vmem:[%s6276_s7 + $0x98] sm:$0xff]  ;;  %v2452_v11 = vld [vmem:[%s6276_s7 + $0x90] sm:$0xff] }
 0x76c   :  { %v1882_v47 = vpop.permute.xlu0 %1881  ;;  %v1889_v55 = vpop.permute.xlu1 %1888 }
 0x76d   :  { %v1908_v18 = vmul.f32 %v5261_v6, %v1882_v47  ;;  %v1909_v24 = vmul.f32 %v5322_v29, %v1889_v55  ;;  %v1984_v6 = vld [vmem:[#allocation6 + $0x1d8] sm:$0xff]  ;;  %v2447_v29 = vld [vmem:[%s6276_s7 + $0x68] sm:$0xff]  ;;  %v2450_v55 = vld [vmem:[%s6276_s7 + $0x80] sm:$0xff] }
 0x76e   :  { %v2451_v47 = vld [vmem:[%s6276_s7 + $0x88] sm:$0xff] }
 0x76f   :  { %v1915_v22 = vadd.f32 %v1914_v19, %v1908_v18  ;;  %v2481_v18 = vld [vmem:[%s6276_s7 + $0x178] sm:$0xff]  ;;  %v2480_v19 = vld [vmem:[%s6276_s7 + $0x170] sm:$0xff] }
 0x770   :  { %2526 = vmatpush.msrb.mxu2 %v2481_v18  ;;  %v2908_v18 = vld [vmem:[#allocation6 + $0x4a0] sm:$0xff] }
 0x771   :  { %v1916_v27 = vadd.f32 %v1915_v22, %v1909_v24  ;;  %v2479_v22 = vld [vmem:[%s6276_s7 + $0x168] sm:$0xff]  ;;  %v2478_v24 = vld [vmem:[%s6276_s7 + $0x160] sm:$0xff] }
 0x772   :  { %2527 = vmatpush.msrb.mxu2 %v2480_v19 }
 0x773   :  { %v1917_v20 = vadd.f32 %v1916_v27, %v1910_v0  ;;  %v5508_v27 = vld [vmem:[%s6275_s6] sm:$0xf]  ;;  %v2476_v0 = vld [vmem:[%s6276_s7 + $0x150] sm:$0xff] }
 0x774   :  { %v1903_v13 = vpop.permute.xlu0 %1902  ;;  %2528 = vmatpush.msrb.mxu2 %v2479_v22  ;;  %v2904_v22 = vld [vmem:[#allocation6 + $0x480] sm:$0xff] }
 0x775   :  { %v1911_v28 = vmul.f32 %v5268_v43, %v1903_v13  ;;  %v1980_v43 = vld [vmem:[#allocation6 + $0x1b8] sm:$0xff]  ;;  %v2119_v13 = vperm.slane %v5508_v27, 0 }
 0x776   :  { %2529 = vmatpush.msrb.mxu2 %v2478_v24 }
 0x777   :  { %v5382_v32 = vadd.f32 %v1917_v20, %v1911_v28  ;;  %v2475_v28 = vld [vmem:[%s6276_s7 + $0x148] sm:$0xff] }
 0x778   :  { %2530 = vmatpush.msrb.mxu2 %v2477_v26 }
 0x779   :  { %2163 = vmatmul.f32.vlgmr.msra.gmra.mxu1 %v5382_v32  ;;  %2223 = vmatmul.f32.vlgmr.msrb.gmra.mxu0 %v5382_v32 }
 0x77a   :  { %2283 = vmatmul.f32.vlgmr.msrb.gmra.mxu3 %v5382_v32  ;;  %2307 = vmatpush.msra.mxu1 %v1988_v33 }
 0x77b   :  { %2343 = vmatmul.f32.vlgmr.msra.gmra.mxu2 %v5382_v32  ;;  %2486 = vmatpush.msrb.mxu0 %v2449_v2  ;;  %v2473_v2 = vld [vmem:[%s6276_s7 + $0x138] sm:$0xff] }
 0x77c   :  { %2308 = vmatpush.msra.mxu1 %v1984_v6  ;;  %2531 = vmatpush.msrb.mxu2 %v2476_v0 }
 0x77d   :  { %2487 = vmatpush.msrb.mxu0 %v2448_v57  ;;  %v2120_v57 = vperm.slane %v5508_v27, 1 }
 0x77e   :  { %2309 = vmatpush.msra.mxu1 %v1980_v43  ;;  %2532 = vmatpush.msrb.mxu2 %v2475_v28  ;;  %v2900_v28 = vld [vmem:[#allocation6 + $0x460] sm:$0xff] }
 0x77f   :  { %2488 = vmatpush.msrb.mxu0 %v2447_v29  ;;  %v2472_v29 = vld [vmem:[%s6276_s7 + $0x130] sm:$0xff] }
 0x780   :  { %2310 = vmatpush.msra.mxu1 %v1976_v34  ;;  %v2184_v34 = vpop.f32.mrf.mxu2 }
 0x781   :  { %2489 = vmatpush.msrb.mxu0 %v2446_v42  ;;  %2243 = vmatmul.f32.vlgmr.msrb.gmra.mxu1 %v5218_v53 }
 0x782   :  { %2303 = vmatmul.f32.vlgmr.msra.gmra.mxu0 %v5218_v53  ;;  %2311 = vmatpush.msra.mxu1 %v1972_v36 }
 0x783   :  { %2363 = vmatmul.f32.vlgmr.msra.gmra.mxu3 %v5218_v53  ;;  %2490 = vmatpush.msrb.mxu0 %v2445_v37  ;;  %v2441_v53 = vld [vmem:[%s6276_s7 + $0x38] sm:$0xff]  ;;  %v2471_v37 = vld [vmem:[%s6276_s7 + $0x128] sm:$0xff] }
 0x784   :  { %2312 = vmatpush.msra.mxu1 %v1968_v38 }
 0x785   :  { %2491 = vmatpush.msrb.mxu0 %v2444_v39 }
 0x786   :  { %2313 = vmatpush.msra.mxu1 %v1964_v40  ;;  %v2470_v40 = vld [vmem:[%s6276_s7 + $0x120] sm:$0xff] }
 0x787   :  { %2492 = vmatpush.msrb.mxu0 %v2443_v41 }
 0x788   :  { %2314 = vmatpush.msra.mxu1 %v1960_v44 }
 0x789   :  { %2493 = vmatpush.msrb.mxu0 %v2442_v46  ;;  %v2469_v46 = vld [vmem:[%s6276_s7 + $0x118] sm:$0xff] }
 0x78a   :  { %2315 = vmatpush.msra.mxu1 %v1956_v48 }
 0x78b   :  { %2494 = vmatpush.msrb.mxu0 %v2441_v53 }
 0x78c   :  { %2316 = vmatpush.msra.mxu1 %v1952_v23  ;;  %v2468_v23 = vld [vmem:[%s6276_s7 + $0x110] sm:$0xff] }
 0x78d   :  { %2495 = vmatpush.msrb.mxu0 %v2440_v31 }
 0x78e   :  { %2317 = vmatpush.msra.mxu1 %v1948_v49  ;;  %v2467_v49 = vld [vmem:[%s6276_s7 + $0x108] sm:$0xff] }
 0x78f   :  { %2496 = vmatpush.msrb.mxu0 %v2439_v50  ;;  %v2466_v50 = vld [vmem:[%s6276_s7 + $0x100] sm:$0xff] }
 0x790   :  { %2318 = vmatpush.msra.mxu1 %v1944_v51  ;;  %v2948_v51 = vld [vmem:[#allocation6 + $0x5e0] sm:$0xff] }
 0x791   :  { %2497 = vmatpush.msrb.mxu0 %v2438_v30 }
 0x792   :  { %2319 = vmatpush.msra.mxu1 %v1940_v52  ;;  %v2944_v52 = vld [vmem:[#allocation6 + $0x5c0] sm:$0xff] }
 0x793   :  { %2498 = vmatpush.msrb.mxu0 %v2437_v7  ;;  %v2940_v7 = vld [vmem:[#allocation6 + $0x5a0] sm:$0xff] }
 0x794   :  { %2320 = vmatpush.msra.mxu1 %v1936_v56 }
 0x795   :  { %2499 = vmatpush.msrb.mxu0 %v2436_v58 }
 0x796   :  { %2321 = vmatpush.msra.mxu1 %v1932_v59 }
 0x797   :  { %2500 = vmatpush.msrb.mxu0 %v2435_v60  ;;  %v2936_v60 = vld [vmem:[#allocation6 + $0x580] sm:$0xff] }
 0x798   :  { %2322 = vmatpush.msra.mxu1 %v1928_v5  ;;  %v2932_v5 = vld [vmem:[#allocation6 + $0x560] sm:$0xff] }
 0x799   :  { %2501 = vmatpush.msrb.mxu0 %v2434_v61  ;;  %2323 = vmatmul.f32.vlgmr.msra.gmra.mxu1 %v5369_v3  ;;  %v2928_v61 = vld [vmem:[#allocation6 + $0x540] sm:$0xff] }
 0x79a   :  { %2502 = vmatmul.f32.vlgmr.msrb.gmra.mxu0 %v5369_v3  ;;  %2506 = vmatpush.msrb.mxu1 %v2465_v62  ;;  %v2460_v3 = vld [vmem:[%s6276_s7 + $0xd0] sm:$0xff] }
 0x79c   :  { %2507 = vmatpush.msrb.mxu1 %v2464_v63 }
 0x79e   :  { %2508 = vmatpush.msrb.mxu1 %v2463_v9  ;;  %v2924_v9 = vld [vmem:[#allocation6 + $0x520] sm:$0xff] }
 0x7a0   :  { %2509 = vmatpush.msrb.mxu1 %v2462_v4 }
 0x7a2   :  { %2510 = vmatpush.msrb.mxu1 %v2461_v14  ;;  %v2920_v14 = vld [vmem:[#allocation6 + $0x500] sm:$0xff] }
 0x7a4   :  { %2511 = vmatpush.msrb.mxu1 %v2460_v3 }
 0x7a5   :  { %v2144_v20 = vpop.f32.mrf.mxu0 }
 0x7a6   :  { %2512 = vmatpush.msrb.mxu1 %v2459_v10  ;;  %v2145_v33 = vadd.f32 %v2144_v20, %v2119_v13  ;;  %v2122_v10 = vperm.slane %v5508_v27, 3 }
 0x7a8   :  { %2513 = vmatpush.msrb.mxu1 %v2458_v12 }
 0x7aa   :  { %2514 = vmatpush.msrb.mxu1 %v2457_v15  ;;  %v2916_v15 = vld [vmem:[#allocation6 + $0x4e0] sm:$0xff] }
 0x7ab   :  { %v2204_v42 = vpop.f32.mrf.mxu3 }
 0x7ac   :  { %2515 = vmatpush.msrb.mxu1 %v2456_v16  ;;  %v2205_v39 = vadd.f32 %v2204_v42, %v2120_v57  ;;  %v2264_v62 = vpop.f32.mrf.mxu2  ;;  %v2892_v57 = vld [vmem:[#allocation6 + $0x420] sm:$0xff] }
 0x7ae   :  { %2516 = vmatpush.msrb.mxu1 %v2455_v17 }
 0x7b0   :  { %2517 = vmatpush.msrb.mxu1 %v2454_v54  ;;  %v2912_v54 = vld [vmem:[#allocation6 + $0x4c0] sm:$0xff] }
 0x7b2   :  { %2518 = vmatpush.msrb.mxu1 %v2453_v45  ;;  %v2121_v45 = vperm.slane %v5508_v27, 2 }
 0x7b4   :  { %2519 = vmatpush.msrb.mxu1 %v2452_v11  ;;  %v2265_v0 = vadd.f32 %v2264_v62, %v2121_v45 }
 0x7b6   :  { %2520 = vmatpush.msrb.mxu1 %v2451_v47 }
 0x7b8   :  { %2521 = vmatpush.msrb.mxu1 %v2450_v55 }
 0x7b9   :  { %2522 = vmatmul.f32.vlgmr.msrb.gmra.mxu1 %v5382_v32  ;;  %v2474_v32 = vld [vmem:[%s6276_s7 + $0x140] sm:$0xff] }
 0x7ba   :  { %2533 = vmatpush.msrb.mxu2 %v2474_v32 }
 0x7bc   :  { %2534 = vmatpush.msrb.mxu2 %v2473_v2  ;;  %v2896_v2 = vld [vmem:[#allocation6 + $0x440] sm:$0xff] }
 0x7be   :  { %2535 = vmatpush.msrb.mxu2 %v2472_v29  ;;  %v2888_v29 = vld [vmem:[#allocation6 + $0x400] sm:$0xff] }
 0x7c0   :  { %2536 = vmatpush.msrb.mxu2 %v2471_v37 }
 0x7c2   :  { %2537 = vmatpush.msrb.mxu2 %v2470_v40 }
 0x7c4   :  { %2538 = vmatpush.msrb.mxu2 %v2469_v46 }
 0x7c6   :  { %2539 = vmatpush.msrb.mxu2 %v2468_v23 }
 0x7c8   :  { %2540 = vmatpush.msrb.mxu2 %v2467_v49 }
 0x7ca   :  { %2541 = vmatpush.msrb.mxu2 %v2466_v50 }
 0x7cc   :  { %3002 = vmatpush.msra.mxu2 %v2948_v51 }
 0x7ce   :  { %3003 = vmatpush.msra.mxu2 %v2944_v52 }
 0x7d0   :  { %3004 = vmatpush.msra.mxu2 %v2940_v7 }
 0x7d2   :  { %3005 = vmatpush.msra.mxu2 %v2936_v60 }
 0x7d4   :  { %3006 = vmatpush.msra.mxu2 %v2932_v5 }
 0x7d6   :  { %3007 = vmatpush.msra.mxu2 %v2928_v61 }
 0x7d8   :  { %3008 = vmatpush.msra.mxu2 %v2924_v9 }
 0x7da   :  { %3009 = vmatpush.msra.mxu2 %v2920_v14 }
 0x7dc   :  { %3010 = vmatpush.msra.mxu2 %v2916_v15 }
 0x7de   :  { %3011 = vmatpush.msra.mxu2 %v2912_v54 }
 0x7e0   :  { %3012 = vmatpush.msra.mxu2 %v2908_v18 }
 0x7e2   :  { %3013 = vmatpush.msra.mxu2 %v2904_v22 }
 0x7e4   :  { %3014 = vmatpush.msra.mxu2 %v2900_v28  ;;  %v2573_v28 = vld [vmem:[%s6273_s4 + $0x78] sm:$0xff] }
 0x7e5   :  { %2574 = vmatpush.msrb.mxu3 %v2573_v28 }
 0x7e6   :  { %3015 = vmatpush.msra.mxu2 %v2896_v2  ;;  %v2569_v2 = vld [vmem:[%s6273_s4 + $0x58] sm:$0xff] }
 0x7e8   :  { %3016 = vmatpush.msra.mxu2 %v2892_v57 }
 0x7ea   :  { %3017 = vmatpush.msra.mxu2 %v2888_v29  ;;  %v2566_v29 = vld [vmem:[%s6273_s4 + $0x40] sm:$0xff] }
 0x7f6   :  { %v2164_v6 = vpop.f32.mrf.mxu1  ;;  %v2224_v38 = vpop.f32.mrf.mxu0 }
 0x7f7   :  { %v2165_v43 = vadd.f32 %v2164_v6, %v2145_v33  ;;  %v2225_v44 = vadd.f32 %v2224_v38, %v2205_v39 }
 0x7f9   :  { %v2185_v36 = vadd.f32 %v2184_v34, %v2165_v43 }
 0x7fb   :  { %v4239_v41 = vmul.f32 -1.442695, %v2185_v36 }
 0x7fd   :  { %4321 = vpow2.f32 %v4239_v41  ;;  %v2284_v63 = vpop.f32.mrf.mxu3 }
 0x7fe   :  { %v2244_v48 = vpop.f32.mrf.mxu1  ;;  %v2344_v47 = vpop.f32.mrf.mxu2  ;;  %v2285_v32 = vadd.f32 %v2284_v63, %v2265_v0  ;;  %v5622_v0 = vld [vmem:[%s6271_s2 + $0x38] sm:$0xff] }
 0x7ff   :  { %v2245_v53 = vadd.f32 %v2244_v48, %v2225_v44  ;;  %v2304_v27 = vpop.f32.mrf.mxu0 }
 0x800   :  { %v2305_v42 = vadd.f32 %v2304_v27, %v2285_v32  ;;  %v2571_v32 = vld [vmem:[%s6273_s4 + $0x68] sm:$0xff] }
 0x801   :  { %v4240_v31 = vmul.f32 -1.442695, %v2245_v53 }
 0x803   :  { %4323 = vpow2.f32 %v4240_v31  ;;  %v4322_v30 = vpop.eup %4321 }
 0x804   :  { %v5545_v58 = vadd.f32 1.0, %v4322_v30 }
 0x806   :  { %v2364_v26 = vpop.f32.mrf.mxu3  ;;  %v2382_v38 = vand.u32 2147483648, %v5545_v58  ;;  %vm2376_vm15 = vweird.f32 %v5545_v58  ;;  %v2380_v39 = vand.u32 2147483647, %v5545_v58 }
 0x808   :  { %v2383_v53 = vor.u32 1.1754944e-38, %v2382_v38  ;;  %vm2381_vm10 = vcmp.eq.f32.partialorder %v2380_v39, 8.507059e+37  ;;  %v2563_v38 = vld [vmem:[%s6273_s4 + $0x28] sm:$0xff]  ;;  %v2562_v39 = vld [vmem:[%s6273_s4 + $0x20] sm:$0xff] }
 0x809   :  { %v4324_v56 = vpop.eup %4323 }
 0x80a   :  { %v5547_v59 = vadd.f32 1.0, %v4324_v56 }
 0x80c   :  { %4325 = vrcp.f32 %v5547_v59  ;;  %v2401_v34 = vand.u32 2147483648, %v5547_v59  ;;  %vm2395_vm13 = vweird.f32 %v5547_v59  ;;  %v2399_v37 = vand.u32 2147483647, %v5547_v59 }
 0x80d   :  { %4327 = vrcp.f32 %v5545_v58 }
 0x80e   :  { %v2402_v44 = vor.u32 1.1754944e-38, %v2401_v34  ;;  %vm2400_vm9 = vcmp.eq.f32.partialorder %v2399_v37, 8.507059e+37  ;;  %v2565_v34 = vld [vmem:[%s6273_s4 + $0x38] sm:$0xff]  ;;  %v2564_v37 = vld [vmem:[%s6273_s4 + $0x30] sm:$0xff] }
 0x812   :  { %v4326_v4 = vpop.eup %4325 }
 0x813   :  { %v5551_v3 = vpop.eup %4327  ;;  %v2391_v12 = vmul.f32 %v4326_v4, %v5547_v59  ;;  %vm2396_vm11 = vweird.f32 %v4326_v4 }
 0x814   :  { %v2372_v16 = vmul.f32 %v5551_v3, %v5545_v58  ;;  %vm2377_vm14 = vweird.f32 %v5551_v3  ;;  %vm2397_vm8 = vmor %vm2395_vm13, %vm2396_vm11 }
 0x815   :  { %v2392_v55 = vsub.f32 1.0, %v2391_v12  ;;  %vm2378_vm7 = vmor %vm2376_vm15, %vm2377_vm14  ;;  %v5593_v12 = vld [vmem:[%s6271_s2 + $0x30] sm:$0xff] }
 0x816   :  { %v2324_v17 = vpop.f32.mrf.mxu1  ;;  %v2373_v24 = vsub.f32 1.0, %v2372_v16  ;;  %v4274_v16 = vld [vmem:[%s6277_s8] ss:$0 sm:$0xff] }
 0x817   :  { %v2325_v11 = vadd.f32 %v2324_v17, %v2122_v10  ;;  %v2393_v20 = vmul.f32 %v4326_v4, %v2392_v55  ;;  %v2503_v17 = vpop.f32.mrf.mxu0 }
 0x818   :  { %v2374_v6 = vmul.f32 %v5551_v3, %v2373_v24  ;;  %v2504_v45 = vadd.f32 %v4274_v16, %v2503_v17  ;;  %v5615_v24 = vld [vmem:[%s6271_s2 + $0x20] sm:$0xff] }
 0x819   :  { %v2345_v19 = vadd.f32 %v2344_v47, %v2325_v11  ;;  %v2394_v43 = vadd.f32 %v4326_v4, %v2393_v20  ;;  %v2572_v20 = vld [vmem:[%s6273_s4 + $0x70] sm:$0xff] }
 0x81a   :  { %v2375_v36 = vadd.f32 %v5551_v3, %v2374_v6  ;;  %2575 = vmatpush.msrb.mxu3 %v2572_v20  ;;  %v2568_v6 = vld [vmem:[%s6273_s4 + $0x50] sm:$0xff] }
 0x81b   :  { %v2365_v13 = vadd.f32 %v2364_v26, %v2345_v19  ;;  %v2398_v40 = vsel %vm2397_vm8, %v4326_v4, %v2394_v43  ;;  %v5578_v4 = vld [vmem:[%s6271_s2] sm:$0xff]  ;;  %v5608_v19 = vld [vmem:[%s6271_s2 + $0x8] sm:$0xff] }
 0x81c   :  { %v2379_v46 = vsel %vm2378_vm7, %v5551_v3, %v2375_v36  ;;  %v2403_v23 = vsel %vm2400_vm9, %v2402_v44, %v2398_v40  ;;  %v5586_v3 = vld [vmem:[%s6271_s2 + $0x18] sm:$0xff]  ;;  %2576 = vmatpush.msrb.mxu3 %v2571_v32  ;;  %v2567_v43 = vld [vmem:[%s6273_s4 + $0x48] sm:$0xff]  ;;  %vm6290_vm9 = vcmp.gt.f32.partialorder %v4597_v35, 0.5 }
 0x81d   :  { %v4241_v33 = vmul.f32 -1.442695, %v2365_v13  ;;  %v2384_v31 = vsel %vm2381_vm10, %v2383_v53, %v2379_v46  ;;  %v2425_v49 = vmul.f32 %v2403_v23, %v5215_v1  ;;  %v2561_v40 = vld [vmem:[%s6273_s4 + $0x18] sm:$0xff]  ;;  %v2560_v46 = vld [vmem:[%s6273_s4 + $0x10] sm:$0xff]  ;;  %v2558_v53 = vld [vmem:[%s6273_s4] sm:$0xff]  ;;  %vm6291_vm10 = vcmask 64512  }
 0x81f   :  { %4329 = vpow2.f32 %v4241_v33  ;;  %v2570_v33 = vld [vmem:[%s6273_s4 + $0x60] sm:$0xff] }
 0x820   :  { %4331 = vtanh.f32 %v2305_v42  ;;  %2577 = vmatpush.msrb.mxu3 %v2570_v33  ;;  %v5657_v42 = vld [vmem:[%s6271_s2 + $0x10] sm:$0xff] }
 0x822   :  { %2578 = vmatpush.msrb.mxu3 %v2569_v2 }
 0x824   :  { %2579 = vmatpush.msrb.mxu3 %v2568_v6 }
 0x825   :  { %v4330_v41 = vpop.eup %4329 }
 0x826   :  { %v2409_v48 = vadd.f32 1.0, %v4330_v41  ;;  %v4332_v50 = vpop.eup %4331  ;;  %2580 = vmatpush.msrb.mxu3 %v2567_v43  ;;  %v5676_v41 = vld [vmem:[%s6271_s2 + $0x28] sm:$0xff] }
 0x827   :  { %v2426_v51 = vmul.f32 %v4332_v50, %v2384_v31 }
 0x828   :  { %4333 = vrcp.f32 %v2409_v48  ;;  %v2421_v58 = vand.u32 2147483648, %v2409_v48  ;;  %v2419_v60 = vand.u32 2147483647, %v2409_v48  ;;  %vm2415_vm13 = vweird.f32 %v2409_v48  ;;  %2581 = vmatpush.msrb.mxu3 %v2566_v29 }
 0x829   :  { %v5569_v52 = vadd.f32 %v2426_v51, %v2425_v49 }
 0x82a   :  { %v2422_v61 = vor.u32 1.1754944e-38, %v2421_v58  ;;  %vm2420_vm8 = vcmp.eq.f32.partialorder %v2419_v60, 8.507059e+37  ;;  %2582 = vmatpush.msrb.mxu3 %v2565_v34 }
 0x82b   :  { %4335 = vtanh.f32 %v5569_v52 }
 0x82c   :  { %2583 = vmatpush.msrb.mxu3 %v2564_v37 }
 0x82e   :  { %v4334_v30 = vpop.eup %4333  ;;  %2584 = vmatpush.msrb.mxu3 %v2563_v38  ;;  %v2820_v38 = vld [vmem:[#allocation6 + $0x1e0] sm:$0xff] }
 0x82f   :  { %v2411_v7 = vmul.f32 %v4334_v30, %v2409_v48  ;;  %vm2416_vm11 = vweird.f32 %v4334_v30  ;;  %v2559_v48 = vld [vmem:[%s6273_s4 + $0x8] sm:$0xff]  ;;  %2962 = vmatpush.msra.mxu0 %v2820_v38 }
 0x830   :  { %vm2417_vm14 = vmor %vm2415_vm13, %vm2416_vm11  ;;  %2585 = vmatpush.msrb.mxu3 %v2562_v39  ;;  %v2821_v39 = vld [vmem:[#allocation6 + $0x1e8] sm:$0xff] }
 0x831   :  { %v2412_v56 = vsub.f32 1.0, %v2411_v7  ;;  %v4336_v1 = vpop.eup %4335  ;;  %vm6292_vm11 = vmmov %vm6291_vm10  ;;  %v2777_v38 = vld [vmem:[#allocation6 + $0x88] sm:$0xff] }
 0x832   :  { %2586 = vmatpush.msrb.mxu3 %v2561_v40  ;;  %v2822_v40 = vld [vmem:[#allocation6 + $0x1f0] sm:$0xff] }
 0x833   :  { %v2413_v59 = vmul.f32 %v4334_v30, %v2412_v56 }
 0x834   :  { %2587 = vmatpush.msrb.mxu3 %v2560_v46  ;;  %v2816_v46 = vld [vmem:[#allocation6 + $0x1c0] sm:$0xff] }
 0x835   :  { %v2414_v5 = vadd.f32 %v4334_v30, %v2413_v59  ;;  %2963 = vmatpush.msra.mxu0 %v2816_v46  ;;  %v2774_v46 = vld [vmem:[#allocation6 + $0x70] sm:$0xff] }
 0x836   :  { %v2523_v54 = vpop.f32.mrf.mxu1  ;;  %2588 = vmatpush.msrb.mxu3 %v2559_v48  ;;  %v2817_v48 = vld [vmem:[#allocation6 + $0x1c8] sm:$0xff] }
 0x837   :  { %v2418_v62 = vsel %vm2417_vm14, %v4334_v30, %v2414_v5  ;;  %v2524_v11 = vadd.f32 %v2523_v54, %v2504_v45 }
 0x838   :  { %v2423_v63 = vsel %vm2420_vm8, %v2422_v61, %v2418_v62  ;;  %2589 = vmatpush.msrb.mxu3 %v2558_v53  ;;  %v2818_v53 = vld [vmem:[#allocation6 + $0x1d0] sm:$0xff] }
 0x839   :  { %v5572_v9 = vmul.f32 %v4336_v1, %v2423_v63 }
 0x83a   :  { %3022 = vmatpush.msra.mxu3 %v2821_v39  ;;  %v2778_v39 = vld [vmem:[#allocation6 + $0x90] sm:$0xff] }
 0x83b   :  { %2542 = vmatmul.f32.vlgmr.msrb.gmra.mxu2 %v5572_v9  ;;  %v2602_v14 = vmul.f32 %v5578_v4, %v5572_v9  ;;  %v2605_v10 = vmul.f32 %v5586_v3, %v5572_v9  ;;  %v2608_v15 = vmul.f32 %v5593_v12, %v5572_v9  ;;  %v2603_v22 = vmul.f32 %v5608_v19, %v5572_v9 }
 0x83c   :  { %v2606_v26 = vmul.f32 %v5615_v24, %v5572_v9  ;;  %v2609_v13 = vmul.f32 %v5622_v0, %v5572_v9  ;;  %v2604_v36 = vmul.f32 %v5657_v42, %v5572_v9  ;;  %v2607_v44 = vmul.f32 %v5676_v41, %v5572_v9  ;;  %3082 = vmatpush.msrb.mxu2 %v2822_v40  ;;  %v2772_v40 = vld [vmem:[#allocation6 + $0x60] sm:$0xff] }
 0x83d   :  { %2610 = vadd.xlane.f32.xlu0 %v2602_v14  ;;  %3023 = vmatpush.msra.mxu3 %v2817_v48  ;;  %v2768_v48 = vld [vmem:[#allocation6 + $0x40] sm:$0xff] }
 0x83e   :  { %3083 = vmatpush.msrb.mxu2 %v2818_v53  ;;  %v2769_v53 = vld [vmem:[#allocation6 + $0x48] sm:$0xff] }
 0x843   :  { %3018 = vmatmul.f32.vlgmr.msra.gmra.mxu2 %v5572_v9 }
 0x845   :  { %2616 = vadd.xlane.f32.xlu0 %v2605_v10 }
 0x84d   :  { %2622 = vadd.xlane.f32.xlu0 %v2608_v15 }
 0x8b0   :  { %v2611_v23 = vpop.xlane.xlu0 %2610 }
 0x8b1   :  { %v2634_v56 = vperm.slane %v2611_v23, %v4582_v21  ;;  %v2812_v23 = vld [vmem:[#allocation6 + $0x1a0] sm:$0xff] }
 0x8b2   :  { %2964 = vmatpush.msra.mxu0 %v2812_v23  ;;  %v2770_v23 = vld [vmem:[#allocation6 + $0x50] sm:$0xff] }
 0x8b8   :  { %v2617_v50 = vpop.xlane.xlu0 %2616 }
 0x8b9   :  { %v2637_v5 = vperm.slane %v2617_v50, %v4582_v21  ;;  %v2814_v50 = vld [vmem:[#allocation6 + $0x1b0] sm:$0xff] }
 0x8ba   :  { %3084 = vmatpush.msrb.mxu2 %v2814_v50 }
 0x8be   :  { %v2543_v47 = vpop.f32.mrf.mxu2 }
 0x8bf   :  { %v2544_v55 = vadd.f32 %v2543_v47, %v2524_v11 }
 0x8c0   :  { %v2623_v61 = vpop.xlane.xlu0 %2622 }
 0x8c1   :  { %4242 = vst [vmem:[%s6280_s11 + $0x10] sm:$0xff] %v2544_v55  ;;  %v2548_v18 = vsel %vm80_vm12, %v2544_v55, -1e+30  ;;  %v2640_v15 = vperm.slane %v2623_v61, %v4582_v21 }
 0x8c2   :  { %2549 = vmax.xlane.f32.xlu1 %v2548_v18 }
 0x8ca   :  { %2612 = vadd.xlane.f32.xlu1 %v2603_v22 }
 0x8d2   :  { %2618 = vadd.xlane.f32.xlu1 %v2606_v26 }
 0x8da   :  { %2624 = vadd.xlane.f32.xlu1 %v2609_v13 }
 0x935   :  { %v2550_v27 = vpop.xlane.xlu1 %2549 }
 0x936   :  { %vm2551_vm15 = vcmp.eq.f32.partialorder %v2548_v18, %v2550_v27 }
 0x937   :  { %v2552_v57 = vsel %vm2551_vm15, %v4918_v8, 1e+09 }
 0x938   :  { %2553 = vmin.xlane.f32.xlu2 %v2552_v57 }
 0x93d   :  { %v2613_v31 = vpop.xlane.xlu1 %2612 }
 0x93e   :  { %v2635_v30 = vperm.slane %v2613_v31, %v4582_v21  ;;  %v2813_v31 = vld [vmem:[#allocation6 + $0x1a8] sm:$0xff] }
 0x93f   :  { %3024 = vmatpush.msra.mxu3 %v2813_v31 }
 0x940   :  { %2614 = vadd.xlane.f32.xlu2 %v2604_v36  ;;  %v2642_v59 = vsel %vm130_vm0, %v2635_v30, %v2634_v56  ;;  %v2808_v30 = vld [vmem:[#allocation6 + $0x180] sm:$0xff] }
 0x941   :  { %2965 = vmatpush.msra.mxu0 %v2808_v30  ;;  %v2766_v30 = vld [vmem:[#allocation6 + $0x30] sm:$0xff] }
 0x945   :  { %v2619_v51 = vpop.xlane.xlu1 %2618 }
 0x946   :  { %v2638_v1 = vperm.slane %v2619_v51, %v4582_v21 }
 0x948   :  { %2620 = vadd.xlane.f32.xlu2 %v2607_v44 }
 0x94d   :  { %v2625_v63 = vpop.xlane.xlu1 %2624 }
 0x94e   :  { %v2641_v17 = vperm.slane %v2625_v63, %v4582_v21  ;;  %v2800_v63 = vld [vmem:[#allocation6 + $0x140] sm:$0xff] }
 0x9ab   :  { %v2554_v49 = vpop.xlane.xlu2 %2553 }
 0x9ac   :  { %vm2555_vm7 = vcmp.eq.f32.partialorder %v4918_v8, %v2554_v49 }
 0x9ad   :  { %4244 = vmatmul.msk.f32.vlgmr.msrb.gmra.mxu3 %vm2555_vm7, %v4454_v25 }
 0x9b3   :  { %v2615_v7 = vpop.xlane.xlu2 %2614 }
 0x9b4   :  { %v2636_v58 = vperm.slane %v2615_v7, %v4582_v21  ;;  %v2809_v7 = vld [vmem:[#allocation6 + $0x188] sm:$0xff] }
 0x9b5   :  { %3025 = vmatpush.msra.mxu3 %v2809_v7  ;;  %v2760_v7 = vld [vmem:[#allocation6] sm:$0xff] }
 0x9b6   :  { %v2643_v60 = vsel %vm132_vm1, %v2636_v58, %v2642_v59  ;;  %v2810_v59 = vld [vmem:[#allocation6 + $0x190] sm:$0xff] }
 0x9b7   :  { %v2644_v62 = vsel %vm134_vm2, %v2637_v5, %v2643_v60  ;;  %v2804_v60 = vld [vmem:[#allocation6 + $0x160] sm:$0xff]  ;;  %v2805_v5 = vld [vmem:[#allocation6 + $0x168] sm:$0xff]  ;;  %3085 = vmatpush.msrb.mxu2 %v2810_v59 }
 0x9b8   :  { %v2645_v16 = vsel %vm136_vm3, %v2638_v1, %v2644_v62  ;;  %v2806_v62 = vld [vmem:[#allocation6 + $0x170] sm:$0xff]  ;;  %2966 = vmatpush.msra.mxu0 %v2804_v60  ;;  %3026 = vmatpush.msra.mxu3 %v2805_v5  ;;  %v2884_v59 = vld [vmem:[#allocation6 + $0x3e0] sm:$0xff]  ;;  %v2885_v60 = vld [vmem:[#allocation6 + $0x3e8] sm:$0xff] }
 0x9b9   :  { %3086 = vmatpush.msrb.mxu2 %v2806_v62  ;;  %v2880_v5 = vld [vmem:[#allocation6 + $0x3c0] sm:$0xff]  ;;  %2982 = vmatpush.msra.mxu1 %v2884_v59  ;;  %v2887_v59 = vld [vmem:[#allocation6 + $0x3f8] sm:$0xff] }
 0x9ba   :  { %2967 = vmatpush.msra.mxu0 %v2800_v63  ;;  %v2876_v62 = vld [vmem:[#allocation6 + $0x3a0] sm:$0xff]  ;;  %v2886_v63 = vld [vmem:[#allocation6 + $0x3f0] sm:$0xff] }
 0x9bb   :  { %v2621_v14 = vpop.xlane.xlu2 %2620  ;;  %2983 = vmatpush.msra.mxu1 %v2880_v5  ;;  %v2945_v5 = vld [vmem:[#allocation6 + $0x5c8] sm:$0xff] }
 0x9bc   :  { %v2639_v10 = vperm.slane %v2621_v14, %v4582_v21  ;;  %v2801_v14 = vld [vmem:[#allocation6 + $0x148] sm:$0xff] }
 0x9bd   :  { %3027 = vmatpush.msra.mxu3 %v2801_v14  ;;  %v2872_v14 = vld [vmem:[#allocation6 + $0x380] sm:$0xff]  ;;  %2984 = vmatpush.msra.mxu1 %v2876_v62  ;;  %v2883_v62 = vld [vmem:[#allocation6 + $0x3d8] sm:$0xff] }
 0x9be   :  { %v2646_v54 = vsel %vm138_vm4, %v2639_v10, %v2645_v16 }
 0x9bf   :  { %v2647_v45 = vsel %vm140_vm5, %v2640_v15, %v2646_v54  ;;  %v2802_v15 = vld [vmem:[#allocation6 + $0x150] sm:$0xff]  ;;  %v2797_v54 = vld [vmem:[#allocation6 + $0x128] sm:$0xff]  ;;  %2985 = vmatpush.msra.mxu1 %v2872_v14 }
 0x9c0   :  { %v2648_v11 = vsel %vm142_vm6, %v2641_v17, %v2647_v45  ;;  %v2796_v17 = vld [vmem:[#allocation6 + $0x120] sm:$0xff]  ;;  %3087 = vmatpush.msrb.mxu2 %v2802_v15  ;;  %3028 = vmatpush.msra.mxu3 %v2797_v54  ;;  %v2882_v15 = vld [vmem:[#allocation6 + $0x3d0] sm:$0xff]  ;;  %v2869_v54 = vld [vmem:[#allocation6 + $0x368] sm:$0xff] }
 0x9c1   :  { %v2650_v47 = vsel %vm6290_vm9, %v2648_v11, -1e+09  ;;  %v2798_v11 = vld [vmem:[#allocation6 + $0x130] sm:$0xff]  ;;  %2968 = vmatpush.msra.mxu0 %v2796_v17  ;;  %v2868_v17 = vld [vmem:[#allocation6 + $0x360] sm:$0xff] }
 0x9c2   :  { %v2651_v55 = vsel %vm6291_vm10, %v2650_v47, -inf  ;;  %3088 = vmatpush.msrb.mxu2 %v2798_v11  ;;  %v2865_v11 = vld [vmem:[#allocation6 + $0x348] sm:$0xff]  ;;  %2986 = vmatpush.msra.mxu1 %v2868_v17  ;;  %v2942_v14 = vld [vmem:[#allocation6 + $0x5b0] sm:$0xff] }
 0x9c3   :  { %v2652_v18 = vrot.slane %v2651_v55, 4  ;;  %v2938_v17 = vld [vmem:[#allocation6 + $0x590] sm:$0xff] }
 0x9c5   :  { %v2653_v22 = vmax.f32 %v2651_v55, %v2652_v18 }
 0x9c7   :  { %v2654_v26 = vrot.slane %v2653_v22, 2 }
 0x9c9   :  { %v2655_v13 = vmax.f32 %v2653_v22, %v2654_v26  ;;  %v2792_v22 = vld [vmem:[#allocation6 + $0x100] sm:$0xff]  ;;  %v2793_v26 = vld [vmem:[#allocation6 + $0x108] sm:$0xff] }
 0x9ca   :  { %2969 = vmatpush.msra.mxu0 %v2792_v22  ;;  %3029 = vmatpush.msra.mxu3 %v2793_v26  ;;  %v4246_v22 = vld [vmem:[%s6270_s1 + $0x18] sm:$0xff] }
 0x9cb   :  { %v2656_v28 = vrot.slane %v2655_v13, 1 }
 0x9cd   :  { %v2657_v20 = vmax.f32 %v2655_v13, %v2656_v28  ;;  %v2794_v13 = vld [vmem:[#allocation6 + $0x110] sm:$0xff]  ;;  %v2788_v28 = vld [vmem:[#allocation6 + $0xe0] sm:$0xff] }
 0x9ce   :  { %3089 = vmatpush.msrb.mxu2 %v2794_v13  ;;  %2970 = vmatpush.msra.mxu0 %v2788_v28  ;;  %v2856_v28 = vld [vmem:[#allocation6 + $0x300] sm:$0xff] }
 0x9cf   :  { %v2658_v32 = vsub.f32 %v2650_v47, %v2657_v20  ;;  %v2789_v20 = vld [vmem:[#allocation6 + $0xe8] sm:$0xff] }
 0x9d0   :  { %3030 = vmatpush.msra.mxu3 %v2789_v20  ;;  %v2857_v20 = vld [vmem:[#allocation6 + $0x308] sm:$0xff] }
 0x9d1   :  { %v2659_v33 = vmul.f32 1.442695, %v2658_v32  ;;  %v2790_v32 = vld [vmem:[#allocation6 + $0xf0] sm:$0xff] }
 0x9d2   :  { %3090 = vmatpush.msrb.mxu2 %v2790_v32  ;;  %v2874_v32 = vld [vmem:[#allocation6 + $0x390] sm:$0xff] }
 0x9d3   :  { %4337 = vpow2.f32 %v2659_v33  ;;  %v2784_v33 = vld [vmem:[#allocation6 + $0xc0] sm:$0xff] }
 0x9d4   :  { %2971 = vmatpush.msra.mxu0 %v2784_v33  ;;  %v2852_v33 = vld [vmem:[#allocation6 + $0x2e0] sm:$0xff] }
 0x9d9   :  { %v4338_v2 = vpop.eup %4337 }
 0x9da   :  { %v2661_v27 = vsel %vm6292_vm11, %v4338_v2, 0.0 }
 0x9db   :  { %v2662_v6 = vrot.slane %v2661_v27, 4 }
 0x9dd   :  { %v2663_v57 = vadd.f32 %v2662_v6, %v2661_v27  ;;  %v2786_v27 = vld [vmem:[#allocation6 + $0xd0] sm:$0xff]  ;;  %v2780_v6 = vld [vmem:[#allocation6 + $0xa0] sm:$0xff] }
 0x9de   :  { %3091 = vmatpush.msrb.mxu2 %v2786_v27  ;;  %2972 = vmatpush.msra.mxu0 %v2780_v6  ;;  %v2870_v27 = vld [vmem:[#allocation6 + $0x370] sm:$0xff]  ;;  %v2848_v6 = vld [vmem:[#allocation6 + $0x2c0] sm:$0xff] }
 0x9df   :  { %v2664_v43 = vrot.slane %v2663_v57, 2 }
 0x9e1   :  { %v2665_v29 = vadd.f32 %v2664_v43, %v2663_v57 }
 0x9e3   :  { %v2666_v34 = vrot.slane %v2665_v29, 1 }
 0x9e5   :  { %v2667_v36 = vadd.f32 %v2666_v34, %v2665_v29  ;;  %v2781_v29 = vld [vmem:[#allocation6 + $0xa8] sm:$0xff] }
 0x9e7   :  { %4339 = vrcp.f32 %v2667_v36  ;;  %v2679_v51 = vand.u32 2147483648, %v2667_v36  ;;  %v2677_v58 = vand.u32 2147483647, %v2667_v36  ;;  %vm2673_vm14 = vweird.f32 %v2667_v36 }
 0x9e9   :  { %v2680_v1 = vor.u32 1.1754944e-38, %v2679_v51  ;;  %vm2678_vm15 = vcmp.eq.f32.partialorder %v2677_v58, 8.507059e+37  ;;  %v2765_v51 = vld [vmem:[#allocation6 + $0x28] sm:$0xff]  ;;  %v2762_v58 = vld [vmem:[#allocation6 + $0x10] sm:$0xff] }
 0x9ed   :  { %v4340_v37 = vpop.eup %4339 }
 0x9ee   :  { %v2669_v44 = vmul.f32 %v4340_v37, %v2667_v36  ;;  %vm2674_vm13 = vweird.f32 %v4340_v37  ;;  %v2782_v36 = vld [vmem:[#allocation6 + $0xb0] sm:$0xff] }
 0x9ef   :  { %vm2675_vm8 = vmor %vm2673_vm14, %vm2674_vm13  ;;  %3092 = vmatpush.msrb.mxu2 %v2782_v36  ;;  %v2862_v36 = vld [vmem:[#allocation6 + $0x330] sm:$0xff] }
 0x9f0   :  { %v2670_v49 = vsub.f32 1.0, %v2669_v44  ;;  %v2773_v44 = vld [vmem:[#allocation6 + $0x68] sm:$0xff] }
 0x9f1   :  { %3093 = vmatpush.msrb.mxu2 %v2778_v39  ;;  %v2858_v39 = vld [vmem:[#allocation6 + $0x310] sm:$0xff] }
 0x9f2   :  { %v2671_v56 = vmul.f32 %v4340_v37, %v2670_v49  ;;  %v2764_v49 = vld [vmem:[#allocation6 + $0x20] sm:$0xff] }
 0x9f3   :  { %3094 = vmatpush.msrb.mxu2 %v2774_v46  ;;  %v2854_v46 = vld [vmem:[#allocation6 + $0x2f0] sm:$0xff] }
 0x9f4   :  { %v2672_v61 = vadd.f32 %v4340_v37, %v2671_v56  ;;  %v2761_v56 = vld [vmem:[#allocation6 + $0x8] sm:$0xff] }
 0x9f5   :  { %3095 = vmatpush.msrb.mxu2 %v2770_v23  ;;  %v2850_v23 = vld [vmem:[#allocation6 + $0x2d0] sm:$0xff] }
 0x9f6   :  { %v2676_v10 = vsel %vm2675_vm8, %v4340_v37, %v2672_v61  ;;  %v2776_v37 = vld [vmem:[#allocation6 + $0x80] sm:$0xff]  ;;  %v2881_v61 = vld [vmem:[#allocation6 + $0x3c8] sm:$0xff] }
 0x9f7   :  { %v2681_v16 = vsel %vm2678_vm15, %v2680_v1, %v2676_v10  ;;  %2973 = vmatpush.msra.mxu0 %v2776_v37  ;;  %3096 = vmatpush.msrb.mxu2 %v2766_v30  ;;  %v2877_v1 = vld [vmem:[#allocation6 + $0x3a8] sm:$0xff]  ;;  %v2840_v37 = vld [vmem:[#allocation6 + $0x280] sm:$0xff] }
 0x9f8   :  { %v5710_v45 = vmul.f32 %v4338_v2, %v2681_v16  ;;  %v2785_v2 = vld [vmem:[#allocation6 + $0xc8] sm:$0xff]  ;;  %v2878_v16 = vld [vmem:[#allocation6 + $0x3b0] sm:$0xff] }
 0x9f9   :  { %3031 = vmatpush.msra.mxu3 %v2785_v2  ;;  %2974 = vmatpush.msra.mxu0 %v2772_v40  ;;  %v2873_v10 = vld [vmem:[#allocation6 + $0x388] sm:$0xff]  ;;  %v2836_v40 = vld [vmem:[#allocation6 + $0x260] sm:$0xff] }
 0x9fa   :  { %v2697_v47 = vperm.slane %v5710_v45, 2  ;;  %v2690_v55 = vperm.slane %v5710_v45, 1  ;;  %v2683_v18 = vperm.slane %v5710_v45, 0  ;;  %v2725_v57 = vperm.slane %v5710_v45, 6  ;;  %3097 = vmatpush.msrb.mxu2 %v2762_v58  ;;  %v2853_v2 = vld [vmem:[#allocation6 + $0x2e8] sm:$0xff]  ;;  %v2950_v58 = vld [vmem:[#allocation6 + $0x5f0] sm:$0xff] }
 0x9fb   :  { %v2704_v43 = vperm.slane %v5710_v45, 3  ;;  %v2711_v34 = vperm.slane %v5710_v45, 4  ;;  %3032 = vmatpush.msra.mxu3 %v2781_v29  ;;  %v2718_v31 = vperm.slane %v5710_v45, 5  ;;  %2975 = vmatpush.msra.mxu0 %v2768_v48  ;;  %v2732_v50 = vperm.slane %v5710_v45, 7  ;;  %v2864_v45 = vld [vmem:[#allocation6 + $0x340] sm:$0xff]  ;;  %v2825_v30 = vld [vmem:[#allocation6 + $0x208] sm:$0xff] }
 0x9fc   :  { %2702 = vperm.xlu1 %4271, %v2697_v47   ;;  %2695 = vperm.xlu0 %4270, %v2690_v55   ;;  %v2860_v47 = vld [vmem:[#allocation6 + $0x320] sm:$0xff]  ;;  %v2861_v55 = vld [vmem:[#allocation6 + $0x328] sm:$0xff] }
 0x9fd   :  { %2688 = vperm.xlu2 %4269, %v2683_v18   ;;  %3033 = vmatpush.msra.mxu3 %v2777_v38  ;;  %v2599_v18 = vstv %s2598_s19  ;;  %v2844_v29 = vld [vmem:[#allocation6 + $0x2a0] sm:$0xff]  ;;  %v2841_v38 = vld [vmem:[#allocation6 + $0x288] sm:$0xff] }
 0x9fe   :  { %2976 = vmatpush.msra.mxu0 %v2764_v49  ;;  %2987 = vmatpush.msra.mxu1 %v2864_v45  ;;  %vm2600_vm7 = vcmp.eq.s32.totalorder %v2599_v18, 1  ;;  %v2832_v48 = vld [vmem:[#allocation6 + $0x240] sm:$0xff]  ;;  %v2829_v49 = vld [vmem:[#allocation6 + $0x228] sm:$0xff]  ;;  %v2826_v45 = vld [vmem:[#allocation6 + $0x210] sm:$0xff] }
 0x9ff   :  { %3034 = vmatpush.msra.mxu3 %v2773_v44  ;;  %v2837_v44 = vld [vmem:[#allocation6 + $0x268] sm:$0xff]  ;;  %3162 = vmatpush.msra.mxu2 %v2887_v59  ;;  %v2951_v18 = vld [vmem:[#allocation6 + $0x5f8] sm:$0xff] }
 0xa00   :  { %2977 = vmatpush.msra.mxu0 %v2760_v7  ;;  %2988 = vmatpush.msra.mxu1 %v2860_v47  ;;  %v2842_v7 = vld [vmem:[#allocation6 + $0x290] sm:$0xff]  ;;  %v2919_v59 = vld [vmem:[#allocation6 + $0x4f8] sm:$0xff] }
 0xa01   :  { %3035 = vmatpush.msra.mxu3 %v2769_v53  ;;  %v2833_v53 = vld [vmem:[#allocation6 + $0x248] sm:$0xff]  ;;  %3163 = vmatpush.msra.mxu2 %v2883_v62  ;;  %v2934_v47 = vld [vmem:[#allocation6 + $0x570] sm:$0xff]  ;;  %v2915_v62 = vld [vmem:[#allocation6 + $0x4d8] sm:$0xff] }
 0xa02   :  { %3042 = vmatpush.msrb.mxu0 %v2885_v60  ;;  %2989 = vmatpush.msra.mxu1 %v2856_v28  ;;  %v2838_v60 = vld [vmem:[#allocation6 + $0x270] sm:$0xff]  ;;  %v2867_v28 = vld [vmem:[#allocation6 + $0x358] sm:$0xff] }
 0xa03   :  { %3036 = vmatpush.msra.mxu3 %v2765_v51  ;;  %v2824_v51 = vld [vmem:[#allocation6 + $0x200] sm:$0xff] }
 0xa04   :  { %2730 = vperm.xlu1 %4271, %v2725_v57   ;;  %2709 = vperm.xlu0 %4270, %v2704_v43   ;;  %v2849_v57 = vld [vmem:[#allocation6 + $0x2c8] sm:$0xff]  ;;  %v2866_v43 = vld [vmem:[#allocation6 + $0x350] sm:$0xff] }
 0xa05   :  { %2716 = vperm.xlu2 %4269, %v2711_v34   ;;  %3037 = vmatpush.msra.mxu3 %v2761_v56  ;;  %v2845_v34 = vld [vmem:[#allocation6 + $0x2a8] sm:$0xff] }
 0xa06   :  { %3043 = vmatpush.msrb.mxu0 %v2881_v61  ;;  %2990 = vmatpush.msra.mxu1 %v2852_v33  ;;  %v2949_v56 = vld [vmem:[#allocation6 + $0x5e8] sm:$0xff]  ;;  %v2946_v61 = vld [vmem:[#allocation6 + $0x5d0] sm:$0xff] }
 0xa07   :  { %3102 = vmatpush.msrb.mxu3 %v2886_v63  ;;  %v2941_v63 = vld [vmem:[#allocation6 + $0x5a8] sm:$0xff]  ;;  %v2926_v33 = vld [vmem:[#allocation6 + $0x530] sm:$0xff] }
 0xa08   :  { %3044 = vmatpush.msrb.mxu0 %v2877_v1  ;;  %2991 = vmatpush.msra.mxu1 %v2848_v6  ;;  %v2834_v1 = vld [vmem:[#allocation6 + $0x250] sm:$0xff]  ;;  %v2921_v6 = vld [vmem:[#allocation6 + $0x508] sm:$0xff] }
 0xa09   :  { %3103 = vmatpush.msrb.mxu3 %v2882_v15  ;;  %v2830_v15 = vld [vmem:[#allocation6 + $0x230] sm:$0xff] }
 0xa0a   :  { %3045 = vmatpush.msrb.mxu0 %v2873_v10  ;;  %2992 = vmatpush.msra.mxu1 %v2844_v29  ;;  %v2879_v10 = vld [vmem:[#allocation6 + $0x3b8] sm:$0xff] }
 0xa0b   :  { %3104 = vmatpush.msrb.mxu3 %v2878_v16  ;;  %v2937_v16 = vld [vmem:[#allocation6 + $0x588] sm:$0xff]  ;;  %3164 = vmatpush.msra.mxu2 %v2879_v10  ;;  %v2939_v29 = vld [vmem:[#allocation6 + $0x598] sm:$0xff] }
 0xa0c   :  { %2723 = vperm.xlu0 %4270, %v2718_v31   ;;  %3046 = vmatpush.msrb.mxu0 %v2869_v54  ;;  %v2828_v31 = vld [vmem:[#allocation6 + $0x220] sm:$0xff]  ;;  %v2875_v54 = vld [vmem:[#allocation6 + $0x398] sm:$0xff] }
 0xa0d   :  { %2737 = vperm.xlu2 %4269, %v2732_v50   ;;  %3105 = vmatpush.msrb.mxu3 %v2874_v32  ;;  %v2846_v50 = vld [vmem:[#allocation6 + $0x2b0] sm:$0xff]  ;;  %v2925_v32 = vld [vmem:[#allocation6 + $0x528] sm:$0xff]  ;;  %v2911_v10 = vld [vmem:[#allocation6 + $0x4b8] sm:$0xff] }
 0xa0e   :  { %3047 = vmatpush.msrb.mxu0 %v2865_v11  ;;  %2993 = vmatpush.msra.mxu1 %v2840_v37  ;;  %v2933_v11 = vld [vmem:[#allocation6 + $0x568] sm:$0xff]  ;;  %v2855_v37 = vld [vmem:[#allocation6 + $0x2f8] sm:$0xff] }
 0xa0f   :  { %3106 = vmatpush.msrb.mxu3 %v2870_v27  ;;  %3165 = vmatpush.msra.mxu2 %v2875_v54  ;;  %v2943_v27 = vld [vmem:[#allocation6 + $0x5b8] sm:$0xff] }
 0xa10   :  { %3048 = vmatpush.msrb.mxu0 %v2861_v55  ;;  %2994 = vmatpush.msra.mxu1 %v2836_v40  ;;  %v2871_v55 = vld [vmem:[#allocation6 + $0x378] sm:$0xff]  ;;  %v2914_v40 = vld [vmem:[#allocation6 + $0x4d0] sm:$0xff] }
 0xa11   :  { %3107 = vmatpush.msrb.mxu3 %v2866_v43  ;;  %3166 = vmatpush.msra.mxu2 %v2871_v55  ;;  %v2859_v43 = vld [vmem:[#allocation6 + $0x318] sm:$0xff] }
 0xa12   :  { %3049 = vmatpush.msrb.mxu0 %v2857_v20  ;;  %2995 = vmatpush.msra.mxu1 %v2832_v48  ;;  %v2947_v20 = vld [vmem:[#allocation6 + $0x5d8] sm:$0xff]  ;;  %v2909_v48 = vld [vmem:[#allocation6 + $0x4a8] sm:$0xff] }
 0xa13   :  { %3108 = vmatpush.msrb.mxu3 %v2862_v36  ;;  %3167 = vmatpush.msra.mxu2 %v2867_v28  ;;  %v2918_v36 = vld [vmem:[#allocation6 + $0x4f0] sm:$0xff]  ;;  %v2907_v54 = vld [vmem:[#allocation6 + $0x498] sm:$0xff] }
 0xa14   :  { %3050 = vmatpush.msrb.mxu0 %v2853_v2  ;;  %2996 = vmatpush.msra.mxu1 %v2828_v31  ;;  %v2863_v2 = vld [vmem:[#allocation6 + $0x338] sm:$0xff] }
 0xa15   :  { %3109 = vmatpush.msrb.mxu3 %v2858_v39  ;;  %3168 = vmatpush.msra.mxu2 %v2863_v2  ;;  %v2913_v39 = vld [vmem:[#allocation6 + $0x4c8] sm:$0xff]  ;;  %v2927_v31 = vld [vmem:[#allocation6 + $0x538] sm:$0xff] }
 0xa16   :  { %3051 = vmatpush.msrb.mxu0 %v2849_v57  ;;  %2997 = vmatpush.msra.mxu1 %v2824_v51  ;;  %v2922_v57 = vld [vmem:[#allocation6 + $0x510] sm:$0xff]  ;;  %v2843_v51 = vld [vmem:[#allocation6 + $0x298] sm:$0xff] }
 0xa17   :  { %3110 = vmatpush.msrb.mxu3 %v2854_v46  ;;  %3169 = vmatpush.msra.mxu2 %v2859_v43  ;;  %v2931_v46 = vld [vmem:[#allocation6 + $0x558] sm:$0xff] }
 0xa18   :  { %3052 = vmatpush.msrb.mxu0 %v2845_v34  ;;  %3062 = vmatpush.msrb.mxu1 %v2949_v56  ;;  %v2917_v34 = vld [vmem:[#allocation6 + $0x4e8] sm:$0xff]  ;;  %v2902_v56 = vld [vmem:[#allocation6 + $0x470] sm:$0xff]  ;;  %v2895_v55 = vld [vmem:[#allocation6 + $0x438] sm:$0xff] }
 0xa19   :  { %3111 = vmatpush.msrb.mxu3 %v2850_v23  ;;  %3170 = vmatpush.msra.mxu2 %v2855_v37  ;;  %v2847_v23 = vld [vmem:[#allocation6 + $0x2b8] sm:$0xff] }
 0xa1a   :  { %3053 = vmatpush.msrb.mxu0 %v2841_v38  ;;  %3063 = vmatpush.msrb.mxu1 %v2945_v5  ;;  %v2935_v38 = vld [vmem:[#allocation6 + $0x578] sm:$0xff]  ;;  %v2898_v5 = vld [vmem:[#allocation6 + $0x450] sm:$0xff] }
 0xa1b   :  { %3112 = vmatpush.msrb.mxu3 %v2846_v50  ;;  %v2906_v50 = vld [vmem:[#allocation6 + $0x490] sm:$0xff] }
 0xa1c   :  { %3054 = vmatpush.msrb.mxu0 %v2837_v44  ;;  %3064 = vmatpush.msrb.mxu1 %v2941_v63  ;;  %v2851_v44 = vld [vmem:[#allocation6 + $0x2d8] sm:$0xff]  ;;  %v2894_v63 = vld [vmem:[#allocation6 + $0x430] sm:$0xff] }
 0xa1d   :  { %3113 = vmatpush.msrb.mxu3 %v2842_v7  ;;  %3171 = vmatpush.msra.mxu2 %v2851_v44  ;;  %v2901_v7 = vld [vmem:[#allocation6 + $0x468] sm:$0xff] }
 0xa1e   :  { %3055 = vmatpush.msrb.mxu0 %v2833_v53  ;;  %3065 = vmatpush.msrb.mxu1 %v2937_v16  ;;  %v2910_v53 = vld [vmem:[#allocation6 + $0x4b0] sm:$0xff] }
 0xa1f   :  { %3114 = vmatpush.msrb.mxu3 %v2838_v60  ;;  %3172 = vmatpush.msra.mxu2 %v2847_v23  ;;  %v2897_v60 = vld [vmem:[#allocation6 + $0x448] sm:$0xff]  ;;  %v2890_v16 = vld [vmem:[#allocation6 + $0x410] sm:$0xff]  ;;  %v2807_v23 = vld [vmem:[#allocation6 + $0x178] sm:$0xff] }
 0xa20   :  { %3056 = vmatpush.msrb.mxu0 %v2829_v49  ;;  %3066 = vmatpush.msrb.mxu1 %v2933_v11  ;;  %v2905_v49 = vld [vmem:[#allocation6 + $0x488] sm:$0xff]  ;;  %v2899_v11 = vld [vmem:[#allocation6 + $0x458] sm:$0xff] }
 0xa21   :  { %3115 = vmatpush.msrb.mxu3 %v2834_v1  ;;  %3173 = vmatpush.msra.mxu2 %v2843_v51  ;;  %v2893_v1 = vld [vmem:[#allocation6 + $0x428] sm:$0xff]  ;;  %v2799_v51 = vld [vmem:[#allocation6 + $0x138] sm:$0xff] }
 0xa22   :  { %3057 = vmatpush.msrb.mxu0 %v2825_v30  ;;  %v2923_v30 = vld [vmem:[#allocation6 + $0x518] sm:$0xff] }
 0xa23   :  { %3116 = vmatpush.msrb.mxu3 %v2830_v15  ;;  %v2889_v15 = vld [vmem:[#allocation6 + $0x408] sm:$0xff] }
 0xa25   :  { %3117 = vmatpush.msrb.mxu3 %v2826_v45  ;;  %v2903_v45 = vld [vmem:[#allocation6 + $0x478] sm:$0xff] }
 0xa30   :  { %v2591_v26 = vpop.f32.mrf.mxu3 }
 0xa31   :  { %v5723_v13 = vsel %vm2600_vm7, %v4246_v22, %v2591_v26  ;;  %v2929_v22 = vld [vmem:[#allocation6 + $0x548] sm:$0xff]  ;;  %v2930_v26 = vld [vmem:[#allocation6 + $0x550] sm:$0xff] }
 0xa32   :  { %2978 = vmatmul.f32.vlgmr.msra.gmra.mxu0 %v5723_v13  ;;  %3038 = vmatmul.f32.vlgmr.msra.gmra.mxu3 %v5723_v13 }
 0xa33   :  { %3098 = vmatmul.f32.vlgmr.msrb.gmra.mxu2 %v5723_v13  ;;  %3122 = vmatpush.msra.mxu0 %v2950_v58  ;;  %v2839_v58 = vld [vmem:[#allocation6 + $0x278] sm:$0xff] }
 0xa34   :  { %3182 = vmatpush.msra.mxu3 %v2951_v18  ;;  %3067 = vmatpush.msrb.mxu1 %v2929_v22  ;;  %v2891_v22 = vld [vmem:[#allocation6 + $0x418] sm:$0xff] }
 0xa35   :  { %3123 = vmatpush.msra.mxu0 %v2946_v61  ;;  %3174 = vmatpush.msra.mxu2 %v2839_v58  ;;  %v2835_v61 = vld [vmem:[#allocation6 + $0x258] sm:$0xff] }
 0xa36   :  { %3183 = vmatpush.msra.mxu3 %v2947_v20  ;;  %3068 = vmatpush.msrb.mxu1 %v2925_v32  ;;  %v2791_v58 = vld [vmem:[#allocation6 + $0xf8] sm:$0xff] }
 0xa37   :  { %3124 = vmatpush.msra.mxu0 %v2942_v14  ;;  %3175 = vmatpush.msra.mxu2 %v2835_v61  ;;  %v2831_v14 = vld [vmem:[#allocation6 + $0x238] sm:$0xff]  ;;  %v3274_v61 = vld [vmem:[%s6276_s7 + $0x28] sm:$0xff] }
 0xa38   :  { %3184 = vmatpush.msra.mxu3 %v2943_v27  ;;  %3069 = vmatpush.msrb.mxu1 %v2921_v6 }
 0xa39   :  { %3125 = vmatpush.msra.mxu0 %v2938_v17  ;;  %3176 = vmatpush.msra.mxu2 %v2831_v14  ;;  %v2827_v17 = vld [vmem:[#allocation6 + $0x218] sm:$0xff] }
 0xa3a   :  { %3185 = vmatpush.msra.mxu3 %v2939_v29  ;;  %3070 = vmatpush.msrb.mxu1 %v2917_v34  ;;  %v3272_v14 = vld [vmem:[%s6276_s7 + $0x18] sm:$0xff] }
 0xa3b   :  { %3126 = vmatpush.msra.mxu0 %v2934_v47  ;;  %3177 = vmatpush.msra.mxu2 %v2827_v17  ;;  %v3270_v17 = vld [vmem:[%s6276_s7 + $0x8] sm:$0xff] }
 0xa3c   :  { %3186 = vmatpush.msra.mxu3 %v2935_v38  ;;  %3071 = vmatpush.msrb.mxu1 %v2913_v39 }
 0xa3d   :  { %3127 = vmatpush.msra.mxu0 %v2930_v26 }
 0xa3e   :  { %3187 = vmatpush.msra.mxu3 %v2931_v46  ;;  %3072 = vmatpush.msrb.mxu1 %v2909_v48  ;;  %v2811_v48 = vld [vmem:[#allocation6 + $0x198] sm:$0xff] }
 0xa3f   :  { %3128 = vmatpush.msra.mxu0 %v2926_v33 }
 0xa40   :  { %3188 = vmatpush.msra.mxu3 %v2927_v31  ;;  %3073 = vmatpush.msrb.mxu1 %v2905_v49  ;;  %v3280_v31 = vld [vmem:[%s6276_s7 + $0x58] sm:$0xff] }
 0xa41   :  { %3129 = vmatpush.msra.mxu0 %v2922_v57  ;;  %v2803_v49 = vld [vmem:[#allocation6 + $0x158] sm:$0xff] }
 0xa42   :  { %3189 = vmatpush.msra.mxu3 %v2923_v30  ;;  %3074 = vmatpush.msrb.mxu1 %v2901_v7  ;;  %v3278_v30 = vld [vmem:[%s6276_s7 + $0x48] sm:$0xff]  ;;  %v2795_v7 = vld [vmem:[#allocation6 + $0x118] sm:$0xff] }
 0xa43   :  { %3130 = vmatpush.msra.mxu0 %v2918_v36 }
 0xa44   :  { %3190 = vmatpush.msra.mxu3 %v2919_v59  ;;  %3075 = vmatpush.msrb.mxu1 %v2897_v60  ;;  %v2787_v59 = vld [vmem:[#allocation6 + $0xd8] sm:$0xff]  ;;  %v3275_v60 = vld [vmem:[%s6276_s7 + $0x30] sm:$0xff] }
 0xa45   :  { %3131 = vmatpush.msra.mxu0 %v2914_v40 }
 0xa46   :  { %3191 = vmatpush.msra.mxu3 %v2915_v62  ;;  %3076 = vmatpush.msrb.mxu1 %v2893_v1  ;;  %v2779_v62 = vld [vmem:[#allocation6 + $0x98] sm:$0xff]  ;;  %v3273_v1 = vld [vmem:[%s6276_s7 + $0x20] sm:$0xff] }
 0xa47   :  { %3132 = vmatpush.msra.mxu0 %v2910_v53  ;;  %v3281_v53 = vld [vmem:[%s6276_s7 + $0x60] sm:$0xff] }
 0xa48   :  { %3192 = vmatpush.msra.mxu3 %v2911_v10  ;;  %3077 = vmatpush.msrb.mxu1 %v2889_v15  ;;  %v2771_v10 = vld [vmem:[#allocation6 + $0x58] sm:$0xff]  ;;  %v3271_v15 = vld [vmem:[%s6276_s7 + $0x10] sm:$0xff] }
 0xa49   :  { %3133 = vmatpush.msra.mxu0 %v2906_v50  ;;  %v3279_v50 = vld [vmem:[%s6276_s7 + $0x50] sm:$0xff] }
 0xa4a   :  { %3193 = vmatpush.msra.mxu3 %v2907_v54  ;;  %v2763_v54 = vld [vmem:[#allocation6 + $0x18] sm:$0xff] }
 0xa4b   :  { %3134 = vmatpush.msra.mxu0 %v2902_v56  ;;  %v3277_v56 = vld [vmem:[%s6276_s7 + $0x40] sm:$0xff] }
 0xa4c   :  { %3194 = vmatpush.msra.mxu3 %v2903_v45  ;;  %v3269_v45 = vld [vmem:[%s6276_s7] sm:$0xff] }
 0xa4d   :  { %3135 = vmatpush.msra.mxu0 %v2898_v5  ;;  %v2783_v5 = vld [vmem:[#allocation6 + $0xb8] sm:$0xff] }
 0xa4e   :  { %3195 = vmatpush.msra.mxu3 %v2899_v11  ;;  %v3300_v11 = vld [vmem:[%s6276_s7 + $0xf8] sm:$0xff] }
 0xa4f   :  { %3136 = vmatpush.msra.mxu0 %v2894_v63  ;;  %v2775_v63 = vld [vmem:[#allocation6 + $0x78] sm:$0xff] }
 0xa50   :  { %3196 = vmatpush.msra.mxu3 %v2895_v55  ;;  %v3298_v55 = vld [vmem:[%s6276_s7 + $0xe8] sm:$0xff] }
 0xa51   :  { %3137 = vmatpush.msra.mxu0 %v2890_v16  ;;  %v2767_v16 = vld [vmem:[#allocation6 + $0x38] sm:$0xff] }
 0xa52   :  { %3197 = vmatpush.msra.mxu3 %v2891_v22  ;;  %v3296_v22 = vld [vmem:[%s6276_s7 + $0xd8] sm:$0xff] }
 0xa57   :  { %v2689_v47 = vpop.permute.xlu2 %2688 }
 0xa58   :  { %v2739_v28 = vmul.f32 %v5578_v4, %v2689_v47  ;;  %v3299_v47 = vld [vmem:[%s6276_s7 + $0xf0] sm:$0xff] }
 0xa5f   :  { %v2717_v33 = vpop.permute.xlu2 %2716 }
 0xa60   :  { %v2743_v29 = vmul.f32 %v5615_v24, %v2717_v33  ;;  %v2819_v24 = vld [vmem:[#allocation6 + $0x1d8] sm:$0xff]  ;;  %v3290_v33 = vld [vmem:[%s6276_s7 + $0xa8] sm:$0xff] }
 0xa67   :  { %v2738_v38 = vpop.permute.xlu2 %2737 }
 0xa68   :  { %v2746_v40 = vmul.f32 %v5622_v0, %v2738_v38  ;;  %v2815_v0 = vld [vmem:[#allocation6 + $0x1b8] sm:$0xff]  ;;  %v5862_v38 = vld [vmem:[%s6275_s6] sm:$0xf] }
 0xa6e   :  { %v2696_v18 = vpop.permute.xlu0 %2695  ;;  %v2703_v20 = vpop.permute.xlu1 %2702 }
 0xa6f   :  { %v2740_v26 = vmul.f32 %v5608_v19, %v2696_v18  ;;  %v2741_v27 = vmul.f32 %v5657_v42, %v2703_v20  ;;  %v2823_v42 = vld [vmem:[#allocation6 + $0x1f8] sm:$0xff]  ;;  %v3297_v18 = vld [vmem:[%s6276_s7 + $0xe0] sm:$0xff] }
 0xa70   :  { %v3292_v20 = vld [vmem:[%s6276_s7 + $0xb8] sm:$0xff] }
 0xa71   :  { %v2747_v32 = vadd.f32 %v2740_v26, %v2739_v28  ;;  %v3294_v26 = vld [vmem:[%s6276_s7 + $0xc8] sm:$0xff]  ;;  %v3293_v28 = vld [vmem:[%s6276_s7 + $0xc0] sm:$0xff] }
 0xa73   :  { %v2748_v57 = vadd.f32 %v2747_v32, %v2741_v27  ;;  %v3291_v32 = vld [vmem:[%s6276_s7 + $0xb0] sm:$0xff]  ;;  %v3288_v27 = vld [vmem:[%s6276_s7 + $0x98] sm:$0xff] }
 0xa76   :  { %v2710_v2 = vpop.permute.xlu0 %2709  ;;  %v2731_v34 = vpop.permute.xlu1 %2730 }
 0xa77   :  { %v2742_v6 = vmul.f32 %v5586_v3, %v2710_v2  ;;  %v2745_v4 = vmul.f32 %v5593_v12, %v2731_v34  ;;  %v3284_v3 = vld [vmem:[%s6276_s7 + $0x78] sm:$0xff]  ;;  %v3283_v12 = vld [vmem:[%s6276_s7 + $0x70] sm:$0xff]  ;;  %v3289_v2 = vld [vmem:[%s6276_s7 + $0xa0] sm:$0xff] }
 0xa78   :  { %v3315_v34 = vld [vmem:[%s6276_s7 + $0x170] sm:$0xff] }
 0xa79   :  { %v2749_v43 = vadd.f32 %v2748_v57, %v2742_v6  ;;  %v3287_v6 = vld [vmem:[%s6276_s7 + $0x90] sm:$0xff]  ;;  %v3286_v57 = vld [vmem:[%s6276_s7 + $0x88] sm:$0xff] }
 0xa7b   :  { %v2750_v19 = vadd.f32 %v2749_v43, %v2743_v29  ;;  %v3285_v43 = vld [vmem:[%s6276_s7 + $0x80] sm:$0xff]  ;;  %v3316_v29 = vld [vmem:[%s6276_s7 + $0x178] sm:$0xff] }
 0xa7c   :  { %3361 = vmatpush.msrb.mxu2 %v3316_v29  ;;  %v3743_v29 = vld [vmem:[#allocation6 + $0x4a0] sm:$0xff] }
 0xa7e   :  { %v2724_v36 = vpop.permute.xlu0 %2723  ;;  %3362 = vmatpush.msrb.mxu2 %v3315_v34 }
 0xa7f   :  { %v2744_v37 = vmul.f32 %v5676_v41, %v2724_v36  ;;  %v3282_v41 = vld [vmem:[%s6276_s7 + $0x68] sm:$0xff] }
 0xa80   :  { %v3314_v36 = vld [vmem:[%s6276_s7 + $0x168] sm:$0xff] }
 0xa81   :  { %v2751_v39 = vadd.f32 %v2750_v19, %v2744_v37  ;;  %3363 = vmatpush.msrb.mxu2 %v3314_v36  ;;  %v3313_v37 = vld [vmem:[%s6276_s7 + $0x160] sm:$0xff]  ;;  %v3312_v19 = vld [vmem:[%s6276_s7 + $0x158] sm:$0xff] }
 0xa82   :  { %v3739_v36 = vld [vmem:[#allocation6 + $0x480] sm:$0xff] }
 0xa83   :  { %v2752_v44 = vadd.f32 %v2751_v39, %v2745_v4  ;;  %3364 = vmatpush.msrb.mxu2 %v3313_v37  ;;  %v3311_v4 = vld [vmem:[%s6276_s7 + $0x150] sm:$0xff]  ;;  %v2954_v39 = vperm.slane %v5862_v38, 0 }
 0xa85   :  { %v5736_v46 = vadd.f32 %v2752_v44, %v2746_v40  ;;  %3365 = vmatpush.msrb.mxu2 %v3312_v19  ;;  %v3310_v40 = vld [vmem:[%s6276_s7 + $0x148] sm:$0xff] }
 0xa87   :  { %2998 = vmatmul.f32.vlgmr.msra.gmra.mxu1 %v5736_v46  ;;  %3058 = vmatmul.f32.vlgmr.msrb.gmra.mxu0 %v5736_v46 }
 0xa88   :  { %3118 = vmatmul.f32.vlgmr.msrb.gmra.mxu3 %v5736_v46  ;;  %3142 = vmatpush.msra.mxu1 %v2823_v42 }
 0xa89   :  { %3178 = vmatmul.f32.vlgmr.msra.gmra.mxu2 %v5736_v46  ;;  %3321 = vmatpush.msrb.mxu0 %v3284_v3  ;;  %v3308_v3 = vld [vmem:[%s6276_s7 + $0x138] sm:$0xff] }
 0xa8a   :  { %3143 = vmatpush.msra.mxu1 %v2819_v24  ;;  %3366 = vmatpush.msrb.mxu2 %v3311_v4 }
 0xa8b   :  { %3322 = vmatpush.msrb.mxu0 %v3283_v12  ;;  %v2955_v12 = vperm.slane %v5862_v38, 1 }
 0xa8c   :  { %3144 = vmatpush.msra.mxu1 %v2815_v0  ;;  %3367 = vmatpush.msrb.mxu2 %v3310_v40  ;;  %v3735_v40 = vld [vmem:[#allocation6 + $0x460] sm:$0xff] }
 0xa8d   :  { %3323 = vmatpush.msrb.mxu0 %v3282_v41  ;;  %v3307_v41 = vld [vmem:[%s6276_s7 + $0x130] sm:$0xff] }
 0xa8e   :  { %3145 = vmatpush.msra.mxu1 %v2811_v48  ;;  %v3019_v48 = vpop.f32.mrf.mxu2 }
 0xa8f   :  { %3324 = vmatpush.msrb.mxu0 %v3281_v53  ;;  %3078 = vmatmul.f32.vlgmr.msrb.gmra.mxu1 %v5572_v9 }
 0xa90   :  { %3138 = vmatmul.f32.vlgmr.msra.gmra.mxu0 %v5572_v9  ;;  %3146 = vmatpush.msra.mxu1 %v2807_v23 }
 0xa91   :  { %3198 = vmatmul.f32.vlgmr.msra.gmra.mxu3 %v5572_v9  ;;  %3325 = vmatpush.msrb.mxu0 %v3280_v31  ;;  %v3276_v9 = vld [vmem:[%s6276_s7 + $0x38] sm:$0xff]  ;;  %v3306_v31 = vld [vmem:[%s6276_s7 + $0x128] sm:$0xff] }
 0xa92   :  { %3147 = vmatpush.msra.mxu1 %v2803_v49 }
 0xa93   :  { %3326 = vmatpush.msrb.mxu0 %v3279_v50 }
 0xa94   :  { %3148 = vmatpush.msra.mxu1 %v2799_v51  ;;  %v3305_v51 = vld [vmem:[%s6276_s7 + $0x120] sm:$0xff] }
 0xa95   :  { %3327 = vmatpush.msrb.mxu0 %v3278_v30 }
 0xa96   :  { %3149 = vmatpush.msra.mxu1 %v2795_v7 }
 0xa97   :  { %3328 = vmatpush.msrb.mxu0 %v3277_v56  ;;  %v3304_v56 = vld [vmem:[%s6276_s7 + $0x118] sm:$0xff] }
 0xa98   :  { %3150 = vmatpush.msra.mxu1 %v2791_v58 }
 0xa99   :  { %3329 = vmatpush.msrb.mxu0 %v3276_v9 }
 0xa9a   :  { %3151 = vmatpush.msra.mxu1 %v2787_v59  ;;  %v3303_v59 = vld [vmem:[%s6276_s7 + $0x110] sm:$0xff] }
 0xa9b   :  { %3330 = vmatpush.msrb.mxu0 %v3275_v60 }
 0xa9c   :  { %3152 = vmatpush.msra.mxu1 %v2783_v5  ;;  %v3302_v5 = vld [vmem:[%s6276_s7 + $0x108] sm:$0xff] }
 0xa9d   :  { %3331 = vmatpush.msrb.mxu0 %v3274_v61  ;;  %v3301_v61 = vld [vmem:[%s6276_s7 + $0x100] sm:$0xff] }
 0xa9e   :  { %3153 = vmatpush.msra.mxu1 %v2779_v62  ;;  %v3783_v62 = vld [vmem:[#allocation6 + $0x5e0] sm:$0xff] }
 0xa9f   :  { %3332 = vmatpush.msrb.mxu0 %v3273_v1 }
 0xaa0   :  { %3154 = vmatpush.msra.mxu1 %v2775_v63  ;;  %v3779_v63 = vld [vmem:[#allocation6 + $0x5c0] sm:$0xff] }
 0xaa1   :  { %3333 = vmatpush.msrb.mxu0 %v3272_v14  ;;  %v3775_v14 = vld [vmem:[#allocation6 + $0x5a0] sm:$0xff] }
 0xaa2   :  { %3155 = vmatpush.msra.mxu1 %v2771_v10 }
 0xaa3   :  { %3334 = vmatpush.msrb.mxu0 %v3271_v15 }
 0xaa4   :  { %3156 = vmatpush.msra.mxu1 %v2767_v16 }
 0xaa5   :  { %3335 = vmatpush.msrb.mxu0 %v3270_v17  ;;  %v3771_v17 = vld [vmem:[#allocation6 + $0x580] sm:$0xff] }
 0xaa6   :  { %3157 = vmatpush.msra.mxu1 %v2763_v54  ;;  %v3767_v54 = vld [vmem:[#allocation6 + $0x560] sm:$0xff] }
 0xaa7   :  { %3336 = vmatpush.msrb.mxu0 %v3269_v45  ;;  %3158 = vmatmul.f32.vlgmr.msra.gmra.mxu1 %v5723_v13  ;;  %v3763_v45 = vld [vmem:[#allocation6 + $0x540] sm:$0xff] }
 0xaa8   :  { %3337 = vmatmul.f32.vlgmr.msrb.gmra.mxu0 %v5723_v13  ;;  %3341 = vmatpush.msrb.mxu1 %v3300_v11  ;;  %v3295_v13 = vld [vmem:[%s6276_s7 + $0xd0] sm:$0xff] }
 0xaaa   :  { %3342 = vmatpush.msrb.mxu1 %v3299_v47 }
 0xaac   :  { %3343 = vmatpush.msrb.mxu1 %v3298_v55  ;;  %v3759_v55 = vld [vmem:[#allocation6 + $0x520] sm:$0xff] }
 0xaae   :  { %3344 = vmatpush.msrb.mxu1 %v3297_v18 }
 0xaaf   :  { %v2979_v44 = vpop.f32.mrf.mxu0 }
 0xab0   :  { %3345 = vmatpush.msrb.mxu1 %v3296_v22  ;;  %v2980_v42 = vadd.f32 %v2979_v44, %v2954_v39  ;;  %v3755_v22 = vld [vmem:[#allocation6 + $0x500] sm:$0xff] }
 0xab2   :  { %3346 = vmatpush.msrb.mxu1 %v3295_v13 }
 0xab4   :  { %3347 = vmatpush.msrb.mxu1 %v3294_v26  ;;  %v2957_v26 = vperm.slane %v5862_v38, 3 }
 0xab5   :  { %v3039_v53 = vpop.f32.mrf.mxu3 }
 0xab6   :  { %3348 = vmatpush.msrb.mxu1 %v3293_v28  ;;  %v3040_v50 = vadd.f32 %v3039_v53, %v2955_v12  ;;  %v3099_v11 = vpop.f32.mrf.mxu2  ;;  %v3727_v12 = vld [vmem:[#allocation6 + $0x420] sm:$0xff] }
 0xab8   :  { %3349 = vmatpush.msrb.mxu1 %v3292_v20  ;;  %v3751_v20 = vld [vmem:[#allocation6 + $0x4e0] sm:$0xff] }
 0xaba   :  { %3350 = vmatpush.msrb.mxu1 %v3291_v32 }
 0xabc   :  { %3351 = vmatpush.msrb.mxu1 %v3290_v33 }
 0xabe   :  { %3352 = vmatpush.msrb.mxu1 %v3289_v2  ;;  %v3747_v2 = vld [vmem:[#allocation6 + $0x4c0] sm:$0xff] }
 0xac0   :  { %3353 = vmatpush.msrb.mxu1 %v3288_v27  ;;  %v2956_v27 = vperm.slane %v5862_v38, 2 }
 0xac2   :  { %3354 = vmatpush.msrb.mxu1 %v3287_v6  ;;  %v3100_v4 = vadd.f32 %v3099_v11, %v2956_v27 }
 0xac4   :  { %3355 = vmatpush.msrb.mxu1 %v3286_v57 }
 0xac6   :  { %3356 = vmatpush.msrb.mxu1 %v3285_v43 }
 0xac7   :  { %3357 = vmatmul.f32.vlgmr.msrb.gmra.mxu1 %v5736_v46  ;;  %v3309_v46 = vld [vmem:[%s6276_s7 + $0x140] sm:$0xff] }
 0xac8   :  { %3368 = vmatpush.msrb.mxu2 %v3309_v46 }
 0xaca   :  { %3369 = vmatpush.msrb.mxu2 %v3308_v3  ;;  %v3731_v3 = vld [vmem:[#allocation6 + $0x440] sm:$0xff] }
 0xacc   :  { %3370 = vmatpush.msrb.mxu2 %v3307_v41  ;;  %v3723_v41 = vld [vmem:[#allocation6 + $0x400] sm:$0xff] }
 0xace   :  { %3371 = vmatpush.msrb.mxu2 %v3306_v31 }
 0xad0   :  { %3372 = vmatpush.msrb.mxu2 %v3305_v51 }
 0xad2   :  { %3373 = vmatpush.msrb.mxu2 %v3304_v56 }
 0xad4   :  { %3374 = vmatpush.msrb.mxu2 %v3303_v59 }
 0xad6   :  { %3375 = vmatpush.msrb.mxu2 %v3302_v5 }
 0xad8   :  { %3376 = vmatpush.msrb.mxu2 %v3301_v61 }
 0xada   :  { %3837 = vmatpush.msra.mxu2 %v3783_v62 }
 0xadc   :  { %3838 = vmatpush.msra.mxu2 %v3779_v63 }
 0xade   :  { %3839 = vmatpush.msra.mxu2 %v3775_v14 }
 0xae0   :  { %3840 = vmatpush.msra.mxu2 %v3771_v17 }
 0xae2   :  { %3841 = vmatpush.msra.mxu2 %v3767_v54 }
 0xae4   :  { %3842 = vmatpush.msra.mxu2 %v3763_v45 }
 0xae6   :  { %3843 = vmatpush.msra.mxu2 %v3759_v55 }
 0xae8   :  { %3844 = vmatpush.msra.mxu2 %v3755_v22 }
 0xaea   :  { %3845 = vmatpush.msra.mxu2 %v3751_v20 }
 0xaec   :  { %3846 = vmatpush.msra.mxu2 %v3747_v2 }
 0xaee   :  { %3847 = vmatpush.msra.mxu2 %v3743_v29 }
 0xaf0   :  { %3848 = vmatpush.msra.mxu2 %v3739_v36 }
 0xaf2   :  { %3849 = vmatpush.msra.mxu2 %v3735_v40  ;;  %v3408_v40 = vld [vmem:[%s6273_s4 + $0x78] sm:$0xff] }
 0xaf3   :  { %3409 = vmatpush.msrb.mxu3 %v3408_v40 }
 0xaf4   :  { %3850 = vmatpush.msra.mxu2 %v3731_v3  ;;  %v3404_v3 = vld [vmem:[%s6273_s4 + $0x58] sm:$0xff] }
 0xaf6   :  { %3851 = vmatpush.msra.mxu2 %v3727_v12 }
 0xaf8   :  { %3852 = vmatpush.msra.mxu2 %v3723_v41  ;;  %v3401_v41 = vld [vmem:[%s6273_s4 + $0x40] sm:$0xff] }
 0xb04   :  { %v2999_v24 = vpop.f32.mrf.mxu1  ;;  %v3059_v49 = vpop.f32.mrf.mxu0 }
 0xb05   :  { %v3000_v0 = vadd.f32 %v2999_v24, %v2980_v42  ;;  %v3060_v7 = vadd.f32 %v3059_v49, %v3040_v50 }
 0xb07   :  { %v3020_v23 = vadd.f32 %v3019_v48, %v3000_v0 }
 0xb09   :  { %v4247_v30 = vmul.f32 -1.442695, %v3020_v23 }
 0xb0b   :  { %4341 = vpow2.f32 %v4247_v30  ;;  %v3119_v47 = vpop.f32.mrf.mxu3 }
 0xb0c   :  { %v3079_v58 = vpop.f32.mrf.mxu1  ;;  %v3179_v57 = vpop.f32.mrf.mxu2  ;;  %v3120_v46 = vadd.f32 %v3119_v47, %v3100_v4  ;;  %v5976_v4 = vld [vmem:[%s6271_s2 + $0x38] sm:$0xff] }
 0xb0d   :  { %v3080_v9 = vadd.f32 %v3079_v58, %v3060_v7  ;;  %v3139_v38 = vpop.f32.mrf.mxu0 }
 0xb0e   :  { %v3140_v53 = vadd.f32 %v3139_v38, %v3120_v46  ;;  %v3406_v46 = vld [vmem:[%s6273_s4 + $0x68] sm:$0xff] }
 0xb0f   :  { %v4248_v60 = vmul.f32 -1.442695, %v3080_v9 }
 0xb11   :  { %4343 = vpow2.f32 %v4248_v60  ;;  %v4342_v1 = vpop.eup %4341 }
 0xb12   :  { %v5899_v15 = vadd.f32 1.0, %v4342_v1 }
 0xb14   :  { %v3199_v19 = vpop.f32.mrf.mxu3  ;;  %v3217_v49 = vand.u32 2147483648, %v5899_v15  ;;  %vm3211_vm14 = vweird.f32 %v5899_v15  ;;  %v3215_v50 = vand.u32 2147483647, %v5899_v15 }
 0xb16   :  { %v3218_v9 = vor.u32 1.1754944e-38, %v3217_v49  ;;  %vm3216_vm7 = vcmp.eq.f32.partialorder %v3215_v50, 8.507059e+37  ;;  %v3398_v49 = vld [vmem:[%s6273_s4 + $0x28] sm:$0xff]  ;;  %v3397_v50 = vld [vmem:[%s6273_s4 + $0x20] sm:$0xff] }
 0xb17   :  { %v4344_v10 = vpop.eup %4343 }
 0xb18   :  { %v5901_v16 = vadd.f32 1.0, %v4344_v10 }
 0xb1a   :  { %4345 = vrcp.f32 %v5901_v16  ;;  %v3236_v48 = vand.u32 2147483648, %v5901_v16  ;;  %vm3230_vm10 = vweird.f32 %v5901_v16  ;;  %v3234_v31 = vand.u32 2147483647, %v5901_v16 }
 0xb1b   :  { %4347 = vrcp.f32 %v5899_v15 }
 0xb1c   :  { %v3237_v7 = vor.u32 1.1754944e-38, %v3236_v48  ;;  %vm3235_vm15 = vcmp.eq.f32.partialorder %v3234_v31, 8.507059e+37  ;;  %v3400_v48 = vld [vmem:[%s6273_s4 + $0x38] sm:$0xff]  ;;  %v3399_v31 = vld [vmem:[%s6273_s4 + $0x30] sm:$0xff] }
 0xb20   :  { %v4346_v18 = vpop.eup %4345 }
 0xb21   :  { %v5905_v13 = vpop.eup %4347  ;;  %v3226_v28 = vmul.f32 %v4346_v18, %v5901_v16  ;;  %vm3231_vm9 = vweird.f32 %v4346_v18 }
 0xb22   :  { %v3207_v32 = vmul.f32 %v5905_v13, %v5899_v15  ;;  %vm3212_vm11 = vweird.f32 %v5905_v13  ;;  %vm3232_vm13 = vmor %vm3230_vm10, %vm3231_vm9 }
 0xb23   :  { %v3227_v43 = vsub.f32 1.0, %v3226_v28  ;;  %vm3213_vm8 = vmor %vm3211_vm14, %vm3212_vm11  ;;  %v5947_v28 = vld [vmem:[%s6271_s2 + $0x30] sm:$0xff] }
 0xb24   :  { %v3159_v33 = vpop.f32.mrf.mxu1  ;;  %v3208_v37 = vsub.f32 1.0, %v3207_v32  ;;  %v4275_v32 = vld [vmem:[%s6277_s8] ss:$0 sm:$0xff] }
 0xb25   :  { %v3160_v6 = vadd.f32 %v3159_v33, %v2957_v26  ;;  %v3228_v44 = vmul.f32 %v4346_v18, %v3227_v43  ;;  %v3338_v33 = vpop.f32.mrf.mxu0 }
 0xb26   :  { %v3209_v24 = vmul.f32 %v5905_v13, %v3208_v37  ;;  %v3339_v27 = vadd.f32 %v4275_v32, %v3338_v33  ;;  %v5969_v37 = vld [vmem:[%s6271_s2 + $0x20] sm:$0xff] }
 0xb27   :  { %v3180_v34 = vadd.f32 %v3179_v57, %v3160_v6  ;;  %v3229_v0 = vadd.f32 %v4346_v18, %v3228_v44  ;;  %v3407_v44 = vld [vmem:[%s6273_s4 + $0x70] sm:$0xff] }
 0xb28   :  { %v3210_v23 = vadd.f32 %v5905_v13, %v3209_v24  ;;  %3410 = vmatpush.msrb.mxu3 %v3407_v44  ;;  %v3403_v24 = vld [vmem:[%s6273_s4 + $0x50] sm:$0xff] }
 0xb29   :  { %v3200_v39 = vadd.f32 %v3199_v19, %v3180_v34  ;;  %v3233_v51 = vsel %vm3232_vm13, %v4346_v18, %v3229_v0  ;;  %v5932_v18 = vld [vmem:[%s6271_s2] sm:$0xff]  ;;  %v5962_v34 = vld [vmem:[%s6271_s2 + $0x8] sm:$0xff] }
 0xb2a   :  { %v3214_v56 = vsel %vm3213_vm8, %v5905_v13, %v3210_v23  ;;  %v3238_v59 = vsel %vm3235_vm15, %v3237_v7, %v3233_v51  ;;  %v5940_v13 = vld [vmem:[%s6271_s2 + $0x18] sm:$0xff]  ;;  %3411 = vmatpush.msrb.mxu3 %v3406_v46  ;;  %v3402_v0 = vld [vmem:[%s6273_s4 + $0x48] sm:$0xff] }
 0xb2b   :  { %v4249_v42 = vmul.f32 -1.442695, %v3200_v39  ;;  %v3219_v60 = vsel %vm3216_vm7, %v3218_v9, %v3214_v56  ;;  %v3260_v5 = vmul.f32 %v3238_v59, %v5569_v52  ;;  %v3396_v51 = vld [vmem:[%s6273_s4 + $0x18] sm:$0xff]  ;;  %v3395_v56 = vld [vmem:[%s6273_s4 + $0x10] sm:$0xff]  ;;  %v3393_v9 = vld [vmem:[%s6273_s4] sm:$0xff] }
 0xb2d   :  { %4349 = vpow2.f32 %v4249_v42  ;;  %v3405_v42 = vld [vmem:[%s6273_s4 + $0x60] sm:$0xff] }
 0xb2e   :  { %4351 = vtanh.f32 %v3140_v53  ;;  %3412 = vmatpush.msrb.mxu3 %v3405_v42  ;;  %v6011_v53 = vld [vmem:[%s6271_s2 + $0x10] sm:$0xff] }
 0xb30   :  { %3413 = vmatpush.msrb.mxu3 %v3404_v3 }
 0xb32   :  { %3414 = vmatpush.msrb.mxu3 %v3403_v24 }
 0xb33   :  { %v4350_v30 = vpop.eup %4349 }
 0xb34   :  { %v3244_v58 = vadd.f32 1.0, %v4350_v30  ;;  %v4352_v61 = vpop.eup %4351  ;;  %3415 = vmatpush.msrb.mxu3 %v3402_v0  ;;  %v6030_v30 = vld [vmem:[%s6271_s2 + $0x28] sm:$0xff]  ;;  %s4253_s2 = sld [smem:[#allocation3 + $0x4]] }
 0xb35   :  { %v3261_v62 = vmul.f32 %v4352_v61, %v3219_v60 }
 0xb36   :  { %4353 = vrcp.f32 %v3244_v58  ;;  %v3256_v15 = vand.u32 2147483648, %v3244_v58  ;;  %v3254_v17 = vand.u32 2147483647, %v3244_v58  ;;  %vm3250_vm10 = vweird.f32 %v3244_v58  ;;  %3416 = vmatpush.msrb.mxu3 %v3401_v41  ;;  %v3655_v41 = vld [vmem:[#allocation6 + $0x1e0] sm:$0xff] }
 0xb37   :  { %v5923_v63 = vadd.f32 %v3261_v62, %v3260_v5  ;;  %3797 = vmatpush.msra.mxu0 %v3655_v41  ;;  %v3609_v41 = vld [vmem:[#allocation6 + $0x70] sm:$0xff] }
 0xb38   :  { %v3257_v45 = vor.u32 1.1754944e-38, %v3256_v15  ;;  %vm3255_vm13 = vcmp.eq.f32.partialorder %v3254_v17, 8.507059e+37  ;;  %3417 = vmatpush.msrb.mxu3 %v3400_v48  ;;  %v3656_v48 = vld [vmem:[#allocation6 + $0x1e8] sm:$0xff] }
 0xb39   :  { %4355 = vtanh.f32 %v5923_v63 }
 0xb3a   :  { %3418 = vmatpush.msrb.mxu3 %v3399_v31  ;;  %p3430_p4 = scmp.gt.s32.totalorder %s4253_s2, 0 }
 0xb3c   :  { %v4354_v1 = vpop.eup %4353  ;;  %3419 = vmatpush.msrb.mxu3 %v3398_v49  ;;  %v3651_v49 = vld [vmem:[#allocation6 + $0x1c0] sm:$0xff] }
 0xb3d   :  { %v3246_v14 = vmul.f32 %v4354_v1, %v3244_v58  ;;  %vm3251_vm9 = vweird.f32 %v4354_v1  ;;  %v3394_v58 = vld [vmem:[%s6273_s4 + $0x8] sm:$0xff]  ;;  %3798 = vmatpush.msra.mxu0 %v3651_v49  ;;  %s3433_s4 = scalar_select %p3430_p4, 1, 0 }
 0xb3e   :  { %vm3252_vm11 = vmor %vm3250_vm10, %vm3251_vm9  ;;  %3420 = vmatpush.msrb.mxu3 %v3397_v50  ;;  %v3652_v50 = vld [vmem:[#allocation6 + $0x1c8] sm:$0xff] }
 0xb3f   :  { %v3247_v10 = vsub.f32 1.0, %v3246_v14  ;;  %v4356_v52 = vpop.eup %4355 }
 0xb40   :  { %3421 = vmatpush.msrb.mxu3 %v3396_v51  ;;  %v3653_v51 = vld [vmem:[#allocation6 + $0x1d0] sm:$0xff] }
 0xb41   :  { %v3248_v16 = vmul.f32 %v4354_v1, %v3247_v10 }
 0xb42   :  { %3422 = vmatpush.msrb.mxu3 %v3395_v56  ;;  %v3648_v56 = vld [vmem:[#allocation6 + $0x1a8] sm:$0xff] }
 0xb43   :  { %v3249_v54 = vadd.f32 %v4354_v1, %v3248_v16 }
 0xb44   :  { %v3358_v2 = vpop.f32.mrf.mxu1  ;;  %3423 = vmatpush.msrb.mxu3 %v3394_v58 }
 0xb45   :  { %v3253_v11 = vsel %vm3252_vm11, %v4354_v1, %v3249_v54  ;;  %v3359_v6 = vadd.f32 %v3358_v2, %v3339_v27 }
 0xb46   :  { %v3258_v47 = vsel %vm3255_vm13, %v3257_v45, %v3253_v11  ;;  %3424 = vmatpush.msrb.mxu3 %v3393_v9  ;;  %v3649_v9 = vld [vmem:[#allocation6 + $0x1b0] sm:$0xff] }
 0xb47   :  { %v5926_v55 = vmul.f32 %v4356_v52, %v3258_v47 }
 0xb48   :  { %3857 = vmatpush.msra.mxu3 %v3656_v48  ;;  %v3603_v48 = vld [vmem:[#allocation6 + $0x40] sm:$0xff] }
 0xb49   :  { %3377 = vmatmul.f32.vlgmr.msrb.gmra.mxu2 %v5926_v55  ;;  %v3437_v22 = vmul.f32 %v5932_v18, %v5926_v55  ;;  %v3440_v26 = vmul.f32 %v5940_v13, %v5926_v55  ;;  %v3443_v20 = vmul.f32 %v5947_v28, %v5926_v55  ;;  %v3438_v36 = vmul.f32 %v5962_v34, %v5926_v55 }
 0xb4a   :  { %v3441_v19 = vmul.f32 %v5969_v37, %v5926_v55  ;;  %v3444_v39 = vmul.f32 %v5976_v4, %v5926_v55  ;;  %v3439_v23 = vmul.f32 %v6011_v53, %v5926_v55  ;;  %v3442_v7 = vmul.f32 %v6030_v30, %v5926_v55  ;;  %3858 = vmatpush.msra.mxu3 %v3652_v50  ;;  %v3599_v50 = vld [vmem:[#allocation6 + $0x20] sm:$0xff] }
 0xb4b   :  { %3445 = vadd.xlane.f32.xlu2 %v3437_v22 }
 0xb4c   :  { %3859 = vmatpush.msra.mxu3 %v3648_v56  ;;  %v3601_v56 = vld [vmem:[#allocation6 + $0x30] sm:$0xff] }
 0xb51   :  { %3853 = vmatmul.f32.vlgmr.msra.gmra.mxu2 %v5926_v55 }
 0xb53   :  { %3451 = vadd.xlane.f32.xlu2 %v3440_v26 }
 0xb5b   :  { %3457 = vadd.xlane.f32.xlu2 %v3443_v20 }
 0xbbe   :  { %v3446_v59 = vpop.xlane.xlu2 %3445 }
 0xbbf   :  { %v3469_v10 = vperm.slane %v3446_v59, %v4582_v21 }
 0xbc6   :  { %v3452_v61 = vpop.xlane.xlu2 %3451 }
 0xbc7   :  { %v3472_v54 = vperm.slane %v3452_v61, %v4582_v21 }
 0xbcc   :  { %v3378_v57 = vpop.f32.mrf.mxu2 }
 0xbcd   :  { %v3379_v43 = vadd.f32 %v3378_v57, %v3359_v6 }
 0xbce   :  { %v3458_v45 = vpop.xlane.xlu2 %3457 }
 0xbcf   :  { %4250 = vst [vmem:[%s6280_s11 + $0x18] sm:$0xff] %v3379_v43  ;;  %v3383_v29 = vsel %vm80_vm12, %v3379_v43, -1e+30  ;;  %v3475_v22 = vperm.slane %v3458_v45, %v4582_v21  ;;  %v3636_v45 = vld [vmem:[#allocation6 + $0x148] sm:$0xff] }
 0xbd0   :  { %3384 = vmax.xlane.f32.xlu0 %v3383_v29 }
 0xbd8   :  { %3447 = vadd.xlane.f32.xlu0 %v3438_v36 }
 0xbe0   :  { %3453 = vadd.xlane.f32.xlu0 %v3441_v19 }
 0xbe8   :  { %3459 = vadd.xlane.f32.xlu0 %v3444_v39 }
 0xc43   :  { %v3385_v38 = vpop.xlane.xlu0 %3384 }
 0xc44   :  { %vm3386_vm12 = vcmp.eq.f32.partialorder %v3383_v29, %v3385_v38 }
 0xc45   :  { %v3387_v12 = vsel %vm3386_vm12, %v4918_v8, 1e+09 }
 0xc46   :  { %3388 = vmin.xlane.f32.xlu1 %v3387_v12 }
 0xc4b   :  { %v3448_v60 = vpop.xlane.xlu0 %3447 }
 0xc4c   :  { %v3470_v1 = vperm.slane %v3448_v60, %v4582_v21  ;;  %v3643_v60 = vld [vmem:[#allocation6 + $0x180] sm:$0xff] }
 0xc4e   :  { %3449 = vadd.xlane.f32.xlu1 %v3439_v23  ;;  %v3477_v16 = vsel %vm130_vm0, %v3470_v1, %v3469_v10  ;;  %vm6293_vm0 = vcmp.gt.f32.partialorder %v4597_v35, 0.5  ;;  %v3657_v23 = vld [vmem:[#allocation6 + $0x1f0] sm:$0xff]  ;;  %v3640_v10 = vld [vmem:[#allocation6 + $0x168] sm:$0xff] }
 0xc4f   :  { %3917 = vmatpush.msrb.mxu2 %v3657_v23  ;;  %v3645_v1 = vld [vmem:[#allocation6 + $0x190] sm:$0xff]  ;;  %v3604_v23 = vld [vmem:[#allocation6 + $0x48] sm:$0xff] }
 0xc51   :  { %3918 = vmatpush.msrb.mxu2 %v3653_v51 }
 0xc53   :  { %v3454_v62 = vpop.xlane.xlu0 %3453  ;;  %3919 = vmatpush.msrb.mxu2 %v3649_v9  ;;  %v3596_v9 = vld [vmem:[#allocation6 + $0x8] sm:$0xff] }
 0xc55   :  { %3920 = vmatpush.msrb.mxu2 %v3645_v1  ;;  %v3711_v1 = vld [vmem:[#allocation6 + $0x3a0] sm:$0xff] }
 0xc56   :  { %3455 = vadd.xlane.f32.xlu1 %v3442_v7  ;;  %v3647_v7 = vld [vmem:[#allocation6 + $0x1a0] sm:$0xff] }
 0xc57   :  { %3799 = vmatpush.msra.mxu0 %v3647_v7  ;;  %v3600_v7 = vld [vmem:[#allocation6 + $0x28] sm:$0xff] }
 0xc59   :  { %3800 = vmatpush.msra.mxu0 %v3643_v60  ;;  %v3719_v60 = vld [vmem:[#allocation6 + $0x3e0] sm:$0xff] }
 0xc5a   :  { %3817 = vmatpush.msra.mxu1 %v3719_v60  ;;  %v3781_v60 = vld [vmem:[#allocation6 + $0x5d0] sm:$0xff] }
 0xc5b   :  { %v3460_v11 = vpop.xlane.xlu0 %3459 }
 0xc5c   :  { %v3476_v20 = vperm.slane %v3460_v11, %v4582_v21 }
 0xcb9   :  { %v3389_v5 = vpop.xlane.xlu1 %3388 }
 0xcba   :  { %vm3390_vm14 = vcmp.eq.f32.partialorder %v4918_v8, %v3389_v5  ;;  %v3644_v5 = vld [vmem:[#allocation6 + $0x188] sm:$0xff] }
 0xcbb   :  { %4252 = vmatmul.msk.f32.vlgmr.msrb.gmra.mxu3 %vm3390_vm14, %v4454_v25  ;;  %v3473_v25 = vperm.slane %v3454_v62, %v4582_v21 }
 0xcbc   :  { %3860 = vmatpush.msra.mxu3 %v3644_v5  ;;  %v3720_v5 = vld [vmem:[#allocation6 + $0x3e8] sm:$0xff] }
 0xcbe   :  { %3861 = vmatpush.msra.mxu3 %v3640_v10  ;;  %v3721_v10 = vld [vmem:[#allocation6 + $0x3f0] sm:$0xff] }
 0xcc0   :  { %3862 = vmatpush.msra.mxu3 %v3636_v45  ;;  %v3703_v45 = vld [vmem:[#allocation6 + $0x360] sm:$0xff] }
 0xcc1   :  { %v3450_v14 = vpop.xlane.xlu1 %3449 }
 0xcc2   :  { %v3471_v15 = vperm.slane %v3450_v14, %v4582_v21  ;;  %v3639_v14 = vld [vmem:[#allocation6 + $0x160] sm:$0xff] }
 0xcc3   :  { %3801 = vmatpush.msra.mxu0 %v3639_v14  ;;  %v3712_v14 = vld [vmem:[#allocation6 + $0x3a8] sm:$0xff] }
 0xcc4   :  { %v3478_v17 = vsel %vm132_vm1, %v3471_v15, %v3477_v16  ;;  %vm6294_vm1 = vcmask 64512   ;;  %v3641_v16 = vld [vmem:[#allocation6 + $0x170] sm:$0xff] }
 0xcc5   :  { %v3479_v8 = vsel %vm134_vm2, %v3472_v54, %v3478_v17  ;;  %vm6295_vm2 = vmmov %vm6294_vm1  ;;  %v3635_v54 = vld [vmem:[#allocation6 + $0x140] sm:$0xff]  ;;  %3921 = vmatpush.msrb.mxu2 %v3641_v16  ;;  %v3708_v16 = vld [vmem:[#allocation6 + $0x388] sm:$0xff] }
 0xcc6   :  { %v3480_v26 = vsel %vm136_vm3, %v3473_v25, %v3479_v8  ;;  %v3637_v25 = vld [vmem:[#allocation6 + $0x150] sm:$0xff]  ;;  %3802 = vmatpush.msra.mxu0 %v3635_v54 }
 0xcc7   :  { %3922 = vmatpush.msrb.mxu2 %v3637_v25  ;;  %v3713_v54 = vld [vmem:[#allocation6 + $0x3b0] sm:$0xff] }
 0xcc8   :  { %v3709_v25 = vld [vmem:[#allocation6 + $0x390] sm:$0xff] }
 0xcc9   :  { %v3456_v52 = vpop.xlane.xlu1 %3455 }
 0xcca   :  { %v3474_v47 = vperm.slane %v3456_v52, %v4582_v21  ;;  %v3631_v52 = vld [vmem:[#allocation6 + $0x120] sm:$0xff] }
 0xccb   :  { %3803 = vmatpush.msra.mxu0 %v3631_v52  ;;  %v3700_v52 = vld [vmem:[#allocation6 + $0x348] sm:$0xff] }
 0xccc   :  { %v3481_v32 = vsel %vm138_vm4, %v3474_v47, %v3480_v26  ;;  %v3632_v47 = vld [vmem:[#allocation6 + $0x128] sm:$0xff]  ;;  %v3633_v26 = vld [vmem:[#allocation6 + $0x130] sm:$0xff] }
 0xccd   :  { %v3482_v33 = vsel %vm140_vm5, %v3475_v22, %v3481_v32  ;;  %3863 = vmatpush.msra.mxu3 %v3632_v47  ;;  %3923 = vmatpush.msrb.mxu2 %v3633_v26  ;;  %v3705_v47 = vld [vmem:[#allocation6 + $0x370] sm:$0xff]  ;;  %v3696_v26 = vld [vmem:[#allocation6 + $0x328] sm:$0xff] }
 0xcce   :  { %v3483_v2 = vsel %vm142_vm6, %v3476_v20, %v3482_v33 }
 0xccf   :  { %v3485_v27 = vsel %vm6293_vm0, %v3483_v2, -1e+09  ;;  %v3627_v2 = vld [vmem:[#allocation6 + $0x100] sm:$0xff] }
 0xcd0   :  { %v3486_v6 = vsel %vm6294_vm1, %v3485_v27, -inf  ;;  %3804 = vmatpush.msra.mxu0 %v3627_v2  ;;  %v3688_v2 = vld [vmem:[#allocation6 + $0x2e8] sm:$0xff] }
 0xcd1   :  { %v3487_v57 = vrot.slane %v3486_v6, 4 }
 0xcd3   :  { %v3488_v43 = vmax.f32 %v3486_v6, %v3487_v57  ;;  %v3629_v6 = vld [vmem:[#allocation6 + $0x110] sm:$0xff]  ;;  %v3623_v57 = vld [vmem:[#allocation6 + $0xe0] sm:$0xff] }
 0xcd4   :  { %3924 = vmatpush.msrb.mxu2 %v3629_v6  ;;  %3805 = vmatpush.msra.mxu0 %v3623_v57  ;;  %v4254_v6 = vld [vmem:[%s6270_s1 + $0x20] sm:$0xff] }
 0xcd5   :  { %v3489_v29 = vrot.slane %v3488_v43, 2 }
 0xcd7   :  { %v3490_v36 = vmax.f32 %v3488_v43, %v3489_v29  ;;  %v3624_v43 = vld [vmem:[#allocation6 + $0xe8] sm:$0xff]  ;;  %v3625_v29 = vld [vmem:[#allocation6 + $0xf0] sm:$0xff] }
 0xcd8   :  { %3925 = vmatpush.msrb.mxu2 %v3625_v29  ;;  %v3683_v29 = vld [vmem:[#allocation6 + $0x2c0] sm:$0xff] }
 0xcd9   :  { %v3491_v19 = vrot.slane %v3490_v36, 1 }
 0xcdb   :  { %v3492_v39 = vmax.f32 %v3490_v36, %v3491_v19  ;;  %v3619_v36 = vld [vmem:[#allocation6 + $0xc0] sm:$0xff]  ;;  %v3620_v19 = vld [vmem:[#allocation6 + $0xc8] sm:$0xff] }
 0xcdc   :  { %3806 = vmatpush.msra.mxu0 %v3619_v36  ;;  %v3684_v36 = vld [vmem:[#allocation6 + $0x2c8] sm:$0xff] }
 0xcdd   :  { %v3493_v40 = vsub.f32 %v3485_v27, %v3492_v39  ;;  %v3628_v27 = vld [vmem:[#allocation6 + $0x108] sm:$0xff]  ;;  %v3621_v39 = vld [vmem:[#allocation6 + $0xd0] sm:$0xff] }
 0xcde   :  { %3864 = vmatpush.msra.mxu3 %v3628_v27  ;;  %3926 = vmatpush.msrb.mxu2 %v3621_v39  ;;  %v3434_v27 = vstv %s3433_s4  ;;  %v3679_v39 = vld [vmem:[#allocation6 + $0x2a0] sm:$0xff] }
 0xcdf   :  { %v3494_v44 = vmul.f32 1.442695, %v3493_v40  ;;  %v3615_v40 = vld [vmem:[#allocation6 + $0xa0] sm:$0xff]  ;;  %vm3435_vm8 = vcmp.eq.s32.totalorder %v3434_v27, 1  ;;  %v3757_v27 = vld [vmem:[#allocation6 + $0x510] sm:$0xff] }
 0xce0   :  { %3865 = vmatpush.msra.mxu3 %v3624_v43  ;;  %3807 = vmatpush.msra.mxu0 %v3615_v40  ;;  %v3680_v40 = vld [vmem:[#allocation6 + $0x2a8] sm:$0xff] }
 0xce1   :  { %4357 = vpow2.f32 %v3494_v44 }
 0xce2   :  { %3866 = vmatpush.msra.mxu3 %v3620_v19  ;;  %v3701_v19 = vld [vmem:[#allocation6 + $0x350] sm:$0xff] }
 0xce7   :  { %v4358_v21 = vpop.eup %4357 }
 0xce8   :  { %v3496_v46 = vsel %vm6295_vm2, %v4358_v21, 0.0 }
 0xce9   :  { %v3497_v42 = vrot.slane %v3496_v46, 4 }
 0xceb   :  { %v3498_v3 = vadd.f32 %v3497_v42, %v3496_v46  ;;  %v3616_v46 = vld [vmem:[#allocation6 + $0xa8] sm:$0xff] }
 0xcec   :  { %3867 = vmatpush.msra.mxu3 %v3616_v46  ;;  %v3676_v46 = vld [vmem:[#allocation6 + $0x288] sm:$0xff] }
 0xced   :  { %v3499_v38 = vrot.slane %v3498_v3, 2 }
 0xcef   :  { %v3500_v24 = vadd.f32 %v3499_v38, %v3498_v3  ;;  %v3617_v3 = vld [vmem:[#allocation6 + $0xb0] sm:$0xff]  ;;  %v3611_v38 = vld [vmem:[#allocation6 + $0x80] sm:$0xff] }
 0xcf0   :  { %3927 = vmatpush.msrb.mxu2 %v3617_v3  ;;  %3808 = vmatpush.msra.mxu0 %v3611_v38  ;;  %v3671_v3 = vld [vmem:[#allocation6 + $0x260] sm:$0xff]  ;;  %v3672_v38 = vld [vmem:[#allocation6 + $0x268] sm:$0xff] }
 0xcf1   :  { %v3501_v35 = vrot.slane %v3500_v24, 1 }
 0xcf3   :  { %v3502_v12 = vadd.f32 %v3501_v35, %v3500_v24  ;;  %v3612_v24 = vld [vmem:[#allocation6 + $0x88] sm:$0xff]  ;;  %v3613_v35 = vld [vmem:[#allocation6 + $0x90] sm:$0xff] }
 0xcf4   :  { %3868 = vmatpush.msra.mxu3 %v3612_v24  ;;  %3928 = vmatpush.msrb.mxu2 %v3613_v35  ;;  %v3689_v24 = vld [vmem:[#allocation6 + $0x2f0] sm:$0xff]  ;;  %v3667_v35 = vld [vmem:[#allocation6 + $0x240] sm:$0xff] }
 0xcf5   :  { %4359 = vrcp.f32 %v3502_v12  ;;  %v3514_v59 = vand.u32 2147483648, %v3502_v12  ;;  %v3512_v62 = vand.u32 2147483647, %v3502_v12  ;;  %vm3508_vm4 = vweird.f32 %v3502_v12 }
 0xcf6   :  { %3929 = vmatpush.msrb.mxu2 %v3609_v41  ;;  %v3663_v41 = vld [vmem:[#allocation6 + $0x220] sm:$0xff] }
 0xcf7   :  { %v3515_v17 = vor.u32 1.1754944e-38, %v3514_v59  ;;  %vm3513_vm6 = vcmp.eq.f32.partialorder %v3512_v62, 8.507059e+37  ;;  %v3597_v59 = vld [vmem:[#allocation6 + $0x10] sm:$0xff]  ;;  %v3716_v62 = vld [vmem:[#allocation6 + $0x3c8] sm:$0xff] }
 0xcfb   :  { %v4360_v0 = vpop.eup %4359 }
 0xcfc   :  { %v3504_v31 = vmul.f32 %v4360_v0, %v3502_v12  ;;  %vm3509_vm3 = vweird.f32 %v4360_v0  ;;  %v3607_v12 = vld [vmem:[#allocation6 + $0x60] sm:$0xff] }
 0xcfd   :  { %vm3510_vm5 = vmor %vm3508_vm4, %vm3509_vm3  ;;  %3809 = vmatpush.msra.mxu0 %v3607_v12  ;;  %v3668_v12 = vld [vmem:[#allocation6 + $0x248] sm:$0xff] }
 0xcfe   :  { %v3505_v58 = vsub.f32 1.0, %v3504_v31  ;;  %v3605_v31 = vld [vmem:[#allocation6 + $0x50] sm:$0xff] }
 0xcff   :  { %3810 = vmatpush.msra.mxu0 %v3603_v48  ;;  %3930 = vmatpush.msrb.mxu2 %v3605_v31  ;;  %v3664_v48 = vld [vmem:[#allocation6 + $0x228] sm:$0xff]  ;;  %v3659_v31 = vld [vmem:[#allocation6 + $0x200] sm:$0xff] }
 0xd00   :  { %v3506_v61 = vmul.f32 %v4360_v0, %v3505_v58  ;;  %v3595_v58 = vld [vmem:[#allocation6] sm:$0xff] }
 0xd01   :  { %3811 = vmatpush.msra.mxu0 %v3599_v50  ;;  %3931 = vmatpush.msrb.mxu2 %v3601_v56  ;;  %v3677_v50 = vld [vmem:[#allocation6 + $0x290] sm:$0xff] }
 0xd02   :  { %v3507_v15 = vadd.f32 %v4360_v0, %v3506_v61  ;;  %v3715_v61 = vld [vmem:[#allocation6 + $0x3c0] sm:$0xff]  ;;  %v3785_v56 = vld [vmem:[#allocation6 + $0x5f0] sm:$0xff] }
 0xd03   :  { %3812 = vmatpush.msra.mxu0 %v3595_v58  ;;  %3932 = vmatpush.msrb.mxu2 %v3597_v59  ;;  %v3673_v58 = vld [vmem:[#allocation6 + $0x270] sm:$0xff]  ;;  %v3718_v59 = vld [vmem:[#allocation6 + $0x3d8] sm:$0xff] }
 0xd04   :  { %v3511_v8 = vsel %vm3510_vm5, %v4360_v0, %v3507_v15  ;;  %v3608_v0 = vld [vmem:[#allocation6 + $0x68] sm:$0xff]  ;;  %3818 = vmatpush.msra.mxu1 %v3715_v61  ;;  %v3707_v15 = vld [vmem:[#allocation6 + $0x380] sm:$0xff] }
 0xd05   :  { %v3516_v11 = vsel %vm3513_vm6, %v3515_v17, %v3511_v8  ;;  %3869 = vmatpush.msra.mxu3 %v3608_v0  ;;  %3877 = vmatpush.msrb.mxu0 %v3720_v5  ;;  %v3717_v17 = vld [vmem:[#allocation6 + $0x3d0] sm:$0xff]  ;;  %v3704_v8 = vld [vmem:[#allocation6 + $0x368] sm:$0xff] }
 0xd06   :  { %v6064_v22 = vmul.f32 %v4358_v21, %v3516_v11  ;;  %3819 = vmatpush.msra.mxu1 %v3711_v1  ;;  %v3699_v11 = vld [vmem:[#allocation6 + $0x340] sm:$0xff]  ;;  %v3685_v0 = vld [vmem:[#allocation6 + $0x2d0] sm:$0xff]  ;;  %v3776_v61 = vld [vmem:[#allocation6 + $0x5a8] sm:$0xff] }
 0xd07   :  { %3870 = vmatpush.msra.mxu3 %v3604_v23  ;;  %3878 = vmatpush.msrb.mxu0 %v3716_v62  ;;  %v3681_v23 = vld [vmem:[#allocation6 + $0x2b0] sm:$0xff]  ;;  %v3714_v1 = vld [vmem:[#allocation6 + $0x3b8] sm:$0xff] }
 0xd08   :  { %v3532_v20 = vperm.slane %v6064_v22, 2  ;;  %v3525_v32 = vperm.slane %v6064_v22, 1  ;;  %v3518_v33 = vperm.slane %v6064_v22, 0  ;;  %v3553_v44 = vperm.slane %v6064_v22, 5  ;;  %3820 = vmatpush.msra.mxu1 %v3707_v15  ;;  %v3669_v5 = vld [vmem:[#allocation6 + $0x250] sm:$0xff] }
 0xd09   :  { %v3539_v21 = vperm.slane %v6064_v22, 3  ;;  %v3546_v42 = vperm.slane %v6064_v22, 4  ;;  %v3560_v49 = vperm.slane %v6064_v22, 6  ;;  %v3567_v51 = vperm.slane %v6064_v22, 7  ;;  %3871 = vmatpush.msra.mxu3 %v3600_v7  ;;  %3879 = vmatpush.msrb.mxu0 %v3712_v14  ;;  %v3695_v22 = vld [vmem:[#allocation6 + $0x320] sm:$0xff]  ;;  %v3722_v7 = vld [vmem:[#allocation6 + $0x3f8] sm:$0xff] }
 0xd0a   :  { %3537 = vperm.xlu0 %4270, %v3532_v20   ;;  %3530 = vperm.xlu2 %4269, %v3525_v32   ;;  %v3691_v20 = vld [vmem:[#allocation6 + $0x300] sm:$0xff]  ;;  %v3692_v32 = vld [vmem:[#allocation6 + $0x308] sm:$0xff]  ;;  %v3777_v62 = vld [vmem:[#allocation6 + $0x5b0] sm:$0xff] }
 0xd0b   :  { %3523 = vperm.xlu1 %4271, %v3518_v33   ;;  %3872 = vmatpush.msra.mxu3 %v3596_v9  ;;  %v3687_v33 = vld [vmem:[#allocation6 + $0x2e0] sm:$0xff]  ;;  %v3780_v9 = vld [vmem:[#allocation6 + $0x5c8] sm:$0xff]  ;;  %v3665_v14 = vld [vmem:[#allocation6 + $0x230] sm:$0xff] }
 0xd0c   :  { %3880 = vmatpush.msrb.mxu0 %v3708_v16  ;;  %3821 = vmatpush.msra.mxu1 %v3703_v45  ;;  %v3773_v15 = vld [vmem:[#allocation6 + $0x590] sm:$0xff]  ;;  %v3710_v16 = vld [vmem:[#allocation6 + $0x398] sm:$0xff] }
 0xd0d   :  { %3937 = vmatpush.msrb.mxu3 %v3721_v10  ;;  %3997 = vmatpush.msra.mxu2 %v3722_v7  ;;  %v3772_v10 = vld [vmem:[#allocation6 + $0x588] sm:$0xff]  ;;  %v3769_v45 = vld [vmem:[#allocation6 + $0x570] sm:$0xff]  ;;  %v3670_v7 = vld [vmem:[#allocation6 + $0x258] sm:$0xff] }
 0xd0e   :  { %3881 = vmatpush.msrb.mxu0 %v3704_v8  ;;  %3822 = vmatpush.msra.mxu1 %v3699_v11  ;;  %v3706_v8 = vld [vmem:[#allocation6 + $0x378] sm:$0xff]  ;;  %v3764_v11 = vld [vmem:[#allocation6 + $0x548] sm:$0xff] }
 0xd0f   :  { %3938 = vmatpush.msrb.mxu3 %v3717_v17  ;;  %3998 = vmatpush.msra.mxu2 %v3718_v59  ;;  %v3661_v17 = vld [vmem:[#allocation6 + $0x210] sm:$0xff]  ;;  %v3666_v59 = vld [vmem:[#allocation6 + $0x238] sm:$0xff] }
 0xd10   :  { %3882 = vmatpush.msrb.mxu0 %v3700_v52  ;;  %3823 = vmatpush.msra.mxu1 %v3695_v22  ;;  %v3765_v52 = vld [vmem:[#allocation6 + $0x550] sm:$0xff]  ;;  %v3782_v22 = vld [vmem:[#allocation6 + $0x5d8] sm:$0xff] }
 0xd11   :  { %3939 = vmatpush.msrb.mxu3 %v3713_v54  ;;  %3999 = vmatpush.msra.mxu2 %v3714_v1  ;;  %v3768_v54 = vld [vmem:[#allocation6 + $0x568] sm:$0xff]  ;;  %v3742_v1 = vld [vmem:[#allocation6 + $0x498] sm:$0xff] }
 0xd12   :  { %3558 = vperm.xlu0 %4270, %v3553_v44   ;;  %3544 = vperm.xlu2 %4269, %v3539_v21   ;;  %v3697_v44 = vld [vmem:[#allocation6 + $0x330] sm:$0xff]  ;;  %v3675_v21 = vld [vmem:[#allocation6 + $0x280] sm:$0xff] }
 0xd13   :  { %3551 = vperm.xlu1 %4271, %v3546_v42   ;;  %3940 = vmatpush.msrb.mxu3 %v3709_v25  ;;  %v3693_v42 = vld [vmem:[#allocation6 + $0x310] sm:$0xff]  ;;  %v3786_v25 = vld [vmem:[#allocation6 + $0x5f8] sm:$0xff] }
 0xd14   :  { %3883 = vmatpush.msrb.mxu0 %v3696_v26  ;;  %3824 = vmatpush.msra.mxu1 %v3691_v20  ;;  %v3760_v26 = vld [vmem:[#allocation6 + $0x528] sm:$0xff]  ;;  %v3761_v20 = vld [vmem:[#allocation6 + $0x530] sm:$0xff] }
 0xd15   :  { %3941 = vmatpush.msrb.mxu3 %v3705_v47  ;;  %4000 = vmatpush.msra.mxu2 %v3710_v16  ;;  %v3702_v47 = vld [vmem:[#allocation6 + $0x358] sm:$0xff] }
 0xd16   :  { %3884 = vmatpush.msrb.mxu0 %v3692_v32  ;;  %3825 = vmatpush.msra.mxu1 %v3687_v33  ;;  %v3698_v32 = vld [vmem:[#allocation6 + $0x338] sm:$0xff] }
 0xd17   :  { %3942 = vmatpush.msrb.mxu3 %v3701_v19  ;;  %4001 = vmatpush.msra.mxu2 %v3706_v8  ;;  %v3778_v33 = vld [vmem:[#allocation6 + $0x5b8] sm:$0xff] }
 0xd18   :  { %3885 = vmatpush.msrb.mxu0 %v3688_v2  ;;  %3826 = vmatpush.msra.mxu1 %v3683_v29  ;;  %v3756_v2 = vld [vmem:[#allocation6 + $0x508] sm:$0xff]  ;;  %v3690_v19 = vld [vmem:[#allocation6 + $0x2f8] sm:$0xff] }
 0xd19   :  { %3943 = vmatpush.msrb.mxu3 %v3697_v44  ;;  %4002 = vmatpush.msra.mxu2 %v3702_v47  ;;  %v3752_v29 = vld [vmem:[#allocation6 + $0x4e8] sm:$0xff]  ;;  %v3749_v44 = vld [vmem:[#allocation6 + $0x4d0] sm:$0xff]  ;;  %v3730_v16 = vld [vmem:[#allocation6 + $0x438] sm:$0xff] }
 0xd1a   :  { %3565 = vperm.xlu2 %4269, %v3560_v49   ;;  %3886 = vmatpush.msrb.mxu0 %v3684_v36  ;;  %v3660_v49 = vld [vmem:[#allocation6 + $0x208] sm:$0xff]  ;;  %v3753_v36 = vld [vmem:[#allocation6 + $0x4f0] sm:$0xff] }
 0xd1b   :  { %3572 = vperm.xlu1 %4271, %v3567_v51   ;;  %3827 = vmatpush.msra.mxu1 %v3679_v39  ;;  %v3784_v51 = vld [vmem:[#allocation6 + $0x5e8] sm:$0xff]  ;;  %v3770_v39 = vld [vmem:[#allocation6 + $0x578] sm:$0xff] }
 0xd1c   :  { %3887 = vmatpush.msrb.mxu0 %v3680_v40  ;;  %3944 = vmatpush.msrb.mxu3 %v3693_v42  ;;  %v3748_v40 = vld [vmem:[#allocation6 + $0x4c8] sm:$0xff] }
 0xd1d   :  { %3828 = vmatpush.msra.mxu1 %v3675_v21  ;;  %4003 = vmatpush.msra.mxu2 %v3698_v32  ;;  %v3686_v21 = vld [vmem:[#allocation6 + $0x2d8] sm:$0xff]  ;;  %v3744_v42 = vld [vmem:[#allocation6 + $0x4a8] sm:$0xff] }
 0xd1e   :  { %3888 = vmatpush.msrb.mxu0 %v3676_v46  ;;  %3945 = vmatpush.msrb.mxu3 %v3689_v24  ;;  %v3766_v46 = vld [vmem:[#allocation6 + $0x558] sm:$0xff] }
 0xd1f   :  { %3829 = vmatpush.msra.mxu1 %v3671_v3  ;;  %v3745_v3 = vld [vmem:[#allocation6 + $0x4b0] sm:$0xff]  ;;  %v3762_v24 = vld [vmem:[#allocation6 + $0x538] sm:$0xff] }
 0xd20   :  { %3889 = vmatpush.msrb.mxu0 %v3672_v38  ;;  %3946 = vmatpush.msrb.mxu3 %v3685_v0  ;;  %v3682_v38 = vld [vmem:[#allocation6 + $0x2b8] sm:$0xff] }
 0xd21   :  { %3830 = vmatpush.msra.mxu1 %v3667_v35  ;;  %v3740_v35 = vld [vmem:[#allocation6 + $0x488] sm:$0xff]  ;;  %v3678_v0 = vld [vmem:[#allocation6 + $0x298] sm:$0xff] }
 0xd22   :  { %3890 = vmatpush.msrb.mxu0 %v3668_v12  ;;  %3947 = vmatpush.msrb.mxu3 %v3681_v23  ;;  %v3741_v12 = vld [vmem:[#allocation6 + $0x490] sm:$0xff] }
 0xd23   :  { %3831 = vmatpush.msra.mxu1 %v3663_v41  ;;  %v3758_v41 = vld [vmem:[#allocation6 + $0x518] sm:$0xff]  ;;  %v3737_v23 = vld [vmem:[#allocation6 + $0x470] sm:$0xff] }
 0xd24   :  { %3891 = vmatpush.msrb.mxu0 %v3664_v48  ;;  %3948 = vmatpush.msrb.mxu3 %v3677_v50  ;;  %v3736_v48 = vld [vmem:[#allocation6 + $0x468] sm:$0xff] }
 0xd25   :  { %3832 = vmatpush.msra.mxu1 %v3659_v31  ;;  %v3674_v31 = vld [vmem:[#allocation6 + $0x278] sm:$0xff]  ;;  %v3732_v50 = vld [vmem:[#allocation6 + $0x448] sm:$0xff] }
 0xd26   :  { %3892 = vmatpush.msrb.mxu0 %v3660_v49  ;;  %3949 = vmatpush.msrb.mxu3 %v3673_v58  ;;  %v3754_v49 = vld [vmem:[#allocation6 + $0x4f8] sm:$0xff]  ;;  %v3728_v58 = vld [vmem:[#allocation6 + $0x428] sm:$0xff] }
 0xd27   :  { %3897 = vmatpush.msrb.mxu1 %v3784_v51  ;;  %v3733_v51 = vld [vmem:[#allocation6 + $0x450] sm:$0xff] }
 0xd28   :  { %3950 = vmatpush.msrb.mxu3 %v3669_v5  ;;  %v3724_v5 = vld [vmem:[#allocation6 + $0x408] sm:$0xff] }
 0xd29   :  { %3898 = vmatpush.msrb.mxu1 %v3780_v9  ;;  %v3729_v9 = vld [vmem:[#allocation6 + $0x430] sm:$0xff] }
 0xd2a   :  { %3951 = vmatpush.msrb.mxu3 %v3665_v14  ;;  %v3738_v14 = vld [vmem:[#allocation6 + $0x478] sm:$0xff] }
 0xd2b   :  { %3899 = vmatpush.msrb.mxu1 %v3776_v61  ;;  %v3725_v61 = vld [vmem:[#allocation6 + $0x410] sm:$0xff] }
 0xd2c   :  { %3952 = vmatpush.msrb.mxu3 %v3661_v17  ;;  %v3726_v17 = vld [vmem:[#allocation6 + $0x418] sm:$0xff] }
 0xd2d   :  { %3900 = vmatpush.msrb.mxu1 %v3772_v10 }
 0xd2f   :  { %3901 = vmatpush.msrb.mxu1 %v3768_v54 }
 0xd31   :  { %3902 = vmatpush.msrb.mxu1 %v3764_v11 }
 0xd33   :  { %3903 = vmatpush.msrb.mxu1 %v3760_v26 }
 0xd35   :  { %3904 = vmatpush.msrb.mxu1 %v3756_v2 }
 0xd37   :  { %3905 = vmatpush.msrb.mxu1 %v3752_v29 }
 0xd39   :  { %3906 = vmatpush.msrb.mxu1 %v3748_v40  ;;  %v3646_v40 = vld [vmem:[#allocation6 + $0x198] sm:$0xff] }
 0xd3b   :  { %3907 = vmatpush.msrb.mxu1 %v3744_v42  ;;  %v3638_v42 = vld [vmem:[#allocation6 + $0x158] sm:$0xff] }
 0xd3d   :  { %3908 = vmatpush.msrb.mxu1 %v3740_v35  ;;  %v3630_v35 = vld [vmem:[#allocation6 + $0x118] sm:$0xff] }
 0xd3e   :  { %v3426_v57 = vpop.f32.mrf.mxu3 }
 0xd3f   :  { %v6077_v43 = vsel %vm3435_vm8, %v4254_v6, %v3426_v57  ;;  %v3694_v6 = vld [vmem:[#allocation6 + $0x318] sm:$0xff]  ;;  %3909 = vmatpush.msrb.mxu1 %v3736_v48  ;;  %v4110_v48 = vld [vmem:[%s6276_s7 + $0x30] sm:$0xff] }
 0xd40   :  { %3813 = vmatmul.f32.vlgmr.msra.gmra.mxu0 %v6077_v43  ;;  %3873 = vmatmul.f32.vlgmr.msra.gmra.mxu3 %v6077_v43  ;;  %v3774_v57 = vld [vmem:[#allocation6 + $0x598] sm:$0xff] }
 0xd41   :  { %3933 = vmatmul.f32.vlgmr.msrb.gmra.mxu2 %v6077_v43  ;;  %3957 = vmatpush.msra.mxu0 %v3785_v56  ;;  %v3750_v56 = vld [vmem:[#allocation6 + $0x4d8] sm:$0xff] }
 0xd42   :  { %4017 = vmatpush.msra.mxu3 %v3786_v25  ;;  %4004 = vmatpush.msra.mxu2 %v3694_v6 }
 0xd43   :  { %3958 = vmatpush.msra.mxu0 %v3781_v60  ;;  %3910 = vmatpush.msrb.mxu1 %v3732_v50  ;;  %v3746_v60 = vld [vmem:[#allocation6 + $0x4b8] sm:$0xff]  ;;  %v4108_v50 = vld [vmem:[%s6276_s7 + $0x20] sm:$0xff] }
 0xd44   :  { %4018 = vmatpush.msra.mxu3 %v3782_v22  ;;  %4005 = vmatpush.msra.mxu2 %v3690_v19 }
 0xd45   :  { %3959 = vmatpush.msra.mxu0 %v3777_v62  ;;  %3911 = vmatpush.msrb.mxu1 %v3728_v58  ;;  %v3662_v62 = vld [vmem:[#allocation6 + $0x218] sm:$0xff]  ;;  %v4106_v58 = vld [vmem:[%s6276_s7 + $0x10] sm:$0xff] }
 0xd46   :  { %4019 = vmatpush.msra.mxu3 %v3778_v33  ;;  %4006 = vmatpush.msra.mxu2 %v3686_v21  ;;  %v3642_v21 = vld [vmem:[#allocation6 + $0x178] sm:$0xff] }
 0xd47   :  { %3960 = vmatpush.msra.mxu0 %v3773_v15  ;;  %3912 = vmatpush.msrb.mxu1 %v3724_v5  ;;  %v3734_v15 = vld [vmem:[#allocation6 + $0x458] sm:$0xff]  ;;  %v4104_v5 = vld [vmem:[%s6276_s7] sm:$0xff] }
 0xd48   :  { %4020 = vmatpush.msra.mxu3 %v3774_v57  ;;  %4007 = vmatpush.msra.mxu2 %v3682_v38  ;;  %v3634_v38 = vld [vmem:[#allocation6 + $0x138] sm:$0xff] }
 0xd49   :  { %3961 = vmatpush.msra.mxu0 %v3769_v45 }
 0xd4a   :  { %4021 = vmatpush.msra.mxu3 %v3770_v39  ;;  %4008 = vmatpush.msra.mxu2 %v3678_v0  ;;  %v3658_v39 = vld [vmem:[#allocation6 + $0x1f8] sm:$0xff] }
 0xd4b   :  { %3962 = vmatpush.msra.mxu0 %v3765_v52  ;;  %v3626_v0 = vld [vmem:[#allocation6 + $0xf8] sm:$0xff] }
 0xd4c   :  { %4022 = vmatpush.msra.mxu3 %v3766_v46  ;;  %4009 = vmatpush.msra.mxu2 %v3674_v31  ;;  %v4115_v46 = vld [vmem:[%s6276_s7 + $0x58] sm:$0xff]  ;;  %v4109_v31 = vld [vmem:[%s6276_s7 + $0x28] sm:$0xff] }
 0xd4d   :  { %3963 = vmatpush.msra.mxu0 %v3761_v20 }
 0xd4e   :  { %4023 = vmatpush.msra.mxu3 %v3762_v24  ;;  %4010 = vmatpush.msra.mxu2 %v3670_v7  ;;  %v4113_v24 = vld [vmem:[%s6276_s7 + $0x48] sm:$0xff]  ;;  %v4107_v7 = vld [vmem:[%s6276_s7 + $0x18] sm:$0xff] }
 0xd4f   :  { %3964 = vmatpush.msra.mxu0 %v3757_v27 }
 0xd50   :  { %4024 = vmatpush.msra.mxu3 %v3758_v41  ;;  %4011 = vmatpush.msra.mxu2 %v3666_v59  ;;  %v3622_v41 = vld [vmem:[#allocation6 + $0xd8] sm:$0xff]  ;;  %v4105_v59 = vld [vmem:[%s6276_s7 + $0x8] sm:$0xff] }
 0xd51   :  { %3965 = vmatpush.msra.mxu0 %v3753_v36 }
 0xd52   :  { %4025 = vmatpush.msra.mxu3 %v3754_v49  ;;  %4012 = vmatpush.msra.mxu2 %v3662_v62  ;;  %v3614_v49 = vld [vmem:[#allocation6 + $0x98] sm:$0xff]  ;;  %v4134_v62 = vld [vmem:[%s6276_s7 + $0xf0] sm:$0xff] }
 0xd53   :  { %3966 = vmatpush.msra.mxu0 %v3749_v44  ;;  %v4116_v44 = vld [vmem:[%s6276_s7 + $0x60] sm:$0xff] }
 0xd54   :  { %4026 = vmatpush.msra.mxu3 %v3750_v56  ;;  %v3606_v56 = vld [vmem:[#allocation6 + $0x58] sm:$0xff] }
 0xd55   :  { %3967 = vmatpush.msra.mxu0 %v3745_v3  ;;  %v4114_v3 = vld [vmem:[%s6276_s7 + $0x50] sm:$0xff] }
 0xd56   :  { %4027 = vmatpush.msra.mxu3 %v3746_v60  ;;  %v3598_v60 = vld [vmem:[#allocation6 + $0x18] sm:$0xff] }
 0xd57   :  { %3968 = vmatpush.msra.mxu0 %v3741_v12  ;;  %v4112_v12 = vld [vmem:[%s6276_s7 + $0x40] sm:$0xff] }
 0xd58   :  { %4028 = vmatpush.msra.mxu3 %v3742_v1  ;;  %v4133_v1 = vld [vmem:[%s6276_s7 + $0xe8] sm:$0xff] }
 0xd59   :  { %3969 = vmatpush.msra.mxu0 %v3737_v23  ;;  %v3618_v23 = vld [vmem:[#allocation6 + $0xb8] sm:$0xff] }
 0xd5a   :  { %4029 = vmatpush.msra.mxu3 %v3738_v14  ;;  %v4132_v14 = vld [vmem:[%s6276_s7 + $0xe0] sm:$0xff] }
 0xd5b   :  { %3970 = vmatpush.msra.mxu0 %v3733_v51  ;;  %v3610_v51 = vld [vmem:[#allocation6 + $0x78] sm:$0xff] }
 0xd5c   :  { %4030 = vmatpush.msra.mxu3 %v3734_v15  ;;  %v4129_v15 = vld [vmem:[%s6276_s7 + $0xc8] sm:$0xff] }
 0xd5d   :  { %3971 = vmatpush.msra.mxu0 %v3729_v9  ;;  %v3602_v9 = vld [vmem:[#allocation6 + $0x38] sm:$0xff] }
 0xd5e   :  { %4031 = vmatpush.msra.mxu3 %v3730_v16  ;;  %v4128_v16 = vld [vmem:[%s6276_s7 + $0xc0] sm:$0xff] }
 0xd5f   :  { %3972 = vmatpush.msra.mxu0 %v3725_v61  ;;  %v4135_v61 = vld [vmem:[%s6276_s7 + $0xf8] sm:$0xff] }
 0xd60   :  { %4032 = vmatpush.msra.mxu3 %v3726_v17  ;;  %v4127_v17 = vld [vmem:[%s6276_s7 + $0xb8] sm:$0xff] }
 0xd64   :  { %v3531_v10 = vpop.permute.xlu2 %3530 }
 0xd65   :  { %v3575_v8 = vmul.f32 %v5962_v34, %v3531_v10  ;;  %v4131_v10 = vld [vmem:[%s6276_s7 + $0xd8] sm:$0xff] }
 0xd6c   :  { %v3545_v11 = vpop.permute.xlu2 %3544 }
 0xd6d   :  { %v3577_v26 = vmul.f32 %v5940_v13, %v3545_v11  ;;  %v4119_v13 = vld [vmem:[%s6276_s7 + $0x78] sm:$0xff]  ;;  %v4122_v11 = vld [vmem:[%s6276_s7 + $0x90] sm:$0xff] }
 0xd74   :  { %v3566_v57 = vpop.permute.xlu2 %3565 }
 0xd75   :  { %v3580_v34 = vmul.f32 %v5947_v28, %v3566_v57  ;;  %v4118_v28 = vld [vmem:[%s6276_s7 + $0x70] sm:$0xff] }
 0xd7c   :  { %v3538_v54 = vpop.permute.xlu0 %3537 }
 0xd7d   :  { %v3524_v45 = vpop.permute.xlu1 %3523  ;;  %v3576_v52 = vmul.f32 %v6011_v53, %v3538_v54  ;;  %v4126_v54 = vld [vmem:[%s6276_s7 + $0xb0] sm:$0xff] }
 0xd7e   :  { %v3574_v25 = vmul.f32 %v5932_v18, %v3524_v45  ;;  %v4125_v45 = vld [vmem:[%s6276_s7 + $0xa8] sm:$0xff] }
 0xd80   :  { %v3582_v47 = vadd.f32 %v3575_v8, %v3574_v25  ;;  %v4124_v8 = vld [vmem:[%s6276_s7 + $0xa0] sm:$0xff]  ;;  %v4123_v25 = vld [vmem:[%s6276_s7 + $0x98] sm:$0xff] }
 0xd82   :  { %v3583_v22 = vadd.f32 %v3582_v47, %v3576_v52  ;;  %v4121_v52 = vld [vmem:[%s6276_s7 + $0x88] sm:$0xff]  ;;  %v4120_v47 = vld [vmem:[%s6276_s7 + $0x80] sm:$0xff] }
 0xd84   :  { %v3559_v20 = vpop.permute.xlu0 %3558  ;;  %v3584_v33 = vadd.f32 %v3583_v22, %v3577_v26  ;;  %v6201_v22 = vld [vmem:[%s6275_s6] sm:$0xf] }
 0xd85   :  { %v3552_v32 = vpop.permute.xlu1 %3551  ;;  %v3579_v27 = vmul.f32 %v6030_v30, %v3559_v20  ;;  %v4117_v30 = vld [vmem:[%s6276_s7 + $0x68] sm:$0xff]  ;;  %v3789_v26 = vperm.slane %v6201_v22, 0 }
 0xd86   :  { %v3578_v2 = vmul.f32 %v5969_v37, %v3552_v32  ;;  %v3654_v37 = vld [vmem:[#allocation6 + $0x1d8] sm:$0xff] }
 0xd88   :  { %v3585_v6 = vadd.f32 %v3584_v33, %v3578_v2  ;;  %v3790_v2 = vperm.slane %v6201_v22, 1 }
 0xd8a   :  { %v3586_v29 = vadd.f32 %v3585_v6, %v3579_v27  ;;  %v3854_v6 = vpop.f32.mrf.mxu2 }
 0xd8c   :  { %v3587_v36 = vadd.f32 %v3586_v29, %v3580_v34 }
 0xd8d   :  { %v3573_v18 = vpop.permute.xlu1 %3572 }
 0xd8e   :  { %v3581_v53 = vmul.f32 %v5976_v4, %v3573_v18  ;;  %v3650_v4 = vld [vmem:[#allocation6 + $0x1b8] sm:$0xff] }
 0xd90   :  { %v6090_v19 = vadd.f32 %v3587_v36, %v3581_v53  ;;  %v4151_v53 = vld [vmem:[%s6276_s7 + $0x178] sm:$0xff] }
 0xd91   :  { %4196 = vmatpush.msrb.mxu2 %v4151_v53 }
 0xd92   :  { %3833 = vmatmul.f32.vlgmr.msra.gmra.mxu1 %v6090_v19  ;;  %3893 = vmatmul.f32.vlgmr.msrb.gmra.mxu0 %v6090_v19 }
 0xd93   :  { %3953 = vmatmul.f32.vlgmr.msrb.gmra.mxu3 %v6090_v19  ;;  %3977 = vmatpush.msra.mxu1 %v3658_v39 }
 0xd94   :  { %4013 = vmatmul.f32.vlgmr.msra.gmra.mxu2 %v6090_v19  ;;  %4156 = vmatpush.msrb.mxu0 %v4119_v13  ;;  %v4150_v13 = vld [vmem:[%s6276_s7 + $0x170] sm:$0xff] }
 0xd95   :  { %3978 = vmatpush.msra.mxu1 %v3654_v37  ;;  %4197 = vmatpush.msrb.mxu2 %v4150_v13 }
 0xd96   :  { %4157 = vmatpush.msrb.mxu0 %v4118_v28  ;;  %v4149_v28 = vld [vmem:[%s6276_s7 + $0x168] sm:$0xff] }
 0xd97   :  { %3979 = vmatpush.msra.mxu1 %v3650_v4  ;;  %4198 = vmatpush.msrb.mxu2 %v4149_v28 }
 0xd98   :  { %4158 = vmatpush.msrb.mxu0 %v4117_v30  ;;  %v4148_v30 = vld [vmem:[%s6276_s7 + $0x160] sm:$0xff] }
 0xd99   :  { %3980 = vmatpush.msra.mxu1 %v3646_v40  ;;  %4199 = vmatpush.msrb.mxu2 %v4148_v30  ;;  %v4147_v40 = vld [vmem:[%s6276_s7 + $0x158] sm:$0xff] }
 0xd9a   :  { %4159 = vmatpush.msrb.mxu0 %v4116_v44  ;;  %3913 = vmatmul.f32.vlgmr.msrb.gmra.mxu1 %v5926_v55 }
 0xd9b   :  { %3973 = vmatmul.f32.vlgmr.msra.gmra.mxu0 %v5926_v55  ;;  %3981 = vmatpush.msra.mxu1 %v3642_v21  ;;  %v4146_v21 = vld [vmem:[%s6276_s7 + $0x150] sm:$0xff] }
 0xd9c   :  { %4033 = vmatmul.f32.vlgmr.msra.gmra.mxu3 %v5926_v55  ;;  %4160 = vmatpush.msrb.mxu0 %v4115_v46  ;;  %v4111_v55 = vld [vmem:[%s6276_s7 + $0x38] sm:$0xff]  ;;  %v4145_v46 = vld [vmem:[%s6276_s7 + $0x148] sm:$0xff] }
 0xd9d   :  { %3982 = vmatpush.msra.mxu1 %v3638_v42  ;;  %4200 = vmatpush.msrb.mxu2 %v4147_v40  ;;  %v4144_v42 = vld [vmem:[%s6276_s7 + $0x140] sm:$0xff] }
 0xd9e   :  { %4161 = vmatpush.msrb.mxu0 %v4114_v3 }
 0xd9f   :  { %3983 = vmatpush.msra.mxu1 %v3634_v38  ;;  %4201 = vmatpush.msrb.mxu2 %v4146_v21 }
 0xda0   :  { %4162 = vmatpush.msrb.mxu0 %v4113_v24 }
 0xda1   :  { %3984 = vmatpush.msra.mxu1 %v3630_v35  ;;  %4202 = vmatpush.msrb.mxu2 %v4145_v46  ;;  %v4143_v35 = vld [vmem:[%s6276_s7 + $0x138] sm:$0xff] }
 0xda2   :  { %4163 = vmatpush.msrb.mxu0 %v4112_v12  ;;  %v4142_v12 = vld [vmem:[%s6276_s7 + $0x130] sm:$0xff] }
 0xda3   :  { %3985 = vmatpush.msra.mxu1 %v3626_v0  ;;  %4203 = vmatpush.msrb.mxu2 %v4144_v42  ;;  %v4141_v0 = vld [vmem:[%s6276_s7 + $0x128] sm:$0xff] }
 0xda4   :  { %4164 = vmatpush.msrb.mxu0 %v4111_v55 }
 0xda5   :  { %3986 = vmatpush.msra.mxu1 %v3622_v41  ;;  %4204 = vmatpush.msrb.mxu2 %v4143_v35 }
 0xda6   :  { %4165 = vmatpush.msrb.mxu0 %v4110_v48  ;;  %v4140_v48 = vld [vmem:[%s6276_s7 + $0x120] sm:$0xff] }
 0xda7   :  { %3987 = vmatpush.msra.mxu1 %v3618_v23  ;;  %4205 = vmatpush.msrb.mxu2 %v4142_v12 }
 0xda8   :  { %4166 = vmatpush.msrb.mxu0 %v4109_v31  ;;  %v4139_v31 = vld [vmem:[%s6276_s7 + $0x118] sm:$0xff] }
 0xda9   :  { %3988 = vmatpush.msra.mxu1 %v3614_v49  ;;  %4206 = vmatpush.msrb.mxu2 %v4141_v0 }
 0xdaa   :  { %4167 = vmatpush.msrb.mxu0 %v4108_v50  ;;  %v3792_v50 = vperm.slane %v6201_v22, 3 }
 0xdab   :  { %3989 = vmatpush.msra.mxu1 %v3610_v51  ;;  %4207 = vmatpush.msrb.mxu2 %v4140_v48 }
 0xdac   :  { %4168 = vmatpush.msrb.mxu0 %v4107_v7 }
 0xdad   :  { %3990 = vmatpush.msra.mxu1 %v3606_v56  ;;  %4208 = vmatpush.msrb.mxu2 %v4139_v31 }
 0xdae   :  { %4169 = vmatpush.msrb.mxu0 %v4106_v58  ;;  %v4138_v58 = vld [vmem:[%s6276_s7 + $0x110] sm:$0xff] }
 0xdaf   :  { %3991 = vmatpush.msra.mxu1 %v3602_v9  ;;  %v3791_v9 = vperm.slane %v6201_v22, 2  ;;  %4209 = vmatpush.msrb.mxu2 %v4138_v58 }
 0xdb0   :  { %4170 = vmatpush.msrb.mxu0 %v4105_v59 }
 0xdb1   :  { %3992 = vmatpush.msra.mxu1 %v3598_v60  ;;  %v4137_v60 = vld [vmem:[%s6276_s7 + $0x108] sm:$0xff] }
 0xdb2   :  { %4171 = vmatpush.msrb.mxu0 %v4104_v5  ;;  %3993 = vmatmul.f32.vlgmr.msra.gmra.mxu1 %v6077_v43 }
 0xdb3   :  { %4172 = vmatmul.f32.vlgmr.msrb.gmra.mxu0 %v6077_v43  ;;  %4176 = vmatpush.msrb.mxu1 %v4135_v61  ;;  %v4130_v43 = vld [vmem:[%s6276_s7 + $0xd0] sm:$0xff] }
 0xdb4   :  { %4210 = vmatpush.msrb.mxu2 %v4137_v60 }
 0xdb5   :  { %4177 = vmatpush.msrb.mxu1 %v4134_v62  ;;  %v4136_v62 = vld [vmem:[%s6276_s7 + $0x100] sm:$0xff] }
 0xdb6   :  { %4211 = vmatpush.msrb.mxu2 %v4136_v62 }
 0xdb7   :  { %4178 = vmatpush.msrb.mxu1 %v4133_v1 }
 0xdb9   :  { %4179 = vmatpush.msrb.mxu1 %v4132_v14 }
 0xdbb   :  { %4180 = vmatpush.msrb.mxu1 %v4131_v10 }
 0xdbd   :  { %4181 = vmatpush.msrb.mxu1 %v4130_v43  ;;  %v3814_v20 = vpop.f32.mrf.mxu0 }
 0xdbe   :  { %v3815_v32 = vadd.f32 %v3814_v20, %v3789_v26 }
 0xdbf   :  { %4182 = vmatpush.msrb.mxu1 %v4129_v15 }
 0xdc1   :  { %4183 = vmatpush.msrb.mxu1 %v4128_v16 }
 0xdc3   :  { %4184 = vmatpush.msrb.mxu1 %v4127_v17  ;;  %v3874_v57 = vpop.f32.mrf.mxu3 }
 0xdc4   :  { %v3875_v18 = vadd.f32 %v3874_v57, %v3790_v2  ;;  %v3934_v55 = vpop.f32.mrf.mxu2 }
 0xdc5   :  { %4185 = vmatpush.msrb.mxu1 %v4126_v54  ;;  %v3935_v43 = vadd.f32 %v3934_v55, %v3791_v9 }
 0xdc7   :  { %4186 = vmatpush.msrb.mxu1 %v4125_v45 }
 0xdc9   :  { %4187 = vmatpush.msrb.mxu1 %v4124_v8 }
 0xdcb   :  { %4188 = vmatpush.msrb.mxu1 %v4123_v25 }
 0xdcd   :  { %4189 = vmatpush.msrb.mxu1 %v4122_v11 }
 0xdcf   :  { %4190 = vmatpush.msrb.mxu1 %v4121_v52 }
 0xdd1   :  { %4191 = vmatpush.msrb.mxu1 %v4120_v47 }
 0xdd2   :  { %4192 = vmatmul.f32.vlgmr.msrb.gmra.mxu1 %v6090_v19 }
 0xe0f   :  { %v3834_v33 = vpop.f32.mrf.mxu1  ;;  %v3894_v34 = vpop.f32.mrf.mxu0 }
 0xe10   :  { %v3835_v27 = vadd.f32 %v3834_v33, %v3815_v32  ;;  %v3895_v19 = vadd.f32 %v3894_v34, %v3875_v18 }
 0xe12   :  { %v3855_v29 = vadd.f32 %v3854_v6, %v3835_v27 }
 0xe14   :  { %v4255_v36 = vmul.f32 -1.442695, %v3855_v29 }
 0xe16   :  { %4361 = vpow2.f32 %v4255_v36  ;;  %v3954_v41 = vpop.f32.mrf.mxu3 }
 0xe17   :  { %v3914_v39 = vpop.f32.mrf.mxu1  ;;  %v4014_v5 = vpop.f32.mrf.mxu2  ;;  %v3955_v17 = vadd.f32 %v3954_v41, %v3935_v43 }
 0xe18   :  { %v3915_v37 = vadd.f32 %v3914_v39, %v3895_v19  ;;  %v3974_v45 = vpop.f32.mrf.mxu0 }
 0xe19   :  { %v3975_v52 = vadd.f32 %v3974_v45, %v3955_v17 }
 0xe1a   :  { %v4256_v4 = vmul.f32 -1.442695, %v3915_v37 }
 0xe1c   :  { %4363 = vpow2.f32 %v4256_v4  ;;  %v4362_v44 = vpop.eup %4361 }
 0xe1d   :  { %v6229_v38 = vadd.f32 1.0, %v4362_v44 }
 0xe1f   :  { %v4034_v10 = vpop.f32.mrf.mxu3  ;;  %v4052_v26 = vand.u32 2147483648, %v6229_v38  ;;  %vm4046_vm11 = vweird.f32 %v6229_v38  ;;  %v4050_v20 = vand.u32 2147483647, %v6229_v38 }
 0xe21   :  { %v4053_v57 = vor.u32 1.1754944e-38, %v4052_v26  ;;  %vm4051_vm14 = vcmp.eq.f32.partialorder %v4050_v20, 8.507059e+37 }
 0xe22   :  { %v4364_v3 = vpop.eup %4363 }
 0xe23   :  { %v4059_v24 = vadd.f32 1.0, %v4364_v3  ;;  %v4276_v3 = vld [vmem:[%s6277_s8] ss:$0 sm:$0xff] }
 0xe25   :  { %4365 = vrcp.f32 %v4059_v24  ;;  %v4071_v11 = vand.u32 2147483648, %v4059_v24  ;;  %vm4065_vm7 = vweird.f32 %v4059_v24  ;;  %v4069_v22 = vand.u32 2147483647, %v4059_v24 }
 0xe26   :  { %4367 = vrcp.f32 %v6229_v38 }
 0xe27   :  { %v4072_v2 = vor.u32 1.1754944e-38, %v4071_v11  ;;  %vm4070_vm12 = vcmp.eq.f32.partialorder %v4069_v22, 8.507059e+37 }
 0xe2b   :  { %v4366_v23 = vpop.eup %4365 }
 0xe2c   :  { %v4368_v49 = vpop.eup %4367  ;;  %v4061_v51 = vmul.f32 %v4366_v23, %v4059_v24  ;;  %vm4066_vm15 = vweird.f32 %v4366_v23 }
 0xe2d   :  { %v4042_v7 = vmul.f32 %v4368_v49, %v6229_v38  ;;  %vm4047_vm9 = vweird.f32 %v4368_v49  ;;  %vm4067_vm10 = vmor %vm4065_vm7, %vm4066_vm15 }
 0xe2e   :  { %v4062_v61 = vsub.f32 1.0, %v4061_v51  ;;  %vm4048_vm13 = vmor %vm4046_vm11, %vm4047_vm9 }
 0xe2f   :  { %v3994_v56 = vpop.f32.mrf.mxu1  ;;  %v4043_v14 = vsub.f32 1.0, %v4042_v7 }
 0xe30   :  { %v3995_v59 = vadd.f32 %v3994_v56, %v3792_v50  ;;  %v4063_v16 = vmul.f32 %v4366_v23, %v4062_v61  ;;  %v4173_v38 = vpop.f32.mrf.mxu0 }
 0xe31   :  { %v4044_v8 = vmul.f32 %v4368_v49, %v4043_v14  ;;  %v4174_v35 = vadd.f32 %v4276_v3, %v4173_v38 }
 0xe32   :  { %v4015_v1 = vadd.f32 %v4014_v5, %v3995_v59  ;;  %v4064_v25 = vadd.f32 %v4366_v23, %v4063_v16 }
 0xe33   :  { %v4045_v47 = vadd.f32 %v4368_v49, %v4044_v8 }
 0xe34   :  { %v4035_v15 = vadd.f32 %v4034_v10, %v4015_v1  ;;  %v4068_v32 = vsel %vm4067_vm10, %v4366_v23, %v4064_v25 }
 0xe35   :  { %v4049_v27 = vsel %vm4048_vm13, %v4368_v49, %v4045_v47  ;;  %v4073_v29 = vsel %vm4070_vm12, %v4072_v2, %v4068_v32 }
 0xe36   :  { %v4257_v54 = vmul.f32 -1.442695, %v4035_v15  ;;  %v4054_v34 = vsel %vm4051_vm14, %v4053_v57, %v4049_v27  ;;  %v4095_v18 = vmul.f32 %v4073_v29, %v5923_v63 }
 0xe38   :  { %4369 = vpow2.f32 %v4257_v54 }
 0xe39   :  { %4371 = vtanh.f32 %v3975_v52 }
 0xe3e   :  { %v4370_v33 = vpop.eup %4369 }
 0xe3f   :  { %v4079_v6 = vadd.f32 1.0, %v4370_v33  ;;  %v4372_v36 = vpop.eup %4371 }
 0xe40   :  { %v4096_v53 = vmul.f32 %v4372_v36, %v4054_v34 }
 0xe41   :  { %4373 = vrcp.f32 %v4079_v6  ;;  %v4091_v28 = vand.u32 2147483648, %v4079_v6  ;;  %v4089_v30 = vand.u32 2147483647, %v4079_v6  ;;  %vm4085_vm1 = vweird.f32 %v4079_v6 }
 0xe42   :  { %v4097_v39 = vadd.f32 %v4096_v53, %v4095_v18 }
 0xe43   :  { %v4092_v44 = vor.u32 1.1754944e-38, %v4091_v28  ;;  %vm4090_vm3 = vcmp.eq.f32.partialorder %v4089_v30, 8.507059e+37 }
 0xe44   :  { %4375 = vtanh.f32 %v4097_v39 }
 0xe47   :  { %v4374_v19 = vpop.eup %4373 }
 0xe48   :  { %v4081_v13 = vmul.f32 %v4374_v19, %v4079_v6  ;;  %vm4086_vm0 = vweird.f32 %v4374_v19 }
 0xe49   :  { %vm4087_vm2 = vmor %vm4085_vm1, %vm4086_vm0 }
 0xe4a   :  { %v4082_v37 = vsub.f32 1.0, %v4081_v13  ;;  %v4376_v46 = vpop.eup %4375 }
 0xe4c   :  { %v4083_v4 = vmul.f32 %v4374_v19, %v4082_v37 }
 0xe4e   :  { %v4084_v40 = vadd.f32 %v4374_v19, %v4083_v4 }
 0xe4f   :  { %v4193_v24 = vpop.f32.mrf.mxu1 }
 0xe50   :  { %v4088_v21 = vsel %vm4087_vm2, %v4374_v19, %v4084_v40  ;;  %v4194_v12 = vadd.f32 %v4193_v24, %v4174_v35 }
 0xe51   :  { %v4093_v42 = vsel %vm4090_vm3, %v4092_v44, %v4088_v21 }
 0xe52   :  { %v4099_v63 = vmul.f32 %v4376_v46, %v4093_v42 }
 0xe54   :  { %4212 = vmatmul.f32.vlgmr.msrb.gmra.mxu2 %v4099_v63 }
 0xed7   :  { %v4213_v0 = vpop.f32.mrf.mxu2 }
 0xed8   :  { %v4214_v55 = vadd.f32 %v4213_v0, %v4194_v12 }
 0xeda   :  { %4258 = vst [vmem:[%s6280_s11 + $0x20] sm:$0xff] %v4214_v55 }
 0xedb   :  { %4222 = vsyncpa [#allocation4], 1 }
 0xedc   :  { %4223 = vsyncpa [#allocation5], 1 }

</bundles_post_ra>
